<compile_context>
chip_gen: v5e
topology: v5e:2x2
jax: 0.10.0
libtpu: 0.0.40
codegen_flags: <defaults>
</compile_context>

<pallas_src>
import jax
import jax.numpy as jnp
import numpy as np
from jax.experimental import pallas as pl
from jax.experimental.pallas import tpu as pltpu

_EPS = 1e-5
_NCH = 64                          # conv1 output channels
_NTAP = 16                         # 3x3 = 9 taps, zero-padded to 16 (sublane-aligned MXU K)
_WEIGHT_BYTES_BUDGET = 16 << 20    # VMEM budget for double-buffered bf16 FC-weight blocks


def _num_tensorcores():
    """2 on v7x (two TensorCores share the 'parallel' axis), else 1 (v5e/v6e single TC)."""
    try:
        kind = jax.devices()[0].device_kind.lower()
    except Exception:
        return 1
    return 2 if "v7" in kind else 1


def _vmem_capacity_bytes():
    try:
        cap = getattr(pltpu.get_tpu_info(), "vmem_capacity_bytes", None)
        if cap:
            return int(cap)
    except Exception:
        pass
    return 64 << 20                # conservative fallback (v7x per-TensorCore VMEM)


def _pick_tk(d, tn):
    """Largest divisor of d (multiple of 128, or d itself) whose double-buffered bf16
    (tk, tn) weight block fits _WEIGHT_BYTES_BUDGET -> few, large, contiguous DMAs."""
    max_tk = max(128, _WEIGHT_BYTES_BUDGET // (2 * 2 * tn))
    if d <= max_tk or d % 128 != 0:
        return d
    t = (min(max_tk, d) // 128) * 128
    while t >= 128:
        if d % t == 0:
            return t
        t -= 128
    return d


def _vmem_estimate_bytes(hw, d, tk, tn):
    wfc = 2 * tk * tn * 2                                    # double-buffered bf16 weight blocks
    small = hw * 4 + _NCH * _NTAP * 4 + 4 * _NCH * 4 + 2 * (2 * tn * 4)
    scr = _NTAP * hw * 4 + d * 2                             # tap matrix + bf16 conv result
    conv = 3 * _NCH * hw * 4                                 # live f32 (64, HW) intermediates
    return wfc + small + scr + conv


def nn_forward(x, params, dimz, dimy, dimx):
    assert dimz == 1, "conv path of the original module only supports dimz == 1"
    H, W = dimy, dimx
    HW = H * W
    D = dimz * dimy * dimx            # == HW

    # ---- grid sizing: parallel axis = one output tile per TensorCore -------------------
    n_tiles = _num_tensorcores()
    if D % n_tiles != 0 or (n_tiles > 1 and (D // n_tiles) % 128 != 0):
        n_tiles = 1
    TN = D // n_tiles
    TK = _pick_tk(D, TN)
    k_tiles = D // TK

    vmem_cap = _vmem_capacity_bytes()
    vmem_est = _vmem_estimate_bytes(HW, D, TK, TN)
    assert vmem_est <= int(0.85 * vmem_cap), (
        f"VMEM estimate {vmem_est} B exceeds device VMEM {vmem_cap} B; "
        "tile the conv path over pixels for this problem size")
    vmem_limit = int(min(max(vmem_est + (8 << 20), 32 << 20), int(0.85 * vmem_cap)))

    xf = x[..., 0].astype(jnp.float32).reshape(1, HW)
    w1p = jnp.pad(params["w1"].astype(jnp.float32), ((0, 0), (0, _NTAP - 9)))   # (64, 16)

    def kernel(x_ref, w1_ref, b1_ref, g1_ref, be1_ref, w2_ref, c2_ref,
               wfc_ref, bfc_ref, out_ref, taps_scr, v_scr):
        k = pl.program_id(1)

        # -------- conv + BN path: runs once per core (k == 0), entirely in VMEM --------
        @pl.when(k == 0)
        def _():
            xv = x_ref[...]                                       # (1, HW) f32 flattened image
            idx = jax.lax.broadcasted_iota(jnp.int32, (1, HW), 1)
            if (W & (W - 1)) == 0:                                # row/col planes, in-register
                row = idx >> (int(W).bit_length() - 1)
                col = idx & (W - 1)
            else:
                # TODO(synk): non-power-of-two widths rely on Mosaic int-div lowering.
                row = idx // W
                col = idx - row * W
            inv_hw = 1.0 / HW

            # 3x3 taps (padding=1) as shifted / border-masked copies of the flattened image.
            taps_scr[...] = jnp.zeros_like(taps_scr)              # also zeroes the 7 pad rows
            for dy in (-1, 0, 1):
                for dx in (-1, 0, 1):
                    off = dy * W + dx
                    tap = pltpu.roll(xv, (-off) % HW, axis=1) if off else xv
                    if dy or dx:                                  # zero padding at the border
                        valid = ((row >= -dy) & (row < H - dy) &
                                 (col >= -dx) & (col < W - dx))
                        tap = jnp.where(valid, tap, 0.0)
                    kidx = (dy + 1) * 3 + (dx + 1)                # = ky*3 + kx (PyTorch order)
                    taps_scr[kidx:kidx + 1, :] = tap

            # conv1: single MXU matmul (64,16)@(16,HW) + bias + ReLU.
            a1 = jnp.dot(w1_ref[...], taps_scr[...], preferred_element_type=jnp.float32)
            a1 = jnp.maximum(a1 + b1_ref[...], 0.0)               # (64, HW)

            # BatchNorm2d(64): training-mode batch stats, two-pass variance.
            m1 = jnp.sum(a1, axis=1, keepdims=True) * inv_hw
            c1 = a1 - m1
            v1 = jnp.sum(c1 * c1, axis=1, keepdims=True) * inv_hw
            a1 = c1 * jax.lax.rsqrt(v1 + _EPS) * g1_ref[...] + be1_ref[...]

            # conv2: 1x1, 64 -> 1 on the MXU; scalars (bias, gamma, beta) from SMEM.
            a2 = jnp.dot(w2_ref[...], a1, preferred_element_type=jnp.float32)   # (1, HW)
            a2 = jnp.maximum(a2 + c2_ref[0], 0.0)
            m2 = jnp.sum(a2, axis=1, keepdims=True) * inv_hw
            cc = a2 - m2
            v2 = jnp.sum(cc * cc, axis=1, keepdims=True) * inv_hw
            vv = cc * jax.lax.rsqrt(v2 + _EPS) * c2_ref[1] + c2_ref[2]

            # lane-dense flattened FC input, cached once as bf16; init the FC accumulator.
            v_scr[...] = vv.astype(jnp.bfloat16)
            out_ref[...] = jnp.zeros_like(out_ref)

        # -------- tiled FC GEMV: (1,TK) @ (TK,TN), bf16 weights, f32 accumulation --------
        start = pl.multiple_of(k * TK, TK)
        out_ref[...] += jnp.dot(v_scr[:, pl.ds(start, TK)], wfc_ref[...],
                                preferred_element_type=jnp.float32)

        @pl.when(k == pl.num_programs(1) - 1)
        def _():
            y = out_ref[...] + bfc_ref[...]
            out_ref[...] = jnp.where(y >= 0.0, y, 0.01 * y)       # LeakyReLU(0.01)

    def _resident(shape):
        # whole (small) array, fetched once and kept VMEM-resident across the grid
        ndim = len(shape)
        return pl.BlockSpec(shape, lambda n, k: (0,) * ndim)

    grid_spec = pltpu.PrefetchScalarGridSpec(
        num_scalar_prefetch=0,
        grid=(n_tiles, k_tiles),
        in_specs=[
            _resident((1, HW)),            # flattened image
            _resident((_NCH, _NTAP)),      # conv1 weight (tap-padded)
            _resident((_NCH, 1)),          # conv1 bias
            _resident((_NCH, 1)),          # BN1 gamma
            _resident((_NCH, 1)),          # BN1 beta
            _resident((1, _NCH)),          # conv2 weight
            pl.BlockSpec(memory_space=pltpu.MemorySpace.SMEM),   # [conv2 bias, BN2 gamma, BN2 beta]
            pl.BlockSpec((TK, TN), lambda n, k: (k, n)),         # FC weight (bf16), streamed
            pl.BlockSpec((1, TN), lambda n, k: (0, n)),          # FC bias
        ],
        out_specs=pl.BlockSpec((1, TN), lambda n, k: (0, n)),
        scratch_shapes=[pltpu.VMEM((_NTAP, HW), jnp.float32),    # conv1 tap matrix
                        pltpu.VMEM((1, D), jnp.bfloat16)],       # conv output (lane-dense, bf16)
    )

    out = pl.pallas_call(
        kernel,
        out_shape=jax.ShapeDtypeStruct((1, D), jnp.float32),
        grid_spec=grid_spec,
        compiler_params=pltpu.CompilerParams(
            dimension_semantics=("parallel", "arbitrary"),
            vmem_limit_bytes=vmem_limit),
    )(xf, w1p, params["b1"], params["g1"], params["be1"],
      params["w2"], params["c2"], params["wfc"], params["bfc"])

    return out.reshape(dimz, dimy, dimx)


def nn_forward_ref(x, params, dimz, dimy, dimx):
    # Pure-JAX reference of the same forward semantics (f32 conv path, bf16 FC weights).
    H, W = dimy, dimx
    HW = H * W
    xpad = jnp.pad(x[..., 0].astype(jnp.float32), ((1, 1), (1, 1)))
    taps = jnp.stack([xpad[ky:ky + H, kx:kx + W].reshape(HW)
                      for ky in range(3) for kx in range(3)], axis=0)     # (9, HW)
    a1 = params["w1"] @ taps + params["b1"]
    a1 = jnp.maximum(a1, 0.0)
    m1 = a1.mean(axis=1, keepdims=True)
    v1 = jnp.square(a1 - m1).mean(axis=1, keepdims=True)
    a1 = (a1 - m1) / jnp.sqrt(v1 + _EPS) * params["g1"] + params["be1"]
    a2 = params["w2"] @ a1 + params["c2"][0]
    a2 = jnp.maximum(a2, 0.0)
    m2 = a2.mean()
    v2 = jnp.square(a2 - m2).mean()
    v = (a2 - m2) / jnp.sqrt(v2 + _EPS) * params["c2"][1] + params["c2"][2]
    y = jnp.dot(v.astype(jnp.bfloat16), params["wfc"],
                preferred_element_type=jnp.float32) + params["bfc"]
    y = jnp.where(y >= 0.0, y, 0.01 * y)
    return y.reshape(dimz, dimy, dimx)


def make_params(dimz, dimy, dimx, key):
    D = dimz * dimy * dimx
    k1, k2, k3, k4, k5, k6 = jax.random.split(key, 6)
    # PyTorch layouts: conv1 weight (64,1,3,3), conv2 weight (1,64,1,1), fc weight (D_out, D_in).
    w_conv1 = jax.random.normal(k1, (_NCH, 1, 3, 3), jnp.float32) * 0.2
    b_conv1 = jax.random.normal(k2, (_NCH,), jnp.float32) * 0.1
    w_conv2 = jax.random.normal(k3, (1, _NCH, 1, 1), jnp.float32) * 0.2
    b_conv2 = jax.random.normal(k4, (1,), jnp.float32) * 0.1
    w_fc = jax.random.normal(k5, (D, D), jnp.float32) * (1.0 / np.sqrt(D))
    b_fc = jax.random.normal(k6, (D,), jnp.float32) * 0.1
    return {
        "w1": w_conv1.reshape(_NCH, 9),                 # (64, 9), tap index = ky*3 + kx
        "b1": b_conv1.reshape(_NCH, 1),
        "g1": jnp.ones((_NCH, 1), jnp.float32),         # BN1 gamma init = 1
        "be1": jnp.zeros((_NCH, 1), jnp.float32),       # BN1 beta init = 0
        "w2": w_conv2.reshape(1, _NCH),
        "c2": jnp.concatenate([b_conv2,
                               jnp.ones((1,), jnp.float32),
                               jnp.zeros((1,), jnp.float32)]),   # [bias2, gamma2, beta2] -> SMEM
        "wfc": w_fc.T.astype(jnp.bfloat16),             # (D_in, D_out), bf16 halves HBM traffic
        "bfc": b_fc.reshape(1, D),
    }


if __name__ == "__main__":
    dimz, dimy, dimx = 1, 32, 32      # D = 1024 -> single contiguous bf16 weight slab per core
    key = jax.random.PRNGKey(0)
    kx_, kp_ = jax.random.split(key)

    x = jax.random.normal(kx_, (dimy, dimx, 1), jnp.float32)
    params = make_params(dimz, dimy, dimx, kp_)

    y = nn_forward(x, params, dimz, dimy, dimx)
    y = jax.block_until_ready(y)

    y_ref = nn_forward_ref(x, params, dimz, dimy, dimx)
    np.testing.assert_allclose(np.asarray(y), np.asarray(y_ref), rtol=5e-3, atol=5e-3)
    assert y.shape == (dimz, dimy, dimx)

    print("KERNEL_OK")
</pallas_src>

<mosaic_0001>
module attributes {stable_mosaic.version = 11 : i64} {
  func.func @kernel(%arg0: i32, %arg1: i32, %arg2: memref<1x1024xf32, #tpu.memory_space<vmem>>, %arg3: memref<64x16xf32, #tpu.memory_space<vmem>>, %arg4: memref<64x1xf32, #tpu.memory_space<vmem>>, %arg5: memref<64x1xf32, #tpu.memory_space<vmem>>, %arg6: memref<64x1xf32, #tpu.memory_space<vmem>>, %arg7: memref<1x64xf32, #tpu.memory_space<vmem>>, %arg8: memref<3xf32, #tpu.memory_space<smem>>, %arg9: memref<1024x1024xbf16, #tpu.memory_space<vmem>>, %arg10: memref<1x1024xf32, #tpu.memory_space<vmem>>, %arg11: memref<1x1024xf32, #tpu.memory_space<vmem>>, %arg12: memref<16x1024xf32, #tpu.memory_space<vmem>>, %arg13: memref<1x1024xbf16, #tpu.memory_space<vmem>>) attributes {dimension_semantics = [#tpu.dimension_semantics<parallel>, #tpu.dimension_semantics<arbitrary>], iteration_bounds = array<i64: 1, 1>, scalar_prefetch = 0 : i64, scratch_operands = 2 : i64, tpu.core_type = #tpu.core_type<tc>, window_params = [{pipeline_mode = #tpu.pipeline_mode<synchronous>, transform_indices = @transform_0, window_bounds = array<i64: 1, 1024>}, {pipeline_mode = #tpu.pipeline_mode<synchronous>, transform_indices = @transform_1, window_bounds = array<i64: 64, 16>}, {pipeline_mode = #tpu.pipeline_mode<synchronous>, transform_indices = @transform_2, window_bounds = array<i64: 64, 1>}, {pipeline_mode = #tpu.pipeline_mode<synchronous>, transform_indices = @transform_3, window_bounds = array<i64: 64, 1>}, {pipeline_mode = #tpu.pipeline_mode<synchronous>, transform_indices = @transform_4, window_bounds = array<i64: 64, 1>}, {pipeline_mode = #tpu.pipeline_mode<synchronous>, transform_indices = @transform_5, window_bounds = array<i64: 1, 64>}, {transform_indices = @transform_6, window_bounds = array<i64: 3>}, {transform_indices = @transform_7, window_bounds = array<i64: 1024, 1024>}, {transform_indices = @transform_8, window_bounds = array<i64: 1, 1024>}, {transform_indices = @transform_9, window_bounds = array<i64: 1, 1024>}]} {
    %c0_i32 = arith.constant 0 : i32
    %0 = arith.cmpi eq, %arg1, %c0_i32 : i32
    %1 = arith.extui %0 : i1 to i32
    %c0_i32_0 = arith.constant 0 : i32
    %2 = arith.cmpi ne, %1, %c0_i32_0 : i32
    scf.if %2 {
      %c0_9 = arith.constant 0 : index
      %c0_10 = arith.constant 0 : index
      %15 = vector.load %arg2[%c0_9, %c0_10] : memref<1x1024xf32, #tpu.memory_space<vmem>>, vector<1x1024xf32>
      %16 = tpu.iota {dimensions = array<i32: 1>} : vector<1x1024xi32>
      %c5_i32 = arith.constant 5 : i32
      %17 = vector.broadcast %c5_i32 : i32 to vector<1x1024xi32>
      %18 = arith.shrsi %16, %17 : vector<1x1024xi32>
      %c31_i32 = arith.constant 31 : i32
      %19 = vector.broadcast %c31_i32 : i32 to vector<1x1024xi32>
      %20 = arith.andi %16, %19 : vector<1x1024xi32>
      %cst_11 = arith.constant 0.000000e+00 : f32
      %21 = vector.broadcast %cst_11 : f32 to vector<16x1024xf32>
      %c0_12 = arith.constant 0 : index
      %c0_13 = arith.constant 0 : index
      %22 = vector.load %arg12[%c0_12, %c0_13] : memref<16x1024xf32, #tpu.memory_space<vmem>>, vector<16x1024xf32>
      tpu.vector_store %arg12[%c0_12, %c0_13], %21 {strides = array<i32>} : memref<16x1024xf32, #tpu.memory_space<vmem>>, vector<16x1024xf32>,
      %c33_i32 = arith.constant 33 : i32
      %23 = tpu.dynamic_rotate %15 by %c33_i32 dim 1 : vector<1x1024xf32>, i32 -> vector<1x1024xf32>
      %c1_i32 = arith.constant 1 : i32
      %24 = vector.broadcast %c1_i32 : i32 to vector<1x1024xi32>
      %25 = arith.cmpi sge, %18, %24 : vector<1x1024xi32>
      %c33_i32_14 = arith.constant 33 : i32
      %26 = vector.broadcast %c33_i32_14 : i32 to vector<1x1024xi32>
      %27 = arith.cmpi slt, %18, %26 : vector<1x1024xi32>
      %28 = arith.andi %25, %27 : vector<1x1024xi1>
      %c1_i32_15 = arith.constant 1 : i32
      %29 = vector.broadcast %c1_i32_15 : i32 to vector<1x1024xi32>
      %30 = arith.cmpi sge, %20, %29 : vector<1x1024xi32>
      %31 = arith.andi %28, %30 : vector<1x1024xi1>
      %c33_i32_16 = arith.constant 33 : i32
      %32 = vector.broadcast %c33_i32_16 : i32 to vector<1x1024xi32>
      %33 = arith.cmpi slt, %20, %32 : vector<1x1024xi32>
      %34 = arith.andi %31, %33 : vector<1x1024xi1>
      %cst_17 = arith.constant 0.000000e+00 : f32
      %35 = vector.broadcast %cst_17 : f32 to vector<1x1024xf32>
      %36 = arith.select %34, %23, %35 : vector<1x1024xi1>, vector<1x1024xf32>
      %c0_18 = arith.constant 0 : index
      %c0_19 = arith.constant 0 : index
      %37 = vector.load %arg12[%c0_18, %c0_19] : memref<16x1024xf32, #tpu.memory_space<vmem>>, vector<1x1024xf32>
      tpu.vector_store %arg12[%c0_18, %c0_19], %36 {strides = array<i32>} : memref<16x1024xf32, #tpu.memory_space<vmem>>, vector<1x1024xf32>,
      %c32_i32 = arith.constant 32 : i32
      %38 = tpu.dynamic_rotate %15 by %c32_i32 dim 1 : vector<1x1024xf32>, i32 -> vector<1x1024xf32>
      %c1_i32_20 = arith.constant 1 : i32
      %39 = vector.broadcast %c1_i32_20 : i32 to vector<1x1024xi32>
      %40 = arith.cmpi sge, %18, %39 : vector<1x1024xi32>
      %c33_i32_21 = arith.constant 33 : i32
      %41 = vector.broadcast %c33_i32_21 : i32 to vector<1x1024xi32>
      %42 = arith.cmpi slt, %18, %41 : vector<1x1024xi32>
      %43 = arith.andi %40, %42 : vector<1x1024xi1>
      %c0_i32_22 = arith.constant 0 : i32
      %44 = vector.broadcast %c0_i32_22 : i32 to vector<1x1024xi32>
      %45 = arith.cmpi sge, %20, %44 : vector<1x1024xi32>
      %46 = arith.andi %43, %45 : vector<1x1024xi1>
      %c32_i32_23 = arith.constant 32 : i32
      %47 = vector.broadcast %c32_i32_23 : i32 to vector<1x1024xi32>
      %48 = arith.cmpi slt, %20, %47 : vector<1x1024xi32>
      %49 = arith.andi %46, %48 : vector<1x1024xi1>
      %cst_24 = arith.constant 0.000000e+00 : f32
      %50 = vector.broadcast %cst_24 : f32 to vector<1x1024xf32>
      %51 = arith.select %49, %38, %50 : vector<1x1024xi1>, vector<1x1024xf32>
      %c1 = arith.constant 1 : index
      %c0_25 = arith.constant 0 : index
      %52 = vector.load %arg12[%c1, %c0_25] : memref<16x1024xf32, #tpu.memory_space<vmem>>, vector<1x1024xf32>
      tpu.vector_store %arg12[%c1, %c0_25], %51 {strides = array<i32>} : memref<16x1024xf32, #tpu.memory_space<vmem>>, vector<1x1024xf32>,
      %c31_i32_26 = arith.constant 31 : i32
      %53 = tpu.dynamic_rotate %15 by %c31_i32_26 dim 1 : vector<1x1024xf32>, i32 -> vector<1x1024xf32>
      %c1_i32_27 = arith.constant 1 : i32
      %54 = vector.broadcast %c1_i32_27 : i32 to vector<1x1024xi32>
      %55 = arith.cmpi sge, %18, %54 : vector<1x1024xi32>
      %c33_i32_28 = arith.constant 33 : i32
      %56 = vector.broadcast %c33_i32_28 : i32 to vector<1x1024xi32>
      %57 = arith.cmpi slt, %18, %56 : vector<1x1024xi32>
      %58 = arith.andi %55, %57 : vector<1x1024xi1>
      %c-1_i32 = arith.constant -1 : i32
      %59 = vector.broadcast %c-1_i32 : i32 to vector<1x1024xi32>
      %60 = arith.cmpi sge, %20, %59 : vector<1x1024xi32>
      %61 = arith.andi %58, %60 : vector<1x1024xi1>
      %c31_i32_29 = arith.constant 31 : i32
      %62 = vector.broadcast %c31_i32_29 : i32 to vector<1x1024xi32>
      %63 = arith.cmpi slt, %20, %62 : vector<1x1024xi32>
      %64 = arith.andi %61, %63 : vector<1x1024xi1>
      %cst_30 = arith.constant 0.000000e+00 : f32
      %65 = vector.broadcast %cst_30 : f32 to vector<1x1024xf32>
      %66 = arith.select %64, %53, %65 : vector<1x1024xi1>, vector<1x1024xf32>
      %c2 = arith.constant 2 : index
      %c0_31 = arith.constant 0 : index
      %67 = vector.load %arg12[%c2, %c0_31] : memref<16x1024xf32, #tpu.memory_space<vmem>>, vector<1x1024xf32>
      tpu.vector_store %arg12[%c2, %c0_31], %66 {strides = array<i32>} : memref<16x1024xf32, #tpu.memory_space<vmem>>, vector<1x1024xf32>,
      %c1_i32_32 = arith.constant 1 : i32
      %68 = tpu.dynamic_rotate %15 by %c1_i32_32 dim 1 : vector<1x1024xf32>, i32 -> vector<1x1024xf32>
      %c0_i32_33 = arith.constant 0 : i32
      %69 = vector.broadcast %c0_i32_33 : i32 to vector<1x1024xi32>
      %70 = arith.cmpi sge, %18, %69 : vector<1x1024xi32>
      %c32_i32_34 = arith.constant 32 : i32
      %71 = vector.broadcast %c32_i32_34 : i32 to vector<1x1024xi32>
      %72 = arith.cmpi slt, %18, %71 : vector<1x1024xi32>
      %73 = arith.andi %70, %72 : vector<1x1024xi1>
      %c1_i32_35 = arith.constant 1 : i32
      %74 = vector.broadcast %c1_i32_35 : i32 to vector<1x1024xi32>
      %75 = arith.cmpi sge, %20, %74 : vector<1x1024xi32>
      %76 = arith.andi %73, %75 : vector<1x1024xi1>
      %c33_i32_36 = arith.constant 33 : i32
      %77 = vector.broadcast %c33_i32_36 : i32 to vector<1x1024xi32>
      %78 = arith.cmpi slt, %20, %77 : vector<1x1024xi32>
      %79 = arith.andi %76, %78 : vector<1x1024xi1>
      %cst_37 = arith.constant 0.000000e+00 : f32
      %80 = vector.broadcast %cst_37 : f32 to vector<1x1024xf32>
      %81 = arith.select %79, %68, %80 : vector<1x1024xi1>, vector<1x1024xf32>
      %c3 = arith.constant 3 : index
      %c0_38 = arith.constant 0 : index
      %82 = vector.load %arg12[%c3, %c0_38] : memref<16x1024xf32, #tpu.memory_space<vmem>>, vector<1x1024xf32>
      tpu.vector_store %arg12[%c3, %c0_38], %81 {strides = array<i32>} : memref<16x1024xf32, #tpu.memory_space<vmem>>, vector<1x1024xf32>,
      %c4 = arith.constant 4 : index
      %c0_39 = arith.constant 0 : index
      %83 = vector.load %arg12[%c4, %c0_39] : memref<16x1024xf32, #tpu.memory_space<vmem>>, vector<1x1024xf32>
      tpu.vector_store %arg12[%c4, %c0_39], %15 {strides = array<i32>} : memref<16x1024xf32, #tpu.memory_space<vmem>>, vector<1x1024xf32>,
      %c1023_i32 = arith.constant 1023 : i32
      %84 = tpu.dynamic_rotate %15 by %c1023_i32 dim 1 : vector<1x1024xf32>, i32 -> vector<1x1024xf32>
      %c0_i32_40 = arith.constant 0 : i32
      %85 = vector.broadcast %c0_i32_40 : i32 to vector<1x1024xi32>
      %86 = arith.cmpi sge, %18, %85 : vector<1x1024xi32>
      %c32_i32_41 = arith.constant 32 : i32
      %87 = vector.broadcast %c32_i32_41 : i32 to vector<1x1024xi32>
      %88 = arith.cmpi slt, %18, %87 : vector<1x1024xi32>
      %89 = arith.andi %86, %88 : vector<1x1024xi1>
      %c-1_i32_42 = arith.constant -1 : i32
      %90 = vector.broadcast %c-1_i32_42 : i32 to vector<1x1024xi32>
      %91 = arith.cmpi sge, %20, %90 : vector<1x1024xi32>
      %92 = arith.andi %89, %91 : vector<1x1024xi1>
      %c31_i32_43 = arith.constant 31 : i32
      %93 = vector.broadcast %c31_i32_43 : i32 to vector<1x1024xi32>
      %94 = arith.cmpi slt, %20, %93 : vector<1x1024xi32>
      %95 = arith.andi %92, %94 : vector<1x1024xi1>
      %cst_44 = arith.constant 0.000000e+00 : f32
      %96 = vector.broadcast %cst_44 : f32 to vector<1x1024xf32>
      %97 = arith.select %95, %84, %96 : vector<1x1024xi1>, vector<1x1024xf32>
      %c5 = arith.constant 5 : index
      %c0_45 = arith.constant 0 : index
      %98 = vector.load %arg12[%c5, %c0_45] : memref<16x1024xf32, #tpu.memory_space<vmem>>, vector<1x1024xf32>
      tpu.vector_store %arg12[%c5, %c0_45], %97 {strides = array<i32>} : memref<16x1024xf32, #tpu.memory_space<vmem>>, vector<1x1024xf32>,
      %c993_i32 = arith.constant 993 : i32
      %99 = tpu.dynamic_rotate %15 by %c993_i32 dim 1 : vector<1x1024xf32>, i32 -> vector<1x1024xf32>
      %c-1_i32_46 = arith.constant -1 : i32
      %100 = vector.broadcast %c-1_i32_46 : i32 to vector<1x1024xi32>
      %101 = arith.cmpi sge, %18, %100 : vector<1x1024xi32>
      %c31_i32_47 = arith.constant 31 : i32
      %102 = vector.broadcast %c31_i32_47 : i32 to vector<1x1024xi32>
      %103 = arith.cmpi slt, %18, %102 : vector<1x1024xi32>
      %104 = arith.andi %101, %103 : vector<1x1024xi1>
      %c1_i32_48 = arith.constant 1 : i32
      %105 = vector.broadcast %c1_i32_48 : i32 to vector<1x1024xi32>
      %106 = arith.cmpi sge, %20, %105 : vector<1x1024xi32>
      %107 = arith.andi %104, %106 : vector<1x1024xi1>
      %c33_i32_49 = arith.constant 33 : i32
      %108 = vector.broadcast %c33_i32_49 : i32 to vector<1x1024xi32>
      %109 = arith.cmpi slt, %20, %108 : vector<1x1024xi32>
      %110 = arith.andi %107, %109 : vector<1x1024xi1>
      %cst_50 = arith.constant 0.000000e+00 : f32
      %111 = vector.broadcast %cst_50 : f32 to vector<1x1024xf32>
      %112 = arith.select %110, %99, %111 : vector<1x1024xi1>, vector<1x1024xf32>
      %c6 = arith.constant 6 : index
      %c0_51 = arith.constant 0 : index
      %113 = vector.load %arg12[%c6, %c0_51] : memref<16x1024xf32, #tpu.memory_space<vmem>>, vector<1x1024xf32>
      tpu.vector_store %arg12[%c6, %c0_51], %112 {strides = array<i32>} : memref<16x1024xf32, #tpu.memory_space<vmem>>, vector<1x1024xf32>,
      %c992_i32 = arith.constant 992 : i32
      %114 = tpu.dynamic_rotate %15 by %c992_i32 dim 1 : vector<1x1024xf32>, i32 -> vector<1x1024xf32>
      %c-1_i32_52 = arith.constant -1 : i32
      %115 = vector.broadcast %c-1_i32_52 : i32 to vector<1x1024xi32>
      %116 = arith.cmpi sge, %18, %115 : vector<1x1024xi32>
      %c31_i32_53 = arith.constant 31 : i32
      %117 = vector.broadcast %c31_i32_53 : i32 to vector<1x1024xi32>
      %118 = arith.cmpi slt, %18, %117 : vector<1x1024xi32>
      %119 = arith.andi %116, %118 : vector<1x1024xi1>
      %c0_i32_54 = arith.constant 0 : i32
      %120 = vector.broadcast %c0_i32_54 : i32 to vector<1x1024xi32>
      %121 = arith.cmpi sge, %20, %120 : vector<1x1024xi32>
      %122 = arith.andi %119, %121 : vector<1x1024xi1>
      %c32_i32_55 = arith.constant 32 : i32
      %123 = vector.broadcast %c32_i32_55 : i32 to vector<1x1024xi32>
      %124 = arith.cmpi slt, %20, %123 : vector<1x1024xi32>
      %125 = arith.andi %122, %124 : vector<1x1024xi1>
      %cst_56 = arith.constant 0.000000e+00 : f32
      %126 = vector.broadcast %cst_56 : f32 to vector<1x1024xf32>
      %127 = arith.select %125, %114, %126 : vector<1x1024xi1>, vector<1x1024xf32>
      %c7 = arith.constant 7 : index
      %c0_57 = arith.constant 0 : index
      %128 = vector.load %arg12[%c7, %c0_57] : memref<16x1024xf32, #tpu.memory_space<vmem>>, vector<1x1024xf32>
      tpu.vector_store %arg12[%c7, %c0_57], %127 {strides = array<i32>} : memref<16x1024xf32, #tpu.memory_space<vmem>>, vector<1x1024xf32>,
      %c991_i32 = arith.constant 991 : i32
      %129 = tpu.dynamic_rotate %15 by %c991_i32 dim 1 : vector<1x1024xf32>, i32 -> vector<1x1024xf32>
      %c-1_i32_58 = arith.constant -1 : i32
      %130 = vector.broadcast %c-1_i32_58 : i32 to vector<1x1024xi32>
      %131 = arith.cmpi sge, %18, %130 : vector<1x1024xi32>
      %c31_i32_59 = arith.constant 31 : i32
      %132 = vector.broadcast %c31_i32_59 : i32 to vector<1x1024xi32>
      %133 = arith.cmpi slt, %18, %132 : vector<1x1024xi32>
      %134 = arith.andi %131, %133 : vector<1x1024xi1>
      %c-1_i32_60 = arith.constant -1 : i32
      %135 = vector.broadcast %c-1_i32_60 : i32 to vector<1x1024xi32>
      %136 = arith.cmpi sge, %20, %135 : vector<1x1024xi32>
      %137 = arith.andi %134, %136 : vector<1x1024xi1>
      %c31_i32_61 = arith.constant 31 : i32
      %138 = vector.broadcast %c31_i32_61 : i32 to vector<1x1024xi32>
      %139 = arith.cmpi slt, %20, %138 : vector<1x1024xi32>
      %140 = arith.andi %137, %139 : vector<1x1024xi1>
      %cst_62 = arith.constant 0.000000e+00 : f32
      %141 = vector.broadcast %cst_62 : f32 to vector<1x1024xf32>
      %142 = arith.select %140, %129, %141 : vector<1x1024xi1>, vector<1x1024xf32>
      %c8 = arith.constant 8 : index
      %c0_63 = arith.constant 0 : index
      %143 = vector.load %arg12[%c8, %c0_63] : memref<16x1024xf32, #tpu.memory_space<vmem>>, vector<1x1024xf32>
      tpu.vector_store %arg12[%c8, %c0_63], %142 {strides = array<i32>} : memref<16x1024xf32, #tpu.memory_space<vmem>>, vector<1x1024xf32>,
      %c0_64 = arith.constant 0 : index
      %c0_65 = arith.constant 0 : index
      %144 = vector.load %arg3[%c0_64, %c0_65] : memref<64x16xf32, #tpu.memory_space<vmem>>, vector<64x16xf32>
      %c0_66 = arith.constant 0 : index
      %c0_67 = arith.constant 0 : index
      %145 = vector.load %arg12[%c0_66, %c0_67] : memref<16x1024xf32, #tpu.memory_space<vmem>>, vector<16x1024xf32>
      %cst_68 = arith.constant dense<0.000000e+00> : vector<64x1024xf32>
      %146 = tpu.matmul %144, %145, %cst_68 {dimension_numbers = #tpu.dot_dimension_numbers<[1], [0], [0], [1], [0, 0, 1, 1], [], []>} : vector<64x16xf32>, vector<16x1024xf32>, vector<64x1024xf32> -> vector<64x1024xf32>
      %c0_69 = arith.constant 0 : index
      %c0_70 = arith.constant 0 : index
      %147 = vector.load %arg4[%c0_69, %c0_70] : memref<64x1xf32, #tpu.memory_space<vmem>>, vector<64x1xf32>
      %148 = vector.broadcast %147 : vector<64x1xf32> to vector<64x1024xf32>
      %149 = arith.addf %146, %148 : vector<64x1024xf32>
      %cst_71 = arith.constant 0.000000e+00 : f32
      %150 = vector.broadcast %cst_71 : f32 to vector<64x1024xf32>
      %151 = arith.maximumf %149, %150 : vector<64x1024xf32>
      %cst_72 = arith.constant dense<0.000000e+00> : vector<64xf32>
      %152 = vector.multi_reduction <add>, %151, %cst_72 [1] : vector<64x1024xf32> to vector<64xf32>
      %153 = vector.shape_cast %152 : vector<64xf32> to vector<64x1xf32>
      %cst_73 = arith.constant 9.765625E-4 : f32
      %154 = vector.broadcast %cst_73 : f32 to vector<64x1xf32>
      %155 = arith.mulf %153, %154 : vector<64x1xf32>
      %156 = vector.broadcast %155 : vector<64x1xf32> to vector<64x1024xf32>
      %157 = arith.subf %151, %156 : vector<64x1024xf32>
      %158 = arith.mulf %157, %157 : vector<64x1024xf32>
      %cst_74 = arith.constant dense<0.000000e+00> : vector<64xf32>
      %159 = vector.multi_reduction <add>, %158, %cst_74 [1] : vector<64x1024xf32> to vector<64xf32>
      %160 = vector.shape_cast %159 : vector<64xf32> to vector<64x1xf32>
      %cst_75 = arith.constant 9.765625E-4 : f32
      %161 = vector.broadcast %cst_75 : f32 to vector<64x1xf32>
      %162 = arith.mulf %160, %161 : vector<64x1xf32>
      %cst_76 = arith.constant 9.99999974E-6 : f32
      %163 = vector.broadcast %cst_76 : f32 to vector<64x1xf32>
      %164 = arith.addf %162, %163 : vector<64x1xf32>
      %165 = math.rsqrt %164 : vector<64x1xf32>
      %166 = vector.broadcast %165 : vector<64x1xf32> to vector<64x1024xf32>
      %167 = arith.mulf %157, %166 : vector<64x1024xf32>
      %c0_77 = arith.constant 0 : index
      %c0_78 = arith.constant 0 : index
      %168 = vector.load %arg5[%c0_77, %c0_78] : memref<64x1xf32, #tpu.memory_space<vmem>>, vector<64x1xf32>
      %169 = vector.broadcast %168 : vector<64x1xf32> to vector<64x1024xf32>
      %170 = arith.mulf %167, %169 : vector<64x1024xf32>
      %c0_79 = arith.constant 0 : index
      %c0_80 = arith.constant 0 : index
      %171 = vector.load %arg6[%c0_79, %c0_80] : memref<64x1xf32, #tpu.memory_space<vmem>>, vector<64x1xf32>
      %172 = vector.broadcast %171 : vector<64x1xf32> to vector<64x1024xf32>
      %173 = arith.addf %170, %172 : vector<64x1024xf32>
      %c0_81 = arith.constant 0 : index
      %c0_82 = arith.constant 0 : index
      %174 = vector.load %arg7[%c0_81, %c0_82] : memref<1x64xf32, #tpu.memory_space<vmem>>, vector<1x64xf32>
      %cst_83 = arith.constant dense<0.000000e+00> : vector<1x1024xf32>
      %175 = tpu.matmul %174, %173, %cst_83 {dimension_numbers = #tpu.dot_dimension_numbers<[1], [0], [0], [1], [0, 0, 1, 1], [], []>} : vector<1x64xf32>, vector<64x1024xf32>, vector<1x1024xf32> -> vector<1x1024xf32>
      %c0_84 = arith.constant 0 : index
      %176 = memref.load %arg8[%c0_84] : memref<3xf32, #tpu.memory_space<smem>>
      %177 = vector.broadcast %176 : f32 to vector<1x1024xf32>
      %178 = arith.addf %175, %177 : vector<1x1024xf32>
      %cst_85 = arith.constant 0.000000e+00 : f32
      %179 = vector.broadcast %cst_85 : f32 to vector<1x1024xf32>
      %180 = arith.maximumf %178, %179 : vector<1x1024xf32>
      %cst_86 = arith.constant dense<0.000000e+00> : vector<1xf32>
      %181 = vector.multi_reduction <add>, %180, %cst_86 [1] : vector<1x1024xf32> to vector<1xf32>
      %182 = vector.shape_cast %181 : vector<1xf32> to vector<1x1xf32>
      %cst_87 = arith.constant 9.765625E-4 : f32
      %183 = vector.broadcast %cst_87 : f32 to vector<1x1xf32>
      %184 = arith.mulf %182, %183 : vector<1x1xf32>
      %185 = vector.broadcast %184 : vector<1x1xf32> to vector<1x1024xf32>
      %186 = arith.subf %180, %185 : vector<1x1024xf32>
      %187 = arith.mulf %186, %186 : vector<1x1024xf32>
      %cst_88 = arith.constant dense<0.000000e+00> : vector<1xf32>
      %188 = vector.multi_reduction <add>, %187, %cst_88 [1] : vector<1x1024xf32> to vector<1xf32>
      %189 = vector.shape_cast %188 : vector<1xf32> to vector<1x1xf32>
      %cst_89 = arith.constant 9.765625E-4 : f32
      %190 = vector.broadcast %cst_89 : f32 to vector<1x1xf32>
      %191 = arith.mulf %189, %190 : vector<1x1xf32>
      %cst_90 = arith.constant 9.99999974E-6 : f32
      %192 = vector.broadcast %cst_90 : f32 to vector<1x1xf32>
      %193 = arith.addf %191, %192 : vector<1x1xf32>
      %194 = math.rsqrt %193 : vector<1x1xf32>
      %195 = vector.broadcast %194 : vector<1x1xf32> to vector<1x1024xf32>
      %196 = arith.mulf %186, %195 : vector<1x1024xf32>
      %c1_91 = arith.constant 1 : index
      %197 = memref.load %arg8[%c1_91] : memref<3xf32, #tpu.memory_space<smem>>
      %198 = vector.broadcast %197 : f32 to vector<1x1024xf32>
      %199 = arith.mulf %196, %198 : vector<1x1024xf32>
      %c2_92 = arith.constant 2 : index
      %200 = memref.load %arg8[%c2_92] : memref<3xf32, #tpu.memory_space<smem>>
      %201 = vector.broadcast %200 : f32 to vector<1x1024xf32>
      %202 = arith.addf %199, %201 : vector<1x1024xf32>
      %203 = arith.truncf %202 : vector<1x1024xf32> to vector<1x1024xbf16>
      %c0_93 = arith.constant 0 : index
      %c0_94 = arith.constant 0 : index
      %204 = vector.load %arg13[%c0_93, %c0_94] : memref<1x1024xbf16, #tpu.memory_space<vmem>>, vector<1x1024xbf16>
      tpu.vector_store %arg13[%c0_93, %c0_94], %203 {strides = array<i32>} : memref<1x1024xbf16, #tpu.memory_space<vmem>>, vector<1x1024xbf16>,
      %cst_95 = arith.constant 0.000000e+00 : f32
      %205 = vector.broadcast %cst_95 : f32 to vector<1x1024xf32>
      %c0_96 = arith.constant 0 : index
      %c0_97 = arith.constant 0 : index
      %206 = vector.load %arg11[%c0_96, %c0_97] : memref<1x1024xf32, #tpu.memory_space<vmem>>, vector<1x1024xf32>
      tpu.vector_store %arg11[%c0_96, %c0_97], %205 {strides = array<i32>} : memref<1x1024xf32, #tpu.memory_space<vmem>>, vector<1x1024xf32>,
    } else {
    }
    %c1024_i32 = arith.constant 1024 : i32
    %3 = arith.muli %arg1, %c1024_i32 : i32
    %4 = tpu.assume_multiple %3, 1024 : i32
    %c0 = arith.constant 0 : index
    %c0_1 = arith.constant 0 : index
    %5 = vector.load %arg11[%c0, %c0_1] : memref<1x1024xf32, #tpu.memory_space<vmem>>, vector<1x1024xf32>
    %c0_2 = arith.constant 0 : index
    %6 = arith.index_cast %4 : i32 to index
    %7 = vector.load %arg13[%c0_2, %6] : memref<1x1024xbf16, #tpu.memory_space<vmem>>, vector<1x1024xbf16>
    %c0_3 = arith.constant 0 : index
    %c0_4 = arith.constant 0 : index
    %8 = vector.load %arg9[%c0_3, %c0_4] : memref<1024x1024xbf16, #tpu.memory_space<vmem>>, vector<1024x1024xbf16>
    %cst = arith.constant dense<0.000000e+00> : vector<1x1024xf32>
    %9 = tpu.matmul %7, %8, %cst {dimension_numbers = #tpu.dot_dimension_numbers<[1], [0], [0], [1], [0, 0, 1, 1], [], []>} : vector<1x1024xbf16>, vector<1024x1024xbf16>, vector<1x1024xf32> -> vector<1x1024xf32>
    %10 = arith.addf %5, %9 : vector<1x1024xf32>
    %c0_5 = arith.constant 0 : index
    %c0_6 = arith.constant 0 : index
    %11 = vector.load %arg11[%c0_5, %c0_6] : memref<1x1024xf32, #tpu.memory_space<vmem>>, vector<1x1024xf32>
    tpu.vector_store %arg11[%c0_5, %c0_6], %10 {strides = array<i32>} : memref<1x1024xf32, #tpu.memory_space<vmem>>, vector<1x1024xf32>,
    %c0_i32_7 = arith.constant 0 : i32
    %12 = arith.cmpi eq, %arg1, %c0_i32_7 : i32
    %13 = arith.extui %12 : i1 to i32
    %c0_i32_8 = arith.constant 0 : i32
    %14 = arith.cmpi ne, %13, %c0_i32_8 : i32
    scf.if %14 {
      %c0_9 = arith.constant 0 : index
      %c0_10 = arith.constant 0 : index
      %15 = vector.load %arg11[%c0_9, %c0_10] : memref<1x1024xf32, #tpu.memory_space<vmem>>, vector<1x1024xf32>
      %c0_11 = arith.constant 0 : index
      %c0_12 = arith.constant 0 : index
      %16 = vector.load %arg10[%c0_11, %c0_12] : memref<1x1024xf32, #tpu.memory_space<vmem>>, vector<1x1024xf32>
      %17 = arith.addf %15, %16 : vector<1x1024xf32>
      %cst_13 = arith.constant 0.000000e+00 : f32
      %18 = vector.broadcast %cst_13 : f32 to vector<1x1024xf32>
      %19 = arith.cmpf oge, %17, %18 : vector<1x1024xf32>
      %cst_14 = arith.constant 0.00999999977 : f32
      %20 = vector.broadcast %cst_14 : f32 to vector<1x1024xf32>
      %21 = arith.mulf %20, %17 : vector<1x1024xf32>
      %22 = arith.select %19, %17, %21 : vector<1x1024xi1>, vector<1x1024xf32>
      %c0_15 = arith.constant 0 : index
      %c0_16 = arith.constant 0 : index
      %23 = vector.load %arg11[%c0_15, %c0_16] : memref<1x1024xf32, #tpu.memory_space<vmem>>, vector<1x1024xf32>
      tpu.vector_store %arg11[%c0_15, %c0_16], %22 {strides = array<i32>} : memref<1x1024xf32, #tpu.memory_space<vmem>>, vector<1x1024xf32>,
    } else {
    }
    return
  }
  func.func @transform_0(%arg0: i32, %arg1: i32) -> (i32, i32) {
    %c0_i32 = arith.constant 0 : i32
    %c0_i32_0 = arith.constant 0 : i32
    %c0_i32_1 = arith.constant 0 : i32
    return %c0_i32, %c0_i32_0 : i32, i32
  }
  func.func @transform_1(%arg0: i32, %arg1: i32) -> (i32, i32) {
    %c0_i32 = arith.constant 0 : i32
    %c0_i32_0 = arith.constant 0 : i32
    %c0_i32_1 = arith.constant 0 : i32
    return %c0_i32, %c0_i32_0 : i32, i32
  }
  func.func @transform_2(%arg0: i32, %arg1: i32) -> (i32, i32) {
    %c0_i32 = arith.constant 0 : i32
    %c0_i32_0 = arith.constant 0 : i32
    %c0_i32_1 = arith.constant 0 : i32
    return %c0_i32, %c0_i32_0 : i32, i32
  }
  func.func @transform_3(%arg0: i32, %arg1: i32) -> (i32, i32) {
    %c0_i32 = arith.constant 0 : i32
    %c0_i32_0 = arith.constant 0 : i32
    %c0_i32_1 = arith.constant 0 : i32
    return %c0_i32, %c0_i32_0 : i32, i32
  }
  func.func @transform_4(%arg0: i32, %arg1: i32) -> (i32, i32) {
    %c0_i32 = arith.constant 0 : i32
    %c0_i32_0 = arith.constant 0 : i32
    %c0_i32_1 = arith.constant 0 : i32
    return %c0_i32, %c0_i32_0 : i32, i32
  }
  func.func @transform_5(%arg0: i32, %arg1: i32) -> (i32, i32) {
    %c0_i32 = arith.constant 0 : i32
    %c0_i32_0 = arith.constant 0 : i32
    %c0_i32_1 = arith.constant 0 : i32
    return %c0_i32, %c0_i32_0 : i32, i32
  }
  func.func @transform_6(%arg0: i32, %arg1: i32) -> i32 {
    %c0_i32 = arith.constant 0 : i32
    %c0_i32_0 = arith.constant 0 : i32
    return %c0_i32 : i32
  }
  func.func @transform_7(%arg0: i32, %arg1: i32) -> (i32, i32) {
    %c0_i32 = arith.constant 0 : i32
    return %arg1, %arg0 : i32, i32
  }
  func.func @transform_8(%arg0: i32, %arg1: i32) -> (i32, i32) {
    %c0_i32 = arith.constant 0 : i32
    %c0_i32_0 = arith.constant 0 : i32
    return %c0_i32, %arg0 : i32, i32
  }
  func.func @transform_9(%arg0: i32, %arg1: i32) -> (i32, i32) {
    %c0_i32 = arith.constant 0 : i32
    %c0_i32_0 = arith.constant 0 : i32
    return %c0_i32, %arg0 : i32, i32
  }
}

</mosaic_0001>

<bundles_post_ra>
// kernel: tpu_custom_call.1
= control target key start
LH: loop header
LB: loop body
LE: loop exit
PB: predicated region body
PF: predicated region fallthrough
CT: control target
= control target key end

     0   :  { %14 = vsyncpa [#allocation5], 0  ;;  %s12073_s0 = inlined_call_operand.hbm [shape: f32[1,1024], index: 0, kind: input, shape index: {}]   ;;  %s12074_s1 = inlined_call_operand.vmem [shape: f32[64,16], index: 1, kind: input, shape index: {}]   ;;  %s12075_s2 = inlined_call_operand.vmem [shape: f32[64,1], index: 2, kind: input, shape index: {}]   ;;  %s12076_s3 = inlined_call_operand.vmem [shape: f32[64,1], index: 3, kind: input, shape index: {}]   ;;  %s12077_s4 = inlined_call_operand.vmem [shape: f32[64,1], index: 4, kind: input, shape index: {}]   ;;  %s12078_s5 = inlined_call_operand.hbm [shape: f32[1,64], index: 5, kind: input, shape index: {}]   ;;  %s12079_s6 = inlined_call_operand.hbm [shape: f32[3], index: 6, kind: input, shape index: {}]   ;;  %s12080_s7 = inlined_call_operand.hbm [shape: bf16[1024,1024], index: 7, kind: input, shape index: {}]   ;;  %s12081_s8 = inlined_call_operand.hbm [shape: f32[1,1024], index: 8, kind: input, shape index: {}]   ;;  %s12082_s9 = inlined_call_operand.hbm [shape: f32[1,1024], index: 9, kind: output, shape index: {}]  }
   0x1   :  { %15 = vsyncpa [#allocation9], 0 }
   0x2   :  { %16 = vsyncpa [#allocation7], 0 }
   0x3   :  { %17 = vsyncpa [#allocation13], 0  ;;  %s43_s11 = sshll.u32 %s12078_s5, 4  ;;  %s44_s11 = int_to_ptr.hbm [resolvable:$true] %s43_s11 }
   0x4   :  { %18 = vsyncpa [#allocation6], 0  ;;  %s9211_s12 = smov [#allocation8]   ;;  %s24_s16 = sshll.u32 %s12073_s0, 4  ;;  %s25_s16 = int_to_ptr.hbm [resolvable:$true] %s24_s16 }
   0x5   :  { %s45_s13 = sshll.u32 %s9211_s12, 4  ;;  %s9212_s17 = smov [#allocation4]   ;;  %s46_s13 = int_to_ptr.vmem [resolvable:$true] %s45_s13 }
   0x6   :  { %48 = dma.hbm_to_vmem [thread:$0]  %s44_s11, 16, %s46_s13, [#allocation9]  }
   0x7   :  { %s26_s18 = sshll.u32 %s9212_s17, 4  ;;  %s54_s21 = sshll.u32 %s12079_s6, 4  ;;  %s27_s18 = int_to_ptr.vmem [resolvable:$true] %s26_s18  ;;  %s55_s21 = int_to_ptr.hbm [resolvable:$true] %s54_s21 }
   0x8   :  { %29 = dma.hbm_to_vmem [thread:$0]  %s25_s16, 128, %s27_s18, [#allocation5]  }
   0x9   :  { %s62_s23 = sshll.u32 %s12080_s7, 4  ;;  %s9213_s24 = smov [#allocation10]   ;;  %s63_s23 = int_to_ptr.hbm [resolvable:$true] %s62_s23 }
   0xa   :  { %57 = dma.hbm_to_smem %s55_s21, 16, %s9213_s24, [#allocation7]  }
   0xb   :  { %s9214_s25 = smov [#allocation11]   ;;  %s9215_s26 = smov 512  }
   0xc   :  { %s64_s0 = sshll.u32 %s9214_s25, 4  ;;  %s9216_s27 = smov 32   ;;  %s65_s0 = int_to_ptr.vmem [resolvable:$true] %s64_s0 }
   0xd   :  { %70 = dma.hbm_to_vmem [thread:$0]  %s63_s23, 65536, %s65_s0, [#allocation9], %s9215_s26, %s9215_s26, %s9216_s27  }
   0xe   :  { %s76_s6 = sshll.u32 %s12081_s8, 4  ;;  %s9217_s30 = smov [#allocation12]   ;;  %s77_s6 = int_to_ptr.hbm [resolvable:$true] %s76_s6 }
   0xf   :  { %s78_s10 = sshll.u32 %s9217_s30, 4  ;;  %s79_s10 = int_to_ptr.vmem [resolvable:$true] %s78_s10 }
  0x10   :  { %81 = dma.hbm_to_vmem [thread:$0]  %s77_s6, 128, %s79_s10, [#allocation13]  }
  0x11   :  { %9199 = dma.done.wait [#allocation5], 128  }
  0x12   :  { %9200 = vsyncadd [#allocation5], 4294967168 }
  0x13   :  { %9201 = dma.done.wait [#allocation9], 16  }
  0x14   :  { %9202 = vsyncadd [#allocation9], 4294967280 }
  0x15   :  { %9203 = dma.done.wait [#allocation7], 16  }
  0x16   :  { %9204 = vsyncadd [#allocation7], 4294967280 }
  0x17   :  { %9205 = dma.done.wait [#allocation9], 65536  }
  0x18   :  { %9206 = vsyncadd [#allocation9], 4294901760 }
  0x19   :  { %9207 = dma.done.wait [#allocation13], 128  }
  0x1a   :  { %9208 = vsyncadd [#allocation13], 4294967168 }
  0x1b   :  { %102 = sfence }
  0x1c   :  { %v9294_v0 = vld [vmem:[#allocation4] sm:$0xff]  ;;  %s9218_s7 = smov 95   ;;  %s9219_s8 = smov 33   ;;  %v108_v10 = vlaneseq  ;;  %v9222_v14 = vmov 0.0   ;;  %v12277_v25 = vmov 0  ;;  %v12279_v26 = vmov 0 }
  0x1d   :  { %v9297_v1 = vperm.slane %v9294_v0, 2  ;;  %v9300_v2 = vperm.slane %v9294_v0, 0  ;;  %v9303_v3 = vperm.slane %v9294_v0, 4  ;;  %v9309_v4 = vperm.slane %v9294_v0, 3  ;;  %s9220_s11 = smov 31   ;;  %s9221_s12 = smov 1  }
  0x1e   :  { %v9312_v5 = vperm.slane %v9294_v0, 1  ;;  %v9315_v6 = vperm.slane %v9294_v0, 5  ;;  %v9321_v7 = vperm.slane %v9294_v0, 7  ;;  %v9324_v8 = vperm.slane %v9294_v0, 6  ;;  %141 = vst [vmem:[#allocation2 + $0x40] sm:$0xff] %v9222_v14  ;;  %s9223_s13 = smov 127  }
  0x1f   :  { %824 = vrot.lane.b32.xlu1 %v9297_v1, %s9218_s7  ;;  %820 = vrot.lane.b32.xlu0 %v9300_v2, %s9218_s7  ;;  %v9369_v11 = vand.u32 127, %v108_v10  ;;  %142 = vst [vmem:[#allocation2 + $0x48] sm:$0xff] %v9222_v14  ;;  %v12282_v34 = vmov 0  ;;  %v12284_v35 = vmov 0  ;;  %v12286_v39 = vmov 0  ;;  %s9224_s14 = smov 97  }
  0x20   :  { %828 = vrot.lane.b32.xlu2 %v9303_v3, %s9218_s7  ;;  %143 = vst [vmem:[#allocation2 + $0x50] sm:$0xff] %v9222_v14  ;;  %v12288_v41 = vmov 0  ;;  %v12290_v44 = vmov 0  ;;  %v12292_v45 = vmov 0  ;;  %v12295_v46 = vmov 0  ;;  %s9225_s15 = smov 96  }
  0x21   :  { %v9374_v13 = vadd.s32 512, %v9369_v11  ;;  %v9380_v15 = vadd.s32 256, %v9369_v11  ;;  %144 = vst [vmem:[#allocation2 + $0x58] sm:$0xff] %v9222_v14  ;;  %v9388_v17 = vadd.s32 384, %v9369_v11  ;;  %v9397_v21 = vadd.s32 128, %v9369_v11  ;;  %s11846_s24 = sld [smem:[#allocation10 + $0x2]] }
  0x22   :  { %145 = vst [vmem:[#allocation2 + $0x60] sm:$0xff] %v9222_v14  ;;  %v9412_v24 = vshra.s32 %v9369_v11, 5  ;;  %v9431_v29 = vadd.s32 896, %v9369_v11  ;;  %v9438_v32 = vadd.s32 640, %v9369_v11  ;;  %v9441_v33 = vadd.s32 768, %v9369_v11  ;;  %s9227_s25 = smov [#allocation14]  }
  0x23   :  { %v9385_v16 = vshra.s32 %v9374_v13, 5  ;;  %146 = vst [vmem:[#allocation2 + $0x68] sm:$0xff] %v9222_v14  ;;  %v9393_v19 = vshra.s32 %v9380_v15, 5  ;;  %v129_v20 = vand.u32 31, %v9374_v13  ;;  %v9402_v22 = vshra.s32 %v9388_v17, 5  ;;  %s6355_s0 = sshll.u32 %s9227_s25, 4  ;;  %s6356_s0 = int_to_ptr.vmem [resolvable:$true] %s6355_s0 }
  0x24   :  { %147 = vst [vmem:[#allocation2 + $0x70] sm:$0xff] %v9222_v14  ;;  %v127_v23 = vand.u32 31, %v9380_v15  ;;  %v128_v27 = vand.u32 31, %v9388_v17  ;;  %v9426_v28 = vshra.s32 %v9397_v21, 5  ;;  %v12101_v36 = vand.u32 31, %v9369_v11  ;;  %s6357_s28 = sshll.u32 %s12082_s9, 4  ;;  %s6358_s28 = int_to_ptr.hbm [resolvable:$true] %s6357_s28 }
  0x25   :  { %148 = vst [vmem:[#allocation2 + $0x78] sm:$0xff] %v9222_v14  ;;  %vm675_vm0 = vcmp.ge.s32.totalorder %v9385_v16, 4294967295  ;;  %vm683_vm1 = vcmp.lt.s32.totalorder %v9385_v16, 31  ;;  %vm673_vm2 = vcmp.ge.s32.totalorder %v9393_v19, 4294967295  ;;  %vm681_vm3 = vcmp.lt.s32.totalorder %v9393_v19, 31 }
  0x26   :  { %133 = vst [vmem:[#allocation2] sm:$0xff] %v9222_v14  ;;  %vm9416_vm4 = vcmp.lt.s32.totalorder %v129_v20, 31  ;;  %vm9420_vm5 = vmand %vm675_vm0, %vm683_vm1  ;;  %vm674_vm6 = vcmp.ge.s32.totalorder %v9402_v22, 4294967295  ;;  %vm682_vm7 = vcmp.lt.s32.totalorder %v9402_v22, 31  ;;  %vm9445_vm8 = vcmp.lt.s32.totalorder %v127_v23, 31 }
  0x27   :  { %826 = vrot.lane.b32.xlu1 %v9309_v4, %s9218_s7  ;;  %822 = vrot.lane.b32.xlu0 %v9312_v5, %s9218_s7  ;;  %134 = vst [vmem:[#allocation2 + $0x8] sm:$0xff] %v9222_v14  ;;  %v12278_v25 = vsel %vm9416_vm4, 4294967295, %v12277_v25  ;;  %v12280_v26 = vsel %vm9420_vm5, 4294967295, %v12279_v26  ;;  %v12283_v34 = vsel %vm9445_vm8, 4294967295, %v12282_v34  ;;  %vm9453_vm9 = vmand %vm673_vm2, %vm681_vm3  ;;  %v126_v38 = vand.u32 31, %v9397_v21 }
  0x28   :  { %830 = vrot.lane.b32.xlu2 %v9315_v6, %s9218_s7  ;;  %135 = vst [vmem:[#allocation2 + $0x10] sm:$0xff] %v9222_v14  ;;  %v12285_v35 = vsel %vm9453_vm9, 4294967295, %v12284_v35  ;;  %vm671_vm11 = vcmp.ge.s32.totalorder %v9412_v24, 4294967295  ;;  %vm679_vm12 = vcmp.lt.s32.totalorder %v9412_v24, 31  ;;  %vm9469_vm13 = vmand %vm674_vm6, %vm682_vm7  ;;  %vm672_vm14 = vcmp.ge.s32.totalorder %v9426_v28, 4294967295 }
  0x29   :  { %12281 = vst [vmem:[#allocation21_spill] sm:$0xff] %v12280_v26  ;;  %v12287_v39 = vsel %vm9469_vm13, 4294967295, %v12286_v39  ;;  %vm680_vm15 = vcmp.lt.s32.totalorder %v9426_v28, 31  ;;  %v9476_v40 = vshra.s32 %v9431_v29, 5  ;;  %vm9480_vm0 = vcmp.lt.s32.totalorder %v128_v27, 31  ;;  %vm9501_vm3 = vmand %vm671_vm11, %vm679_vm12 }
  0x2a   :  { %136 = vst [vmem:[#allocation2 + $0x18] sm:$0xff] %v9222_v14  ;;  %v12289_v41 = vsel %vm9480_vm0, 4294967295, %v12288_v41  ;;  %v9489_v42 = vshra.s32 %v9438_v32, 5  ;;  %v9492_v43 = vshra.s32 %v9441_v33, 5  ;;  %vm9497_vm2 = vcmp.lt.s32.totalorder %v12101_v36, 31  ;;  %vm9521_vm11 = vmand %vm672_vm14, %vm680_vm15 }
  0x2b   :  { %137 = vst [vmem:[#allocation2 + $0x20] sm:$0xff] %v9222_v14  ;;  %v12291_v44 = vsel %vm9497_vm2, 4294967295, %v12290_v44  ;;  %v12293_v45 = vsel %vm9501_vm3, 4294967295, %v12292_v45  ;;  %vm12089_vm6 = vcmp.lt.s32.totalorder %v9369_v11, 95  ;;  %vm9513_vm7 = vcmp.lt.s32.totalorder %v126_v38, 31  ;;  %vm12305_vm2 = vmand %vm9453_vm9, %vm9445_vm8 }
  0x2c   :  { %138 = vst [vmem:[#allocation2 + $0x28] sm:$0xff] %v9222_v14  ;;  %v12296_v46 = vsel %vm9513_vm7, 4294967295, %v12295_v46  ;;  %v12297_v47 = vmov 0  ;;  %v12100_v48 = vand.u32 31, %v9431_v29  ;;  %vm686_vm1 = vcmp.lt.s32.totalorder %v9476_v40, 31  ;;  %vm854_vm14 = vmand %vm9521_vm11, %vm9513_vm7 }
  0x2d   :  { %139 = vst [vmem:[#allocation2 + $0x30] sm:$0xff] %v9222_v14  ;;  %v12298_v47 = vsel %vm9521_vm11, 4294967295, %v12297_v47  ;;  %v130_v49 = vand.u32 31, %v9438_v32  ;;  %v131_v52 = vand.u32 31, %v9441_v33  ;;  %vm684_vm10 = vcmp.lt.s32.totalorder %v9489_v42, 31 }
  0x2e   :  { %140 = vst [vmem:[#allocation2 + $0x38] sm:$0xff] %v9222_v14  ;;  %vm685_vm15 = vcmp.lt.s32.totalorder %v9492_v43, 31  ;;  %vm9563_vm12 = vcmp.lt.s32.totalorder %v12100_v48, 31  ;;  %v12299_v58 = vmov 0  ;;  %vm12301_vm11 = vcmp.ge.s32.totalorder %v9476_v40, 4294967295 }
  0x2f   :  { %834 = vrot.lane.b32.xlu1 %v9321_v7, %s9218_s7  ;;  %832 = vrot.lane.b32.xlu0 %v9324_v8, %s9218_s7  ;;  %569 = vst [vmem:[#allocation2 + $0x4] ss:$8 sm:$0xf] %v9294_v0  ;;  %v12300_v58 = vsel %vm9563_vm12, 4294967295, %v12299_v58  ;;  %vm9571_vm7 = vmand %vm12301_vm11, %vm686_vm1  ;;  %v12302_v59 = vmov 0  ;;  %vm9587_vm3 = vcmp.lt.s32.totalorder %v130_v49, 31  ;;  %vm12322_vm9 = vnez %v12291_v44 }
  0x30   :  { %166 = vrot.lane.b32.xlu2 %v9300_v2, %s9219_s8  ;;  %12294 = vst [vmem:[#allocation22_spill] sm:$0xff] %v12293_v45  ;;  %v12303_v59 = vsel %vm9571_vm7, 4294967295, %v12302_v59  ;;  %v12307_v62 = vmov 0  ;;  %vm12309_vm1 = vcmp.ge.s32.totalorder %v9489_v42, 4294967295  ;;  %v12310_v63 = vmov 0 }
  0x31   :  { %570 = vst [vmem:[#allocation2 + $0x4] ss:$8 sm:$0xf0] %v9294_v0  ;;  %v12308_v62 = vsel %vm9587_vm3, 4294967295, %v12307_v62  ;;  %vm9593_vm11 = vmand %vm12309_vm1, %vm684_vm10  ;;  %v12316_v10 = vmov 0  ;;  %v12346_v17 = vmov 0 }
  0x32   :  { %12304 = vst [vmem:[#allocation23_spill] sm:$0xff] %v12303_v59  ;;  %v12311_v63 = vsel %vm9593_vm11, 4294967295, %v12310_v63  ;;  %vm12319_vm10 = vmand %vm9420_vm5, %vm9416_vm4  ;;  %vm12326_vm5 = vcmask 1042434   ;;  %v12350_v15 = vmov 0  ;;  %v12358_v33 = vmov 0 }
  0x33   :  { %12312 = vst [vmem:[#allocation24_spill] sm:$0xff] %v12311_v63 }
  0x37   :  { %170 = vrot.lane.b32.xlu1 %v9297_v1, %s9219_s8  ;;  %168 = vrot.lane.b32.xlu0 %v9312_v5, %s9219_s8 }
  0x38   :  { %172 = vrot.lane.b32.xlu2 %v9309_v4, %s9219_s8 }
  0x3f   :  { %176 = vrot.lane.b32.xlu1 %v9315_v6, %s9219_s8  ;;  %174 = vrot.lane.b32.xlu0 %v9303_v3, %s9219_s8 }
  0x40   :  { %178 = vrot.lane.b32.xlu2 %v9324_v8, %s9219_s8 }
  0x47   :  { %287 = vrot.lane.b32.xlu1 %v9300_v2, %s9216_s27  ;;  %180 = vrot.lane.b32.xlu0 %v9321_v7, %s9219_s8 }
  0x48   :  { %289 = vrot.lane.b32.xlu2 %v9312_v5, %s9216_s27 }
  0x4f   :  { %293 = vrot.lane.b32.xlu1 %v9309_v4, %s9216_s27  ;;  %291 = vrot.lane.b32.xlu0 %v9297_v1, %s9216_s27 }
  0x50   :  { %295 = vrot.lane.b32.xlu2 %v9303_v3, %s9216_s27 }
  0x57   :  { %299 = vrot.lane.b32.xlu1 %v9324_v8, %s9216_s27  ;;  %297 = vrot.lane.b32.xlu0 %v9315_v6, %s9216_s27 }
  0x58   :  { %301 = vrot.lane.b32.xlu2 %v9321_v7, %s9216_s27 }
  0x5f   :  { %380 = vrot.lane.b32.xlu1 %v9312_v5, %s9220_s11  ;;  %378 = vrot.lane.b32.xlu0 %v9300_v2, %s9220_s11 }
  0x60   :  { %382 = vrot.lane.b32.xlu2 %v9297_v1, %s9220_s11 }
  0x67   :  { %386 = vrot.lane.b32.xlu1 %v9303_v3, %s9220_s11  ;;  %384 = vrot.lane.b32.xlu0 %v9309_v4, %s9220_s11 }
  0x68   :  { %388 = vrot.lane.b32.xlu2 %v9315_v6, %s9220_s11 }
  0x6f   :  { %392 = vrot.lane.b32.xlu1 %v9321_v7, %s9220_s11  ;;  %390 = vrot.lane.b32.xlu0 %v9324_v8, %s9220_s11 }
  0x70   :  { %469 = vrot.lane.b32.xlu2 %v9300_v2, %s9221_s12 }
  0x77   :  { %473 = vrot.lane.b32.xlu1 %v9297_v1, %s9221_s12  ;;  %471 = vrot.lane.b32.xlu0 %v9312_v5, %s9221_s12 }
  0x78   :  { %475 = vrot.lane.b32.xlu2 %v9309_v4, %s9221_s12 }
  0x7a   :  { %v9364_v9 = vpop.permute.xlu2 %828 }
  0x7f   :  { %479 = vrot.lane.b32.xlu1 %v9315_v6, %s9221_s12  ;;  %477 = vrot.lane.b32.xlu0 %v9303_v3, %s9221_s12 }
  0x80   :  { %481 = vrot.lane.b32.xlu2 %v9324_v8, %s9221_s12 }
  0x82   :  { %v9371_v12 = vpop.permute.xlu2 %830 }
  0x83   :  { %v839_v57 = vsel %vm12089_vm6, %v9364_v9, %v9371_v12 }
  0x84   :  { %v865_v14 = vsel %vm12319_vm10, %v839_v57, 0.0  ;;  %vm12321_vm10 = vnez %v12293_v45 }
  0x87   :  { %571 = vrot.lane.b32.xlu1 %v9300_v2, %s9223_s13  ;;  %483 = vrot.lane.b32.xlu0 %v9321_v7, %s9221_s12 }
  0x88   :  { %573 = vrot.lane.b32.xlu2 %v9312_v5, %s9223_s13 }
  0x8a   :  { %v9390_v18 = vpop.permute.xlu2 %166 }
  0x8f   :  { %577 = vrot.lane.b32.xlu1 %v9309_v4, %s9223_s13  ;;  %575 = vrot.lane.b32.xlu0 %v9297_v1, %s9223_s13 }
  0x90   :  { %579 = vrot.lane.b32.xlu2 %v9303_v3, %s9223_s13 }
  0x91   :  { %v825_v30 = vpop.permute.xlu1 %824  ;;  %v9433_v31 = vpop.permute.xlu0 %820 }
  0x92   :  { %v9458_v37 = vpop.permute.xlu2 %172 }
  0x97   :  { %583 = vrot.lane.b32.xlu1 %v9324_v8, %s9223_s13  ;;  %581 = vrot.lane.b32.xlu0 %v9315_v6, %s9223_s13 }
  0x98   :  { %585 = vrot.lane.b32.xlu2 %v9321_v7, %s9223_s13 }
  0x99   :  { %v827_v50 = vpop.permute.xlu1 %826  ;;  %v823_v51 = vpop.permute.xlu0 %822 }
  0x9a   :  { %v840_v53 = vsel %vm12089_vm6, %v827_v50, %v9364_v9  ;;  %v841_v54 = vsel %vm12089_vm6, %v825_v30, %v827_v50  ;;  %v842_v55 = vsel %vm12089_vm6, %v823_v51, %v825_v30  ;;  %v9555_v56 = vpop.permute.xlu2 %178  ;;  %vm12306_vm6 = vmand %vm9469_vm13, %vm9480_vm0  ;;  %v12313_v9 = vmov 0 }
  0x9b   :  { %v863_v60 = vsel %vm12305_vm2, %v841_v54, 0.0  ;;  %v864_v61 = vsel %vm12306_vm6, %v840_v53, 0.0  ;;  %v862_v0 = vsel %vm854_vm14, %v842_v55, 0.0  ;;  %vm9599_vm2 = vcmp.lt.s32.totalorder %v131_v52, 31  ;;  %vm12323_vm14 = vmand %vm12321_vm10, %vm12322_vm9 }
  0x9c   :  { %v12314_v9 = vsel %vm9599_vm2, 4294967295, %v12313_v9  ;;  %vm12315_vm6 = vcmp.ge.s32.totalorder %v9492_v43, 4294967295  ;;  %v878_v30 = vrot.slane %v863_v60, 6  ;;  %v879_v50 = vrot.slane %v864_v61, 5 }
  0x9d   :  { %vm9605_vm13 = vmand %vm12315_vm6, %vm685_vm15  ;;  %vm12320_vm15 = vcmp.lt.s32.totalorder %v9369_v11, 95  ;;  %v877_v54 = vrot.slane %v862_v0, 7  ;;  %vm200_vm6 = vcmp.lt.s32.totalorder %v9426_v28, 33  ;;  %vm12331_vm10 = vcmask 1044484  }
  0x9e   :  { %v12317_v10 = vsel %vm9605_vm13, 4294967295, %v12316_v10  ;;  %v843_v53 = vsel %vm12320_vm15, %v9433_v31, %v823_v51  ;;  %v880_v51 = vrot.slane %v865_v14, 4  ;;  %vm12324_vm4 = vmmov %vm12320_vm15  ;;  %v885_v36 = vsel %vm12326_vm5, %v878_v30, %v879_v50 }
  0x9f   :  { %12318 = vst [vmem:[#allocation25_spill] sm:$0xff] %v12317_v10  ;;  %648 = vrot.lane.b32.xlu1 %v9312_v5, %s9224_s14  ;;  %646 = vrot.lane.b32.xlu0 %v9300_v2, %s9224_s14  ;;  %v861_v60 = vsel %vm12323_vm14, %v843_v53, 0.0  ;;  %vm12325_vm1 = vmmov %vm12324_vm4  ;;  %vm196_vm0 = vcmp.ge.s32.totalorder %v9489_v42, 1  ;;  %vm199_vm9 = vcmp.lt.s32.totalorder %v9412_v24, 33 }
  0xa0   :  { %650 = vrot.lane.b32.xlu2 %v9297_v1, %s9224_s14  ;;  %vm12327_vm14 = vmand %vm9571_vm7, %vm9563_vm12  ;;  %vm201_vm7 = vcmp.lt.s32.totalorder %v9393_v19, 33  ;;  %vm9702_vm12 = vcmp.ge.s32.totalorder %v126_v38, 1 }
  0xa1   :  { %v835_v55 = vpop.permute.xlu1 %834  ;;  %v833_v57 = vpop.permute.xlu0 %832 }
  0xa2   :  { %v844_v61 = vsel %vm12320_vm15, %v835_v55, %v9433_v31  ;;  %v837_v0 = vsel %vm12324_vm4, %v833_v57, %v835_v55  ;;  %v838_v14 = vsel %vm12325_vm1, %v9371_v12, %v833_v57  ;;  %v9650_v48 = vpop.permute.xlu2 %289  ;;  %vm12328_vm15 = vmand %vm9593_vm11, %vm9587_vm3  ;;  %vm12330_vm1 = vcmask 1040384  }
  0xa3   :  { %v868_v53 = vsel %vm12327_vm14, %v844_v61, 0.0  ;;  %v866_v31 = vsel %vm12328_vm15, %v838_v14, 0.0  ;;  %vm12329_vm4 = vmand %vm9605_vm13, %vm9599_vm2  ;;  %v884_v30 = vsel %vm12330_vm1, %v861_v60, %v877_v54  ;;  %vm192_vm14 = vcmp.ge.s32.totalorder %v9426_v28, 1 }
  0xa4   :  { %v867_v12 = vsel %vm12329_vm4, %v837_v0, 0.0  ;;  %v883_v50 = vrot.slane %v868_v53, 1  ;;  %v881_v55 = vrot.slane %v866_v31, 3  ;;  %vm12332_vm11 = vcmask 1046534  }
  0xa5   :  { %v882_v57 = vrot.slane %v867_v12, 2  ;;  %vm193_vm15 = vcmp.ge.s32.totalorder %v9393_v19, 1  ;;  %vm12333_vm13 = vcmask 1041408   ;;  %vm12334_vm4 = vcmask 1045508  }
  0xa6   :  { %v887_v61 = vsel %vm12331_vm10, %v880_v51, %v881_v55  ;;  %v886_v0 = vsel %vm12333_vm13, %v884_v30, %v885_v36  ;;  %vm12335_vm1 = vcmp.lt.s32.totalorder %v9402_v22, 33  ;;  %vm12336_vm10 = vcmp.ge.s32.totalorder %v9402_v22, 1 }
  0xa7   :  { %v888_v14 = vsel %vm12332_vm11, %v882_v57, %v883_v50  ;;  %654 = vrot.lane.b32.xlu1 %v9303_v3, %s9224_s14  ;;  %652 = vrot.lane.b32.xlu0 %v9309_v4, %s9224_s14  ;;  %vm9685_vm5 = vmand %vm12336_vm10, %vm12335_vm1  ;;  %v12337_v51 = vmov 0  ;;  %vm12339_vm11 = vcmask 1043456   ;;  %vm9692_vm13 = vcmp.ge.s32.totalorder %v128_v27, 1 }
  0xa8   :  { %v889_v54 = vsel %vm12334_vm4, %v887_v61, %v888_v14  ;;  %v12338_v51 = vsel %vm9685_vm5, 4294967295, %v12337_v51  ;;  %v12340_v36 = vmov 0  ;;  %vm9696_vm4 = vmand %vm192_vm14, %vm200_vm6  ;;  %v12344_v31 = vmov 0  ;;  %656 = vrot.lane.b32.xlu2 %v9315_v6, %s9224_s14 }
  0xa9   :  { %v890_v60 = vsel %vm12339_vm11, %v886_v0, %v889_v54  ;;  %v12341_v36 = vsel %vm9692_vm13, 4294967295, %v12340_v36  ;;  %v12345_v31 = vsel %vm9702_vm12, 4294967295, %v12344_v31  ;;  %v171_v12 = vpop.permute.xlu1 %170  ;;  %vm9708_vm1 = vmand %vm193_vm15, %vm201_vm7  ;;  %vm9714_vm6 = vcmp.ge.s32.totalorder %v127_v23, 1  ;;  %v169_v21 = vpop.permute.xlu0 %168 }
  0xaa   :  { %893 = vst [vmem:[#allocation2 + $0x40] ss:$8 sm:$0xf] %v890_v60  ;;  %v12347_v17 = vsel %vm9708_vm1, 4294967295, %v12346_v17  ;;  %v12348_v27 = vmov 0  ;;  %vm197_vm14 = vcmp.ge.s32.totalorder %v9492_v43, 1  ;;  %v9720_v38 = vpop.permute.xlu2 %295 }
  0xab   :  { %v12349_v27 = vsel %vm9714_vm6, 4294967295, %v12348_v27  ;;  %894 = vst [vmem:[#allocation2 + $0x40] ss:$8 sm:$0xf0] %v890_v60  ;;  %vm205_vm10 = vcmp.lt.s32.totalorder %v9492_v43, 33  ;;  %vm195_vm11 = vcmp.ge.s32.totalorder %v9385_v16, 1 }
  0xac   :  { %vm203_vm2 = vcmp.lt.s32.totalorder %v9385_v16, 33  ;;  %vm204_vm3 = vcmp.lt.s32.totalorder %v9489_v42, 33  ;;  %vm9738_vm8 = vmand %vm197_vm14, %vm205_vm10  ;;  %vm9744_vm15 = vcmp.ge.s32.totalorder %v131_v52, 1  ;;  %v12352_v23 = vmov 0 }
  0xad   :  { %v12351_v15 = vsel %vm9738_vm8, 4294967295, %v12350_v15  ;;  %v12353_v23 = vsel %vm9744_vm15, 4294967295, %v12352_v23  ;;  %vm9748_vm7 = vmand %vm195_vm11, %vm203_vm2  ;;  %v12354_v30 = vmov 0  ;;  %v12356_v50 = vmov 0 }
  0xae   :  { %v12355_v30 = vsel %vm9748_vm7, 4294967295, %v12354_v30  ;;  %vm9756_vm14 = vmand %vm196_vm0, %vm204_vm3  ;;  %vm9762_vm10 = vcmp.ge.s32.totalorder %v129_v20, 1  ;;  %vm9769_vm11 = vcmp.ge.s32.totalorder %v130_v49, 1  ;;  %v12360_v61 = vmov 0 }
  0xaf   :  { %660 = vrot.lane.b32.xlu1 %v9321_v7, %s9224_s14  ;;  %658 = vrot.lane.b32.xlu0 %v9324_v8, %s9224_s14  ;;  %v12357_v50 = vsel %vm9756_vm14, 4294967295, %v12356_v50  ;;  %v12359_v33 = vsel %vm9762_vm10, 4294967295, %v12358_v33  ;;  %v12361_v61 = vsel %vm9769_vm11, 4294967295, %v12360_v61  ;;  %vm198_vm6 = vcmp.ge.s32.totalorder %v9476_v40, 1  ;;  %vm228_vm10 = vmand %vm9756_vm14, %vm9769_vm11 }
  0xb0   :  { %745 = vrot.lane.b32.xlu2 %v9300_v2, %s9225_s15  ;;  %vm206_vm0 = vcmp.lt.s32.totalorder %v9476_v40, 33  ;;  %vm12362_vm15 = vcmp.lt.s32.totalorder %v9369_v11, 33  ;;  %vm12384_vm11 = vnez %v12351_v15  ;;  %vm12385_vm14 = vnez %v12353_v23 }
  0xb1   :  { %v911_v52 = vld [vmem:[#allocation2 + $0x40] sm:$0xff]  ;;  %v912_v55 = vld [vmem:[#allocation2 + $0x48] sm:$0xff]  ;;  %v913_v57 = vld [vmem:[#allocation2 + $0x50] sm:$0xff]  ;;  %v177_v13 = vpop.permute.xlu1 %176  ;;  %v175_v14 = vpop.permute.xlu0 %174  ;;  %v187_v32 = vsel %vm12362_vm15, %v171_v12, %v9458_v37 }
  0xb2   :  { %1006 = vmatpush.msra.mxu0 %v911_v52  ;;  %1047 = vmatpush.msra.mxu1 %v912_v55  ;;  %v914_v20 = vld [vmem:[#allocation2 + $0x58] sm:$0xff]  ;;  %v9787_v2 = vpop.permute.xlu2 %301  ;;  %vm12363_vm3 = vmmov %vm12362_vm15  ;;  %v12371_v52 = vand.u32 31, %v9369_v11  ;;  %v12372_v55 = vmov 0 }
  0xb3   :  { %1088 = vmatpush.msra.mxu2 %v913_v57  ;;  %1129 = vmatpush.msra.mxu3 %v914_v20  ;;  %v188_v49 = vsel %vm12363_vm3, %v169_v21, %v171_v12  ;;  %vm12364_vm8 = vmmov %vm12363_vm3  ;;  %v12374_v57 = vmov 0 }
  0xb4   :  { %v189_v0 = vsel %vm12364_vm8, %v9390_v18, %v169_v21  ;;  %vm12365_vm2 = vmmov %vm12363_vm3  ;;  %vm12368_vm3 = vcmp.ge.s32.totalorder %v9412_v24, 1  ;;  %vm9817_vm8 = vcmp.ge.s32.totalorder %v12371_v52, 1 }
  0xb5   :  { %v184_v54 = vsel %vm12365_vm2, %v177_v13, %v9555_v56  ;;  %vm12366_vm7 = vmmov %vm12365_vm2  ;;  %v12373_v55 = vsel %vm9817_vm8, 4294967295, %v12372_v55 }
  0xb6   :  { %v185_v60 = vsel %vm12366_vm7, %v175_v14, %v177_v13  ;;  %vm12367_vm15 = vmmov %vm12365_vm2  ;;  %v12376_v13 = vand.u32 31, %v9431_v29 }
  0xb7   :  { %v186_v12 = vsel %vm12367_vm15, %v9458_v37, %v175_v14  ;;  %vm9811_vm1 = vmand %vm12368_vm3, %vm199_vm9  ;;  %v12377_v37 = vmov 0  ;;  %vm12382_vm15 = vnez %v12349_v27  ;;  %749 = vrot.lane.b32.xlu1 %v9297_v1, %s9225_s15  ;;  %747 = vrot.lane.b32.xlu0 %v9312_v5, %s9225_s15 }
  0xb8   :  { %vm9821_vm2 = vmand %vm198_vm6, %vm206_vm0  ;;  %vm9827_vm7 = vcmp.ge.s32.totalorder %v12376_v13, 1  ;;  %vm12381_vm0 = vnez %v12347_v17  ;;  %v252_v13 = vsel %vm228_vm10, %v185_v60, 0.0  ;;  %751 = vrot.lane.b32.xlu2 %v9309_v4, %s9225_s15 }
  0xb9   :  { %v12375_v57 = vsel %vm9821_vm2, 4294967295, %v12374_v57  ;;  %v12378_v37 = vsel %vm9827_vm7, 4294967295, %v12377_v37  ;;  %vm12379_vm9 = vmand %vm9685_vm5, %vm9692_vm13  ;;  %vm12388_vm13 = vnez %v12359_v33  ;;  %v288_v60 = vpop.permute.xlu1 %287  ;;  %v267_v45 = vrot.slane %v252_v13, 3 }
  0xba   :  { %v250_v20 = vsel %vm12379_vm9, %v187_v32, 0.0  ;;  %vm12380_vm6 = vmand %vm9696_vm4, %vm9702_vm12  ;;  %vm12387_vm9 = vnez %v12355_v30  ;;  %v9876_v59 = vpop.permute.xlu2 %382 }
  0xbb   :  { %v248_v14 = vsel %vm12380_vm6, %v189_v0, 0.0  ;;  %vm12383_vm3 = vmand %vm12381_vm0, %vm12382_vm15  ;;  %vm12397_vm15 = vcmask 1041408  }
  0xbc   :  { %v249_v29 = vsel %vm12383_vm3, %v188_v49, 0.0  ;;  %vm12386_vm2 = vmand %vm12384_vm11, %vm12385_vm14  ;;  %v265_v49 = vrot.slane %v250_v20, 5  ;;  %v263_v0 = vrot.slane %v248_v14, 7  ;;  %vm12396_vm14 = vcmask 1046534  }
  0xbd   :  { %v253_v52 = vsel %vm12386_vm2, %v184_v54, 0.0  ;;  %vm12389_vm5 = vmand %vm12387_vm9, %vm12388_vm13  ;;  %vm12390_vm2 = vnez %v12375_v57  ;;  %v264_v54 = vrot.slane %v249_v29, 6  ;;  %vm12395_vm13 = vcmask 1044484  }
  0xbe   :  { %v251_v32 = vsel %vm12389_vm5, %v186_v12, 0.0  ;;  %vm223_vm6 = vmand %vm9811_vm1, %vm9817_vm8  ;;  %v268_v1 = vrot.slane %v253_v52, 2  ;;  %v181_v12 = vpop.permute.xlu0 %180  ;;  %vm12391_vm5 = vcmp.lt.s32.totalorder %v9369_v11, 33  ;;  %vm12394_vm8 = vcmask 1042434  }
  0xbf   :  { %vm230_vm3 = vmand %vm12390_vm2, %vm9827_vm7  ;;  %v266_v5 = vrot.slane %v251_v32, 4  ;;  %v183_v10 = vsel %vm12391_vm5, %v9555_v56, %v181_v12  ;;  %vm12393_vm7 = vcmask 1040384   ;;  %v273_v29 = vsel %vm12394_vm8, %v264_v54, %v265_v49  ;;  %755 = vrot.lane.b32.xlu1 %v9315_v6, %s9225_s15  ;;  %753 = vrot.lane.b32.xlu0 %v9303_v3, %s9225_s15 }
  0xc0   :  { %vm12392_vm10 = vmmov %vm12391_vm5  ;;  %v254_v4 = vsel %vm230_vm3, %v183_v10, 0.0  ;;  %vm12398_vm5 = vcmask 1045508   ;;  %vm12399_vm3 = vcmask 1043456   ;;  %757 = vrot.lane.b32.xlu2 %v9324_v8, %s9225_s15 }
  0xc1   :  { %v190_v63 = vsel %vm12392_vm10, %v181_v12, %v9390_v18  ;;  %v269_v20 = vrot.slane %v254_v4, 1  ;;  %v277_v52 = vsel %vm12395_vm13, %v266_v5, %v267_v45  ;;  %vm12400_vm13 = vnez %v12338_v51 }
  0xc2   :  { %v247_v26 = vsel %vm223_vm6, %v190_v63, 0.0  ;;  %vm303_vm6 = vcmp.lt.s32.totalorder %v9369_v11, 32  ;;  %v9903_v8 = vpop.permute.xlu2 %388  ;;  %vm12403_vm10 = vcmask 1046534  }
  0xc3   :  { %v271_v14 = vsel %vm12393_vm7, %v247_v26, %v263_v0  ;;  %v279_v32 = vsel %vm12396_vm14, %v268_v1, %v269_v20  ;;  %v294_v26 = vpop.permute.xlu1 %293  ;;  %v310_v3 = vsel %vm303_vm6, %v288_v60, %v9650_v48  ;;  %vm12401_vm14 = vnez %v12357_v50 }
  0xc4   :  { %v275_v13 = vsel %vm12397_vm15, %v271_v14, %v273_v29  ;;  %v281_v56 = vsel %vm12398_vm5, %v277_v52, %v279_v32  ;;  %v307_v10 = vsel %vm303_vm6, %v294_v26, %v9720_v38  ;;  %v345_v54 = vsel %vm9696_vm4, %v310_v3, 0.0 }
  0xc5   :  { %v283_v18 = vsel %vm12399_vm3, %v275_v13, %v281_v56  ;;  %v348_v1 = vsel %vm12387_vm9, %v307_v10, 0.0  ;;  %v360_v4 = vrot.slane %v345_v54, 7  ;;  %vm12402_vm15 = vcmask 1044484  }
  0xc6   :  { %285 = vst [vmem:[#allocation2] ss:$8 sm:$0xf] %v283_v18  ;;  %v292_v45 = vpop.permute.xlu0 %291  ;;  %v363_v29 = vrot.slane %v348_v1, 4  ;;  %vm12404_vm5 = vcmask 1041408  }
  0xc7   :  { %286 = vst [vmem:[#allocation2] ss:$8 sm:$0xf0] %v283_v18  ;;  %v308_v63 = vsel %vm303_vm6, %v292_v45, %v294_v26  ;;  %v309_v6 = vsel %vm303_vm6, %v9650_v48, %v292_v45  ;;  %759 = vrot.lane.b32.xlu0 %v9321_v7, %s9225_s15  ;;  %v311_v48 = vsel %vm303_vm6, %v9787_v2, %v288_v60 }
  0xc8   :  { %v346_v49 = vsel %vm12381_vm0, %v309_v6, 0.0  ;;  %v347_v0 = vsel %vm12400_vm13, %v308_v63, 0.0  ;;  %v344_v60 = vsel %vm9811_vm1, %v311_v48, 0.0 }
  0xc9   :  { %v361_v12 = vrot.slane %v346_v49, 6  ;;  %v362_v5 = vrot.slane %v347_v0, 5  ;;  %v367_v6 = vsel %vm12393_vm7, %v344_v60, %v360_v4  ;;  %vm12406_vm7 = vnez %v12283_v34 }
  0xca   :  { %v9938_v10 = vpop.permute.xlu2 %469 }
  0xcb   :  { %v300_v20 = vpop.permute.xlu1 %299 }
  0xcc   :  { %v304_v52 = vsel %vm303_vm6, %v300_v20, %v9787_v2  ;;  %v368_v2 = vsel %vm12394_vm8, %v361_v12, %v362_v5  ;;  %vm12153_vm8 = vcmp.lt.s32.totalorder %v9369_v11, 31 }
  0xcd   :  { %v351_v13 = vsel %vm12390_vm2, %v304_v52, 0.0  ;;  %v369_v49 = vsel %vm12404_vm5, %v367_v6, %v368_v2 }
  0xce   :  { %v298_v14 = vpop.permute.xlu0 %297  ;;  %v366_v26 = vrot.slane %v351_v13, 1 }
  0xcf   :  { %v305_v32 = vsel %vm303_vm6, %v298_v14, %v300_v20  ;;  %v306_v7 = vsel %vm303_vm6, %v9720_v38, %v298_v14  ;;  %vm12405_vm6 = vcmask 1045508  }
  0xd0   :  { %v349_v56 = vsel %vm12401_vm14, %v306_v7, 0.0  ;;  %v350_v18 = vsel %vm12384_vm11, %v305_v32, 0.0 }
  0xd1   :  { %v364_v45 = vrot.slane %v349_v56, 3  ;;  %v365_v63 = vrot.slane %v350_v18, 2 }
  0xd2   :  { %v9948_v12 = vpop.permute.xlu2 %475 }
  0xd3   :  { %v370_v38 = vsel %vm12402_vm15, %v363_v29, %v364_v45  ;;  %v371_v3 = vsel %vm12403_vm10, %v365_v63, %v366_v26  ;;  %v381_v1 = vpop.permute.xlu1 %380  ;;  %vm429_vm15 = vmand %vm12381_vm0, %vm12406_vm7  ;;  %vm12407_vm10 = vnez %v12296_v46  ;;  %vm12411_vm7 = vnez %v12291_v44 }
  0xd4   :  { %v372_v0 = vsel %vm12405_vm6, %v370_v38, %v371_v3  ;;  %vm428_vm5 = vmand %vm9696_vm4, %vm12407_vm10  ;;  %vm12408_vm6 = vnez %v12308_v62  ;;  %v400_v20 = vsel %vm12153_vm8, %v381_v1, %v9876_v59  ;;  %vm12409_vm4 = vnez %v12289_v41 }
  0xd5   :  { %v373_v54 = vsel %vm12399_vm3, %v369_v49, %v372_v0  ;;  %vm432_vm3 = vmand %vm12401_vm14, %vm12408_vm6  ;;  %vm12410_vm14 = vnez %v12278_v25  ;;  %v437_v29 = vsel %vm429_vm15, %v400_v20, 0.0  ;;  %vm12412_vm10 = vnez %v12314_v9 }
  0xd6   :  { %376 = vst [vmem:[#allocation2 + $0x1] ss:$8 sm:$0xf] %v373_v54  ;;  %v379_v48 = vpop.permute.xlu0 %378  ;;  %vm430_vm0 = vmand %vm12400_vm13, %vm12409_vm4 }
  0xd7   :  { %377 = vst [vmem:[#allocation2 + $0x1] ss:$8 sm:$0xf0] %v373_v54  ;;  %v401_v17 = vsel %vm12153_vm8, %v379_v48, %v381_v1  ;;  %vm431_vm6 = vmand %vm12387_vm9, %vm12410_vm14  ;;  %vm12413_vm9 = vnez %v12300_v58  ;;  %vm12423_vm14 = vcmask 1043456  }
  0xd8   :  { %v436_v52 = vsel %vm428_vm5, %v401_v17, 0.0  ;;  %vm427_vm13 = vmand %vm9811_vm1, %vm12411_vm7  ;;  %vm12414_vm1 = vcmp.lt.s32.totalorder %v9369_v11, 31  ;;  %vm497_vm5 = vcmp.ge.s32.totalorder %v9402_v22, 0 }
  0xd9   :  { %vm433_vm4 = vmand %vm12384_vm11, %vm12412_vm10  ;;  %v451_v30 = vrot.slane %v436_v52, 7 }
  0xda   :  { %vm12415_vm15 = vmmov %vm12414_vm1  ;;  %v9998_v45 = vpop.permute.xlu2 %481 }
  0xdb   :  { %v387_v5 = vpop.permute.xlu1 %386  ;;  %vm12416_vm11 = vmmov %vm12414_vm1 }
  0xdc   :  { %v397_v14 = vsel %vm12153_vm8, %v387_v5, %v9903_v8 }
  0xdd   :  { %v440_v32 = vsel %vm432_vm3, %v397_v14, 0.0  ;;  %vm495_vm3 = vcmp.ge.s32.totalorder %v9426_v28, 0  ;;  %v12434_v14 = vmov 0 }
  0xde   :  { %v385_v4 = vpop.permute.xlu0 %384  ;;  %v455_v60 = vrot.slane %v440_v32, 3 }
  0xdf   :  { %v399_v53 = vsel %vm12153_vm8, %v9876_v59, %v385_v4  ;;  %v398_v50 = vsel %vm12153_vm8, %v385_v4, %v387_v5  ;;  %vm434_vm8 = vmand %vm12390_vm2, %vm12413_vm9  ;;  %v452_v59 = vrot.slane %v437_v29, 6  ;;  %vm12417_vm2 = vcmask 1040384  }
  0xe0   :  { %v438_v7 = vsel %vm430_vm0, %v399_v53, 0.0  ;;  %v439_v51 = vsel %vm431_vm6, %v398_v50, 0.0  ;;  %vm505_vm6 = vcmp.lt.s32.totalorder %v9402_v22, 32  ;;  %vm12418_vm0 = vcmask 1042434  }
  0xe1   :  { %v453_v13 = vrot.slane %v438_v7, 5  ;;  %v454_v2 = vrot.slane %v439_v51, 4  ;;  %vm10013_vm10 = vmand %vm497_vm5, %vm505_vm6  ;;  %vm500_vm5 = vcmp.ge.s32.totalorder %v9492_v43, 0  ;;  %vm508_vm6 = vcmp.lt.s32.totalorder %v9492_v43, 32 }
  0xe2   :  { %vm10045_vm7 = vmand %vm500_vm5, %vm508_vm6  ;;  %v12432_v43 = vmov 0  ;;  %vm12159_vm9 = vcmp.lt.s32.totalorder %v9369_v11, 1  ;;  %vm494_vm5 = vcmp.ge.s32.totalorder %v9412_v24, 0  ;;  %vm502_vm6 = vcmp.lt.s32.totalorder %v9412_v24, 32 }
  0xe3   :  { %v393_v56 = vpop.permute.xlu1 %392  ;;  %v459_v0 = vsel %vm12418_vm0, %v452_v59, %v453_v13  ;;  %v12433_v43 = vsel %vm10045_vm7, 4294967295, %v12432_v43 }
  0xe4   :  { %v402_v21 = vsel %vm12414_vm1, %v393_v56, %v379_v48  ;;  %vm12419_vm1 = vcmask 1044484  }
  0xe5   :  { %v435_v57 = vsel %vm427_vm13, %v402_v21, 0.0  ;;  %v461_v54 = vsel %vm12419_vm1, %v454_v2, %v455_v60  ;;  %vm503_vm13 = vcmp.lt.s32.totalorder %v9426_v28, 32 }
  0xe6   :  { %v391_v18 = vpop.permute.xlu0 %390  ;;  %v458_v38 = vsel %vm12417_vm2, %v435_v57, %v451_v30  ;;  %vm504_vm2 = vcmp.lt.s32.totalorder %v9393_v19, 32  ;;  %vm10017_vm0 = vmand %vm495_vm3, %vm503_vm13  ;;  %vm498_vm13 = vcmp.ge.s32.totalorder %v9385_v16, 0 }
  0xe7   :  { %v395_v26 = vsel %vm12415_vm15, %v391_v18, %v393_v56  ;;  %v396_v15 = vsel %vm12416_vm11, %v9903_v8, %v391_v18  ;;  %vm12420_vm15 = vcmask 1046534   ;;  %vm496_vm11 = vcmp.ge.s32.totalorder %v9393_v19, 0  ;;  %v10035_v19 = vpop.permute.xlu2 %573 }
  0xe8   :  { %v441_v63 = vsel %vm433_vm4, %v396_v15, 0.0  ;;  %v442_v6 = vsel %vm434_vm8, %v395_v26, 0.0  ;;  %vm12421_vm4 = vcmask 1041408   ;;  %vm12422_vm8 = vcmask 1045508   ;;  %vm10021_vm1 = vmand %vm496_vm11, %vm504_vm2 }
  0xe9   :  { %v456_v3 = vrot.slane %v441_v63, 2  ;;  %v457_v49 = vrot.slane %v442_v6, 1  ;;  %v460_v1 = vsel %vm12421_vm4, %v458_v38, %v459_v0  ;;  %vm506_vm4 = vcmp.lt.s32.totalorder %v9385_v16, 32 }
  0xea   :  { %vm499_vm2 = vcmp.ge.s32.totalorder %v9489_v42, 0  ;;  %vm10049_vm3 = vmand %vm498_vm13, %vm506_vm4  ;;  %v12436_v16 = vmov 0  ;;  %vm12440_vm4 = vnez %v12361_v61 }
  0xeb   :  { %v462_v8 = vsel %vm12420_vm15, %v456_v3, %v457_v49  ;;  %v474_v4 = vpop.permute.xlu1 %473  ;;  %vm12430_vm15 = vnez %v12341_v36  ;;  %v12435_v14 = vsel %vm10049_vm3, 4294967295, %v12434_v14  ;;  %vm10090_vm13 = vmand %vm494_vm5, %vm502_vm6  ;;  %vm12448_vm5 = vnez %v12349_v27 }
  0xec   :  { %v463_v48 = vsel %vm12422_vm8, %v461_v54, %v462_v8  ;;  %v490_v50 = vsel %vm12159_vm9, %v474_v4, %v9948_v12  ;;  %vm12449_vm6 = vmand %vm10021_vm1, %vm12448_vm5 }
  0xed   :  { %v464_v22 = vsel %vm12423_vm14, %v460_v1, %v463_v48  ;;  %vm507_vm14 = vcmp.lt.s32.totalorder %v9489_v42, 32 }
  0xee   :  { %467 = vst [vmem:[#allocation2 + $0x2] ss:$8 sm:$0xf] %v464_v22  ;;  %v472_v28 = vpop.permute.xlu0 %471  ;;  %vm10054_vm12 = vmand %vm499_vm2, %vm507_vm14  ;;  %vm501_vm14 = vcmp.ge.s32.totalorder %v9476_v40, 0  ;;  %vm509_vm2 = vcmp.lt.s32.totalorder %v9476_v40, 32 }
  0xef   :  { %468 = vst [vmem:[#allocation2 + $0x2] ss:$8 sm:$0xf0] %v464_v22  ;;  %v12437_v16 = vsel %vm10054_vm12, 4294967295, %v12436_v16  ;;  %v491_v29 = vsel %vm12159_vm9, %v472_v28, %v474_v4  ;;  %v492_v24 = vsel %vm12159_vm9, %v9938_v10, %v472_v28  ;;  %vm523_vm8 = vmand %vm10054_vm12, %vm12440_vm4  ;;  %vm12446_vm12 = vnez %v12345_v31  ;;  %v580_v13 = vpop.permute.xlu2 %579 }
  0xf0   :  { %vm10094_vm3 = vmand %vm501_vm14, %vm509_vm2  ;;  %v536_v30 = vsel %vm12449_vm6, %v491_v29, 0.0  ;;  %vm12450_vm14 = vnez %v12353_v23  ;;  %vm12456_vm6 = vnez %v12378_v37 }
  0xf1   :  { %vm12445_vm4 = vmand %vm10013_vm10, %vm12430_vm15  ;;  %v551_v26 = vrot.slane %v536_v30, 6 }
  0xf2   :  { %v537_v59 = vsel %vm12445_vm4, %v490_v50, 0.0  ;;  %vm12447_vm11 = vmand %vm10017_vm0, %vm12446_vm12  ;;  %vm12452_vm4 = vnez %v12435_v14 }
  0xf3   :  { %v480_v42 = vpop.permute.xlu1 %479  ;;  %vm12451_vm2 = vmand %vm10045_vm7, %vm12450_vm14  ;;  %v552_v2 = vrot.slane %v537_v59, 5  ;;  %vm12461_vm14 = vcmask 1044484   ;;  %vm12465_vm7 = vcmask 1043456  }
  0xf4   :  { %v487_v52 = vsel %vm12159_vm9, %v480_v42, %v9998_v45  ;;  %vm525_vm5 = vmand %vm10094_vm3, %vm12456_vm6  ;;  %vm12462_vm6 = vcmask 1046534  }
  0xf5   :  { %v540_v60 = vsel %vm12451_vm2, %v487_v52, 0.0  ;;  %vm12459_vm2 = vcmask 1040384  }
  0xf6   :  { %v478_v53 = vpop.permute.xlu0 %477  ;;  %v555_v15 = vrot.slane %v540_v60, 2 }
  0xf7   :  { %v488_v40 = vsel %vm12159_vm9, %v478_v53, %v480_v42  ;;  %v489_v32 = vsel %vm12159_vm9, %v9948_v12, %v478_v53  ;;  %v535_v12 = vsel %vm12447_vm11, %v492_v24, 0.0  ;;  %vm12453_vm9 = vnez %v12359_v33 }
  0xf8   :  { %vm12454_vm15 = vmand %vm12452_vm4, %vm12453_vm9  ;;  %v539_v18 = vsel %vm523_vm8, %v488_v40, 0.0  ;;  %vm12455_vm11 = vnez %v12373_v55  ;;  %v550_v21 = vrot.slane %v535_v12, 7  ;;  %vm587_vm9 = vcmp.lt.s32.totalorder %v9369_v11, 127 }
  0xf9   :  { %v538_v56 = vsel %vm12454_vm15, %v489_v32, 0.0  ;;  %vm518_vm12 = vmand %vm10090_vm13, %vm12455_vm11  ;;  %v554_v38 = vrot.slane %v539_v18, 3  ;;  %vm12457_vm15 = vcmp.lt.s32.totalorder %v9369_v11, 1  ;;  %vm12460_vm11 = vcmask 1042434  }
  0xfa   :  { %v553_v6 = vrot.slane %v538_v56, 4  ;;  %vm12458_vm8 = vmmov %vm12457_vm15  ;;  %v558_v48 = vsel %vm12460_vm11, %v551_v26, %v552_v2  ;;  %vm12463_vm4 = vcmask 1041408  }
  0xfb   :  { %v572_v57 = vpop.permute.xlu1 %571 }
  0xfc   :  { %v560_v22 = vsel %vm12461_vm14, %v553_v6, %v554_v38  ;;  %vm12467_vm14 = vnez %v12296_v46 }
  0xfd   :  { %vm605_vm11 = vmand %vm10017_vm0, %vm12467_vm14  ;;  %vm12474_vm14 = vnez %v12435_v14 }
  0xfe   :  { %v484_v63 = vpop.permute.xlu0 %483 }
  0xff   :  { %v486_v3 = vsel %vm12457_vm15, %v9998_v45, %v484_v63  ;;  %v493_v49 = vsel %vm12458_vm8, %v484_v63, %v9938_v10  ;;  %vm12464_vm15 = vcmask 1045508   ;;  %v586_v10 = vpop.permute.xlu2 %585  ;;  %vm12470_vm8 = vnez %v12291_v44 }
 0x100   :  { %v534_v0 = vsel %vm518_vm12, %v493_v49, 0.0  ;;  %v541_v54 = vsel %vm525_vm5, %v486_v3, 0.0  ;;  %vm12466_vm12 = vnez %v12289_v41  ;;  %v595_v20 = vsel %vm587_vm9, %v586_v10, %v572_v57 }
 0x101   :  { %v556_v8 = vrot.slane %v541_v54, 1  ;;  %v557_v1 = vsel %vm12459_vm2, %v534_v0, %v550_v21  ;;  %vm607_vm5 = vmand %vm10013_vm10, %vm12466_vm12  ;;  %vm12472_vm2 = vnez %v12433_v43  ;;  %vm12475_vm10 = vnez %v12308_v62 }
 0x102   :  { %v559_v28 = vsel %vm12463_vm4, %v557_v1, %v558_v48  ;;  %vm12476_vm12 = vnez %v12437_v16 }
 0x103   :  { %v561_v4 = vsel %vm12462_vm6, %v555_v15, %v556_v8  ;;  %v578_v53 = vpop.permute.xlu1 %577  ;;  %vm12469_vm6 = vnez %v12300_v58  ;;  %v594_v58 = vsel %vm587_vm9, %v572_v57, %v10035_v19 }
 0x104   :  { %v562_v45 = vsel %vm12464_vm15, %v560_v22, %v561_v4  ;;  %v591_v29 = vsel %vm587_vm9, %v578_v53, %v580_v13  ;;  %vm611_vm0 = vmand %vm10094_vm3, %vm12469_vm6  ;;  %vm12471_vm3 = vnez %v12314_v9  ;;  %vm12479_vm6 = vcmask 1046534  }
 0x105   :  { %v563_v42 = vsel %vm12465_vm7, %v559_v28, %v562_v45  ;;  %vm12468_vm7 = vnez %v12283_v34  ;;  %v615_v34 = vsel %vm607_vm5, %v591_v29, 0.0  ;;  %vm610_vm15 = vmand %vm12472_vm2, %vm12471_vm3  ;;  %v619_v44 = vsel %vm611_vm0, %v595_v20, 0.0  ;;  %v12504_v29 = vld [vmem:[#allocation22_spill] sm:$0xff] }
 0x106   :  { %566 = vst [vmem:[#allocation2 + $0x3] ss:$8 sm:$0xf] %v563_v42  ;;  %v576_v50 = vpop.permute.xlu0 %575  ;;  %vm606_vm4 = vmand %vm10021_vm1, %vm12468_vm7  ;;  %v630_v41 = vrot.slane %v615_v34, 5  ;;  %v634_v59 = vrot.slane %v619_v44, 1  ;;  %vm12477_vm7 = vcmask 1040384   ;;  %vm12484_vm2 = vnez %v12349_v27 }
 0x107   :  { %567 = vst [vmem:[#allocation2 + $0x3] ss:$8 sm:$0xf0] %v563_v42  ;;  %v592_v24 = vsel %vm587_vm9, %v576_v50, %v578_v53  ;;  %v593_v46 = vsel %vm587_vm9, %v10035_v19, %v576_v50  ;;  %vm604_vm1 = vmand %vm10090_vm13, %vm12470_vm8  ;;  %vm12473_vm13 = vnez %v12278_v25  ;;  %v651_v19 = vpop.permute.xlu2 %650  ;;  %vm12480_vm0 = vcmask 1044484   ;;  %v12500_v42 = vld [vmem:[#allocation25_spill] sm:$0xff] }
 0x108   :  { %v613_v52 = vsel %vm605_vm11, %v593_v46, 0.0  ;;  %v614_v17 = vsel %vm606_vm4, %v592_v24, 0.0  ;;  %vm608_vm11 = vmand %vm12474_vm14, %vm12473_vm13  ;;  %v612_v32 = vsel %vm604_vm1, %v594_v58, 0.0  ;;  %vm12478_vm4 = vcmask 1042434  }
 0x109   :  { %v628_v40 = vrot.slane %v613_v52, 7  ;;  %v629_v5 = vrot.slane %v614_v17, 6  ;;  %vm609_vm5 = vmand %vm12476_vm12, %vm12475_vm10  ;;  %vm12482_vm8 = vcmask 1045508   ;;  %vm12483_vm1 = vcmask 1043456  }
 0x10a   :  { %vm12163_vm3 = vcmp.lt.s32.totalorder %v9369_v11, 97  ;;  %vm12486_vm14 = vnez %v12341_v36  ;;  %vm12488_vm12 = vnez %v12345_v31  ;;  %v12491_v36 = vld [vmem:[#allocation21_spill] sm:$0xff]  ;;  %v12494_v31 = vld [vmem:[#allocation23_spill] sm:$0xff] }
 0x10b   :  { %v584_v7 = vpop.permute.xlu1 %583  ;;  %v635_v30 = vsel %vm12477_vm7, %v612_v32, %v628_v40  ;;  %v636_v56 = vsel %vm12478_vm4, %v629_v5, %v630_v41  ;;  %vm12490_vm4 = vnez %v12359_v33  ;;  %v12497_v33 = vld [vmem:[#allocation24_spill] sm:$0xff] }
 0x10c   :  { %v588_v12 = vsel %vm587_vm9, %v584_v7, %v586_v10 }
 0x10d   :  { %v618_v62 = vsel %vm610_vm15, %v588_v12, 0.0  ;;  %vm12485_vm15 = vnez %v12285_v35 }
 0x10e   :  { %v582_v51 = vpop.permute.xlu0 %581  ;;  %v633_v18 = vrot.slane %v618_v62, 2  ;;  %vm697_vm13 = vmand %vm12485_vm15, %vm12484_vm2  ;;  %vm12496_vm2 = vnez %v12361_v61 }
 0x10f   :  { %v589_v25 = vsel %vm587_vm9, %v582_v51, %v584_v7  ;;  %v590_v14 = vsel %vm587_vm9, %v580_v13, %v582_v51  ;;  %vm12481_vm9 = vcmask 1041408   ;;  %v657_v6 = vpop.permute.xlu2 %656 }
 0x110   :  { %v616_v16 = vsel %vm608_vm11, %v590_v14, 0.0  ;;  %v617_v60 = vsel %vm609_vm5, %v589_v25, 0.0  ;;  %v639_v26 = vsel %vm12479_vm6, %v633_v18, %v634_v59  ;;  %v637_v13 = vsel %vm12481_vm9, %v635_v30, %v636_v56  ;;  %v924_v30 = vld [vmem:[%s12075_s2 + $0x28] sm:$0xff] }
 0x111   :  { %v631_v2 = vrot.slane %v616_v16, 4  ;;  %v632_v21 = vrot.slane %v617_v60, 3  ;;  %vm12487_vm11 = vnez %v12287_v39  ;;  %vm12489_vm5 = vnez %v12298_v47 }
 0x112   :  { %vm698_vm10 = vmand %vm12487_vm11, %vm12486_vm14  ;;  %vm12492_vm6 = vnez %v12491_v36  ;;  %vm12493_vm9 = vnez %v12378_v37  ;;  %vm12498_vm14 = vnez %v12497_v33  ;;  %v9226_v60 = vmov 0   ;;  %v923_v33 = vld [vmem:[%s12075_s2 + $0x20] sm:$0xff] }
 0x113   :  { %v638_v15 = vsel %vm12480_vm0, %v631_v2, %v632_v21  ;;  %v649_v9 = vpop.permute.xlu1 %648  ;;  %vm696_vm7 = vmand %vm12489_vm5, %vm12488_vm12  ;;  %9024 = vset.pattern.permute.xlu0 %v9226_v60  ;;  %9022 = vset.pattern.permute.xlu1 %v9226_v60 }
 0x114   :  { %v640_v57 = vsel %vm12482_vm8, %v638_v15, %v639_v26  ;;  %v668_v27 = vsel %vm12163_vm3, %v649_v9, %v651_v19  ;;  %vm699_vm0 = vmand %vm12492_vm6, %vm12490_vm4  ;;  %vm12495_vm8 = vnez %v12494_v31  ;;  %vm12499_vm4 = vnez %v12353_v23  ;;  %954 = vperm.xlu0 %9024, %v924_v30   ;;  %9023 = vset.pattern.permute.xlu2 %v9226_v60  ;;  %v926_v15 = vld [vmem:[%s12075_s2 + $0x38] sm:$0xff]  ;;  %v1942_v60 = vld [vmem:[%s12077_s4 + $0x30] sm:$0xff] }
 0x115   :  { %v641_v43 = vsel %vm12483_vm1, %v637_v13, %v640_v57  ;;  %v712_v22 = vsel %vm696_vm7, %v668_v27, 0.0  ;;  %vm702_vm1 = vmand %vm12495_vm8, %vm12493_vm9  ;;  %vm12503_vm7 = vnez %v12373_v55  ;;  %964 = vperm.xlu1 %9022, %v926_v15   ;;  %v1943_v30 = vld [vmem:[%s12077_s4 + $0x38] sm:$0xff] }
 0x116   :  { %644 = vst [vmem:[#allocation2 + $0x5] ss:$8 sm:$0xf] %v641_v43  ;;  %v647_v63 = vpop.permute.xlu0 %646  ;;  %vm700_vm12 = vmand %vm12498_vm14, %vm12496_vm2  ;;  %v727_v10 = vrot.slane %v712_v22, 7 }
 0x117   :  { %645 = vst [vmem:[#allocation2 + $0x5] ss:$8 sm:$0xf0] %v641_v43  ;;  %v10237_v8 = vpop.permute.xlu2 %745 }
 0x11b   :  { %v655_v38 = vpop.permute.xlu1 %654 }
 0x11c   :  { %v665_v54 = vsel %vm12163_vm3, %v655_v38, %v657_v6 }
 0x11d   :  { %v715_v4 = vsel %vm699_vm0, %v665_v54, 0.0  ;;  %vm12505_vm0 = vnez %v12504_v29  ;;  %949 = vperm.xlu1 %9022, %v923_v33  }
 0x11e   :  { %v653_v3 = vpop.permute.xlu0 %652  ;;  %vm695_vm9 = vmand %vm12505_vm0, %vm12503_vm7  ;;  %v730_v61 = vrot.slane %v715_v4, 4  ;;  %vm12510_vm7 = vcmask 1040384   ;;  %vm12511_vm0 = vcmask 1044484  }
 0x11f   :  { %v666_v49 = vsel %vm12163_vm3, %v653_v3, %v655_v38  ;;  %v667_v0 = vsel %vm12163_vm3, %v651_v19, %v653_v3  ;;  %vm12501_vm3 = vnez %v12500_v42  ;;  %v752_v32 = vpop.permute.xlu2 %751 }
 0x120   :  { %v713_v1 = vsel %vm697_vm13, %v667_v0, 0.0  ;;  %v714_v48 = vsel %vm698_vm10, %v666_v49, 0.0  ;;  %vm701_vm13 = vmand %vm12501_vm3, %vm12499_vm4  ;;  %vm12502_vm10 = vcmp.lt.s32.totalorder %v9369_v11, 97  ;;  %vm12514_vm3 = vcmask 1045508  }
 0x121   :  { %v728_v28 = vrot.slane %v713_v1, 6  ;;  %v729_v45 = vrot.slane %v714_v48, 5  ;;  %v669_v37 = vsel %vm12502_vm10, %v647_v63, %v649_v9  ;;  %vm12506_vm2 = vmmov %vm12502_vm10  ;;  %vm12509_vm10 = vcmask 1042434  }
 0x122   :  { %vm12507_vm8 = vmmov %vm12506_vm2  ;;  %v711_v40 = vsel %vm695_vm9, %v669_v37, 0.0  ;;  %vm12524_vm9 = vcmask 1045508   ;;  %v921_v37 = vld [vmem:[%s12075_s2 + $0x10] sm:$0xff] }
 0x123   :  { %v661_v53 = vpop.permute.xlu1 %660  ;;  %vm12508_vm4 = vmmov %vm12506_vm2  ;;  %v735_v17 = vsel %vm12509_vm10, %v728_v28, %v729_v45  ;;  %v734_v41 = vsel %vm12510_vm7, %v711_v40, %v727_v10 }
 0x124   :  { %v670_v24 = vsel %vm12506_vm2, %v661_v53, %v647_v63  ;;  %vm12512_vm2 = vcmask 1046534  }
 0x125   :  { %v718_v20 = vsel %vm702_vm1, %v670_v24, 0.0  ;;  %vm12515_vm1 = vcmask 1043456   ;;  %939 = vperm.xlu1 %9022, %v921_v37  }
 0x126   :  { %v659_v50 = vpop.permute.xlu0 %658  ;;  %v733_v58 = vrot.slane %v718_v20, 1  ;;  %v916_v20 = vld [vmem:[#allocation2 + $0x68] sm:$0xff] }
 0x127   :  { %v663_v23 = vsel %vm12507_vm8, %v659_v50, %v661_v53  ;;  %v664_v46 = vsel %vm12508_vm4, %v657_v6, %v659_v50  ;;  %vm12513_vm8 = vcmask 1041408   ;;  %v758_v14 = vpop.permute.xlu2 %757  ;;  %v919_v6 = vld [vmem:[%s12075_s2] sm:$0xff]  ;;  %vm12525_vm4 = vmmov %vm12515_vm1  ;;  %v925_v53 = vld [vmem:[%s12075_s2 + $0x30] sm:$0xff] }
 0x128   :  { %v716_v52 = vsel %vm700_vm12, %v664_v46, 0.0  ;;  %v717_v34 = vsel %vm701_vm13, %v663_v23, 0.0  ;;  %v736_v7 = vsel %vm12513_vm8, %v734_v41, %v735_v17  ;;  %vm761_vm12 = vcmp.lt.s32.totalorder %v9369_v11, 96  ;;  %929 = vperm.xlu0 %9024, %v919_v6   ;;  %vm12522_vm13 = vmmov %vm12512_vm2  ;;  %959 = vperm.xlu2 %9023, %v925_v53   ;;  %v10333_v50 = vld [vmem:[%s12074_s1] sm:$0xff]  ;;  %v915_v46 = vld [vmem:[#allocation2 + $0x60] sm:$0xff] }
 0x129   :  { %v731_v55 = vrot.slane %v716_v52, 3  ;;  %v732_v44 = vrot.slane %v717_v34, 2  ;;  %v917_v52 = vld [vmem:[#allocation2 + $0x70] sm:$0xff]  ;;  %v918_v34 = vld [vmem:[#allocation2 + $0x78] sm:$0xff]  ;;  %v896_v41 = vld [vmem:[%s12074_s1 + $0x8] sm:$0xff] }
 0x12b   :  { %v737_v5 = vsel %vm12511_vm0, %v730_v61, %v731_v55  ;;  %v738_v19 = vsel %vm12512_vm2, %v732_v44, %v733_v58  ;;  %v750_v12 = vpop.permute.xlu1 %749  ;;  %v922_v55 = vld [vmem:[%s12075_s2 + $0x18] sm:$0xff] }
 0x12c   :  { %v739_v51 = vsel %vm12514_vm3, %v737_v5, %v738_v19  ;;  %v766_v56 = vsel %vm761_vm12, %v750_v12, %v752_v32  ;;  %vm12516_vm3 = vnez %v12500_v42  ;;  %v920_v5 = vld [vmem:[%s12075_s2 + $0x8] sm:$0xff]  ;;  %v897_v19 = vld [vmem:[%s12074_s1 + $0x10] sm:$0xff] }
 0x12d   :  { %v740_v59 = vsel %vm12515_vm1, %v736_v7, %v739_v51  ;;  %v788_v13 = vsel %vm12485_vm15, %v766_v56, 0.0  ;;  %vm12517_vm15 = vnez %v12494_v31  ;;  %v899_v7 = vld [vmem:[%s12074_s1 + $0x20] sm:$0xff]  ;;  %v1831_v51 = vld [vmem:[%s12076_s3 + $0x38] sm:$0xff]  ;;  %v1830_v56 = vld [vmem:[%s12076_s3 + $0x30] sm:$0xff] }
 0x12e   :  { %743 = vst [vmem:[#allocation2 + $0x6] ss:$8 sm:$0xf] %v740_v59  ;;  %v748_v25 = vpop.permute.xlu0 %747  ;;  %v803_v38 = vrot.slane %v788_v13, 6  ;;  %1869 = vperm.xlu1 %9022, %v1831_v51  }
 0x12f   :  { %744 = vst [vmem:[#allocation2 + $0x6] ss:$8 sm:$0xf0] %v740_v59  ;;  %v767_v2 = vsel %vm761_vm12, %v748_v25, %v750_v12  ;;  %v768_v39 = vsel %vm761_vm12, %v10237_v8, %v748_v25  ;;  %v900_v59 = vld [vmem:[%s12074_s1 + $0x28] sm:$0xff]  ;;  %v901_v25 = vld [vmem:[%s12074_s1 + $0x30] sm:$0xff] }
 0x130   :  { %v787_v43 = vsel %vm12489_vm5, %v767_v2, 0.0  ;;  %vm12519_vm5 = vnez %v12504_v29  ;;  %944 = vperm.xlu2 %9023, %v922_v55   ;;  %v1829_v12 = vld [vmem:[%s12076_s3 + $0x28] sm:$0xff]  ;;  %1981 = vperm.xlu0 %9024, %v1943_v30   ;;  %v1828_v2 = vld [vmem:[%s12076_s3 + $0x20] sm:$0xff] }
 0x131   :  { %v802_v3 = vrot.slane %v787_v43, 7  ;;  %v786_v28 = vsel %vm12519_vm5, %v768_v39, 0.0 }
 0x133   :  { %v756_v62 = vpop.permute.xlu1 %755 }
 0x134   :  { %v763_v21 = vsel %vm761_vm12, %v756_v62, %v758_v14 }
 0x135   :  { %v791_v9 = vsel %vm12498_vm14, %v763_v21, 0.0  ;;  %vm12521_vm14 = vmmov %vm12511_vm0  ;;  %v1940_v21 = vld [vmem:[%s12077_s4 + $0x20] sm:$0xff] }
 0x136   :  { %v754_v16 = vpop.permute.xlu0 %753  ;;  %v806_v47 = vrot.slane %v791_v9, 3  ;;  %vm12523_vm0 = vmmov %vm12513_vm8  ;;  %1859 = vperm.xlu1 %9022, %v1829_v12  }
 0x137   :  { %v765_v18 = vsel %vm761_vm12, %v752_v32, %v754_v16  ;;  %v764_v26 = vsel %vm761_vm12, %v754_v16, %v756_v62  ;;  %v898_v32 = vld [vmem:[%s12074_s1 + $0x18] sm:$0xff]  ;;  %v1826_v16 = vld [vmem:[%s12076_s3 + $0x10] sm:$0xff] }
 0x138   :  { %v789_v57 = vsel %vm12487_vm11, %v765_v18, 0.0  ;;  %v790_v63 = vsel %vm12492_vm6, %v764_v26, 0.0  ;;  %vm12518_vm11 = vmmov %vm12509_vm10  ;;  %vm967_vm10 = vcmask 130048   ;;  %934 = vperm.xlu2 %9023, %v920_v5   ;;  %v902_v62 = vld [vmem:[%s12074_s1 + $0x38] sm:$0xff]  ;;  %1976 = vperm.xlu0 %9024, %v1942_v60  }
 0x139   :  { %v804_v35 = vrot.slane %v789_v57, 5  ;;  %v805_v0 = vrot.slane %v790_v63, 4  ;;  %vm12520_vm6 = vmmov %vm12510_vm7  ;;  %v1827_v18 = vld [vmem:[%s12076_s3 + $0x18] sm:$0xff] }
 0x13a   :  { %v809_v11 = vsel %vm12520_vm6, %v786_v28, %v802_v3 }
 0x13b   :  { %v810_v48 = vsel %vm12518_vm11, %v803_v38, %v804_v35 }
 0x13c   :  { %v811_v31 = vsel %vm12523_vm0, %v809_v11, %v810_v48 }
 0x13e   :  { %v760_v49 = vpop.permute.xlu0 %759 }
 0x13f   :  { %v762_v27 = vsel %vm761_vm12, %v758_v14, %v760_v49  ;;  %v769_v36 = vsel %vm761_vm12, %v760_v49, %v10237_v8  ;;  %v812_v8 = vsel %vm12521_vm14, %v805_v0, %v806_v47  ;;  %v1941_v14 = vld [vmem:[%s12077_s4 + $0x28] sm:$0xff] }
 0x140   :  { %v792_v54 = vsel %vm12516_vm3, %v762_v27, 0.0  ;;  %v793_v1 = vsel %vm12517_vm15, %v769_v36, 0.0  ;;  %1971 = vperm.xlu1 %9022, %v1941_v14   ;;  %1864 = vperm.xlu2 %9023, %v1830_v56  }
 0x141   :  { %v807_v22 = vrot.slane %v792_v54, 2  ;;  %v808_v4 = vrot.slane %v793_v1, 1  ;;  %1849 = vperm.xlu0 %9024, %v1827_v18  }
 0x143   :  { %v813_v45 = vsel %vm12522_vm13, %v807_v22, %v808_v4 }
 0x144   :  { %v814_v42 = vsel %vm12524_vm9, %v812_v8, %v813_v45 }
 0x145   :  { %v815_v10 = vsel %vm12525_vm4, %v811_v31, %v814_v42 }
 0x146   :  { %818 = vst [vmem:[#allocation2 + $0x7] ss:$8 sm:$0xf] %v815_v10 }
 0x147   :  { %819 = vst [vmem:[#allocation2 + $0x7] ss:$8 sm:$0xf0] %v815_v10 }
 0x148   :  { %1844 = vperm.xlu1 %9022, %v1826_v16   ;;  %1854 = vperm.xlu2 %9023, %v1828_v2  }
 0x14d   :  { %v903_v29 = vld [vmem:[#allocation2] sm:$0xff]  ;;  %v904_v61 = vld [vmem:[#allocation2 + $0x8] sm:$0xff]  ;;  %v905_v24 = vld [vmem:[#allocation2 + $0x10] sm:$0xff] }
 0x14e   :  { %1007 = vmatpush.msra.mxu0 %v903_v29  ;;  %1048 = vmatpush.msra.mxu1 %v904_v61  ;;  %v906_v23 = vld [vmem:[#allocation2 + $0x18] sm:$0xff]  ;;  %v907_v17 = vld [vmem:[#allocation2 + $0x20] sm:$0xff]  ;;  %v908_v58 = vld [vmem:[#allocation2 + $0x28] sm:$0xff] }
 0x14f   :  { %1089 = vmatpush.msra.mxu2 %v905_v24  ;;  %1130 = vmatpush.msra.mxu3 %v906_v23  ;;  %v909_v44 = vld [vmem:[#allocation2 + $0x30] sm:$0xff]  ;;  %v910_v40 = vld [vmem:[#allocation2 + $0x38] sm:$0xff] }
 0x150   :  { %6371 = vmatmul.msk.f32.vlgmr.msra.gmra.mxu0 %vm967_vm10, %v10333_v50  ;;  %6379 = vmatmul.msk.f32.vlgmr.msra.gmra.mxu1 %vm967_vm10, %v10333_v50 }
 0x151   :  { %6387 = vmatmul.msk.f32.vlgmr.msra.gmra.mxu2 %vm967_vm10, %v10333_v50  ;;  %6395 = vmatmul.msk.f32.vlgmr.msra.gmra.mxu3 %vm967_vm10, %v10333_v50 }
 0x152   :  { %1170 = vmatpush.msrb.mxu0 %v915_v46  ;;  %1211 = vmatpush.msrb.mxu1 %v916_v20 }
 0x153   :  { %1252 = vmatpush.msrb.mxu2 %v917_v52  ;;  %1293 = vmatpush.msrb.mxu3 %v918_v34 }
 0x154   :  { %1171 = vmatpush.msrb.mxu0 %v907_v17  ;;  %1212 = vmatpush.msrb.mxu1 %v908_v58 }
 0x155   :  { %1253 = vmatpush.msrb.mxu2 %v909_v44  ;;  %1294 = vmatpush.msrb.mxu3 %v910_v40 }
 0x156   :  { %1966 = vperm.xlu2 %9023, %v1940_v21  }
 0x158   :  { %6372 = vmatmul.msk.f32.gmra.mxu0 %vm967_vm10, %v896_v41  ;;  %6380 = vmatmul.msk.f32.gmra.mxu1 %vm967_vm10, %v896_v41 }
 0x159   :  { %6388 = vmatmul.msk.f32.gmra.mxu2 %vm967_vm10, %v896_v41  ;;  %6396 = vmatmul.msk.f32.gmra.mxu3 %vm967_vm10, %v896_v41 }
 0x160   :  { %6373 = vmatmul.msk.f32.gmra.mxu0 %vm967_vm10, %v897_v19  ;;  %6381 = vmatmul.msk.f32.gmra.mxu1 %vm967_vm10, %v897_v19 }
 0x161   :  { %6389 = vmatmul.msk.f32.gmra.mxu2 %vm967_vm10, %v897_v19  ;;  %6397 = vmatmul.msk.f32.gmra.mxu3 %vm967_vm10, %v897_v19 }
 0x168   :  { %6374 = vmatmul.msk.f32.gmra.mxu0 %vm967_vm10, %v898_v32  ;;  %6382 = vmatmul.msk.f32.gmra.mxu1 %vm967_vm10, %v898_v32 }
 0x169   :  { %6390 = vmatmul.msk.f32.gmra.mxu2 %vm967_vm10, %v898_v32  ;;  %6398 = vmatmul.msk.f32.gmra.mxu3 %vm967_vm10, %v898_v32 }
 0x170   :  { %6375 = vmatmul.msk.f32.gmra.mxu0 %vm967_vm10, %v899_v7  ;;  %6383 = vmatmul.msk.f32.gmra.mxu1 %vm967_vm10, %v899_v7 }
 0x171   :  { %6391 = vmatmul.msk.f32.gmra.mxu2 %vm967_vm10, %v899_v7  ;;  %6399 = vmatmul.msk.f32.gmra.mxu3 %vm967_vm10, %v899_v7 }
 0x178   :  { %6376 = vmatmul.msk.f32.gmra.mxu0 %vm967_vm10, %v900_v59  ;;  %6384 = vmatmul.msk.f32.gmra.mxu1 %vm967_vm10, %v900_v59 }
 0x179   :  { %6392 = vmatmul.msk.f32.gmra.mxu2 %vm967_vm10, %v900_v59  ;;  %6400 = vmatmul.msk.f32.gmra.mxu3 %vm967_vm10, %v900_v59 }
 0x180   :  { %6377 = vmatmul.msk.f32.gmra.mxu0 %vm967_vm10, %v901_v25  ;;  %6385 = vmatmul.msk.f32.gmra.mxu1 %vm967_vm10, %v901_v25 }
 0x181   :  { %6393 = vmatmul.msk.f32.gmra.mxu2 %vm967_vm10, %v901_v25  ;;  %6401 = vmatmul.msk.f32.gmra.mxu3 %vm967_vm10, %v901_v25 }
 0x182   :  { %v10478_v1 = vpop.permute.xlu2 %959 }
 0x186   :  { %v10488_v28 = vpop.permute.xlu0 %954 }
 0x187   :  { %v10490_v11 = vpop.permute.xlu1 %964 }
 0x188   :  { %6378 = vmatmul.msk.f32.gmra.mxu0 %vm967_vm10, %v902_v62  ;;  %6386 = vmatmul.msk.f32.gmra.mxu1 %vm967_vm10, %v902_v62 }
 0x189   :  { %6394 = vmatmul.msk.f32.gmra.mxu2 %vm967_vm10, %v902_v62  ;;  %6402 = vmatmul.msk.f32.gmra.mxu3 %vm967_vm10, %v902_v62 }
 0x18a   :  { %v10500_v10 = vpop.permute.xlu2 %944 }
 0x18f   :  { %v10506_v29 = vpop.permute.xlu1 %949 }
 0x190   :  { %6403 = vmatmul.msk.f32.vlgmr.msrb.gmra.mxu0 %vm967_vm10, %v10333_v50  ;;  %6411 = vmatmul.msk.f32.vlgmr.msrb.gmra.mxu1 %vm967_vm10, %v10333_v50 }
 0x191   :  { %6419 = vmatmul.msk.f32.vlgmr.msrb.gmra.mxu2 %vm967_vm10, %v10333_v50  ;;  %6427 = vmatmul.msk.f32.vlgmr.msrb.gmra.mxu3 %vm967_vm10, %v10333_v50 }
 0x192   :  { %v935_v17 = vpop.permute.xlu2 %934 }
 0x198   :  { %6404 = vmatmul.msk.f32.gmra.mxu0 %vm967_vm10, %v896_v41  ;;  %6412 = vmatmul.msk.f32.gmra.mxu1 %vm967_vm10, %v896_v41 }
 0x199   :  { %6420 = vmatmul.msk.f32.gmra.mxu2 %vm967_vm10, %v896_v41  ;;  %6428 = vmatmul.msk.f32.gmra.mxu3 %vm967_vm10, %v896_v41 }
 0x19a   :  { %v930_v37 = vpop.permute.xlu0 %929 }
 0x1a0   :  { %6405 = vmatmul.msk.f32.gmra.mxu0 %vm967_vm10, %v897_v19  ;;  %6413 = vmatmul.msk.f32.gmra.mxu1 %vm967_vm10, %v897_v19 }
 0x1a1   :  { %6421 = vmatmul.msk.f32.gmra.mxu2 %vm967_vm10, %v897_v19  ;;  %6429 = vmatmul.msk.f32.gmra.mxu3 %vm967_vm10, %v897_v19 }
 0x1a8   :  { %6406 = vmatmul.msk.f32.gmra.mxu0 %vm967_vm10, %v898_v32  ;;  %6414 = vmatmul.msk.f32.gmra.mxu1 %vm967_vm10, %v898_v32 }
 0x1a9   :  { %6422 = vmatmul.msk.f32.gmra.mxu2 %vm967_vm10, %v898_v32  ;;  %6430 = vmatmul.msk.f32.gmra.mxu3 %vm967_vm10, %v898_v32 }
 0x1b0   :  { %6407 = vmatmul.msk.f32.gmra.mxu0 %vm967_vm10, %v899_v7  ;;  %6415 = vmatmul.msk.f32.gmra.mxu1 %vm967_vm10, %v899_v7 }
 0x1b1   :  { %6423 = vmatmul.msk.f32.gmra.mxu2 %vm967_vm10, %v899_v7  ;;  %6431 = vmatmul.msk.f32.gmra.mxu3 %vm967_vm10, %v899_v7 }
 0x1b8   :  { %6408 = vmatmul.msk.f32.gmra.mxu0 %vm967_vm10, %v900_v59  ;;  %6416 = vmatmul.msk.f32.gmra.mxu1 %vm967_vm10, %v900_v59 }
 0x1b9   :  { %6424 = vmatmul.msk.f32.gmra.mxu2 %vm967_vm10, %v900_v59  ;;  %6432 = vmatmul.msk.f32.gmra.mxu3 %vm967_vm10, %v900_v59 }
 0x1c0   :  { %6409 = vmatmul.msk.f32.gmra.mxu0 %vm967_vm10, %v901_v25  ;;  %6417 = vmatmul.msk.f32.gmra.mxu1 %vm967_vm10, %v901_v25 }
 0x1c1   :  { %6425 = vmatmul.msk.f32.gmra.mxu2 %vm967_vm10, %v901_v25  ;;  %6433 = vmatmul.msk.f32.gmra.mxu3 %vm967_vm10, %v901_v25 }
 0x1c8   :  { %6410 = vmatmul.msk.f32.gmra.mxu0 %vm967_vm10, %v902_v62  ;;  %6418 = vmatmul.msk.f32.gmra.mxu1 %vm967_vm10, %v902_v62 }
 0x1c9   :  { %6426 = vmatmul.msk.f32.gmra.mxu2 %vm967_vm10, %v902_v62  ;;  %6434 = vmatmul.msk.f32.gmra.mxu3 %vm967_vm10, %v902_v62  ;;  %v10544_v62 = vpop.permute.xlu1 %939 }
 0x1cd   :  { %v1009_v26 = vpop.f32.mrf.mxu0  ;;  %v1050_v15 = vpop.f32.mrf.mxu1 }
 0x1ce   :  { %v10502_v53 = vadd.f32 %v1009_v26, %v930_v37  ;;  %v10504_v50 = vadd.f32 %v1050_v15, %v930_v37 }
 0x1d0   :  { %v12182_v52 = vmax.f32 %v10502_v53, 0.0  ;;  %v12181_v34 = vmax.f32 %v10504_v50, 0.0 }
 0x1d2   :  { %v1384_v44 = vadd.f32 %v12181_v34, %v12182_v52 }
 0x1d4   :  { %v1091_v13 = vpop.f32.mrf.mxu2  ;;  %v1132_v57 = vpop.f32.mrf.mxu3 }
 0x1d5   :  { %v1012_v43 = vpop.f32.mrf.mxu0  ;;  %v1053_v9 = vpop.f32.mrf.mxu1  ;;  %v10512_v23 = vadd.f32 %v1091_v13, %v930_v37  ;;  %v10521_v55 = vadd.f32 %v1132_v57, %v930_v37 }
 0x1d6   :  { %v10527_v40 = vadd.f32 %v1012_v43, %v935_v17  ;;  %v10529_v41 = vadd.f32 %v1053_v9, %v935_v17 }
 0x1d7   :  { %v12176_v58 = vmax.f32 %v10512_v23, 0.0  ;;  %v12171_v7 = vmax.f32 %v10521_v55, 0.0 }
 0x1d8   :  { %v12165_v14 = vmax.f32 %v10527_v40, 0.0  ;;  %v12164_v30 = vmax.f32 %v10529_v41, 0.0 }
 0x1d9   :  { %v1385_v32 = vadd.f32 %v1384_v44, %v12176_v58 }
 0x1da   :  { %v1393_v15 = vadd.f32 %v12164_v30, %v12165_v14 }
 0x1db   :  { %v1386_v18 = vadd.f32 %v1385_v32, %v12171_v7 }
 0x1dc   :  { %v1094_v63 = vpop.f32.mrf.mxu2  ;;  %v1135_v6 = vpop.f32.mrf.mxu3 }
 0x1dd   :  { %v1015_v38 = vpop.f32.mrf.mxu0  ;;  %v1056_v35 = vpop.f32.mrf.mxu1  ;;  %v10538_v51 = vadd.f32 %v1094_v63, %v935_v17  ;;  %v10548_v60 = vadd.f32 %v1135_v6, %v935_v17 }
 0x1de   :  { %v10555_v21 = vadd.f32 %v1015_v38, %v10544_v62  ;;  %v10558_v26 = vadd.f32 %v1056_v35, %v10544_v62 }
 0x1df   :  { %v12166_v2 = vmax.f32 %v10538_v51, 0.0  ;;  %v12168_v43 = vmax.f32 %v10548_v60, 0.0 }
 0x1e1   :  { %v1394_v6 = vadd.f32 %v1393_v15, %v12166_v2 }
 0x1e4   :  { %v1097_v39 = vpop.f32.mrf.mxu2  ;;  %v10464_v3 = vpop.f32.mrf.mxu3 }
 0x1e5   :  { %v10466_v49 = vpop.f32.mrf.mxu0  ;;  %v10468_v47 = vpop.f32.mrf.mxu1  ;;  %v10571_v38 = vadd.f32 %v1097_v39, %v10544_v62 }
 0x1ec   :  { %v10470_v0 = vpop.f32.mrf.mxu2  ;;  %v10472_v27 = vpop.f32.mrf.mxu3 }
 0x1ed   :  { %v10474_v36 = vpop.f32.mrf.mxu0  ;;  %v10476_v54 = vpop.f32.mrf.mxu1  ;;  %v10619_v7 = vadd.f32 %v10470_v0, %v10500_v10 }
 0x1f4   :  { %v10480_v48 = vpop.f32.mrf.mxu2  ;;  %v10482_v22 = vpop.f32.mrf.mxu3 }
 0x1f5   :  { %v10484_v4 = vpop.f32.mrf.mxu0  ;;  %v10486_v33 = vpop.f32.mrf.mxu1 }
 0x1fc   :  { %v10492_v8 = vpop.f32.mrf.mxu2  ;;  %v10494_v45 = vpop.f32.mrf.mxu3 }
 0x1fd   :  { %v10496_v31 = vpop.f32.mrf.mxu0  ;;  %v10498_v42 = vpop.f32.mrf.mxu1 }
 0x204   :  { %v10508_v61 = vpop.f32.mrf.mxu2  ;;  %v10510_v24 = vpop.f32.mrf.mxu3 }
 0x205   :  { %v10514_v46 = vpop.f32.mrf.mxu0  ;;  %v10516_v20 = vpop.f32.mrf.mxu1 }
 0x20c   :  { %v10531_v5 = vpop.f32.mrf.mxu2  ;;  %v10533_v19 = vpop.f32.mrf.mxu3 }
 0x20d   :  { %v1173_v59 = vpop.f32.mrf.mxu0  ;;  %v1214_v12 = vpop.f32.mrf.mxu1 }
 0x20e   :  { %v10540_v25 = vadd.f32 %v1173_v59, %v930_v37  ;;  %v10546_v16 = vadd.f32 %v1214_v12, %v930_v37  ;;  %v12173_v12 = vmax.f32 %v10555_v21, 0.0 }
 0x210   :  { %v12170_v56 = vmax.f32 %v10540_v25, 0.0  ;;  %v12167_v57 = vmax.f32 %v10546_v16, 0.0 }
 0x212   :  { %v1387_v13 = vadd.f32 %v1386_v18, %v12170_v56  ;;  %v12172_v18 = vmax.f32 %v10558_v26, 0.0 }
 0x214   :  { %v1255_v9 = vpop.f32.mrf.mxu2  ;;  %v1296_v63 = vpop.f32.mrf.mxu3  ;;  %v1388_v14 = vadd.f32 %v1387_v13, %v12167_v57  ;;  %v10599_v57 = vadd.f32 %v10466_v49, %v10500_v10 }
 0x215   :  { %v10573_v35 = vadd.f32 %v1255_v9, %v930_v37  ;;  %v10575_v44 = vadd.f32 %v1296_v63, %v930_v37  ;;  %v1176_v32 = vpop.f32.mrf.mxu0  ;;  %v1217_v59 = vpop.f32.mrf.mxu1  ;;  %v10589_v37 = vadd.f32 %v10464_v3, %v10544_v62  ;;  %v1395_v63 = vadd.f32 %v1394_v6, %v12168_v43 }
 0x216   :  { %v10579_v30 = vadd.f32 %v1176_v32, %v935_v17  ;;  %v10585_v2 = vadd.f32 %v1217_v59, %v935_v17  ;;  %v12177_v32 = vmax.f32 %v10571_v38, 0.0  ;;  %v10603_v59 = vadd.f32 %v10468_v47, %v10500_v10 }
 0x217   :  { %v12169_v15 = vmax.f32 %v10573_v35, 0.0  ;;  %v12175_v39 = vmax.f32 %v10575_v44, 0.0  ;;  %v1402_v3 = vadd.f32 %v12172_v18, %v12173_v12  ;;  %v12179_v49 = vmax.f32 %v10589_v37, 0.0 }
 0x218   :  { %v12174_v9 = vmax.f32 %v10579_v30, 0.0  ;;  %v12178_v43 = vmax.f32 %v10585_v2, 0.0 }
 0x219   :  { %v1389_v13 = vadd.f32 %v1388_v14, %v12169_v15  ;;  %v1403_v47 = vadd.f32 %v1402_v3, %v12177_v32  ;;  %v12187_v32 = vmax.f32 %v10619_v7, 0.0 }
 0x21a   :  { %v1396_v6 = vadd.f32 %v1395_v63, %v12174_v9 }
 0x21b   :  { %v1390_v14 = vadd.f32 %v1389_v13, %v12175_v39  ;;  %v12184_v13 = vmax.f32 %v10599_v57, 0.0  ;;  %v12183_v39 = vmax.f32 %v10603_v59, 0.0 }
 0x21c   :  { %v1258_v15 = vpop.f32.mrf.mxu2  ;;  %v1299_v56 = vpop.f32.mrf.mxu3  ;;  %v1397_v3 = vadd.f32 %v1396_v6, %v12178_v43  ;;  %v10649_v43 = vadd.f32 %v10474_v36, %v10506_v29  ;;  %v10666_v36 = vadd.f32 %v10480_v48, %v10506_v29 }
 0x21d   :  { %v10621_v18 = vadd.f32 %v1258_v15, %v935_v17  ;;  %v10623_v12 = vadd.f32 %v1299_v56, %v935_v17  ;;  %1391 = vadd.xlane.f32.xlu1 %v1390_v14  ;;  %v1179_v63 = vpop.f32.mrf.mxu0  ;;  %v1220_v9 = vpop.f32.mrf.mxu1  ;;  %v1404_v14 = vadd.f32 %v1403_v47, %v12179_v49  ;;  %v1411_v47 = vadd.f32 %v12183_v39, %v12184_v13 }
 0x21e   :  { %v10628_v58 = vadd.f32 %v1179_v63, %v10544_v62  ;;  %v10635_v17 = vadd.f32 %v1220_v9, %v10544_v62  ;;  %v10643_v63 = vadd.f32 %v10472_v27, %v10500_v10  ;;  %12526 = vst [vmem:[#allocation21_spill] sm:$0xff] %v10649_v43  ;;  %v10653_v9 = vadd.f32 %v10476_v54, %v10506_v29 }
 0x21f   :  { %v12180_v0 = vmax.f32 %v10621_v18, 0.0  ;;  %v12186_v15 = vmax.f32 %v10623_v12, 0.0  ;;  %12528 = vst [vmem:[#allocation24_spill] sm:$0xff] %v10666_v36  ;;  %v1412_v34 = vadd.f32 %v1411_v47, %v12187_v32 }
 0x220   :  { %v12185_v56 = vmax.f32 %v10628_v58, 0.0  ;;  %12527 = vst [vmem:[#allocation23_spill] sm:$0xff] %v10653_v9  ;;  %v12188_v49 = vmax.f32 %v10635_v17, 0.0  ;;  %v12189_v52 = vmax.f32 %v10643_v63, 0.0 }
 0x221   :  { %v1398_v6 = vadd.f32 %v1397_v3, %v12180_v0 }
 0x222   :  { %v1405_v27 = vadd.f32 %v1404_v14, %v12185_v56  ;;  %v12192_v56 = vmax.f32 %v10649_v43, 0.0 }
 0x223   :  { %v1399_v3 = vadd.f32 %v1398_v6, %v12186_v15 }
 0x224   :  { %v1261_v0 = vpop.f32.mrf.mxu2  ;;  %v1302_v54 = vpop.f32.mrf.mxu3  ;;  %v1406_v47 = vadd.f32 %v1405_v27, %v12188_v49  ;;  %v12530_v49 = vmax.f32 %v10653_v9, 0.0 }
 0x225   :  { %v10672_v39 = vadd.f32 %v1261_v0, %v10544_v62  ;;  %v10675_v14 = vadd.f32 %v1302_v54, %v10544_v62  ;;  %1400 = vadd.xlane.f32.xlu0 %v1399_v3  ;;  %v1182_v13 = vpop.f32.mrf.mxu0  ;;  %v1223_v6 = vpop.f32.mrf.mxu1  ;;  %v10688_v62 = vadd.f32 %v10482_v22, %v10506_v29  ;;  %v1413_v54 = vadd.f32 %v1412_v34, %v12189_v52 }
 0x226   :  { %v10680_v15 = vadd.f32 %v1182_v13, %v10500_v10  ;;  %v10697_v27 = vadd.f32 %v1223_v6, %v10500_v10  ;;  %v1420_v0 = vadd.f32 %v12530_v49, %v12192_v56  ;;  %v10705_v22 = vadd.f32 %v10484_v4, %v10488_v28 }
 0x227   :  { %v12190_v32 = vmax.f32 %v10672_v39, 0.0  ;;  %12529 = vst [vmem:[#allocation25_spill] sm:$0xff] %v10688_v62  ;;  %v12195_v48 = vmax.f32 %v10675_v14, 0.0  ;;  %v10709_v34 = vadd.f32 %v10486_v33, %v10488_v28  ;;  %v12533_v52 = vmax.f32 %v10666_v36, 0.0 }
 0x228   :  { %v12194_v3 = vmax.f32 %v10680_v15, 0.0  ;;  %12531 = vst [vmem:[#allocation22_spill] sm:$0xff] %v10705_v22  ;;  %v10720_v4 = vadd.f32 %v10492_v8, %v10488_v28  ;;  %v12197_v33 = vmax.f32 %v10697_v27, 0.0 }
 0x229   :  { %v1407_v13 = vadd.f32 %v1406_v47, %v12190_v32  ;;  %12532 = vst [vmem:[#allocation26_spill] sm:$0xff] %v10709_v34  ;;  %v1421_v32 = vadd.f32 %v1420_v0, %v12533_v52  ;;  %v12202_v0 = vmax.f32 %v10705_v22, 0.0 }
 0x22a   :  { %v1414_v47 = vadd.f32 %v1413_v54, %v12194_v3 }
 0x22b   :  { %v1408_v6 = vadd.f32 %v1407_v13, %v12195_v48 }
 0x22c   :  { %v1264_v49 = vpop.f32.mrf.mxu2  ;;  %v1305_v56 = vpop.f32.mrf.mxu3  ;;  %v1415_v8 = vadd.f32 %v1414_v47, %v12197_v33  ;;  %v10753_v33 = vadd.f32 %v10496_v31, %v10478_v1  ;;  %v10770_v31 = vadd.f32 %v10508_v61, %v10478_v1 }
 0x22d   :  { %v10724_v43 = vadd.f32 %v1264_v49, %v10500_v10  ;;  %v10727_v54 = vadd.f32 %v1305_v56, %v10500_v10  ;;  %1409 = vadd.xlane.f32.xlu2 %v1408_v6  ;;  %v1185_v13 = vpop.f32.mrf.mxu0  ;;  %v1226_v3 = vpop.f32.mrf.mxu1  ;;  %v12534_v49 = vmax.f32 %v10688_v62, 0.0  ;;  %v10741_v10 = vadd.f32 %v10494_v45, %v10488_v28 }
 0x22e   :  { %v10730_v52 = vadd.f32 %v1185_v13, %v10506_v29  ;;  %v10747_v48 = vadd.f32 %v1226_v3, %v10506_v29  ;;  %12535 = vst [vmem:[#allocation27_spill] sm:$0xff] %v10753_v33  ;;  %v10757_v45 = vadd.f32 %v10498_v42, %v10478_v1  ;;  %v12539_v62 = vmax.f32 %v10720_v4, 0.0 }
 0x22f   :  { %v12198_v9 = vmax.f32 %v10724_v43, 0.0  ;;  %v1422_v36 = vadd.f32 %v1421_v32, %v12534_v49  ;;  %v12204_v13 = vmax.f32 %v10727_v54, 0.0  ;;  %v12537_v32 = vmax.f32 %v10709_v34, 0.0  ;;  %12538 = vst [vmem:[#allocation29_spill] sm:$0xff] %v10770_v31 }
 0x230   :  { %v12203_v56 = vmax.f32 %v10730_v52, 0.0  ;;  %12536 = vst [vmem:[#allocation28_spill] sm:$0xff] %v10757_v45  ;;  %v12205_v34 = vmax.f32 %v10747_v48, 0.0 }
 0x231   :  { %v1416_v47 = vadd.f32 %v1415_v8, %v12198_v9  ;;  %v1429_v49 = vadd.f32 %v12537_v32, %v12202_v0  ;;  %v12206_v8 = vmax.f32 %v10741_v10, 0.0 }
 0x232   :  { %v1423_v3 = vadd.f32 %v1422_v36, %v12203_v56  ;;  %v12209_v56 = vmax.f32 %v10753_v33, 0.0 }
 0x233   :  { %v1417_v6 = vadd.f32 %v1416_v47, %v12204_v13  ;;  %v1430_v22 = vadd.f32 %v1429_v49, %v12539_v62 }
 0x234   :  { %v1267_v9 = vpop.f32.mrf.mxu2  ;;  %v1308_v42 = vpop.f32.mrf.mxu3  ;;  %v1424_v62 = vadd.f32 %v1423_v3, %v12205_v34  ;;  %v12543_v34 = vmax.f32 %v10757_v45, 0.0 }
 0x235   :  { %v10776_v32 = vadd.f32 %v1267_v9, %v10506_v29  ;;  %v10779_v36 = vadd.f32 %v1308_v42, %v10506_v29  ;;  %1418 = vadd.xlane.f32.xlu1 %v1417_v6  ;;  %v1188_v47 = vpop.f32.mrf.mxu0  ;;  %v1229_v0 = vpop.f32.mrf.mxu1  ;;  %v10792_v29 = vadd.f32 %v10510_v24, %v10478_v1  ;;  %v1431_v42 = vadd.f32 %v1430_v22, %v12206_v8 }
 0x236   :  { %v10784_v13 = vadd.f32 %v1188_v47, %v10488_v28  ;;  %v10801_v3 = vadd.f32 %v1229_v0, %v10488_v28  ;;  %v1438_v9 = vadd.f32 %v12543_v34, %v12209_v56  ;;  %v10809_v24 = vadd.f32 %v10514_v46, %v10490_v11 }
 0x237   :  { %v12207_v49 = vmax.f32 %v10776_v32, 0.0  ;;  %12541 = vst [vmem:[#allocation31_spill] sm:$0xff] %v10792_v29  ;;  %v12212_v61 = vmax.f32 %v10779_v36, 0.0  ;;  %v10813_v22 = vadd.f32 %v10516_v20, %v10490_v11  ;;  %v12544_v8 = vmax.f32 %v10770_v31, 0.0 }
 0x238   :  { %12540 = vst [vmem:[#allocation30_spill] sm:$0xff] %v10784_v13  ;;  %v12211_v6 = vmax.f32 %v10784_v13, 0.0  ;;  %v10824_v46 = vadd.f32 %v10531_v5, %v10490_v11  ;;  %v12214_v20 = vmax.f32 %v10801_v3, 0.0 }
 0x239   :  { %v1425_v47 = vadd.f32 %v1424_v62, %v12207_v49  ;;  %12542 = vst [vmem:[#allocation32_spill] sm:$0xff] %v10801_v3  ;;  %v1439_v49 = vadd.f32 %v1438_v9, %v12544_v8  ;;  %v12219_v9 = vmax.f32 %v10809_v24, 0.0 }
 0x23a   :  { %v1432_v62 = vadd.f32 %v1431_v42, %v12211_v6  ;;  %12545 = vst [vmem:[#allocation33_spill] sm:$0xff] %v10824_v46 }
 0x23b   :  { %v1426_v0 = vadd.f32 %v1425_v47, %v12212_v61 }
 0x23c   :  { %v1270_v34 = vpop.f32.mrf.mxu2  ;;  %v1311_v56 = vpop.f32.mrf.mxu3  ;;  %v1433_v5 = vadd.f32 %v1432_v62, %v12214_v20 }
 0x23d   :  { %v10828_v33 = vadd.f32 %v1270_v34, %v10488_v28  ;;  %v10831_v42 = vadd.f32 %v1311_v56, %v10488_v28  ;;  %1427 = vadd.xlane.f32.xlu2 %v1426_v0  ;;  %v1191_v47 = vpop.f32.mrf.mxu0  ;;  %v1232_v6 = vpop.f32.mrf.mxu1  ;;  %v12546_v34 = vmax.f32 %v10792_v29, 0.0  ;;  %v10845_v28 = vadd.f32 %v10533_v19, %v10490_v11 }
 0x23e   :  { %v10834_v8 = vadd.f32 %v1191_v47, %v10478_v1  ;;  %v10851_v61 = vadd.f32 %v1232_v6, %v10478_v1  ;;  %v12548_v6 = vmax.f32 %v10824_v46, 0.0 }
 0x23f   :  { %v12218_v45 = vmax.f32 %v10828_v33, 0.0  ;;  %v1440_v31 = vadd.f32 %v1439_v49, %v12546_v34  ;;  %v12221_v47 = vmax.f32 %v10831_v42, 0.0  ;;  %v12547_v49 = vmax.f32 %v10813_v22, 0.0 }
 0x240   :  { %v12220_v56 = vmax.f32 %v10834_v8, 0.0  ;;  %v12224_v0 = vmax.f32 %v10845_v28, 0.0 }
 0x241   :  { %v1434_v62 = vadd.f32 %v1433_v5, %v12218_v45  ;;  %v1447_v34 = vadd.f32 %v12547_v49, %v12219_v9  ;;  %v12222_v5 = vmax.f32 %v10851_v61, 0.0 }
 0x242   :  { %v1441_v19 = vadd.f32 %v1440_v31, %v12220_v56 }
 0x243   :  { %v1435_v20 = vadd.f32 %v1434_v62, %v12221_v47  ;;  %v1448_v13 = vadd.f32 %v1447_v34, %v12548_v6 }
 0x244   :  { %v1273_v29 = vpop.f32.mrf.mxu2  ;;  %v1314_v3 = vpop.f32.mrf.mxu3  ;;  %v1442_v56 = vadd.f32 %v1441_v19, %v12222_v5 }
 0x245   :  { %v10868_v45 = vadd.f32 %v1273_v29, %v10478_v1  ;;  %v10871_v49 = vadd.f32 %v1314_v3, %v10478_v1  ;;  %1436 = vadd.xlane.f32.xlu0 %v1435_v20  ;;  %v1194_v31 = vpop.f32.mrf.mxu0  ;;  %v1235_v62 = vpop.f32.mrf.mxu1  ;;  %v1449_v29 = vadd.f32 %v1448_v13, %v12224_v0 }
 0x246   :  { %v10874_v9 = vadd.f32 %v1194_v31, %v10490_v11  ;;  %v10886_v20 = vadd.f32 %v1235_v62, %v10490_v11 }
 0x247   :  { %v12230_v47 = vmax.f32 %v10868_v45, 0.0  ;;  %v12229_v3 = vmax.f32 %v10871_v49, 0.0 }
 0x248   :  { %v12225_v34 = vmax.f32 %v10874_v9, 0.0  ;;  %v12228_v46 = vmax.f32 %v10886_v20, 0.0 }
 0x249   :  { %v1443_v1 = vadd.f32 %v1442_v56, %v12230_v47 }
 0x24a   :  { %v1450_v6 = vadd.f32 %v1449_v29, %v12225_v34 }
 0x24b   :  { %v1444_v19 = vadd.f32 %v1443_v1, %v12229_v3 }
 0x24c   :  { %v1276_v31 = vpop.f32.mrf.mxu2  ;;  %v1317_v5 = vpop.f32.mrf.mxu3  ;;  %v1451_v62 = vadd.f32 %v1450_v6, %v12228_v46 }
 0x24d   :  { %v10894_v13 = vadd.f32 %v1276_v31, %v10490_v11  ;;  %v10897_v56 = vadd.f32 %v1317_v5, %v10490_v11  ;;  %1445 = vadd.xlane.f32.xlu2 %v1444_v19  ;;  %v1939_v11 = vld [vmem:[%s12077_s4 + $0x18] sm:$0xff]  ;;  %v1825_v5 = vld [vmem:[%s12076_s3 + $0x8] sm:$0xff]  ;;  %v10913_v6 = vpop.permute.xlu1 %1869  ;;  %v1938_v19 = vld [vmem:[%s12077_s4 + $0x10] sm:$0xff] }
 0x24e   :  { %12549 = vst [vmem:[#allocation34_spill] sm:$0xff] %v10913_v6 }
 0x24f   :  { %v12227_v0 = vmax.f32 %v10894_v13, 0.0  ;;  %v12226_v29 = vmax.f32 %v10897_v56, 0.0 }
 0x251   :  { %v1452_v1 = vadd.f32 %v1451_v62, %v12227_v0 }
 0x253   :  { %v1453_v34 = vadd.f32 %v1452_v1, %v12226_v29  ;;  %v10924_v1 = vpop.permute.xlu2 %1864 }
 0x254   :  { %12553 = vst [vmem:[#allocation38_spill] sm:$0xff] %v10924_v1 }
 0x255   :  { %1454 = vadd.xlane.f32.xlu1 %v1453_v34  ;;  %v10918_v31 = vpop.permute.xlu1 %1859  ;;  %v10920_v34 = vpop.permute.xlu0 %1981 }
 0x256   :  { %12550 = vst [vmem:[#allocation35_spill] sm:$0xff] %v10918_v31 }
 0x257   :  { %12551 = vst [vmem:[#allocation36_spill] sm:$0xff] %v10920_v34  ;;  %v12559_v34 = vmax.f32 %v10504_v50, 0.0 }
 0x259   :  { %1961 = vperm.xlu0 %9024, %v1939_v11  }
 0x25d   :  { %v10922_v62 = vpop.permute.xlu1 %1971  ;;  %v10926_v11 = vpop.permute.xlu0 %1976 }
 0x25e   :  { %12552 = vst [vmem:[#allocation37_spill] sm:$0xff] %v10922_v62  ;;  %v12561_v62 = vmax.f32 %v10512_v23, 0.0 }
 0x25f   :  { %12554 = vst [vmem:[#allocation39_spill] sm:$0xff] %v10926_v11  ;;  %v12563_v11 = vmax.f32 %v10521_v55, 0.0  ;;  %v12568_v55 = vmax.f32 %v10546_v16, 0.0  ;;  %v12573_v16 = vmax.f32 %v10529_v41, 0.0 }
 0x265   :  { %1839 = vperm.xlu2 %9023, %v1825_v5   ;;  %v10928_v29 = vpop.permute.xlu1 %1844  ;;  %v10930_v5 = vpop.permute.xlu2 %1854 }
 0x266   :  { %12555 = vst [vmem:[#allocation40_spill] sm:$0xff] %v10928_v29  ;;  %v10932_v0 = vpop.permute.xlu0 %1849 }
 0x267   :  { %12556 = vst [vmem:[#allocation41_spill] sm:$0xff] %v10930_v5 }
 0x268   :  { %12557 = vst [vmem:[#allocation42_spill] sm:$0xff] %v10932_v0 }
 0x26e   :  { %1956 = vperm.xlu1 %9022, %v1938_v19   ;;  %v12558_v19 = vmax.f32 %v10502_v53, 0.0 }
 0x290   :  { %v1392_v46 = vpop.xlane.xlu1 %1391 }
 0x291   :  { %v1456_v3 = vmul.f32 0.0009765625, %v1392_v46  ;;  %v12565_v46 = vmax.f32 %v10540_v25, 0.0  ;;  %v12570_v25 = vmax.f32 %v10573_v35, 0.0  ;;  %v12575_v35 = vmax.f32 %v10575_v44, 0.0 }
 0x293   :  { %v10936_v47 = vsub.f32 %v12558_v19, %v1456_v3  ;;  %v10940_v6 = vsub.f32 %v12559_v34, %v1456_v3  ;;  %v10944_v31 = vsub.f32 %v12561_v62, %v1456_v3  ;;  %v10948_v1 = vsub.f32 %v12563_v11, %v1456_v3  ;;  %v10960_v34 = vpop.permute.xlu2 %1966 }
 0x294   :  { %v10956_v19 = vsub.f32 %v12565_v46, %v1456_v3  ;;  %12567 = vst [vmem:[#allocation47_spill] sm:$0xff] %v10960_v34  ;;  %v10964_v11 = vsub.f32 %v12568_v55, %v1456_v3  ;;  %v10970_v46 = vsub.f32 %v12570_v25, %v1456_v3  ;;  %v12578_v25 = vmax.f32 %v10579_v30, 0.0 }
 0x295   :  { %12560 = vst [vmem:[#allocation43_spill] sm:$0xff] %v10940_v6  ;;  %v1528_v5 = vmul.f32 %v10936_v47, %v10936_v47  ;;  %v1529_v53 = vmul.f32 %v10940_v6, %v10940_v6  ;;  %v1530_v50 = vmul.f32 %v10944_v31, %v10944_v31  ;;  %v1531_v29 = vmul.f32 %v10948_v1, %v10948_v1 }
 0x296   :  { %12562 = vst [vmem:[#allocation44_spill] sm:$0xff] %v10944_v31  ;;  %v1532_v31 = vmul.f32 %v10956_v19, %v10956_v19  ;;  %v1534_v44 = vmul.f32 %v10970_v46, %v10970_v46 }
 0x297   :  { %12564 = vst [vmem:[#allocation45_spill] sm:$0xff] %v10948_v1  ;;  %v1592_v23 = vadd.f32 %v1529_v53, %v1528_v5  ;;  %v12572_v53 = vmax.f32 %v10527_v40, 0.0  ;;  %v12577_v40 = vmax.f32 %v10548_v60, 0.0 }
 0x298   :  { %12566 = vst [vmem:[#allocation46_spill] sm:$0xff] %v10956_v19  ;;  %v1401_v62 = vpop.xlane.xlu0 %1400 }
 0x299   :  { %12569 = vst [vmem:[#allocation48_spill] sm:$0xff] %v10964_v11  ;;  %v1457_v0 = vmul.f32 0.0009765625, %v1401_v62  ;;  %v1593_v6 = vadd.f32 %v1592_v23, %v1530_v50  ;;  %v12574_v62 = vmax.f32 %v10538_v51, 0.0  ;;  %v10988_v50 = vsub.f32 %v12575_v35, %v1456_v3 }
 0x29a   :  { %12571 = vst [vmem:[#allocation49_spill] sm:$0xff] %v10970_v46  ;;  %v1533_v23 = vmul.f32 %v10964_v11, %v10964_v11 }
 0x29b   :  { %v1594_v5 = vadd.f32 %v1593_v6, %v1531_v29  ;;  %v10976_v34 = vsub.f32 %v12572_v53, %v1457_v0  ;;  %v10980_v55 = vsub.f32 %v12573_v16, %v1457_v0  ;;  %v10984_v1 = vsub.f32 %v12574_v62, %v1457_v0  ;;  %12576 = vst [vmem:[#allocation50_spill] sm:$0xff] %v10988_v50 }
 0x29c   :  { %v10994_v6 = vsub.f32 %v12577_v40, %v1457_v0  ;;  %v11002_v53 = vsub.f32 %v12578_v25, %v1457_v0  ;;  %v1535_v16 = vmul.f32 %v10988_v50, %v10988_v50  ;;  %v12580_v62 = vmax.f32 %v10585_v2, 0.0 }
 0x29d   :  { %v1595_v29 = vadd.f32 %v1594_v5, %v1532_v31  ;;  %v1536_v41 = vmul.f32 %v10976_v34, %v10976_v34  ;;  %v1537_v51 = vmul.f32 %v10980_v55, %v10980_v55  ;;  %v1538_v31 = vmul.f32 %v10984_v1, %v10984_v1 }
 0x29e   :  { %12579 = vst [vmem:[#allocation51_spill] sm:$0xff] %v11002_v53  ;;  %v11012_v35 = vsub.f32 %v12580_v62, %v1457_v0  ;;  %v1539_v25 = vmul.f32 %v10994_v6, %v10994_v6  ;;  %v12584_v50 = vmax.f32 %v10555_v21, 0.0 }
 0x29f   :  { %v1596_v3 = vadd.f32 %v1595_v29, %v1533_v23  ;;  %v1601_v60 = vadd.f32 %v1537_v51, %v1536_v41  ;;  %v12582_v23 = vmax.f32 %v10621_v18, 0.0  ;;  %v1540_v41 = vmul.f32 %v11002_v53, %v11002_v53  ;;  %v12616_v53 = vld [vmem:[#allocation26_spill] sm:$0xff] }
 0x2a0   :  { %v1410_v5 = vpop.xlane.xlu2 %1409  ;;  %12581 = vst [vmem:[#allocation52_spill] sm:$0xff] %v11012_v35  ;;  %v12587_v18 = vmax.f32 %v10623_v12, 0.0 }
 0x2a1   :  { %v1458_v40 = vmul.f32 0.0009765625, %v1410_v5  ;;  %v1597_v30 = vadd.f32 %v1596_v3, %v1534_v44  ;;  %v1602_v11 = vadd.f32 %v1601_v60, %v1538_v31  ;;  %v11018_v29 = vsub.f32 %v12582_v23, %v1457_v0 }
 0x2a2   :  { %v12585_v5 = vmax.f32 %v10558_v26, 0.0  ;;  %v12586_v3 = vmax.f32 %v10571_v38, 0.0  ;;  %v11036_v60 = vsub.f32 %v12587_v18, %v1457_v0  ;;  %v12589_v26 = vmax.f32 %v10589_v37, 0.0 }
 0x2a3   :  { %12583 = vst [vmem:[#allocation53_spill] sm:$0xff] %v11018_v29  ;;  %v1598_v51 = vadd.f32 %v1597_v30, %v1535_v16  ;;  %v1603_v46 = vadd.f32 %v1602_v11, %v1539_v25  ;;  %v11024_v2 = vsub.f32 %v12584_v50, %v1458_v40  ;;  %v1541_v11 = vmul.f32 %v11012_v35, %v11012_v35 }
 0x2a4   :  { %v11028_v44 = vsub.f32 %v12585_v5, %v1458_v40  ;;  %v11032_v31 = vsub.f32 %v12586_v3, %v1458_v40  ;;  %12588 = vst [vmem:[#allocation54_spill] sm:$0xff] %v11036_v60  ;;  %v11044_v50 = vsub.f32 %v12589_v26, %v1458_v40  ;;  %v1542_v62 = vmul.f32 %v11018_v29, %v11018_v29 }
 0x2a5   :  { %1599 = vadd.xlane.f32.xlu0 %v1598_v51  ;;  %v1604_v16 = vadd.f32 %v1603_v46, %v1540_v41  ;;  %v1544_v21 = vmul.f32 %v11024_v2, %v11024_v2  ;;  %v12590_v30 = vmax.f32 %v10628_v58, 0.0  ;;  %v1543_v37 = vmul.f32 %v11036_v60, %v11036_v60 }
 0x2a6   :  { %v1545_v38 = vmul.f32 %v11028_v44, %v11028_v44  ;;  %v1546_v46 = vmul.f32 %v11032_v31, %v11032_v31  ;;  %v12591_v5 = vmax.f32 %v10635_v17, 0.0  ;;  %v1547_v18 = vmul.f32 %v11044_v50, %v11044_v50 }
 0x2a7   :  { %v1605_v12 = vadd.f32 %v1604_v16, %v1541_v11  ;;  %v11052_v25 = vsub.f32 %v12590_v30, %v1458_v40  ;;  %v12592_v16 = vmax.f32 %v10599_v57, 0.0  ;;  %v12595_v17 = vmax.f32 %v10672_v39, 0.0 }
 0x2a8   :  { %v1419_v0 = vpop.xlane.xlu1 %1418  ;;  %v1610_v23 = vadd.f32 %v1545_v38, %v1544_v21  ;;  %v11060_v3 = vsub.f32 %v12591_v5, %v1458_v40  ;;  %v12593_v21 = vmax.f32 %v10603_v59, 0.0  ;;  %v12597_v57 = vmax.f32 %v10643_v63, 0.0 }
 0x2a9   :  { %v1459_v41 = vmul.f32 0.0009765625, %v1419_v0  ;;  %v1606_v51 = vadd.f32 %v1605_v12, %v1542_v62  ;;  %v12594_v0 = vmax.f32 %v10619_v7, 0.0  ;;  %v11078_v12 = vsub.f32 %v12595_v17, %v1458_v40 }
 0x2aa   :  { %v1611_v11 = vadd.f32 %v1610_v23, %v1546_v46  ;;  %v1548_v30 = vmul.f32 %v11052_v25, %v11052_v25 }
 0x2ab   :  { %v1607_v58 = vadd.f32 %v1606_v51, %v1543_v37  ;;  %v11066_v26 = vsub.f32 %v12592_v16, %v1459_v41  ;;  %v11070_v38 = vsub.f32 %v12593_v21, %v1459_v41  ;;  %v11074_v62 = vsub.f32 %v12594_v0, %v1459_v41  ;;  %12596 = vst [vmem:[#allocation55_spill] sm:$0xff] %v11078_v12 }
 0x2ac   :  { %v1612_v46 = vadd.f32 %v1611_v11, %v1547_v18  ;;  %v11084_v23 = vsub.f32 %v12597_v57, %v1459_v41  ;;  %v12598_v37 = vmax.f32 %v10675_v14, 0.0  ;;  %v1549_v51 = vmul.f32 %v11060_v3, %v11060_v3 }
 0x2ad   :  { %1608 = vadd.xlane.f32.xlu2 %v1607_v58  ;;  %v1552_v59 = vmul.f32 %v11066_v26, %v11066_v26  ;;  %v1553_v7 = vmul.f32 %v11070_v38, %v11070_v38  ;;  %v12600_v18 = vmax.f32 %v10680_v15, 0.0  ;;  %v1554_v63 = vmul.f32 %v11074_v62, %v11074_v62 }
 0x2ae   :  { %v11092_v39 = vsub.f32 %v12598_v37, %v1458_v40  ;;  %v1613_v5 = vadd.f32 %v1612_v46, %v1548_v30  ;;  %v1550_v21 = vmul.f32 %v11078_v12, %v11078_v12  ;;  %v12601_v40 = vmax.f32 %v10697_v27, 0.0  ;;  %v12633_v12 = vld [vmem:[#allocation28_spill] sm:$0xff] }
 0x2af   :  { %v11098_v11 = vsub.f32 %v12600_v18, %v1459_v41  ;;  %v1619_v58 = vadd.f32 %v1553_v7, %v1552_v59  ;;  %v1555_v30 = vmul.f32 %v11084_v23, %v11084_v23  ;;  %v12602_v59 = vmax.f32 %v10724_v43, 0.0 }
 0x2b0   :  { %12599 = vst [vmem:[#allocation56_spill] sm:$0xff] %v11092_v39  ;;  %v1428_v16 = vpop.xlane.xlu2 %1427  ;;  %v1614_v0 = vadd.f32 %v1613_v5, %v1549_v51  ;;  %v11106_v17 = vsub.f32 %v12601_v40, %v1459_v41  ;;  %v1551_v46 = vmul.f32 %v11092_v39, %v11092_v39  ;;  %v12603_v5 = vld [vmem:[#allocation21_spill] sm:$0xff]  ;;  %v12609_v43 = vmax.f32 %v10727_v54, 0.0 }
 0x2b1   :  { %v1460_v14 = vmul.f32 0.0009765625, %v1428_v16  ;;  %v1620_v15 = vadd.f32 %v1619_v58, %v1554_v63  ;;  %v11114_v7 = vsub.f32 %v12602_v59, %v1459_v41  ;;  %v1556_v37 = vmul.f32 %v11098_v11, %v11098_v11  ;;  %v12605_v16 = vld [vmem:[#allocation23_spill] sm:$0xff]  ;;  %v12607_v58 = vld [vmem:[#allocation24_spill] sm:$0xff] }
 0x2b2   :  { %v1615_v57 = vadd.f32 %v1614_v0, %v1550_v21  ;;  %v12604_v27 = vmax.f32 %v12603_v5, 0.0  ;;  %v12606_v40 = vmax.f32 %v12605_v16, 0.0  ;;  %v12608_v60 = vmax.f32 %v12607_v58, 0.0  ;;  %v12610_v5 = vld [vmem:[#allocation25_spill] sm:$0xff] }
 0x2b3   :  { %v1621_v51 = vadd.f32 %v1620_v15, %v1555_v30  ;;  %v11132_v0 = vsub.f32 %v12609_v43, %v1459_v41  ;;  %v1557_v30 = vmul.f32 %v11106_v17, %v11106_v17  ;;  %v1558_v54 = vmul.f32 %v11114_v7, %v11114_v7 }
 0x2b4   :  { %v11120_v18 = vsub.f32 %v12604_v27, %v1460_v14  ;;  %v11124_v19 = vsub.f32 %v12606_v40, %v1460_v14  ;;  %v1616_v63 = vadd.f32 %v1615_v57, %v1551_v46  ;;  %v11128_v21 = vsub.f32 %v12608_v60, %v1460_v14 }
 0x2b5   :  { %v1622_v15 = vadd.f32 %v1621_v51, %v1556_v37  ;;  %v12611_v27 = vmax.f32 %v12610_v5, 0.0  ;;  %v12612_v57 = vmax.f32 %v10730_v52, 0.0  ;;  %v1559_v58 = vmul.f32 %v11132_v0, %v11132_v0 }
 0x2b6   :  { %v1560_v59 = vmul.f32 %v11120_v18, %v11120_v18  ;;  %1617 = vadd.xlane.f32.xlu1 %v1616_v63  ;;  %v1561_v60 = vmul.f32 %v11124_v19, %v11124_v19  ;;  %v1562_v37 = vmul.f32 %v11128_v21, %v11128_v21  ;;  %v12613_v5 = vmax.f32 %v10747_v48, 0.0 }
 0x2b7   :  { %v11140_v16 = vsub.f32 %v12611_v27, %v1460_v14  ;;  %v1623_v41 = vadd.f32 %v1622_v15, %v1557_v30  ;;  %v11148_v40 = vsub.f32 %v12612_v57, %v1460_v14  ;;  %v12614_v57 = vld [vmem:[#allocation22_spill] sm:$0xff]  ;;  %v12619_v48 = vmax.f32 %v10776_v32, 0.0 }
 0x2b8   :  { %v1437_v46 = vpop.xlane.xlu0 %1436  ;;  %v1628_v51 = vadd.f32 %v1561_v60, %v1560_v59  ;;  %v11156_v27 = vsub.f32 %v12613_v5, %v1460_v14  ;;  %v12615_v29 = vmax.f32 %v12614_v57, 0.0  ;;  %v12617_v59 = vmax.f32 %v12616_v53, 0.0 }
 0x2b9   :  { %v1461_v63 = vmul.f32 0.0009765625, %v1437_v46  ;;  %v1624_v43 = vadd.f32 %v1623_v41, %v1558_v54  ;;  %v1563_v30 = vmul.f32 %v11140_v16, %v11140_v16  ;;  %v12618_v46 = vmax.f32 %v10720_v4, 0.0 }
 0x2ba   :  { %v1629_v15 = vadd.f32 %v1628_v51, %v1562_v37  ;;  %v11174_v41 = vsub.f32 %v12619_v48, %v1460_v14  ;;  %v1564_v37 = vmul.f32 %v11148_v40, %v11148_v40  ;;  %v1565_v5 = vmul.f32 %v11156_v27, %v11156_v27 }
 0x2bb   :  { %v1625_v52 = vadd.f32 %v1624_v43, %v1559_v58  ;;  %v11162_v35 = vsub.f32 %v12615_v29, %v1461_v63  ;;  %v11166_v60 = vsub.f32 %v12617_v59, %v1461_v63  ;;  %v11170_v54 = vsub.f32 %v12618_v46, %v1461_v63 }
 0x2bc   :  { %12620 = vst [vmem:[#allocation21_spill] sm:$0xff] %v11174_v41  ;;  %v1630_v51 = vadd.f32 %v1629_v15, %v1563_v30  ;;  %v12621_v29 = vmax.f32 %v10741_v10, 0.0  ;;  %v12623_v43 = vmax.f32 %v10779_v36, 0.0  ;;  %v12625_v30 = vld [vmem:[#allocation30_spill] sm:$0xff]  ;;  %v1566_v48 = vmul.f32 %v11174_v41, %v11174_v41 }
 0x2bd   :  { %1626 = vadd.xlane.f32.xlu0 %v1625_v52  ;;  %v1568_v53 = vmul.f32 %v11162_v35, %v11162_v35  ;;  %v1569_v4 = vmul.f32 %v11166_v60, %v11166_v60  ;;  %v12626_v15 = vmax.f32 %v12625_v30, 0.0  ;;  %v1570_v10 = vmul.f32 %v11170_v54, %v11170_v54 }
 0x2be   :  { %v11180_v58 = vsub.f32 %v12621_v29, %v1461_v63  ;;  %v11188_v32 = vsub.f32 %v12623_v43, %v1460_v14  ;;  %v1631_v57 = vadd.f32 %v1630_v51, %v1564_v37  ;;  %v12627_v14 = vld [vmem:[#allocation32_spill] sm:$0xff]  ;;  %v12634_v41 = vmax.f32 %v12633_v12, 0.0  ;;  %v12639_v12 = vld [vmem:[#allocation31_spill] sm:$0xff] }
 0x2bf   :  { %v11194_v52 = vsub.f32 %v12626_v15, %v1461_v63  ;;  %v1637_v59 = vadd.f32 %v1569_v4, %v1568_v53  ;;  %v12628_v43 = vmax.f32 %v12627_v14, 0.0  ;;  %v12629_v53 = vmax.f32 %v10828_v33, 0.0 }
 0x2c0   :  { %12622 = vst [vmem:[#allocation23_spill] sm:$0xff] %v11180_v58  ;;  %v1446_v46 = vpop.xlane.xlu2 %1445  ;;  %v1632_v29 = vadd.f32 %v1631_v57, %v1565_v5  ;;  %v1571_v37 = vmul.f32 %v11180_v58, %v11180_v58  ;;  %v1567_v30 = vmul.f32 %v11188_v32, %v11188_v32  ;;  %v12637_v33 = vmax.f32 %v10831_v42, 0.0 }
 0x2c1   :  { %12624 = vst [vmem:[#allocation24_spill] sm:$0xff] %v11188_v32  ;;  %v1462_v36 = vmul.f32 0.0009765625, %v1446_v46  ;;  %v11202_v39 = vsub.f32 %v12628_v43, %v1461_v63  ;;  %v1638_v51 = vadd.f32 %v1637_v59, %v1570_v10  ;;  %v11210_v4 = vsub.f32 %v12629_v53, %v1461_v63  ;;  %v12631_v46 = vld [vmem:[#allocation27_spill] sm:$0xff]  ;;  %v12635_v59 = vld [vmem:[#allocation29_spill] sm:$0xff] }
 0x2c2   :  { %v1633_v15 = vadd.f32 %v1632_v29, %v1566_v48  ;;  %v1572_v5 = vmul.f32 %v11194_v52, %v11194_v52  ;;  %v12632_v14 = vmax.f32 %v12631_v46, 0.0  ;;  %v12636_v32 = vmax.f32 %v12635_v59, 0.0 }
 0x2c3   :  { %12630 = vst [vmem:[#allocation25_spill] sm:$0xff] %v11210_v4  ;;  %v1639_v57 = vadd.f32 %v1638_v51, %v1571_v37  ;;  %v11220_v58 = vsub.f32 %v12634_v41, %v1462_v36  ;;  %v11228_v29 = vsub.f32 %v12637_v33, %v1461_v63  ;;  %v1573_v37 = vmul.f32 %v11202_v39, %v11202_v39 }
 0x2c4   :  { %v11216_v43 = vsub.f32 %v12632_v14, %v1462_v36  ;;  %v1634_v10 = vadd.f32 %v1633_v15, %v1567_v30  ;;  %v11224_v48 = vsub.f32 %v12636_v32, %v1462_v36  ;;  %v12640_v41 = vmax.f32 %v12639_v12, 0.0 }
 0x2c5   :  { %12638 = vst [vmem:[#allocation22_spill] sm:$0xff] %v11228_v29  ;;  %v1640_v51 = vadd.f32 %v1639_v57, %v1572_v5  ;;  %v1577_v32 = vmul.f32 %v11220_v58, %v11220_v58  ;;  %v1574_v42 = vmul.f32 %v11210_v4, %v11210_v4  ;;  %v12641_v15 = vmax.f32 %v10834_v8, 0.0 }
 0x2c6   :  { %v1576_v53 = vmul.f32 %v11216_v43, %v11216_v43  ;;  %1635 = vadd.xlane.f32.xlu2 %v1634_v10  ;;  %v11236_v46 = vsub.f32 %v12640_v41, %v1462_v36  ;;  %v1578_v5 = vmul.f32 %v11224_v48, %v11224_v48  ;;  %v1575_v59 = vmul.f32 %v11228_v29, %v11228_v29 }
 0x2c7   :  { %v1641_v63 = vadd.f32 %v1640_v51, %v1573_v37  ;;  %v11244_v14 = vsub.f32 %v12641_v15, %v1462_v36  ;;  %v12643_v12 = vmax.f32 %v10851_v61, 0.0  ;;  %v12645_v15 = vmax.f32 %v10809_v24, 0.0 }
 0x2c8   :  { %v1455_v30 = vpop.xlane.xlu1 %1454  ;;  %v1646_v57 = vadd.f32 %v1577_v32, %v1576_v53  ;;  %v1579_v37 = vmul.f32 %v11236_v46, %v11236_v46  ;;  %v12647_v53 = vmax.f32 %v10813_v22, 0.0  ;;  %v12652_v61 = vmax.f32 %v10868_v45, 0.0 }
 0x2c9   :  { %12642 = vst [vmem:[#allocation26_spill] sm:$0xff] %v11244_v14  ;;  %v1463_v10 = vmul.f32 0.0009765625, %v1455_v30  ;;  %v1642_v33 = vadd.f32 %v1641_v63, %v1574_v42  ;;  %v11252_v41 = vsub.f32 %v12643_v12, %v1462_v36  ;;  %v12649_v30 = vld [vmem:[#allocation33_spill] sm:$0xff]  ;;  %v12654_v24 = vmax.f32 %v10845_v28, 0.0 }
 0x2ca   :  { %v1647_v51 = vadd.f32 %v1646_v57, %v1578_v5  ;;  %v12650_v29 = vmax.f32 %v12649_v30, 0.0  ;;  %v11270_v63 = vsub.f32 %v12652_v61, %v1462_v36  ;;  %v1580_v5 = vmul.f32 %v11244_v14, %v11244_v14 }
 0x2cb   :  { %12644 = vst [vmem:[#allocation30_spill] sm:$0xff] %v11252_v41  ;;  %v1643_v8 = vadd.f32 %v1642_v33, %v1575_v59  ;;  %v11258_v4 = vsub.f32 %v12645_v15, %v1463_v10  ;;  %v11262_v32 = vsub.f32 %v12647_v53, %v1463_v10  ;;  %v11276_v59 = vsub.f32 %v12654_v24, %v1463_v10 }
 0x2cc   :  { %v11266_v42 = vsub.f32 %v12650_v29, %v1463_v10  ;;  %12653 = vst [vmem:[#allocation29_spill] sm:$0xff] %v11270_v63  ;;  %v1648_v57 = vadd.f32 %v1647_v51, %v1579_v37  ;;  %v12656_v33 = vmax.f32 %v10871_v49, 0.0  ;;  %v1581_v12 = vmul.f32 %v11252_v41, %v11252_v41 }
 0x2cd   :  { %12646 = vst [vmem:[#allocation32_spill] sm:$0xff] %v11258_v4  ;;  %1644 = vadd.xlane.f32.xlu1 %v1643_v8  ;;  %v1584_v22 = vmul.f32 %v11258_v4, %v11258_v4  ;;  %v1585_v29 = vmul.f32 %v11262_v32, %v11262_v32  ;;  %v12658_v37 = vmax.f32 %v10874_v9, 0.0  ;;  %v1582_v53 = vmul.f32 %v11270_v63, %v11270_v63 }
 0x2ce   :  { %12648 = vst [vmem:[#allocation27_spill] sm:$0xff] %v11262_v32  ;;  %v11284_v45 = vsub.f32 %v12656_v33, %v1462_v36  ;;  %v1649_v15 = vadd.f32 %v1648_v57, %v1580_v5  ;;  %v1586_v28 = vmul.f32 %v11266_v42, %v11266_v42  ;;  %v12660_v49 = vmax.f32 %v10886_v20, 0.0 }
 0x2cf   :  { %12651 = vst [vmem:[#allocation28_spill] sm:$0xff] %v11266_v42  ;;  %v11290_v51 = vsub.f32 %v12658_v37, %v1463_v10  ;;  %v1655_v8 = vadd.f32 %v1585_v29, %v1584_v22  ;;  %v1587_v61 = vmul.f32 %v11276_v59, %v11276_v59  ;;  %v12662_v24 = vmax.f32 %v10894_v13, 0.0 }
 0x2d0   :  { %12655 = vst [vmem:[#allocation31_spill] sm:$0xff] %v11276_v59  ;;  %v1650_v30 = vadd.f32 %v1649_v15, %v1581_v12  ;;  %v11298_v36 = vsub.f32 %v12660_v49, %v1463_v10  ;;  %v1583_v9 = vmul.f32 %v11284_v45, %v11284_v45  ;;  %v12664_v20 = vmax.f32 %v10897_v56, 0.0  ;;  %v1936_v56 = vld [vmem:[%s12077_s4] sm:$0xff] }
 0x2d1   :  { %12657 = vst [vmem:[#allocation33_spill] sm:$0xff] %v11284_v45  ;;  %v1656_v5 = vadd.f32 %v1655_v8, %v1586_v28  ;;  %v11306_v33 = vsub.f32 %v12662_v24, %v1463_v10  ;;  %v1588_v22 = vmul.f32 %v11290_v51, %v11290_v51 }
 0x2d2   :  { %12659 = vst [vmem:[#allocation57_spill] sm:$0xff] %v11290_v51  ;;  %v1651_v57 = vadd.f32 %v1650_v30, %v1582_v53  ;;  %v11312_v15 = vsub.f32 %v12664_v20, %v1463_v10  ;;  %v1589_v37 = vmul.f32 %v11298_v36, %v11298_v36  ;;  %v1824_v10 = vld [vmem:[%s12076_s3] sm:$0xff]  ;;  %s2049_s3 = sld [smem:[#allocation10]] }
 0x2d3   :  { %12661 = vst [vmem:[#allocation58_spill] sm:$0xff] %v11298_v36  ;;  %v1657_v29 = vadd.f32 %v1656_v5, %v1587_v61  ;;  %v1590_v8 = vmul.f32 %v11306_v33, %v11306_v33  ;;  %v1937_v61 = vld [vmem:[%s12077_s4 + $0x8] sm:$0xff]  ;;  %v11329_v5 = vpop.permute.xlu0 %1961  ;;  %s11844_s4 = sld [smem:[#allocation10 + $0x1]] }
 0x2d4   :  { %12663 = vst [vmem:[#allocation59_spill] sm:$0xff] %v11306_v33  ;;  %v1652_v12 = vadd.f32 %v1651_v57, %v1583_v9  ;;  %v1591_v53 = vmul.f32 %v11312_v15, %v11312_v15  ;;  %v11331_v9 = vpop.permute.xlu2 %1839 }
 0x2d5   :  { %12665 = vst [vmem:[#allocation60_spill] sm:$0xff] %v11312_v15  ;;  %v1658_v28 = vadd.f32 %v1657_v29, %v1588_v22 }
 0x2d6   :  { %1653 = vadd.xlane.f32.xlu0 %v1652_v12  ;;  %12666 = vst [vmem:[#allocation61_spill] sm:$0xff] %v11331_v9 }
 0x2d7   :  { %v1659_v13 = vadd.f32 %v1658_v28, %v1589_v37 }
 0x2d9   :  { %v1660_v30 = vadd.f32 %v1659_v13, %v1590_v8 }
 0x2db   :  { %v1661_v49 = vadd.f32 %v1660_v30, %v1591_v53 }
 0x2dd   :  { %1662 = vadd.xlane.f32.xlu2 %v1661_v49 }
 0x2e0   :  { %v11333_v22 = vpop.permute.xlu1 %1956 }
 0x2e1   :  { %12667 = vst [vmem:[#allocation62_spill] sm:$0xff] %v11333_v22 }
 0x2e6   :  { %1946 = vperm.xlu1 %9022, %v1936_v56  }
 0x2ea   :  { %1834 = vperm.xlu0 %9024, %v1824_v10  }
 0x2f5   :  { %1951 = vperm.xlu2 %9023, %v1937_v61  }
 0x318   :  { %v1600_v57 = vpop.xlane.xlu0 %1599 }
 0x319   :  { %v1664_v29 = vmul.f32 0.0009765625, %v1600_v57 }
 0x31b   :  { %v1672_v20 = vadd.f32 1e-05, %v1664_v29 }
 0x31d   :  { %9025 = vrsqrt.f32 %v1672_v20  ;;  %vm1686_vm8 = vweird.f32 %v1672_v20 }
 0x320   :  { %v1609_v24 = vpop.xlane.xlu2 %1608 }
 0x321   :  { %v1665_v12 = vmul.f32 0.0009765625, %v1609_v24 }
 0x323   :  { %v1673_v37 = vadd.f32 1e-05, %v1665_v12  ;;  %v9026_v53 = vpop.eup %9025 }
 0x324   :  { %v1681_v10 = vmul.f32 %v9026_v53, %v1672_v20  ;;  %vm1687_vm7 = vweird.f32 %v9026_v53 }
 0x325   :  { %9027 = vrsqrt.f32 %v1673_v37  ;;  %vm1688_vm12 = vmor %vm1686_vm8, %vm1687_vm7  ;;  %vm1696_vm3 = vweird.f32 %v1673_v37 }
 0x326   :  { %v1682_v57 = vmul.f32 %v9026_v53, %v1681_v10 }
 0x329   :  { %v1618_v28 = vpop.xlane.xlu1 %1617 }
 0x32a   :  { %v1666_v8 = vmul.f32 0.0009765625, %v1618_v28  ;;  %v1683_v28 = vmul.f32 0.5, %v1682_v57 }
 0x32b   :  { %v9028_v49 = vpop.eup %9027 }
 0x32c   :  { %v1674_v13 = vadd.f32 1e-05, %v1666_v8  ;;  %v1691_v63 = vmul.f32 %v9028_v49, %v1673_v37  ;;  %vm1697_vm2 = vweird.f32 %v9028_v49 }
 0x32d   :  { %vm1698_vm15 = vmor %vm1696_vm3, %vm1697_vm2 }
 0x32e   :  { %9029 = vrsqrt.f32 %v1674_v13  ;;  %v1692_v24 = vmul.f32 %v9028_v49, %v1691_v63  ;;  %vm1706_vm11 = vweird.f32 %v1674_v13 }
 0x330   :  { %v1627_v30 = vpop.xlane.xlu0 %1626  ;;  %v1693_v51 = vmul.f32 0.5, %v1692_v24 }
 0x331   :  { %v1667_v56 = vmul.f32 0.0009765625, %v1627_v30  ;;  %v1684_v30 = vsub.f32 1.5, %v1683_v28 }
 0x333   :  { %v1675_v61 = vadd.f32 1e-05, %v1667_v56  ;;  %v1694_v56 = vsub.f32 1.5, %v1693_v51  ;;  %v1685_v63 = vmul.f32 %v9026_v53, %v1684_v30 }
 0x334   :  { %v9030_v45 = vpop.eup %9029 }
 0x335   :  { %v1701_v15 = vmul.f32 %v9030_v45, %v1674_v13  ;;  %9031 = vrsqrt.f32 %v1675_v61  ;;  %v1695_v24 = vmul.f32 %v9028_v49, %v1694_v56  ;;  %vm1707_vm1 = vweird.f32 %v9030_v45  ;;  %v12669_v56 = vld [vmem:[#allocation43_spill] sm:$0xff] }
 0x336   :  { %vm1708_vm5 = vmor %vm1706_vm11, %vm1707_vm1  ;;  %vm1716_vm14 = vweird.f32 %v1675_v61 }
 0x337   :  { %v1702_v29 = vmul.f32 %v9030_v45, %v1701_v15 }
 0x339   :  { %v1636_v12 = vpop.xlane.xlu2 %1635  ;;  %v1703_v8 = vmul.f32 0.5, %v1702_v29  ;;  %v11348_v29 = vsel %vm1698_vm15, %v9028_v49, %v1695_v24  ;;  %v12671_v24 = vld [vmem:[#allocation40_spill] sm:$0xff] }
 0x33a   :  { %v1668_v33 = vmul.f32 0.0009765625, %v1636_v12  ;;  %v1768_v49 = vmul.f32 %v11348_v29, %v10976_v34  ;;  %v1771_v30 = vmul.f32 %v11348_v29, %v10994_v6 }
 0x33b   :  { %v9032_v36 = vpop.eup %9031  ;;  %v1704_v42 = vsub.f32 1.5, %v1703_v8  ;;  %v1769_v8 = vmul.f32 %v11348_v29, %v10980_v55 }
 0x33c   :  { %v1711_v41 = vmul.f32 %v9032_v36, %v1675_v61  ;;  %v11335_v14 = vadd.f32 1e-05, %v1668_v33  ;;  %vm1717_vm6 = vweird.f32 %v9032_v36 }
 0x33d   :  { %v1705_v33 = vmul.f32 %v9030_v45, %v1704_v42  ;;  %vm1718_vm13 = vmor %vm1716_vm14, %vm1717_vm6  ;;  %vm12722_vm6 = vcmask 1040384  }
 0x33e   :  { %v1712_v59 = vmul.f32 %v9032_v36, %v1711_v41  ;;  %9033 = vrsqrt.f32 %v11335_v14  ;;  %vm1726_vm0 = vweird.f32 %v11335_v14  ;;  %vm12723_vm14 = vmmov %vm12722_vm6 }
 0x33f   :  { %v11350_v20 = vsel %vm1708_vm5, %v9030_v45, %v1705_v33  ;;  %vm2051_vm5 = vcmask 523264  }
 0x340   :  { %v1645_v32 = vpop.xlane.xlu1 %1644  ;;  %v1713_v4 = vmul.f32 0.5, %v1712_v59  ;;  %v1778_v55 = vmul.f32 %v11350_v20, %v11032_v31  ;;  %v1779_v6 = vmul.f32 %v11350_v20, %v11044_v50  ;;  %v11406_v50 = vmul.f32 %v11331_v9, %v1771_v30 }
 0x341   :  { %v1669_v10 = vmul.f32 0.0009765625, %v1645_v32  ;;  %v11345_v32 = vsel %vm1688_vm12, %v9026_v53, %v1685_v63  ;;  %v1776_v53 = vmul.f32 %v11350_v20, %v11024_v2 }
 0x342   :  { %v1714_v41 = vsub.f32 1.5, %v1713_v4  ;;  %12668 = vst [vmem:[#allocation63_spill] sm:$0xff] %v11345_v32  ;;  %v11354_v12 = vmul.f32 %v11345_v32, %v10936_v47  ;;  %v1770_v47 = vmul.f32 %v11348_v29, %v10984_v1  ;;  %v11376_v34 = vmul.f32 %v11345_v32, %v12669_v56 }
 0x343   :  { %v11338_v15 = vadd.f32 1e-05, %v1669_v10  ;;  %v12670_v10 = vld [vmem:[#allocation44_spill] sm:$0xff]  ;;  %v1777_v1 = vmul.f32 %v11350_v20, %v11028_v44  ;;  %v1888_v33 = vmul.f32 %v12671_v24, %v1776_v53 }
 0x344   :  { %v11340_v57 = vpop.eup %9033  ;;  %v1715_v42 = vmul.f32 %v9032_v36, %v1714_v41  ;;  %v11380_v63 = vmul.f32 %v11345_v32, %v12670_v10  ;;  %v11391_v41 = vmul.f32 %v11331_v9, %v1768_v49  ;;  %v11403_v31 = vmul.f32 %v11331_v9, %v1770_v47 }
 0x345   :  { %v1721_v51 = vmul.f32 %v11340_v57, %v11335_v14  ;;  %9035 = vrsqrt.f32 %v11338_v15  ;;  %v1889_v49 = vmul.f32 %v12671_v24, %v1777_v1  ;;  %v1891_v47 = vmul.f32 %v12671_v24, %v1779_v6 }
 0x346   :  { %v11370_v61 = vsel %vm1718_vm13, %v9032_v36, %v1715_v42  ;;  %vm1727_vm9 = vweird.f32 %v11340_v57  ;;  %vm1736_vm10 = vweird.f32 %v11338_v15  ;;  %v1780_v14 = vmul.f32 %v11350_v20, %v11052_v25  ;;  %vm12724_vm13 = vmmov %vm12722_vm6 }
 0x347   :  { %v1722_v59 = vmul.f32 %v11340_v57, %v1721_v51  ;;  %v12672_v51 = vld [vmem:[#allocation45_spill] sm:$0xff]  ;;  %v1784_v44 = vmul.f32 %v11370_v61, %v11066_v26  ;;  %v1785_v53 = vmul.f32 %v11370_v61, %v11070_v38  ;;  %v1786_v26 = vmul.f32 %v11370_v61, %v11074_v62  ;;  %v12673_v38 = vld [vmem:[#allocation42_spill] sm:$0xff]  ;;  %vm1728_vm4 = vmor %vm1726_vm0, %vm1727_vm9 }
 0x348   :  { %v1787_v62 = vmul.f32 %v11370_v61, %v11084_v23  ;;  %v1788_v1 = vmul.f32 %v11370_v61, %v11098_v11  ;;  %vm12725_vm0 = vmmov %vm12722_vm6 }
 0x349   :  { %v1654_v37 = vpop.xlane.xlu0 %1653  ;;  %v1723_v13 = vmul.f32 0.5, %v1722_v59  ;;  %v11395_v59 = vmul.f32 %v11345_v32, %v12672_v51  ;;  %v1896_v51 = vmul.f32 %v12673_v38, %v1784_v44  ;;  %v1898_v23 = vmul.f32 %v12673_v38, %v1786_v26  ;;  %vm12726_vm9 = vmmov %vm12725_vm0 }
 0x34a   :  { %v1670_v4 = vmul.f32 0.0009765625, %v1654_v37  ;;  %v11400_v37 = vmul.f32 %v11331_v9, %v1769_v8  ;;  %v1890_v8 = vmul.f32 %v12671_v24, %v1778_v55  ;;  %v1789_v55 = vmul.f32 %v11370_v61, %v11106_v17 }
 0x34b   :  { %v11356_v28 = vpop.eup %9035  ;;  %v1724_v36 = vsub.f32 1.5, %v1723_v13 }
 0x34c   :  { %v11362_v45 = vadd.f32 1e-05, %v1670_v4  ;;  %v1731_v2 = vmul.f32 %v11356_v28, %v11338_v15  ;;  %v11442_v11 = vadd.f32 %v11333_v22, %v1890_v8  ;;  %v1901_v26 = vmul.f32 %v12673_v38, %v1789_v55 }
 0x34d   :  { %v1725_v30 = vmul.f32 %v11340_v57, %v1724_v36  ;;  %vm1737_vm7 = vweird.f32 %v11356_v28  ;;  %v11509_v15 = vmul.f32 %v12671_v24, %v1780_v14 }
 0x34e   :  { %9037 = vrsqrt.f32 %v11362_v45  ;;  %v1732_v4 = vmul.f32 %v11356_v28, %v1731_v2  ;;  %v11422_v2 = vadd.f32 %v11333_v22, %v1888_v33  ;;  %v1897_v33 = vmul.f32 %v12673_v38, %v1785_v53  ;;  %vm1738_vm8 = vmor %vm1736_vm10, %vm1737_vm7 }
 0x34f   :  { %v11445_v17 = vsel %vm1728_vm4, %v11340_v57, %v1725_v30  ;;  %v1900_v53 = vmul.f32 %v12673_v38, %v1788_v1  ;;  %v11458_v57 = vadd.f32 %v11329_v5, %v1896_v51  ;;  %vm1746_vm1 = vweird.f32 %v11362_v45  ;;  %12678 = vst [vmem:[#allocation45_spill] sm:$0xff] %v11509_v15  ;;  %vm12727_vm4 = vmmov %vm12725_vm0 }
 0x350   :  { %v1663_v42 = vpop.xlane.xlu2 %1662  ;;  %v1733_v6 = vmul.f32 0.5, %v1732_v4  ;;  %v11448_v4 = vadd.f32 %v11333_v22, %v1891_v47  ;;  %v11461_v47 = vadd.f32 %v11329_v5, %v1897_v33  ;;  %v1792_v25 = vmul.f32 %v11445_v17, %v11120_v18  ;;  %vm12728_vm10 = vmmov %vm12725_vm0 }
 0x351   :  { %v1671_v13 = vmul.f32 0.0009765625, %v1663_v42  ;;  %v11439_v42 = vadd.f32 %v11333_v22, %v1889_v49  ;;  %v1790_v49 = vmul.f32 %v11370_v61, %v11114_v7  ;;  %v1793_v30 = vmul.f32 %v11445_v17, %v11124_v19  ;;  %vm12729_vm7 = vmmov %vm12725_vm0 }
 0x352   :  { %v1734_v8 = vsub.f32 1.5, %v1733_v6  ;;  %v1794_v51 = vmul.f32 %v11445_v17, %v11128_v21  ;;  %v1795_v55 = vmul.f32 %v11445_v17, %v11140_v16  ;;  %v1796_v6 = vmul.f32 %v11445_v17, %v11148_v40 }
 0x353   :  { %v11419_v56 = vadd.f32 1e-05, %v1671_v13  ;;  %v1899_v13 = vmul.f32 %v12673_v38, %v1787_v62  ;;  %v11469_v62 = vadd.f32 %v11329_v5, %v1898_v23  ;;  %v11482_v19 = vadd.f32 %v11329_v5, %v1900_v53 }
 0x354   :  { %v9038_v10 = vpop.eup %9037  ;;  %v1902_v33 = vmul.f32 %v12673_v38, %v1790_v49  ;;  %v1797_v21 = vmul.f32 %v11445_v17, %v11156_v27 }
 0x355   :  { %v1741_v36 = vmul.f32 %v9038_v10, %v11362_v45  ;;  %9039 = vrsqrt.f32 %v11419_v56  ;;  %v11479_v18 = vadd.f32 %v11329_v5, %v1899_v13  ;;  %12674 = vst [vmem:[#allocation43_spill] sm:$0xff] %v11482_v19  ;;  %vm1747_vm2 = vweird.f32 %v9038_v10 }
 0x356   :  { %v11491_v13 = vadd.f32 %v11329_v5, %v1901_v26  ;;  %vm1748_vm12 = vmor %vm1746_vm1, %vm1747_vm2  ;;  %v11506_v26 = vmul.f32 %v11370_v61, %v11132_v0  ;;  %vm1756_vm15 = vweird.f32 %v11419_v56 }
 0x357   :  { %v1742_v44 = vmul.f32 %v9038_v10, %v1741_v36  ;;  %vm12730_vm2 = vmmov %vm12725_vm0 }
 0x358   :  { %12676 = vst [vmem:[#allocation44_spill] sm:$0xff] %v11491_v13  ;;  %v12689_v13 = vld [vmem:[#allocation34_spill] sm:$0xff]  ;;  %vm12732_vm1 = vmmov %vm12725_vm0 }
 0x359   :  { %v1743_v32 = vmul.f32 0.5, %v1742_v44  ;;  %v12675_v44 = vld [vmem:[#allocation41_spill] sm:$0xff] }
 0x35a   :  { %v1904_v40 = vmul.f32 %v12675_v44, %v1792_v25  ;;  %v1905_v9 = vmul.f32 %v12675_v44, %v1793_v30  ;;  %v1906_v53 = vmul.f32 %v12675_v44, %v1794_v51  ;;  %v1907_v49 = vmul.f32 %v12675_v44, %v1795_v55 }
 0x35b   :  { %v9040_v7 = vpop.eup %9039  ;;  %v1744_v1 = vsub.f32 1.5, %v1743_v32  ;;  %v1735_v32 = vmul.f32 %v11356_v28, %v1734_v8  ;;  %v1908_v27 = vmul.f32 %v12675_v44, %v1796_v6  ;;  %v11502_v25 = vadd.f32 %v11329_v5, %v1902_v33  ;;  %v12679_v6 = vld [vmem:[#allocation47_spill] sm:$0xff] }
 0x35c   :  { %v1751_v36 = vmul.f32 %v9040_v7, %v11419_v56  ;;  %v11521_v51 = vmul.f32 %v11350_v20, %v11060_v3  ;;  %vm1757_vm3 = vweird.f32 %v9040_v7  ;;  %v11524_v0 = vadd.f32 %v12679_v6, %v1904_v40  ;;  %v12682_v40 = vld [vmem:[#allocation32_spill] sm:$0xff] }
 0x35d   :  { %v1745_v23 = vmul.f32 %v9038_v10, %v1744_v1  ;;  %12677 = vst [vmem:[#allocation40_spill] sm:$0xff] %v11502_v25  ;;  %v11512_v45 = vsel %vm1738_vm8, %v11356_v28, %v1735_v32  ;;  %v11517_v1 = vmul.f32 %v12675_v44, %v1797_v21  ;;  %v11527_v61 = vadd.f32 %v12679_v6, %v1905_v9  ;;  %vm1758_vm11 = vmor %vm1756_vm15, %vm1757_vm3  ;;  %v12688_v25 = vld [vmem:[#allocation25_spill] sm:$0xff] }
 0x35e   :  { %v1752_v16 = vmul.f32 %v9040_v7, %v1751_v36  ;;  %v11531_v28 = vadd.f32 %v12679_v6, %v1906_v53  ;;  %v11537_v14 = vadd.f32 %v12679_v6, %v1908_v27  ;;  %v1800_v9 = vmul.f32 %v11512_v45, %v11162_v35  ;;  %v12683_v53 = vld [vmem:[#allocation27_spill] sm:$0xff]  ;;  %v12684_v27 = vld [vmem:[#allocation28_spill] sm:$0xff]  ;;  %vm12731_vm8 = vmmov %vm12725_vm0 }
 0x35f   :  { %v11514_v30 = vsel %vm1748_vm12, %v9038_v10, %v1745_v23  ;;  %v11534_v10 = vadd.f32 %v12679_v6, %v1907_v49  ;;  %v1801_v56 = vmul.f32 %v11512_v45, %v11166_v60  ;;  %v1802_v32 = vmul.f32 %v11512_v45, %v11170_v54  ;;  %v12681_v23 = vld [vmem:[#allocation23_spill] sm:$0xff]  ;;  %vm12733_vm12 = vmmov %vm12725_vm0 }
 0x360   :  { %v1753_v8 = vmul.f32 0.5, %v1752_v16  ;;  %12680 = vst [vmem:[#allocation42_spill] sm:$0xff] %v11537_v14  ;;  %v1808_v36 = vmul.f32 %v11514_v30, %v11216_v43  ;;  %v1809_v33 = vmul.f32 %v11514_v30, %v11220_v58  ;;  %v1803_v21 = vmul.f32 %v11512_v45, %v12681_v23  ;;  %vm12734_vm3 = vmmov %vm12725_vm0 }
 0x361   :  { %v1804_v16 = vmul.f32 %v11512_v45, %v11194_v52  ;;  %v1810_v58 = vmul.f32 %v11514_v30, %v11224_v48  ;;  %v1811_v35 = vmul.f32 %v11514_v30, %v11236_v46  ;;  %v1805_v60 = vmul.f32 %v11512_v45, %v11202_v39  ;;  %v12687_v46 = vld [vmem:[#allocation35_spill] sm:$0xff]  ;;  %vm12735_vm15 = vmmov %vm12725_vm0 }
 0x362   :  { %v1754_v55 = vsub.f32 1.5, %v1753_v8  ;;  %v1912_v23 = vmul.f32 %v12687_v46, %v1800_v9  ;;  %v11574_v39 = vmul.f32 %v11512_v45, %v12688_v25  ;;  %v1913_v9 = vmul.f32 %v12687_v46, %v1801_v56  ;;  %v12690_v25 = vld [vmem:[#allocation36_spill] sm:$0xff] }
 0x363   :  { %v1914_v14 = vmul.f32 %v12687_v46, %v1802_v32  ;;  %v11603_v32 = vpop.permute.xlu0 %1834 }
 0x364   :  { %v1755_v3 = vmul.f32 %v9040_v7, %v1754_v55  ;;  %v12686_v55 = vld [vmem:[#allocation38_spill] sm:$0xff] }
 0x365   :  { %v1920_v48 = vmul.f32 %v12686_v55, %v1808_v36  ;;  %v1922_v36 = vmul.f32 %v12686_v55, %v1810_v58 }
 0x366   :  { %v11553_v43 = vsel %vm1758_vm11, %v9040_v7, %v1755_v3  ;;  %v12685_v7 = vld [vmem:[#allocation31_spill] sm:$0xff]  ;;  %v1921_v3 = vmul.f32 %v12686_v55, %v1809_v33  ;;  %v1923_v33 = vmul.f32 %v12686_v55, %v1811_v35  ;;  %vm12736_vm11 = vmmov %vm12725_vm0 }
 0x367   :  { %v1816_v54 = vmul.f32 %v11553_v43, %v12682_v40  ;;  %v1817_v49 = vmul.f32 %v11553_v43, %v12683_v53  ;;  %v1818_v52 = vmul.f32 %v11553_v43, %v12684_v27  ;;  %v1819_v8 = vmul.f32 %v11553_v43, %v12685_v7  ;;  %v11576_v40 = vpop.permute.xlu2 %1951 }
 0x368   :  { %v11597_v58 = vadd.f32 %v11576_v40, %v11400_v37  ;;  %v11601_v56 = vadd.f32 %v11576_v40, %v11403_v31 }
 0x369   :  { %v1928_v53 = vmul.f32 %v12689_v13, %v1816_v54  ;;  %v1929_v19 = vmul.f32 %v12689_v13, %v1817_v49  ;;  %v1930_v27 = vmul.f32 %v12689_v13, %v1818_v52  ;;  %v1931_v7 = vmul.f32 %v12689_v13, %v1819_v8 }
 0x36a   :  { %v1915_v52 = vmul.f32 %v12687_v46, %v1803_v21  ;;  %v11593_v8 = vadd.f32 %v11576_v40, %v11391_v41 }
 0x36b   :  { %v2040_v22 = vadd.f32 %v12690_v25, %v1928_v53  ;;  %v2041_v15 = vadd.f32 %v12690_v25, %v1929_v19  ;;  %v2042_v54 = vadd.f32 %v12690_v25, %v1930_v27  ;;  %v2043_v49 = vadd.f32 %v12690_v25, %v1931_v7  ;;  %v12691_v19 = vld [vmem:[#allocation39_spill] sm:$0xff]  ;;  %v12692_v53 = vld [vmem:[#allocation37_spill] sm:$0xff]  ;;  %v12693_v7 = vld [vmem:[#allocation26_spill] sm:$0xff] }
 0x36c   :  { %v2032_v35 = vadd.f32 %v12691_v19, %v1920_v48  ;;  %v2033_v21 = vadd.f32 %v12691_v19, %v1921_v3  ;;  %v2024_v27 = vadd.f32 %v12692_v53, %v1912_v23  ;;  %v2034_v41 = vadd.f32 %v12691_v19, %v1922_v36  ;;  %v12694_v48 = vld [vmem:[#allocation30_spill] sm:$0xff] }
 0x36d   :  { %2063 = vmatpush.msra.mxu0 %v2040_v22  ;;  %2083 = vmatpush.msra.mxu1 %v2041_v15  ;;  %v2035_v37 = vadd.f32 %v12691_v19, %v1923_v33  ;;  %v1812_v31 = vmul.f32 %v11514_v30, %v12693_v7  ;;  %v2025_v22 = vadd.f32 %v12692_v53, %v1913_v9 }
 0x36e   :  { %2103 = vmatpush.msra.mxu2 %v2042_v54  ;;  %2123 = vmatpush.msra.mxu3 %v2043_v49  ;;  %v2026_v15 = vadd.f32 %v12692_v53, %v1914_v14  ;;  %v1813_v3 = vmul.f32 %v11514_v30, %v12694_v48  ;;  %v2027_v23 = vadd.f32 %v12692_v53, %v1915_v52 }
 0x36f   :  { %2064 = vmatpush.msra.mxu0 %v2032_v35  ;;  %2084 = vmatpush.msra.mxu1 %v2033_v21  ;;  %v1995_v36 = vadd.f32 %v11576_v40, %v11406_v50  ;;  %v1872_v33 = vmul.f32 %v11603_v32, %v11354_v12  ;;  %v1873_v9 = vmul.f32 %v11603_v32, %v11376_v34  ;;  %v11630_v12 = vpop.permute.xlu1 %1946  ;;  %v12695_v34 = vld [vmem:[#allocation57_spill] sm:$0xff]  ;;  %v12696_v35 = vld [vmem:[#allocation58_spill] sm:$0xff] }
 0x370   :  { %2104 = vmatpush.msra.mxu2 %v2034_v41  ;;  %2124 = vmatpush.msra.mxu3 %v2035_v37  ;;  %v1874_v14 = vmul.f32 %v11603_v32, %v11380_v63  ;;  %v1875_v54 = vmul.f32 %v11603_v32, %v11395_v59  ;;  %v1924_v49 = vmul.f32 %v12686_v55, %v1812_v31  ;;  %v12699_v37 = vld [vmem:[#allocation29_spill] sm:$0xff] }
 0x371   :  { %2065 = vmatpush.msra.mxu0 %v2024_v27  ;;  %2085 = vmatpush.msra.mxu1 %v2025_v22  ;;  %v1916_v50 = vmul.f32 %v12687_v46, %v1804_v16  ;;  %v1917_v52 = vmul.f32 %v12687_v46, %v1805_v60  ;;  %v1820_v63 = vmul.f32 %v11553_v43, %v12695_v34  ;;  %v12697_v60 = vld [vmem:[#allocation59_spill] sm:$0xff] }
 0x372   :  { %2105 = vmatpush.msra.mxu2 %v2026_v15  ;;  %2125 = vmatpush.msra.mxu3 %v2027_v23  ;;  %v1821_v59 = vmul.f32 %v11553_v43, %v12696_v35  ;;  %v1925_v21 = vmul.f32 %v12686_v55, %v1813_v3  ;;  %v1984_v16 = vadd.f32 %v11630_v12, %v1872_v33  ;;  %v12701_v15 = vld [vmem:[#allocation22_spill] sm:$0xff]  ;;  %v12706_v34 = vld [vmem:[#allocation51_spill] sm:$0xff]  ;;  %v12707_v35 = vld [vmem:[#allocation52_spill] sm:$0xff] }
 0x373   :  { %2066 = vmatpush.msra.mxu0 %v11524_v0  ;;  %2086 = vmatpush.msra.mxu1 %v11527_v61  ;;  %v1822_v27 = vmul.f32 %v11553_v43, %v12697_v60  ;;  %v12698_v0 = vld [vmem:[#allocation60_spill] sm:$0xff]  ;;  %v1985_v41 = vadd.f32 %v11630_v12, %v1873_v9  ;;  %v1814_v7 = vmul.f32 %v11514_v30, %v12699_v37  ;;  %v12710_v60 = vld [vmem:[#allocation62_spill] sm:$0xff]  ;;  %v12712_v37 = vld [vmem:[#allocation61_spill] sm:$0xff] }
 0x374   :  { %2106 = vmatpush.msra.mxu2 %v11531_v28  ;;  %2126 = vmatpush.msra.mxu3 %v11534_v10  ;;  %v1823_v61 = vmul.f32 %v11553_v43, %v12698_v0  ;;  %v12700_v28 = vld [vmem:[#allocation33_spill] sm:$0xff]  ;;  %v1986_v31 = vadd.f32 %v11630_v12, %v1874_v14  ;;  %v1987_v43 = vadd.f32 %v11630_v12, %v1875_v54 }
 0x375   :  { %2067 = vmatpush.msra.mxu0 %v11458_v57  ;;  %2087 = vmatpush.msra.mxu1 %v11461_v47  ;;  %v1815_v10 = vmul.f32 %v11514_v30, %v12700_v28  ;;  %v2036_v57 = vadd.f32 %v12691_v19, %v1924_v49  ;;  %v1932_v47 = vmul.f32 %v12689_v13, %v1820_v63  ;;  %v12704_v49 = vld [vmem:[#allocation55_spill] sm:$0xff] }
 0x376   :  { %2107 = vmatpush.msra.mxu2 %v11469_v62  ;;  %2127 = vmatpush.msra.mxu3 %v11479_v18  ;;  %v1933_v22 = vmul.f32 %v12689_v13, %v1821_v59  ;;  %v2037_v30 = vadd.f32 %v12691_v19, %v1925_v21  ;;  %v1934_v62 = vmul.f32 %v12689_v13, %v1822_v27 }
 0x377   :  { %2068 = vmatpush.msra.mxu0 %v11422_v2  ;;  %2088 = vmatpush.msra.mxu1 %v11439_v42  ;;  %v1935_v18 = vmul.f32 %v12689_v13, %v1823_v61  ;;  %v1807_v48 = vmul.f32 %v11512_v45, %v12701_v15  ;;  %v1926_v2 = vmul.f32 %v12686_v55, %v1814_v7  ;;  %v12702_v13 = vld [vmem:[#allocation21_spill] sm:$0xff]  ;;  %v12711_v61 = vld [vmem:[#allocation42_spill] sm:$0xff] }
 0x378   :  { %2108 = vmatpush.msra.mxu2 %v11442_v11  ;;  %2128 = vmatpush.msra.mxu3 %v11448_v4  ;;  %v1927_v42 = vmul.f32 %v12686_v55, %v1815_v10  ;;  %v2028_v3 = vadd.f32 %v12692_v53, %v1916_v50  ;;  %v2029_v11 = vadd.f32 %v12692_v53, %v1917_v52  ;;  %v12703_v55 = vld [vmem:[#allocation24_spill] sm:$0xff]  ;;  %v12713_v10 = vld [vmem:[#allocation54_spill] sm:$0xff] }
 0x379   :  { %2069 = vmatpush.msra.mxu0 %v11593_v8  ;;  %2089 = vmatpush.msra.mxu1 %v11597_v58  ;;  %v1918_v4 = vmul.f32 %v12687_v46, %v11574_v39  ;;  %v1798_v45 = vmul.f32 %v11445_v17, %v12702_v13  ;;  %v2044_v8 = vadd.f32 %v12690_v25, %v1932_v47  ;;  %v12719_v15 = vld [vmem:[#allocation50_spill] sm:$0xff] }
 0x37a   :  { %2109 = vmatpush.msra.mxu2 %v11601_v56  ;;  %2129 = vmatpush.msra.mxu3 %v1995_v36  ;;  %v2045_v58 = vadd.f32 %v12690_v25, %v1933_v22  ;;  %v1799_v23 = vmul.f32 %v11445_v17, %v12703_v55  ;;  %v2046_v56 = vadd.f32 %v12690_v25, %v1934_v62  ;;  %v12716_v22 = vld [vmem:[#allocation48_spill] sm:$0xff] }
 0x37b   :  { %2070 = vmatpush.msra.mxu0 %v1984_v16  ;;  %2090 = vmatpush.msra.mxu1 %v1985_v41  ;;  %v2047_v36 = vadd.f32 %v12690_v25, %v1935_v18  ;;  %v1919_v39 = vmul.f32 %v12687_v46, %v1807_v48  ;;  %v2038_v33 = vadd.f32 %v12691_v19, %v1926_v2  ;;  %v12709_v16 = vld [vmem:[#allocation45_spill] sm:$0xff]  ;;  %v12720_v2 = vld [vmem:[#allocation44_spill] sm:$0xff] }
 0x37c   :  { %2110 = vmatpush.msra.mxu2 %v1986_v31  ;;  %2130 = vmatpush.msra.mxu3 %v1987_v43  ;;  %v2039_v9 = vadd.f32 %v12691_v19, %v1927_v42  ;;  %v1903_v14 = vmul.f32 %v12673_v38, %v11506_v26  ;;  %v2030_v17 = vadd.f32 %v12692_v53, %v1918_v4  ;;  %v12705_v19 = vld [vmem:[#allocation56_spill] sm:$0xff]  ;;  %v11701_v26 = vld [vmem:[#allocation8] sm:$0x1] }
 0x37d   :  { %2143 = vmatpush.msrb.mxu0 %v2044_v8  ;;  %2163 = vmatpush.msrb.mxu1 %v2045_v58  ;;  %v1910_v54 = vmul.f32 %v12675_v44, %v1798_v45  ;;  %v1782_v25 = vmul.f32 %v11350_v20, %v12704_v49  ;;  %v1911_v46 = vmul.f32 %v12675_v44, %v1799_v23  ;;  %v12721_v42 = vld [vmem:[#allocation40_spill] sm:$0xff] }
 0x37e   :  { %2183 = vmatpush.msrb.mxu2 %v2046_v56  ;;  %2203 = vmatpush.msrb.mxu3 %v2047_v36  ;;  %v1893_v50 = vmul.f32 %v12671_v24, %v11521_v51  ;;  %v1783_v52 = vmul.f32 %v11350_v20, %v12705_v19  ;;  %v2031_v38 = vadd.f32 %v12692_v53, %v1919_v39  ;;  %v12708_v51 = vld [vmem:[#allocation53_spill] sm:$0xff] }
 0x37f   :  { %2144 = vmatpush.msrb.mxu0 %v2036_v57  ;;  %2164 = vmatpush.msrb.mxu1 %v2037_v30  ;;  %v1772_v63 = vmul.f32 %v11348_v29, %v12706_v34  ;;  %v1773_v59 = vmul.f32 %v11348_v29, %v12707_v35  ;;  %v2021_v44 = vadd.f32 %v12679_v6, %v11517_v1  ;;  %v12715_v57 = vld [vmem:[#allocation63_spill] sm:$0xff] }
 0x380   :  { %2184 = vmatpush.msrb.mxu2 %v2038_v33  ;;  %2204 = vmatpush.msrb.mxu3 %v2039_v9  ;;  %v2015_v20 = vadd.f32 %v11329_v5, %v1903_v14  ;;  %v1774_v21 = vmul.f32 %v11348_v29, %v12708_v51  ;;  %v2022_v53 = vadd.f32 %v12679_v6, %v1910_v54  ;;  %v12717_v30 = vld [vmem:[#allocation43_spill] sm:$0xff] }
 0x381   :  { %2145 = vmatpush.msrb.mxu0 %v2028_v3  ;;  %2165 = vmatpush.msrb.mxu1 %v2029_v11  ;;  %v2004_v27 = vadd.f32 %v12710_v60, %v12709_v16  ;;  %v1894_v0 = vmul.f32 %v12671_v24, %v1782_v25  ;;  %v2023_v1 = vadd.f32 %v12679_v6, %v1911_v46  ;;  %v12714_v6 = vld [vmem:[#allocation46_spill] sm:$0xff] }
 0x382   :  { %2185 = vmatpush.msrb.mxu2 %v2030_v17  ;;  %2205 = vmatpush.msrb.mxu3 %v2031_v38  ;;  %v2005_v5 = vadd.f32 %v12710_v60, %v1893_v50  ;;  %v1895_v41 = vmul.f32 %v12671_v24, %v1783_v52  ;;  %v1884_v7 = vmul.f32 %v12712_v37, %v1772_v63 }
 0x383   :  { %6437 = vmatmul.msk.f32.vlgmr.msra.gmra.mxu2 %vm2051_vm5, %v11701_v26  ;;  %2146 = vmatpush.msrb.mxu0 %v12711_v61  ;;  %v1885_v28 = vmul.f32 %v12712_v37, %v1773_v59  ;;  %v1775_v31 = vmul.f32 %v11348_v29, %v12713_v10  ;;  %v1886_v43 = vmul.f32 %v12712_v37, %v1774_v21  ;;  %v12718_v29 = vld [vmem:[#allocation49_spill] sm:$0xff] }
 0x384   :  { %2166 = vmatpush.msrb.mxu1 %v2021_v44  ;;  %2186 = vmatpush.msrb.mxu2 %v2022_v53  ;;  %v1764_v47 = vmul.f32 %v12715_v57, %v12714_v6  ;;  %v1765_v24 = vmul.f32 %v12715_v57, %v12716_v22  ;;  %v2006_v62 = vadd.f32 %v12710_v60, %v1894_v0  ;;  %v6671_v22 = vld [vmem:[#allocation11 + $0x1c0] sm:$0xf] }
 0x385   :  { %2206 = vmatpush.msrb.mxu3 %v2023_v1  ;;  %6435 = vmatmul.msk.f32.vlgmr.msra.gmra.mxu0 %vm2051_vm5, %v11701_v26  ;;  %v1766_v18 = vmul.f32 %v12715_v57, %v12718_v29  ;;  %v1767_v48 = vmul.f32 %v12715_v57, %v12719_v15  ;;  %v2007_v3 = vadd.f32 %v12710_v60, %v1895_v41  ;;  %v8617_v29 = vld [vmem:[#allocation11 + $0x3dc] sm:$0xf0] }
 0x386   :  { %6438 = vmatmul.msk.f32.vlgmr.msra.gmra.mxu3 %vm2051_vm5, %v11701_v26  ;;  %2147 = vmatpush.msrb.mxu0 %v12717_v30  ;;  %v1876_v11 = vmul.f32 %v11603_v32, %v1764_v47  ;;  %v1877_v4 = vmul.f32 %v11603_v32, %v1765_v24  ;;  %v1887_v13 = vmul.f32 %v12712_v37, %v1775_v31  ;;  %v8553_v24 = vld [vmem:[#allocation11 + $0x1dc] sm:$0xf0] }
 0x387   :  { %2167 = vmatpush.msrb.mxu1 %v12720_v2  ;;  %2187 = vmatpush.msrb.mxu2 %v12721_v42  ;;  %v1878_v45 = vmul.f32 %v11603_v32, %v1766_v18  ;;  %v1879_v8 = vmul.f32 %v11603_v32, %v1767_v48  ;;  %v1996_v58 = vadd.f32 %v11576_v40, %v1884_v7  ;;  %v6927_v30 = vld [vmem:[#allocation11 + $0x3c0] sm:$0xf] }
 0x388   :  { %2207 = vmatpush.msrb.mxu3 %v2015_v20  ;;  %6436 = vmatmul.msk.f32.vlgmr.msra.gmra.mxu1 %vm2051_vm5, %v11701_v26  ;;  %v1997_v55 = vadd.f32 %v11576_v40, %v1885_v28  ;;  %v1998_v23 = vadd.f32 %v11576_v40, %v1886_v43  ;;  %v1999_v56 = vadd.f32 %v11576_v40, %v1887_v13  ;;  %v2050_v40 = vstv %s2049_s3  ;;  %v7183_v18 = vld [vmem:[#allocation11 + $0x5c0] sm:$0xf] }
 0x389   :  { %2148 = vmatpush.msrb.mxu0 %v2004_v27  ;;  %2168 = vmatpush.msrb.mxu1 %v2005_v5  ;;  %v1988_v36 = vadd.f32 %v11630_v12, %v1876_v11  ;;  %v1989_v39 = vadd.f32 %v11630_v12, %v1877_v4  ;;  %v1990_v32 = vadd.f32 %v11630_v12, %v1878_v45  ;;  %v8681_v15 = vld [vmem:[#allocation11 + $0x5dc] sm:$0xf0] }
 0x38a   :  { %2188 = vmatpush.msrb.mxu2 %v2006_v62  ;;  %2208 = vmatpush.msrb.mxu3 %v2007_v3  ;;  %v1991_v33 = vadd.f32 %v11630_v12, %v1879_v8  ;;  %v6672_v62 = vor.u32 %v8553_v24, %v6671_v22  ;;  %v6928_v48 = vor.u32 %v8617_v29, %v6927_v30  ;;  %v7439_v42 = vld [vmem:[#allocation11 + $0x7c0] sm:$0xf] }
 0x38b   :  { %2149 = vmatpush.msrb.mxu0 %v1996_v58  ;;  %2169 = vmatpush.msrb.mxu1 %v1997_v55  ;;  %v7184_v2 = vor.u32 %v8681_v15, %v7183_v18  ;;  %v8745_v3 = vld [vmem:[#allocation11 + $0x7dc] sm:$0xf0] }
 0x38c   :  { %2189 = vmatpush.msrb.mxu2 %v1998_v23  ;;  %2209 = vmatpush.msrb.mxu3 %v1999_v56  ;;  %v6639_v11 = vld [vmem:[#allocation11 + $0x180] sm:$0xf]  ;;  %v7440_v4 = vor.u32 %v8745_v3, %v7439_v42 }
 0x38d   :  { %2150 = vmatpush.msrb.mxu0 %v1988_v36  ;;  %2170 = vmatpush.msrb.mxu1 %v1989_v39  ;;  %v8545_v13 = vld [vmem:[#allocation11 + $0x19c] sm:$0xf0] }
 0x38e   :  { %2190 = vmatpush.msrb.mxu2 %v1990_v32  ;;  %2210 = vmatpush.msrb.mxu3 %v1991_v33  ;;  %v6895_v45 = vld [vmem:[#allocation11 + $0x380] sm:$0xf]  ;;  %v6640_v58 = vor.u32 %v8545_v13, %v6639_v11 }
 0x38f   :  { %6439 = vmatmul.msk.f32.vlgmr.msrb.gmra.mxu0 %vm2051_vm5, %v11701_v26  ;;  %6441 = vmatmul.msk.f32.vlgmr.msrb.gmra.mxu2 %vm2051_vm5, %v11701_v26  ;;  %v8609_v8 = vld [vmem:[#allocation11 + $0x39c] sm:$0xf0] }
 0x390   :  { %6440 = vmatmul.msk.f32.vlgmr.msrb.gmra.mxu1 %vm2051_vm5, %v11701_v26  ;;  %6442 = vmatmul.msk.f32.vlgmr.msrb.gmra.mxu3 %vm2051_vm5, %v11701_v26  ;;  %v6896_v55 = vor.u32 %v8609_v8, %v6895_v45  ;;  %v7151_v23 = vld [vmem:[#allocation11 + $0x580] sm:$0xf]  ;;  %vm12737_vm5 = vmmov %vm12725_vm0 }
 0x391   :  { %5476 = vmatpush.bf16.msra.mxu0 %v6672_v62  ;;  %5489 = vmatpush.bf16.msra.mxu1 %v6928_v48  ;;  %v8673_v56 = vld [vmem:[#allocation11 + $0x59c] sm:$0xf0] }
 0x392   :  { %5502 = vmatpush.bf16.msra.mxu2 %v7184_v2  ;;  %v7407_v36 = vld [vmem:[#allocation11 + $0x780] sm:$0xf]  ;;  %5515 = vmatpush.bf16.msra.mxu3 %v7440_v4  ;;  %v7152_v39 = vor.u32 %v8673_v56, %v7151_v23 }
 0x393   :  { %v8737_v32 = vld [vmem:[#allocation11 + $0x79c] sm:$0xf0] }
 0x394   :  { %v7408_v33 = vor.u32 %v8737_v32, %v7407_v36  ;;  %v8601_v24 = vld [vmem:[#allocation11 + $0x35c] sm:$0xf0] }
 0x395   :  { %5477 = vmatpush.bf16.msra.mxu0 %v6640_v58  ;;  %5490 = vmatpush.bf16.msra.mxu1 %v6896_v55  ;;  %v7119_v30 = vld [vmem:[#allocation11 + $0x540] sm:$0xf] }
 0x396   :  { %5503 = vmatpush.bf16.msra.mxu2 %v7152_v39  ;;  %5516 = vmatpush.bf16.msra.mxu3 %v7408_v33  ;;  %v8665_v62 = vld [vmem:[#allocation11 + $0x55c] sm:$0xf0] }
 0x397   :  { %v7120_v18 = vor.u32 %v8665_v62, %v7119_v30  ;;  %v7375_v15 = vld [vmem:[#allocation11 + $0x740] sm:$0xf] }
 0x398   :  { %v8729_v48 = vld [vmem:[#allocation11 + $0x75c] sm:$0xf0] }
 0x399   :  { %v6575_v2 = vld [vmem:[#allocation11 + $0x100] sm:$0xf]  ;;  %v7376_v42 = vor.u32 %v8729_v48, %v7375_v15  ;;  %v2305_v15 = vstv %s11846_s24 }
 0x39a   :  { %v8529_v3 = vld [vmem:[#allocation11 + $0x11c] sm:$0xf0]  ;;  %5504 = vmatpush.bf16.msra.mxu2 %v7120_v18  ;;  %v2295_v18 = vstv %s11844_s4 }
 0x39b   :  { %v6831_v11 = vld [vmem:[#allocation11 + $0x300] sm:$0xf]  ;;  %v6576_v13 = vor.u32 %v8529_v3, %v6575_v2  ;;  %5517 = vmatpush.bf16.msra.mxu3 %v7376_v42 }
 0x39c   :  { %v8593_v4 = vld [vmem:[#allocation11 + $0x31c] sm:$0xf0] }
 0x39d   :  { %v6832_v45 = vor.u32 %v8593_v4, %v6831_v11  ;;  %v7087_v8 = vld [vmem:[#allocation11 + $0x500] sm:$0xf] }
 0x39e   :  { %v8657_v58 = vld [vmem:[#allocation11 + $0x51c] sm:$0xf0] }
 0x39f   :  { %v7343_v55 = vld [vmem:[#allocation11 + $0x700] sm:$0xf]  ;;  %v7088_v56 = vor.u32 %v8657_v58, %v7087_v8 }
 0x3a0   :  { %v8721_v36 = vld [vmem:[#allocation11 + $0x71c] sm:$0xf0] }
 0x3a1   :  { %v6543_v39 = vld [vmem:[#allocation11 + $0xc0] sm:$0xf]  ;;  %5505 = vmatpush.bf16.msra.mxu2 %v7088_v56 }
 0x3a2   :  { %v8521_v32 = vld [vmem:[#allocation11 + $0xdc] sm:$0xf0] }
 0x3a3   :  { %v6991_v30 = vld [vmem:[#allocation11 + $0x440] sm:$0xf] }
 0x3a4   :  { %v8633_v62 = vld [vmem:[#allocation11 + $0x45c] sm:$0xf0] }
 0x3a5   :  { %v8697_v2 = vld [vmem:[#allocation11 + $0x65c] sm:$0xf0] }
 0x3a6   :  { %v6447_v42 = vld [vmem:[#allocation11] sm:$0xf] }
 0x3a7   :  { %v8497_v3 = vld [vmem:[#allocation11 + $0x1c] sm:$0xf0] }
 0x3a8   :  { %v6703_v8 = vld [vmem:[#allocation11 + $0x200] sm:$0xf]  ;;  %v6448_v56 = vor.u32 %v8497_v3, %v6447_v42 }
 0x3a9   :  { %v8561_v58 = vld [vmem:[#allocation11 + $0x21c] sm:$0xf0] }
 0x402   :  { %v2072_v9 = vpop.f32.mrf.mxu0 }
 0x403   :  { %v11767_v12 = vadd.f32 %v2072_v9, %v2050_v40 }
 0x405   :  { %v2215_v14 = vmax.f32 %v11767_v12, 0.0  ;;  %v2092_v17 = vpop.f32.mrf.mxu1 }
 0x406   :  { %v11770_v54 = vadd.f32 %v2092_v17, %v2050_v40  ;;  %v2112_v49 = vpop.f32.mrf.mxu2 }
 0x407   :  { %v11772_v25 = vadd.f32 %v2112_v49, %v2050_v40  ;;  %v2223_v46 = vsel %vm12722_vm6, %v2215_v14, 0.0  ;;  %vm2346_vm6 = vsmask.f32 256 }
 0x408   :  { %v2216_v50 = vmax.f32 %v11770_v54, 0.0 }
 0x409   :  { %v2217_v19 = vmax.f32 %v11772_v25, 0.0  ;;  %v2132_v52 = vpop.f32.mrf.mxu3 }
 0x40a   :  { %v2224_v38 = vsel %vm12723_vm14, %v2216_v50, 0.0  ;;  %v11782_v26 = vadd.f32 %v2132_v52, %v2050_v40  ;;  %vm2348_vm14 = vcmask 1041409  }
 0x40b   :  { %v2225_v34 = vadd.f32 %v2224_v38, %v2223_v46  ;;  %v2226_v63 = vsel %vm12724_vm13, %v2217_v19, 0.0  ;;  %vm2349_vm13 = vsmask.f32 1280 }
 0x40c   :  { %v2218_v35 = vmax.f32 %v11782_v26, 0.0  ;;  %v2152_v59 = vpop.f32.mrf.mxu0 }
 0x40d   :  { %v2227_v44 = vadd.f32 %v2226_v63, %v2225_v34  ;;  %v2153_v20 = vadd.f32 %v2152_v59, %v2050_v40  ;;  %v2172_v51 = vpop.f32.mrf.mxu1 }
 0x40e   :  { %v2228_v21 = vsel %vm12725_vm0, %v2218_v35, 0.0  ;;  %v2173_v53 = vadd.f32 %v2172_v51, %v2050_v40 }
 0x40f   :  { %v2229_v16 = vadd.f32 %v2228_v21, %v2227_v44  ;;  %v2219_v60 = vmax.f32 %v2153_v20, 0.0 }
 0x410   :  { %v2220_v27 = vmax.f32 %v2173_v53, 0.0 }
 0x411   :  { %v2230_v0 = vsel %vm12726_vm9, %v2219_v60, 0.0  ;;  %vm2347_vm9 = vmand %vm12725_vm0, %vm2346_vm6  ;;  %vm12739_vm0 = vcmask 1044484  }
 0x412   :  { %v2231_v61 = vadd.f32 %v2230_v0, %v2229_v16  ;;  %v2192_v1 = vpop.f32.mrf.mxu2  ;;  %v2232_v5 = vsel %vm12727_vm4, %v2220_v27, 0.0  ;;  %vm2350_vm4 = vmand %vm2348_vm14, %vm2349_vm13  ;;  %vm2364_vm13 = vcmask 1045509  }
 0x413   :  { %v2193_v41 = vadd.f32 %v2192_v1, %v2050_v40  ;;  %v2212_v37 = vpop.f32.mrf.mxu3 }
 0x414   :  { %v2213_v7 = vadd.f32 %v2212_v37, %v2050_v40  ;;  %v2233_v10 = vadd.f32 %v2232_v5, %v2231_v61 }
 0x415   :  { %v2221_v28 = vmax.f32 %v2193_v41, 0.0 }
 0x416   :  { %v2222_v31 = vmax.f32 %v2213_v7, 0.0 }
 0x417   :  { %v2234_v43 = vsel %vm12728_vm10, %v2221_v28, 0.0  ;;  %vm2353_vm10 = vsmask.f32 2304 }
 0x418   :  { %v2235_v6 = vadd.f32 %v2234_v43, %v2233_v10  ;;  %v2236_v57 = vsel %vm12729_vm7, %v2222_v31, 0.0  ;;  %vm2351_vm7 = vmor %vm2350_vm4, %vm2347_vm9  ;;  %vm2365_vm9 = vsmask.f32 5376 }
 0x419   :  { %vm11859_vm4 = vmand %vm2364_vm13, %vm2365_vm9  ;;  %vm12752_vm13 = vcmask 1042434   ;;  %vm12753_vm9 = vcmask 1041408  }
 0x41a   :  { %v2237_v47 = vadd.f32 %v2236_v57, %v2235_v6  ;;  %v6607_v6 = vld [vmem:[#allocation11 + $0x140] sm:$0xf] }
 0x41b   :  { %v8537_v57 = vld [vmem:[#allocation11 + $0x15c] sm:$0xf0] }
 0x41c   :  { %2238 = vadd.xlane.f32.xlu0 %v2237_v47  ;;  %v6863_v47 = vld [vmem:[#allocation11 + $0x340] sm:$0xf]  ;;  %v6608_v22 = vor.u32 %v8537_v57, %v6607_v6 }
 0x41d   :  { %v6864_v29 = vor.u32 %v8601_v24, %v6863_v47  ;;  %v6735_v47 = vld [vmem:[#allocation11 + $0x240] sm:$0xf] }
 0x41e   :  { %5478 = vmatpush.bf16.msra.mxu0 %v6608_v22  ;;  %v8569_v22 = vld [vmem:[#allocation11 + $0x25c] sm:$0xf0] }
 0x41f   :  { %5491 = vmatpush.bf16.msra.mxu1 %v6864_v29  ;;  %v7247_v29 = vld [vmem:[#allocation11 + $0x640] sm:$0xf]  ;;  %v6736_v4 = vor.u32 %v8569_v22, %v6735_v47 }
 0x420   :  { %v8801_v47 = vld [vmem:[#allocation11 + $0x99c] sm:$0xf0] }
 0x422   :  { %5479 = vmatpush.bf16.msra.mxu0 %v6576_v13  ;;  %v6992_v13 = vor.u32 %v8633_v62, %v6991_v30 }
 0x423   :  { %5492 = vmatpush.bf16.msra.mxu1 %v6832_v45  ;;  %v7248_v45 = vor.u32 %v8697_v2, %v7247_v29  ;;  %v7919_v29 = vld [vmem:[#allocation11 + $0xb80] sm:$0xf] }
 0x48f   :  { %v2239_v40 = vpop.xlane.xlu0 %2238 }
 0x490   :  { %v2240_v9 = vmul.f32 0.0009765625, %v2239_v40  ;;  %v7344_v40 = vor.u32 %v8721_v36, %v7343_v55 }
 0x492   :  { %v11795_v17 = vsub.f32 %v2215_v14, %v2240_v9  ;;  %v11799_v49 = vsub.f32 %v2216_v50, %v2240_v9  ;;  %v11803_v46 = vsub.f32 %v2217_v19, %v2240_v9  ;;  %v11805_v52 = vsub.f32 %v2218_v35, %v2240_v9  ;;  %5518 = vmatpush.bf16.msra.mxu3 %v7344_v40  ;;  %v8977_v40 = vld [vmem:[#allocation11 + $0xf1c] sm:$0xf0] }
 0x493   :  { %v11807_v38 = vsub.f32 %v2219_v60, %v2240_v9  ;;  %v11815_v54 = vsub.f32 %v2220_v27, %v2240_v9  ;;  %v11821_v63 = vsub.f32 %v2221_v28, %v2240_v9  ;;  %v11826_v20 = vsub.f32 %v2222_v31, %v2240_v9  ;;  %v6799_v9 = vld [vmem:[#allocation11 + $0x2c0] sm:$0xf] }
 0x494   :  { %v2249_v26 = vmul.f32 %v11795_v17, %v11795_v17  ;;  %v2250_v12 = vmul.f32 %v11799_v49, %v11799_v49  ;;  %v2251_v14 = vmul.f32 %v11803_v46, %v11803_v46  ;;  %v2252_v25 = vmul.f32 %v11805_v52, %v11805_v52 }
 0x495   :  { %v2253_v35 = vmul.f32 %v11807_v38, %v11807_v38  ;;  %v2254_v51 = vmul.f32 %v11815_v54, %v11815_v54  ;;  %v2255_v16 = vmul.f32 %v11821_v63, %v11821_v63  ;;  %v2256_v0 = vmul.f32 %v11826_v20, %v11826_v20 }
 0x496   :  { %v2257_v50 = vsel %vm12730_vm2, %v2249_v26, 0.0  ;;  %v2258_v19 = vsel %vm12731_vm8, %v2250_v12, 0.0  ;;  %v2260_v59 = vsel %vm12732_vm1, %v2251_v14, 0.0  ;;  %v2262_v21 = vsel %vm12733_vm12, %v2252_v25, 0.0  ;;  %v8585_v26 = vld [vmem:[#allocation11 + $0x2dc] sm:$0xf0] }
 0x497   :  { %v2259_v34 = vadd.f32 %v2258_v19, %v2257_v50  ;;  %v2264_v60 = vsel %vm12734_vm3, %v2253_v35, 0.0  ;;  %v2266_v61 = vsel %vm12735_vm15, %v2254_v51, 0.0  ;;  %v2268_v5 = vsel %vm12736_vm11, %v2255_v16, 0.0  ;;  %v7055_v12 = vld [vmem:[#allocation11 + $0x4c0] sm:$0xf] }
 0x498   :  { %v2270_v37 = vsel %vm12737_vm5, %v2256_v0, 0.0  ;;  %vm12738_vm2 = vcmask 1042434   ;;  %vm2356_vm1 = vcmask 1043459   ;;  %vm2357_vm12 = vsmask.f32 3328 }
 0x499   :  { %v2261_v44 = vadd.f32 %v2260_v59, %v2259_v34  ;;  %vm2354_vm8 = vmand %vm12738_vm2, %vm2353_vm10  ;;  %vm2361_vm11 = vsmask.f32 4352  ;;  %vm2369_vm10 = vsmask.f32 6400  ;;  %v6544_v25 = vor.u32 %v8521_v32, %v6543_v39  ;;  %v8649_v50 = vld [vmem:[#allocation11 + $0x4dc] sm:$0xf0] }
 0x49a   :  { %vm2355_vm3 = vmor %vm2354_vm8, %vm2351_vm7  ;;  %v7311_v19 = vld [vmem:[#allocation11 + $0x6c0] sm:$0xf]  ;;  %v6800_v35 = vor.u32 %v8585_v26, %v6799_v9  ;;  %v7056_v59 = vor.u32 %v8649_v50, %v7055_v12  ;;  %vm2372_vm2 = vcmask 1047559   ;;  %vm12744_vm8 = vcmask 1046534  }
 0x49b   :  { %v2263_v53 = vadd.f32 %v2262_v21, %v2261_v44  ;;  %vm2358_vm15 = vmand %vm2356_vm1, %vm2357_vm12  ;;  %v8713_v44 = vld [vmem:[#allocation11 + $0x6dc] sm:$0xf0]  ;;  %5480 = vmatpush.bf16.msra.mxu0 %v6544_v25 }
 0x49c   :  { %vm2359_vm5 = vmor %vm2358_vm15, %vm2355_vm3  ;;  %v6511_v51 = vld [vmem:[#allocation11 + $0x80] sm:$0xf]  ;;  %5493 = vmatpush.bf16.msra.mxu1 %v6800_v35  ;;  %5506 = vmatpush.bf16.msra.mxu2 %v7056_v59 }
 0x49d   :  { %v2265_v27 = vadd.f32 %v2264_v60, %v2263_v53  ;;  %vm2362_vm6 = vmand %vm12739_vm0, %vm2361_vm11  ;;  %v8513_v21 = vld [vmem:[#allocation11 + $0x9c] sm:$0xf0]  ;;  %v7312_v53 = vor.u32 %v8713_v44, %v7311_v19  ;;  %vm2373_vm11 = vsmask.f32 7424 }
 0x49e   :  { %vm11848_vm14 = vmor %vm2362_vm6, %vm2359_vm5  ;;  %v6767_v16 = vld [vmem:[#allocation11 + $0x280] sm:$0xf] }
 0x49f   :  { %v2267_v1 = vadd.f32 %v2266_v61, %v2265_v27  ;;  %v8577_v60 = vld [vmem:[#allocation11 + $0x29c] sm:$0xf0]  ;;  %vm2367_vm7 = vmor %vm11859_vm4, %vm11848_vm14  ;;  %5519 = vmatpush.bf16.msra.mxu3 %v7312_v53  ;;  %vm12751_vm14 = vcmask 1040384   ;;  %vm12754_vm4 = vcmask 1044484  }
 0x4a0   :  { %v7023_v27 = vld [vmem:[#allocation11 + $0x480] sm:$0xf]  ;;  %vm11870_vm1 = vmand %vm12744_vm8, %vm2369_vm10  ;;  %v6768_v6 = vor.u32 %v8577_v60, %v6767_v16 }
 0x4a1   :  { %v2269_v41 = vadd.f32 %v2268_v5, %v2267_v1  ;;  %v8641_v61 = vld [vmem:[#allocation11 + $0x49c] sm:$0xf0]  ;;  %v6512_v5 = vor.u32 %v8513_v21, %v6511_v51  ;;  %vm11893_vm5 = vmor %vm11870_vm1, %vm2367_vm7  ;;  %vm12756_vm7 = vcmask 1045508  }
 0x4a2   :  { %v7279_v1 = vld [vmem:[#allocation11 + $0x680] sm:$0xf]  ;;  %v7024_v57 = vor.u32 %v8641_v61, %v7023_v27  ;;  %5494 = vmatpush.bf16.msra.mxu1 %v6768_v6  ;;  %vm11903_vm0 = vmand %vm2372_vm2, %vm2373_vm11  ;;  %vm12757_vm2 = vcmask 1043456  }
 0x4a3   :  { %v2271_v7 = vadd.f32 %v2270_v37, %v2269_v41  ;;  %v8705_v41 = vld [vmem:[#allocation11 + $0x69c] sm:$0xf0]  ;;  %5481 = vmatpush.bf16.msra.mxu0 %v6512_v5  ;;  %vm2375_vm6 = vmor %vm11903_vm0, %vm11893_vm5 }
 0x4a4   :  { %v6479_v37 = vld [vmem:[#allocation11 + $0x40] sm:$0xf]  ;;  %v7280_v24 = vor.u32 %v8705_v41, %v7279_v1  ;;  %5507 = vmatpush.bf16.msra.mxu2 %v7024_v57  ;;  %vm12755_vm10 = vmmov %vm12744_vm8 }
 0x4a5   :  { %2272 = vadd.xlane.f32.xlu2 %v2271_v7  ;;  %v8505_v7 = vld [vmem:[#allocation11 + $0x5c] sm:$0xf0]  ;;  %vm12758_vm8 = vmmov %vm12751_vm14 }
 0x4a6   :  { %v6480_v11 = vor.u32 %v8505_v7, %v6479_v37  ;;  %5520 = vmatpush.bf16.msra.mxu3 %v7280_v24  ;;  %v6959_v14 = vld [vmem:[#allocation11 + $0x400] sm:$0xf]  ;;  %5495 = vmatpush.bf16.msra.mxu1 %v6736_v4  ;;  %vm12759_vm1 = vmmov %vm12752_vm13 }
 0x4a7   :  { %v8625_v25 = vld [vmem:[#allocation11 + $0x41c] sm:$0xf0]  ;;  %vm12763_vm11 = vmmov %vm12756_vm7 }
 0x4a8   :  { %5482 = vmatpush.bf16.msra.mxu0 %v6480_v11  ;;  %5508 = vmatpush.bf16.msra.mxu2 %v6992_v13  ;;  %v8809_v21 = vld [vmem:[#allocation11 + $0x9dc] sm:$0xf0]  ;;  %v2376_v13 = vld [vmem:[#allocation3] sm:$0xff]  ;;  %vm12764_vm5 = vmmov %vm12757_vm2 }
 0x4a9   :  { %v7951_v53 = vld [vmem:[#allocation11 + $0xbc0] sm:$0xf] }
 0x4aa   :  { %v8873_v16 = vld [vmem:[#allocation11 + $0xbdc] sm:$0xf0]  ;;  %5521 = vmatpush.bf16.msra.mxu3 %v7248_v45 }
 0x4ab   :  { %v8207_v1 = vld [vmem:[#allocation11 + $0xdc0] sm:$0xf]  ;;  %v7952_v62 = vor.u32 %v8873_v16, %v7951_v53 }
 0x4ac   :  { %v8937_v5 = vld [vmem:[#allocation11 + $0xddc] sm:$0xf0]  ;;  %5483 = vmatpush.bf16.msra.mxu0 %v6448_v56 }
 0x4ad   :  { %v8463_v41 = vld [vmem:[#allocation11 + $0xfc0] sm:$0xf]  ;;  %v8208_v11 = vor.u32 %v8937_v5, %v8207_v1 }
 0x4ae   :  { %v9001_v6 = vld [vmem:[#allocation11 + $0xfdc] sm:$0xf0] }
 0x4af   :  { %v7663_v57 = vld [vmem:[#allocation11 + $0x980] sm:$0xf] }
 0x4b0   :  { %v8431_v4 = vld [vmem:[#allocation11 + $0xf80] sm:$0xf] }
 0x4b1   :  { %v8993_v56 = vld [vmem:[#allocation11 + $0xf9c] sm:$0xf0] }
 0x4b2   :  { %v8849_v53 = vld [vmem:[#allocation11 + $0xb1c] sm:$0xf0] }
 0x4b3   :  { %v8111_v16 = vld [vmem:[#allocation11 + $0xd00] sm:$0xf] }
 0x4b4   :  { %v7567_v5 = vld [vmem:[#allocation11 + $0x8c0] sm:$0xf] }
 0x518   :  { %v2273_v28 = vpop.xlane.xlu2 %2272 }
 0x519   :  { %v2274_v10 = vmul.f32 0.0009765625, %v2273_v28  ;;  %v6960_v28 = vor.u32 %v8625_v25, %v6959_v14 }
 0x51b   :  { %v11842_v31 = vadd.f32 1e-05, %v2274_v10  ;;  %5509 = vmatpush.bf16.msra.mxu2 %v6960_v28  ;;  %v8079_v28 = vld [vmem:[#allocation11 + $0xcc0] sm:$0xf] }
 0x51d   :  { %9041 = vrsqrt.f32 %v11842_v31  ;;  %vm2282_vm3 = vweird.f32 %v11842_v31 }
 0x51f   :  { %5554 = vmatpush.bf16.msrb.mxu2 %v8208_v11  ;;  %v8303_v11 = vld [vmem:[#allocation11 + $0xe80] sm:$0xf] }
 0x523   :  { %v11853_v23 = vpop.eup %9041 }
 0x524   :  { %v2277_v33 = vmul.f32 %v11853_v23, %v11842_v31  ;;  %vm2283_vm12 = vweird.f32 %v11853_v23  ;;  %v6704_v31 = vor.u32 %v8561_v58, %v6703_v8 }
 0x525   :  { %vm2284_vm15 = vmor %vm2282_vm3, %vm2283_vm12 }
 0x526   :  { %v2278_v34 = vmul.f32 %v11853_v23, %v2277_v33  ;;  %5496 = vmatpush.bf16.msra.mxu1 %v6704_v31  ;;  %vm12760_vm12 = vmmov %vm12753_vm9 }
 0x527   :  { %vm12761_vm3 = vmmov %vm12754_vm4 }
 0x528   :  { %v2279_v0 = vmul.f32 0.5, %v2278_v34  ;;  %v7695_v34 = vld [vmem:[#allocation11 + $0x9c0] sm:$0xf] }
 0x529   :  { %v7696_v30 = vor.u32 %v8809_v21, %v7695_v34  ;;  %v7599_v34 = vld [vmem:[#allocation11 + $0x900] sm:$0xf] }
 0x52a   :  { %v2280_v10 = vsub.f32 1.5, %v2279_v0  ;;  %5541 = vmatpush.bf16.msrb.mxu1 %v7952_v62  ;;  %v7855_v21 = vld [vmem:[#allocation11 + $0xb00] sm:$0xf] }
 0x52b   :  { %5528 = vmatpush.bf16.msrb.mxu0 %v7696_v30 }
 0x52c   :  { %v2281_v48 = vmul.f32 %v11853_v23, %v2280_v10 }
 0x52e   :  { %v2285_v55 = vsel %vm2284_vm15, %v11853_v23, %v2281_v48  ;;  %v8929_v48 = vld [vmem:[#allocation11 + $0xd9c] sm:$0xf0]  ;;  %v7856_v23 = vor.u32 %v8849_v53, %v7855_v21  ;;  %v8677_v21 = vld [vmem:[#allocation11 + $0x5c4] sm:$0xf]  ;;  %vm12762_vm15 = vmmov %vm12755_vm10 }
 0x52f   :  { %v2286_v36 = vmul.f32 %v2285_v55, %v11795_v17  ;;  %v2287_v39 = vmul.f32 %v2285_v55, %v11799_v49  ;;  %v2288_v32 = vmul.f32 %v2285_v55, %v11803_v46  ;;  %v2289_v33 = vmul.f32 %v2285_v55, %v11805_v52  ;;  %v7185_v53 = vld [vmem:[#allocation11 + $0x5e0] sm:$0xf0] }
 0x530   :  { %v2290_v17 = vmul.f32 %v2285_v55, %v11807_v38  ;;  %v2291_v49 = vmul.f32 %v2285_v55, %v11815_v54  ;;  %v2292_v46 = vmul.f32 %v2285_v55, %v11821_v63  ;;  %v2293_v52 = vmul.f32 %v2285_v55, %v11826_v20  ;;  %v7215_v63 = vld [vmem:[#allocation11 + $0x600] sm:$0xf] }
 0x531   :  { %v2296_v43 = vmul.f32 %v2295_v18, %v2286_v36  ;;  %v2297_v9 = vmul.f32 %v2295_v18, %v2287_v39  ;;  %v2298_v26 = vmul.f32 %v2295_v18, %v2288_v32  ;;  %v2299_v12 = vmul.f32 %v2295_v18, %v2289_v33  ;;  %v8689_v20 = vld [vmem:[#allocation11 + $0x61c] sm:$0xf0] }
 0x532   :  { %v2300_v38 = vmul.f32 %v2295_v18, %v2290_v17  ;;  %v2301_v50 = vmul.f32 %v2295_v18, %v2291_v49  ;;  %v2302_v54 = vmul.f32 %v2295_v18, %v2292_v46  ;;  %v2303_v19 = vmul.f32 %v2295_v18, %v2293_v52  ;;  %v8865_v18 = vld [vmem:[#allocation11 + $0xb9c] sm:$0xf0] }
 0x533   :  { %v2306_v35 = vadd.f32 %v2305_v15, %v2296_v43  ;;  %v2307_v59 = vadd.f32 %v2305_v15, %v2297_v9  ;;  %v2308_v44 = vadd.f32 %v2305_v15, %v2298_v26  ;;  %v2309_v51 = vadd.f32 %v2305_v15, %v2299_v12  ;;  %v7631_v32 = vld [vmem:[#allocation11 + $0x940] sm:$0xf] }
 0x534   :  { %v2310_v60 = vadd.f32 %v2305_v15, %v2300_v38  ;;  %v2311_v27 = vadd.f32 %v2305_v15, %v2301_v50  ;;  %v2312_v0 = vadd.f32 %v2305_v15, %v2302_v54  ;;  %v2313_v61 = vadd.f32 %v2305_v15, %v2303_v19  ;;  %v8175_v15 = vld [vmem:[#allocation11 + $0xd80] sm:$0xf] }
 0x535   :  { %v2314_v37 = vpack.c.bf16 %v2307_v59, %v2306_v35  ;;  %v2315_v7 = vpack.c.bf16 %v2309_v51, %v2308_v44  ;;  %v7216_v10 = vor.u32 %v8689_v20, %v7215_v63  ;;  %v8464_v39 = vor.u32 %v9001_v6, %v8463_v41  ;;  %v8793_v33 = vld [vmem:[#allocation11 + $0x95c] sm:$0xf0] }
 0x536   :  { %v2316_v22 = vpack.c.bf16 %v2311_v27, %v2310_v60  ;;  %v2317_v24 = vpack.c.bf16 %v2313_v61, %v2312_v0  ;;  %v7887_v17 = vld [vmem:[#allocation11 + $0xb40] sm:$0xf]  ;;  %v7664_v43 = vor.u32 %v8801_v47, %v7663_v57  ;;  %v7920_v25 = vor.u32 %v8865_v18, %v7919_v29 }
 0x537   :  { %v2322_v2 = vrot.slane %v2314_v37, 3  ;;  %v2323_v42 = vrot.slane %v2315_v7, 6  ;;  %v2324_v3 = vrot.slane %v2315_v7, 1  ;;  %5522 = vmatpush.bf16.msra.mxu3 %v7216_v10  ;;  %v8857_v9 = vld [vmem:[#allocation11 + $0xb5c] sm:$0xf0]  ;;  %v8176_v38 = vor.u32 %v8929_v48, %v8175_v15 }
 0x538   :  { %v2325_v45 = vrot.slane %v2316_v22, 4  ;;  %v2326_v8 = vrot.slane %v2316_v22, 7  ;;  %v2327_v58 = vrot.slane %v2317_v24, 2  ;;  %v2328_v55 = vrot.slane %v2317_v24, 5  ;;  %v8143_v26 = vld [vmem:[#allocation11 + $0xd40] sm:$0xf]  ;;  %5529 = vmatpush.bf16.msrb.mxu0 %v7664_v43  ;;  %5542 = vmatpush.bf16.msrb.mxu1 %v7920_v25 }
 0x539   :  { %v2331_v31 = vsel %vm12751_vm14, %v2314_v37, %v2322_v2  ;;  %v2334_v36 = vsel %vm12752_vm13, %v2323_v42, %v2324_v3  ;;  %v8921_v12 = vld [vmem:[#allocation11 + $0xd5c] sm:$0xf0]  ;;  %v8432_v50 = vor.u32 %v8993_v56, %v8431_v4  ;;  %v7632_v19 = vor.u32 %v8793_v33, %v7631_v32  ;;  %5555 = vmatpush.bf16.msrb.mxu2 %v8176_v38 }
 0x53a   :  { %v2335_v49 = vsel %vm12753_vm9, %v2331_v31, %v2334_v36  ;;  %v2338_v46 = vsel %vm12754_vm4, %v2325_v45, %v2326_v8  ;;  %v2341_v52 = vsel %vm12755_vm10, %v2327_v58, %v2328_v55  ;;  %v8399_v63 = vld [vmem:[#allocation11 + $0xf40] sm:$0xf]  ;;  %v7888_v59 = vor.u32 %v8857_v9, %v7887_v17 }
 0x53b   :  { %v2342_v14 = vsel %vm12756_vm7, %v2338_v46, %v2341_v52  ;;  %5567 = vmatpush.bf16.msrb.mxu3 %v8464_v39  ;;  %v8985_v20 = vld [vmem:[#allocation11 + $0xf5c] sm:$0xf0]  ;;  %v8144_v44 = vor.u32 %v8921_v12, %v8143_v26 }
 0x53c   :  { %v2343_v54 = vsel %vm12757_vm2, %v2335_v49, %v2342_v14  ;;  %v8785_v51 = vld [vmem:[#allocation11 + $0x91c] sm:$0xf0]  ;;  %v8400_v27 = vor.u32 %v8985_v20, %v8399_v63  ;;  %5530 = vmatpush.bf16.msrb.mxu0 %v7632_v19  ;;  %5543 = vmatpush.bf16.msrb.mxu1 %v7888_v59  ;;  %v8549_v63 = vld [vmem:[#allocation11 + $0x1c4] sm:$0xf] }
 0x53d   :  { %v2377_v35 = vsel %vm2375_vm6, %v2343_v54, %v2376_v13  ;;  %v8913_v60 = vld [vmem:[#allocation11 + $0xd1c] sm:$0xf0]  ;;  %v7600_v0 = vor.u32 %v8785_v51, %v7599_v34  ;;  %5556 = vmatpush.bf16.msrb.mxu2 %v8144_v44  ;;  %v6673_v34 = vld [vmem:[#allocation11 + $0x1e0] sm:$0xf0] }
 0x53e   :  { %2378 = vst [vmem:[#allocation3] sm:$0xff] %v2377_v35  ;;  %v8367_v61 = vld [vmem:[#allocation11 + $0xf00] sm:$0xf]  ;;  %v8112_v1 = vor.u32 %v8913_v60, %v8111_v16  ;;  %v6929_v59 = vld [vmem:[#allocation11 + $0x3e0] sm:$0xf0] }
 0x53f   :  { %5568 = vmatpush.bf16.msrb.mxu3 %v8432_v50  ;;  %v8777_v41 = vld [vmem:[#allocation11 + $0x8dc] sm:$0xf0]  ;;  %v8368_v6 = vor.u32 %v8977_v40, %v8367_v61  ;;  %2899 = vst [vmem:[#allocation1] ss:$9 sm:$0xff] %v2377_v35  ;;  %v8613_v35 = vld [vmem:[#allocation11 + $0x3c4] sm:$0xf]  ;;  %v6676_v61 = vor.u32 %v8549_v63, %v6673_v34 }
 0x540   :  { %v7823_v37 = vld [vmem:[#allocation11 + $0xac0] sm:$0xf]  ;;  %5531 = vmatpush.bf16.msrb.mxu0 %v7600_v0  ;;  %v7568_v57 = vor.u32 %v8777_v41, %v7567_v5  ;;  %5544 = vmatpush.bf16.msrb.mxu1 %v7856_v23  ;;  %v7441_v0 = vld [vmem:[#allocation11 + $0x7e0] sm:$0xf0]  ;;  %v6932_v40 = vor.u32 %v8613_v35, %v6929_v59  ;;  %v7188_v5 = vor.u32 %v8677_v21, %v7185_v53 }
 0x541   :  { %v8841_v7 = vld [vmem:[#allocation11 + $0xadc] sm:$0xf0]  ;;  %5557 = vmatpush.bf16.msrb.mxu2 %v8112_v1  ;;  %v8541_v23 = vld [vmem:[#allocation11 + $0x184] sm:$0xf] }
 0x542   :  { %v8905_v10 = vld [vmem:[#allocation11 + $0xcdc] sm:$0xf0]  ;;  %v7824_v30 = vor.u32 %v8841_v7, %v7823_v37  ;;  %v6641_v41 = vld [vmem:[#allocation11 + $0x1a0] sm:$0xf0] }
 0x543   :  { %5569 = vmatpush.bf16.msrb.mxu3 %v8400_v27  ;;  %v8335_v47 = vld [vmem:[#allocation11 + $0xec0] sm:$0xf]  ;;  %v8080_v62 = vor.u32 %v8905_v10, %v8079_v28  ;;  %v8741_v27 = vld [vmem:[#allocation11 + $0x7c4] sm:$0xf] }
 0x544   :  { %v8969_v22 = vld [vmem:[#allocation11 + $0xedc] sm:$0xf0]  ;;  %5532 = vmatpush.bf16.msrb.mxu0 %v7568_v57  ;;  %5545 = vmatpush.bf16.msrb.mxu1 %v7824_v30  ;;  %v8605_v37 = vld [vmem:[#allocation11 + $0x384] sm:$0xf]  ;;  %v7444_v28 = vor.u32 %v8741_v27, %v7441_v0 }
 0x545   :  { %v7535_v24 = vld [vmem:[#allocation11 + $0x880] sm:$0xf]  ;;  %v8336_v42 = vor.u32 %v8969_v22, %v8335_v47  ;;  %5558 = vmatpush.bf16.msrb.mxu2 %v8080_v62  ;;  %v6897_v7 = vld [vmem:[#allocation11 + $0x3a0] sm:$0xf0]  ;;  %v6644_v22 = vor.u32 %v8541_v23, %v6641_v41 }
 0x546   :  { %v8769_v29 = vld [vmem:[#allocation11 + $0x89c] sm:$0xf0]  ;;  %v11923_v25 = vld [vmem:[#allocation1] sm:$0xff]  ;;  %v11925_v38 = vld [vmem:[#allocation1 + $0x9] sm:$0xff] }
 0x547   :  { %v7791_v18 = vld [vmem:[#allocation11 + $0xa80] sm:$0xf]  ;;  %5570 = vmatpush.bf16.msrb.mxu3 %v8368_v6  ;;  %v7536_v3 = vor.u32 %v8769_v29, %v7535_v24  ;;  %v11927_v50 = vld [vmem:[#allocation1 + $0x12] sm:$0xff]  ;;  %5484 = vmatmul.bf16.vlgmr.msra.gmra.mxu0 %v11923_v25  ;;  %v8669_v10 = vld [vmem:[#allocation11 + $0x584] sm:$0xf]  ;;  %v6900_v24 = vor.u32 %v8605_v37, %v6897_v7 }
 0x548   :  { %v8833_v15 = vld [vmem:[#allocation11 + $0xa9c] sm:$0xf0]  ;;  %5497 = vmatmul.bf16.vlgmr.msra.gmra.mxu1 %v11925_v38  ;;  %5510 = vmatmul.bf16.vlgmr.msra.gmra.mxu2 %v11927_v50  ;;  %v7153_v6 = vld [vmem:[#allocation11 + $0x5a0] sm:$0xf0] }
 0x549   :  { %v8047_v48 = vld [vmem:[#allocation11 + $0xc80] sm:$0xf]  ;;  %v7792_v45 = vor.u32 %v8833_v15, %v7791_v18  ;;  %5533 = vmatpush.bf16.msrb.mxu0 %v7536_v3  ;;  %v8733_v57 = vld [vmem:[#allocation11 + $0x784] sm:$0xf]  ;;  %v7156_v62 = vor.u32 %v8669_v10, %v7153_v6 }
 0x54a   :  { %v8897_v2 = vld [vmem:[#allocation11 + $0xc9c] sm:$0xf0]  ;;  %v7409_v47 = vld [vmem:[#allocation11 + $0x7a0] sm:$0xf0] }
 0x54b   :  { %v8961_v4 = vld [vmem:[#allocation11 + $0xe9c] sm:$0xf0]  ;;  %v8048_v8 = vor.u32 %v8897_v2, %v8047_v48  ;;  %5571 = vmatpush.bf16.msrb.mxu3 %v8336_v42  ;;  %5546 = vmatpush.bf16.msrb.mxu1 %v7792_v45  ;;  %v8533_v30 = vld [vmem:[#allocation11 + $0x144] sm:$0xf]  ;;  %v7412_v48 = vor.u32 %v8733_v57, %v7409_v47 }
 0x54c   :  { %v7503_v13 = vld [vmem:[#allocation11 + $0x840] sm:$0xf]  ;;  %v8304_v32 = vor.u32 %v8961_v4, %v8303_v11  ;;  %v6609_v29 = vld [vmem:[#allocation11 + $0x160] sm:$0xf0] }
 0x54d   :  { %v8761_v58 = vld [vmem:[#allocation11 + $0x85c] sm:$0xf0]  ;;  %5559 = vmatpush.bf16.msrb.mxu2 %v8048_v8  ;;  %v8597_v18 = vld [vmem:[#allocation11 + $0x344] sm:$0xf]  ;;  %v6612_v4 = vor.u32 %v8533_v30, %v6609_v29 }
 0x54e   :  { %v7759_v55 = vld [vmem:[#allocation11 + $0xa40] sm:$0xf]  ;;  %v7504_v46 = vor.u32 %v8761_v58, %v7503_v13  ;;  %v6865_v15 = vld [vmem:[#allocation11 + $0x360] sm:$0xf0] }
 0x54f   :  { %v8825_v56 = vld [vmem:[#allocation11 + $0xa5c] sm:$0xf0]  ;;  %5572 = vmatpush.bf16.msrb.mxu3 %v8304_v32  ;;  %v8661_v2 = vld [vmem:[#allocation11 + $0x544] sm:$0xf]  ;;  %v6868_v13 = vor.u32 %v8597_v18, %v6865_v15 }
 0x550   :  { %v8015_v31 = vld [vmem:[#allocation11 + $0xc40] sm:$0xf]  ;;  %v7760_v12 = vor.u32 %v8825_v56, %v7759_v55  ;;  %5534 = vmatpush.bf16.msrb.mxu0 %v7504_v46  ;;  %v7121_v42 = vld [vmem:[#allocation11 + $0x560] sm:$0xf0] }
 0x551   :  { %v8889_v36 = vld [vmem:[#allocation11 + $0xc5c] sm:$0xf0]  ;;  %v8725_v3 = vld [vmem:[#allocation11 + $0x744] sm:$0xf]  ;;  %v7124_v8 = vor.u32 %v8661_v2, %v7121_v42 }
 0x552   :  { %v8271_v39 = vld [vmem:[#allocation11 + $0xe40] sm:$0xf]  ;;  %v8016_v14 = vor.u32 %v8889_v36, %v8015_v31  ;;  %5547 = vmatpush.bf16.msrb.mxu1 %v7760_v12  ;;  %v7377_v11 = vld [vmem:[#allocation11 + $0x760] sm:$0xf0] }
 0x553   :  { %v8953_v33 = vld [vmem:[#allocation11 + $0xe5c] sm:$0xf0]  ;;  %v8525_v45 = vld [vmem:[#allocation11 + $0x104] sm:$0xf]  ;;  %v7380_v31 = vor.u32 %v8725_v3, %v7377_v11 }
 0x554   :  { %v7471_v17 = vld [vmem:[#allocation11 + $0x800] sm:$0xf]  ;;  %v8272_v20 = vor.u32 %v8953_v33, %v8271_v39  ;;  %5560 = vmatpush.bf16.msrb.mxu2 %v8016_v14  ;;  %v6577_v58 = vld [vmem:[#allocation11 + $0x120] sm:$0xf0] }
 0x555   :  { %v8753_v49 = vld [vmem:[#allocation11 + $0x81c] sm:$0xf0]  ;;  %v8589_v55 = vld [vmem:[#allocation11 + $0x304] sm:$0xf] }
 0x556   :  { %v7727_v52 = vld [vmem:[#allocation11 + $0xa00] sm:$0xf]  ;;  %v7472_v44 = vor.u32 %v8753_v49, %v7471_v17  ;;  %5573 = vmatpush.bf16.msrb.mxu3 %v8272_v20  ;;  %v6833_v56 = vld [vmem:[#allocation11 + $0x320] sm:$0xf0]  ;;  %v11935_v17 = vld [vmem:[#allocation1 + $0x24] sm:$0xff]  ;;  %v6580_v49 = vor.u32 %v8525_v45, %v6577_v58 }
 0x557   :  { %v8817_v43 = vld [vmem:[#allocation11 + $0xa1c] sm:$0xf0]  ;;  %v8653_v36 = vld [vmem:[#allocation11 + $0x504] sm:$0xf]  ;;  %v6836_v46 = vor.u32 %v8589_v55, %v6833_v56 }
 0x558   :  { %v7983_v9 = vld [vmem:[#allocation11 + $0xc00] sm:$0xf]  ;;  %v7728_v16 = vor.u32 %v8817_v43, %v7727_v52  ;;  %5535 = vmatpush.bf16.msrb.mxu0 %v7472_v44  ;;  %v7089_v39 = vld [vmem:[#allocation11 + $0x520] sm:$0xf0]  ;;  %v11937_v52 = vld [vmem:[#allocation1 + $0x2d] sm:$0xff] }
 0x559   :  { %v8881_v26 = vld [vmem:[#allocation11 + $0xc1c] sm:$0xf0]  ;;  %v8717_v32 = vld [vmem:[#allocation11 + $0x704] sm:$0xf] }
 0x55a   :  { %v8239_v54 = vld [vmem:[#allocation11 + $0xe00] sm:$0xf]  ;;  %v7984_v60 = vor.u32 %v8881_v26, %v7983_v9  ;;  %5548 = vmatpush.bf16.msrb.mxu1 %v7728_v16  ;;  %v7345_v33 = vld [vmem:[#allocation11 + $0x720] sm:$0xf0]  ;;  %v7092_v26 = vor.u32 %v8653_v36, %v7089_v39 }
 0x55b   :  { %v11931_v19 = vld [vmem:[#allocation1 + $0x1b] sm:$0xff]  ;;  %5536 = vmatmul.bf16.vlgmr.msrb.gmra.mxu0 %v11935_v17  ;;  %v7348_v63 = vor.u32 %v8717_v32, %v7345_v33 }
 0x55c   :  { %v8945_v51 = vld [vmem:[#allocation11 + $0xe1c] sm:$0xf0]  ;;  %5523 = vmatmul.bf16.vlgmr.msra.gmra.mxu3 %v11931_v19  ;;  %5561 = vmatpush.bf16.msrb.mxu2 %v7984_v60  ;;  %v8517_v9 = vld [vmem:[#allocation11 + $0xc4] sm:$0xf] }
 0x55d   :  { %v8240_v1 = vor.u32 %v8945_v51, %v8239_v54  ;;  %5580 = vmatpush.bf16.msra.mxu0 %v6676_v61  ;;  %v11939_v43 = vld [vmem:[#allocation1 + $0x36] sm:$0xff]  ;;  %v6545_v12 = vld [vmem:[#allocation11 + $0xe0] sm:$0xf0]  ;;  %5549 = vmatmul.bf16.vlgmr.msrb.gmra.mxu1 %v11937_v52 }
 0x55e   :  { %5593 = vmatpush.bf16.msra.mxu1 %v6932_v40  ;;  %v8581_v14 = vld [vmem:[#allocation11 + $0x2c4] sm:$0xf]  ;;  %v6548_v51 = vor.u32 %v8517_v9, %v6545_v12 }
 0x55f   :  { %5574 = vmatpush.bf16.msrb.mxu3 %v8240_v1  ;;  %v6801_v54 = vld [vmem:[#allocation11 + $0x2e0] sm:$0xf0]  ;;  %5562 = vmatmul.bf16.vlgmr.msrb.gmra.mxu2 %v11939_v43 }
 0x560   :  { %5606 = vmatpush.bf16.msra.mxu2 %v7188_v5  ;;  %v11943_v20 = vld [vmem:[#allocation1 + $0x3f] sm:$0xff]  ;;  %v6804_v21 = vor.u32 %v8581_v14, %v6801_v54 }
 0x561   :  { %5581 = vmatpush.bf16.msra.mxu0 %v6644_v22  ;;  %v8645_v34 = vld [vmem:[#allocation11 + $0x4c4] sm:$0xf] }
 0x562   :  { %5594 = vmatpush.bf16.msra.mxu1 %v6900_v24  ;;  %v7057_v35 = vld [vmem:[#allocation11 + $0x4e0] sm:$0xf0] }
 0x563   :  { %5619 = vmatpush.bf16.msra.mxu3 %v7444_v28  ;;  %v8709_v59 = vld [vmem:[#allocation11 + $0x6c4] sm:$0xf]  ;;  %v7060_v16 = vor.u32 %v8645_v34, %v7057_v35 }
 0x564   :  { %5607 = vmatpush.bf16.msra.mxu2 %v7156_v62  ;;  %v7313_v44 = vld [vmem:[#allocation11 + $0x6e0] sm:$0xf0] }
 0x565   :  { %5582 = vmatpush.bf16.msra.mxu0 %v6612_v4  ;;  %v8509_v53 = vld [vmem:[#allocation11 + $0x84] sm:$0xf]  ;;  %v7316_v61 = vor.u32 %v8709_v59, %v7313_v44 }
 0x566   :  { %5595 = vmatpush.bf16.msra.mxu1 %v6868_v13  ;;  %v6513_v60 = vld [vmem:[#allocation11 + $0xa0] sm:$0xf0] }
 0x567   :  { %5620 = vmatpush.bf16.msra.mxu3 %v7412_v48  ;;  %v8573_v27 = vld [vmem:[#allocation11 + $0x284] sm:$0xf]  ;;  %v6516_v41 = vor.u32 %v8509_v53, %v6513_v60 }
 0x568   :  { %5608 = vmatpush.bf16.msra.mxu2 %v7124_v8  ;;  %v6769_v0 = vld [vmem:[#allocation11 + $0x2a0] sm:$0xf0] }
 0x569   :  { %5583 = vmatpush.bf16.msra.mxu0 %v6580_v49  ;;  %v8637_v40 = vld [vmem:[#allocation11 + $0x484] sm:$0xf]  ;;  %v6772_v37 = vor.u32 %v8573_v27, %v6769_v0 }
 0x56a   :  { %5596 = vmatpush.bf16.msra.mxu1 %v6836_v46  ;;  %v7025_v23 = vld [vmem:[#allocation11 + $0x4a0] sm:$0xf0] }
 0x56b   :  { %5621 = vmatpush.bf16.msra.mxu3 %v7380_v31  ;;  %v8701_v1 = vld [vmem:[#allocation11 + $0x684] sm:$0xf]  ;;  %v7028_v28 = vor.u32 %v8637_v40, %v7025_v23 }
 0x56c   :  { %5575 = vmatmul.bf16.vlgmr.msrb.gmra.mxu3 %v11943_v20  ;;  %5609 = vmatpush.bf16.msra.mxu2 %v7092_v26  ;;  %v7281_v5 = vld [vmem:[#allocation11 + $0x6a0] sm:$0xf0] }
 0x56d   :  { %5584 = vmatpush.bf16.msra.mxu0 %v6548_v51  ;;  %v8501_v7 = vld [vmem:[#allocation11 + $0x44] sm:$0xf]  ;;  %v7284_v47 = vor.u32 %v8701_v1, %v7281_v5 }
 0x56e   :  { %5597 = vmatpush.bf16.msra.mxu1 %v6804_v21  ;;  %v6481_v10 = vld [vmem:[#allocation11 + $0x60] sm:$0xf0] }
 0x56f   :  { %5622 = vmatpush.bf16.msra.mxu3 %v7348_v63  ;;  %v8565_v6 = vld [vmem:[#allocation11 + $0x244] sm:$0xf]  ;;  %v6484_v18 = vor.u32 %v8501_v7, %v6481_v10 }
 0x570   :  { %5610 = vmatpush.bf16.msra.mxu2 %v7060_v16  ;;  %v6737_v57 = vld [vmem:[#allocation11 + $0x260] sm:$0xf0] }
 0x571   :  { %v8629_v22 = vld [vmem:[#allocation11 + $0x444] sm:$0xf]  ;;  %5585 = vmatpush.bf16.msra.mxu0 %v6516_v41  ;;  %v6740_v15 = vor.u32 %v8565_v6, %v6737_v57 }
 0x572   :  { %v6993_v24 = vld [vmem:[#allocation11 + $0x460] sm:$0xf0]  ;;  %5598 = vmatpush.bf16.msra.mxu1 %v6772_v37 }
 0x573   :  { %5623 = vmatpush.bf16.msra.mxu3 %v7316_v61  ;;  %v8693_v30 = vld [vmem:[#allocation11 + $0x644] sm:$0xf]  ;;  %v6996_v3 = vor.u32 %v8629_v22, %v6993_v24 }
 0x574   :  { %v7249_v62 = vld [vmem:[#allocation11 + $0x660] sm:$0xf0]  ;;  %5611 = vmatpush.bf16.msra.mxu2 %v7028_v28 }
 0x575   :  { %v8493_v29 = vld [vmem:[#allocation11 + $0x4] sm:$0xf]  ;;  %v7252_v45 = vor.u32 %v8693_v30, %v7249_v62  ;;  %5586 = vmatpush.bf16.msra.mxu0 %v6484_v18 }
 0x576   :  { %v6449_v48 = vld [vmem:[#allocation11 + $0x20] sm:$0xf0]  ;;  %5599 = vmatpush.bf16.msra.mxu1 %v6740_v15 }
 0x577   :  { %v8557_v2 = vld [vmem:[#allocation11 + $0x204] sm:$0xf]  ;;  %5624 = vmatpush.bf16.msra.mxu3 %v7284_v47  ;;  %v6452_v39 = vor.u32 %v8493_v29, %v6449_v48 }
 0x578   :  { %v6705_v42 = vld [vmem:[#allocation11 + $0x220] sm:$0xf0]  ;;  %5612 = vmatpush.bf16.msra.mxu2 %v6996_v3 }
 0x579   :  { %v8621_v11 = vld [vmem:[#allocation11 + $0x404] sm:$0xf]  ;;  %v6708_v32 = vor.u32 %v8557_v2, %v6705_v42  ;;  %5587 = vmatpush.bf16.msra.mxu0 %v6452_v39 }
 0x57a   :  { %v6961_v4 = vld [vmem:[#allocation11 + $0x420] sm:$0xf0] }
 0x57b   :  { %v8685_v13 = vld [vmem:[#allocation11 + $0x604] sm:$0xf]  ;;  %v6964_v9 = vor.u32 %v8621_v11, %v6961_v4  ;;  %5625 = vmatpush.bf16.msra.mxu3 %v7252_v45  ;;  %5600 = vmatpush.bf16.msra.mxu1 %v6708_v32 }
 0x57c   :  { %v7217_v8 = vld [vmem:[#allocation11 + $0x620] sm:$0xf0]  ;;  %5588 = vmatmul.bf16.vlgmr.msra.gmra.mxu0 %v11923_v25 }
 0x57d   :  { %v8805_v58 = vld [vmem:[#allocation11 + $0x9c4] sm:$0xf]  ;;  %v7220_v12 = vor.u32 %v8685_v13, %v7217_v8  ;;  %5613 = vmatpush.bf16.msra.mxu2 %v6964_v9 }
 0x57e   :  { %v7697_v55 = vld [vmem:[#allocation11 + $0x9e0] sm:$0xf0]  ;;  %5601 = vmatmul.bf16.vlgmr.msra.gmra.mxu1 %v11925_v38 }
 0x57f   :  { %v8869_v56 = vld [vmem:[#allocation11 + $0xbc4] sm:$0xf]  ;;  %v7700_v26 = vor.u32 %v8805_v58, %v7697_v55  ;;  %5626 = vmatpush.bf16.msra.mxu3 %v7220_v12 }
 0x580   :  { %v7953_v31 = vld [vmem:[#allocation11 + $0xbe0] sm:$0xf0]  ;;  %5614 = vmatmul.bf16.vlgmr.msra.gmra.mxu2 %v11927_v50 }
 0x581   :  { %v8933_v36 = vld [vmem:[#allocation11 + $0xdc4] sm:$0xf]  ;;  %v7956_v14 = vor.u32 %v8869_v56, %v7953_v31  ;;  %5632 = vmatpush.bf16.msrb.mxu0 %v7700_v26 }
 0x582   :  { %v8209_v33 = vld [vmem:[#allocation11 + $0xde0] sm:$0xf0]  ;;  %5627 = vmatmul.bf16.vlgmr.msra.gmra.mxu3 %v11931_v19 }
 0x583   :  { %v8997_v49 = vld [vmem:[#allocation11 + $0xfc4] sm:$0xf]  ;;  %v8212_v34 = vor.u32 %v8933_v36, %v8209_v33  ;;  %5645 = vmatpush.bf16.msrb.mxu1 %v7956_v14 }
 0x584   :  { %v8465_v46 = vld [vmem:[#allocation11 + $0xfe0] sm:$0xf0] }
 0x585   :  { %v8797_v54 = vld [vmem:[#allocation11 + $0x984] sm:$0xf]  ;;  %v8468_v35 = vor.u32 %v8997_v49, %v8465_v46  ;;  %5658 = vmatpush.bf16.msrb.mxu2 %v8212_v34 }
 0x586   :  { %v7665_v63 = vld [vmem:[#allocation11 + $0x9a0] sm:$0xf0] }
 0x587   :  { %v8861_v59 = vld [vmem:[#allocation11 + $0xb84] sm:$0xf]  ;;  %v7668_v60 = vor.u32 %v8797_v54, %v7665_v63  ;;  %5671 = vmatpush.bf16.msrb.mxu3 %v8468_v35 }
 0x588   :  { %v7921_v44 = vld [vmem:[#allocation11 + $0xba0] sm:$0xf0] }
 0x589   :  { %v8925_v51 = vld [vmem:[#allocation11 + $0xd84] sm:$0xf]  ;;  %v7924_v27 = vor.u32 %v8861_v59, %v7921_v44  ;;  %5633 = vmatpush.bf16.msrb.mxu0 %v7668_v60 }
 0x58a   :  { %v8177_v21 = vld [vmem:[#allocation11 + $0xda0] sm:$0xf0] }
 0x58b   :  { %v8989_v53 = vld [vmem:[#allocation11 + $0xf84] sm:$0xf]  ;;  %v8180_v40 = vor.u32 %v8925_v51, %v8177_v21  ;;  %5646 = vmatpush.bf16.msrb.mxu1 %v7924_v27 }
 0x58c   :  { %v8433_v16 = vld [vmem:[#allocation11 + $0xfa0] sm:$0xf0] }
 0x58d   :  { %v8789_v0 = vld [vmem:[#allocation11 + $0x944] sm:$0xf]  ;;  %v8436_v23 = vor.u32 %v8989_v53, %v8433_v16  ;;  %5659 = vmatpush.bf16.msrb.mxu2 %v8180_v40 }
 0x58e   :  { %v7633_v61 = vld [vmem:[#allocation11 + $0x960] sm:$0xf0] }
 0x58f   :  { %v8853_v1 = vld [vmem:[#allocation11 + $0xb44] sm:$0xf]  ;;  %v7636_v10 = vor.u32 %v8789_v0, %v7633_v61  ;;  %5672 = vmatpush.bf16.msrb.mxu3 %v8436_v23 }
 0x590   :  { %v7889_v5 = vld [vmem:[#allocation11 + $0xb60] sm:$0xf0] }
 0x591   :  { %v8917_v41 = vld [vmem:[#allocation11 + $0xd44] sm:$0xf]  ;;  %v7892_v6 = vor.u32 %v8853_v1, %v7889_v5  ;;  %5634 = vmatpush.bf16.msrb.mxu0 %v7636_v10 }
 0x592   :  { %v8145_v37 = vld [vmem:[#allocation11 + $0xd60] sm:$0xf0] }
 0x593   :  { %v8981_v7 = vld [vmem:[#allocation11 + $0xf44] sm:$0xf]  ;;  %v8148_v22 = vor.u32 %v8917_v41, %v8145_v37  ;;  %5647 = vmatpush.bf16.msrb.mxu1 %v7892_v6 }
 0x594   :  { %v8401_v28 = vld [vmem:[#allocation11 + $0xf60] sm:$0xf0] }
 0x595   :  { %v8781_v57 = vld [vmem:[#allocation11 + $0x904] sm:$0xf]  ;;  %v8404_v24 = vor.u32 %v8981_v7, %v8401_v28  ;;  %5660 = vmatpush.bf16.msrb.mxu2 %v8148_v22  ;;  %v6679_v22 = vld [vmem:[#allocation11 + $0x1c8] sm:$0xf] }
 0x596   :  { %v7601_v47 = vld [vmem:[#allocation11 + $0x920] sm:$0xf0] }
 0x597   :  { %v8845_v30 = vld [vmem:[#allocation11 + $0xb04] sm:$0xf]  ;;  %v7604_v2 = vor.u32 %v8781_v57, %v7601_v47  ;;  %5673 = vmatpush.bf16.msrb.mxu3 %v8404_v24  ;;  %v8554_v24 = vld [vmem:[#allocation11 + $0x1e4] sm:$0xf0] }
 0x598   :  { %v7857_v62 = vld [vmem:[#allocation11 + $0xb20] sm:$0xf0] }
 0x599   :  { %v8909_v29 = vld [vmem:[#allocation11 + $0xd04] sm:$0xf]  ;;  %v7860_v42 = vor.u32 %v8845_v30, %v7857_v62  ;;  %5635 = vmatpush.bf16.msrb.mxu0 %v7604_v2  ;;  %v6935_v30 = vld [vmem:[#allocation11 + $0x3c8] sm:$0xf] }
 0x59a   :  { %v8113_v18 = vld [vmem:[#allocation11 + $0xd20] sm:$0xf0]  ;;  %v8618_v62 = vld [vmem:[#allocation11 + $0x3e4] sm:$0xf0] }
 0x59b   :  { %v8973_v15 = vld [vmem:[#allocation11 + $0xf04] sm:$0xf]  ;;  %v8116_v4 = vor.u32 %v8909_v29, %v8113_v18  ;;  %5648 = vmatpush.bf16.msrb.mxu1 %v7860_v42  ;;  %v7191_v29 = vld [vmem:[#allocation11 + $0x5c8] sm:$0xf] }
 0x59c   :  { %v8369_v48 = vld [vmem:[#allocation11 + $0xf20] sm:$0xf0]  ;;  %v7447_v2 = vld [vmem:[#allocation11 + $0x7c8] sm:$0xf] }
 0x59d   :  { %v8773_v3 = vld [vmem:[#allocation11 + $0x8c4] sm:$0xf]  ;;  %v8372_v13 = vor.u32 %v8973_v15, %v8369_v48  ;;  %5661 = vmatpush.bf16.msrb.mxu2 %v8116_v4  ;;  %v8682_v48 = vld [vmem:[#allocation11 + $0x5e4] sm:$0xf0]  ;;  %v6680_v4 = vor.u32 %v8554_v24, %v6679_v22 }
 0x59e   :  { %v7569_v11 = vld [vmem:[#allocation11 + $0x8e0] sm:$0xf0]  ;;  %v8746_v42 = vld [vmem:[#allocation11 + $0x7e4] sm:$0xf0] }
 0x59f   :  { %v8837_v45 = vld [vmem:[#allocation11 + $0xac4] sm:$0xf]  ;;  %v7572_v36 = vor.u32 %v8773_v3, %v7569_v11  ;;  %5674 = vmatpush.bf16.msrb.mxu3 %v8372_v13  ;;  %v6936_v13 = vor.u32 %v8618_v62, %v6935_v30  ;;  %v8714_v22 = vld [vmem:[#allocation11 + $0x6e4] sm:$0xf0] }
 0x5a0   :  { %v7825_v8 = vld [vmem:[#allocation11 + $0xae0] sm:$0xf0]  ;;  %v6519_v62 = vld [vmem:[#allocation11 + $0x88] sm:$0xf] }
 0x5a1   :  { %v8901_v58 = vld [vmem:[#allocation11 + $0xcc4] sm:$0xf]  ;;  %v7828_v39 = vor.u32 %v8837_v45, %v7825_v8  ;;  %5636 = vmatpush.bf16.msrb.mxu0 %v7572_v36  ;;  %v6647_v45 = vld [vmem:[#allocation11 + $0x188] sm:$0xf] }
 0x5a2   :  { %v8081_v55 = vld [vmem:[#allocation11 + $0xce0] sm:$0xf0]  ;;  %v8546_v8 = vld [vmem:[#allocation11 + $0x1a4] sm:$0xf0] }
 0x5a3   :  { %v8965_v56 = vld [vmem:[#allocation11 + $0xec4] sm:$0xf]  ;;  %v8084_v49 = vor.u32 %v8901_v58, %v8081_v55  ;;  %5649 = vmatpush.bf16.msrb.mxu1 %v7828_v39  ;;  %v7192_v58 = vor.u32 %v8682_v48, %v7191_v29  ;;  %v7448_v55 = vor.u32 %v8746_v42, %v7447_v2  ;;  %v7159_v36 = vld [vmem:[#allocation11 + $0x588] sm:$0xf] }
 0x5a4   :  { %v8337_v31 = vld [vmem:[#allocation11 + $0xee0] sm:$0xf0]  ;;  %v8674_v39 = vld [vmem:[#allocation11 + $0x5a4] sm:$0xf0] }
 0x5a5   :  { %v8765_v32 = vld [vmem:[#allocation11 + $0x884] sm:$0xf]  ;;  %v8340_v46 = vor.u32 %v8965_v56, %v8337_v31  ;;  %5662 = vmatpush.bf16.msrb.mxu2 %v8084_v49  ;;  %v6903_v56 = vld [vmem:[#allocation11 + $0x388] sm:$0xf]  ;;  %v6648_v49 = vor.u32 %v8546_v8, %v6647_v45 }
 0x5a6   :  { %v7537_v33 = vld [vmem:[#allocation11 + $0x8a0] sm:$0xf0]  ;;  %v8610_v31 = vld [vmem:[#allocation11 + $0x3a4] sm:$0xf0] }
 0x5a7   :  { %v8829_v9 = vld [vmem:[#allocation11 + $0xa84] sm:$0xf]  ;;  %v7540_v34 = vor.u32 %v8765_v32, %v7537_v33  ;;  %5675 = vmatpush.bf16.msrb.mxu3 %v8340_v46  ;;  %v7415_v32 = vld [vmem:[#allocation11 + $0x788] sm:$0xf]  ;;  %v6904_v46 = vor.u32 %v8610_v31, %v6903_v56 }
 0x5a8   :  { %v7793_v26 = vld [vmem:[#allocation11 + $0xaa0] sm:$0xf0]  ;;  %v8738_v33 = vld [vmem:[#allocation11 + $0x7a4] sm:$0xf0] }
 0x5a9   :  { %v8893_v12 = vld [vmem:[#allocation11 + $0xc84] sm:$0xf]  ;;  %v7796_v35 = vor.u32 %v8829_v9, %v7793_v26  ;;  %5637 = vmatpush.bf16.msrb.mxu0 %v7540_v34  ;;  %v6615_v9 = vld [vmem:[#allocation11 + $0x148] sm:$0xf] }
 0x5aa   :  { %v8049_v14 = vld [vmem:[#allocation11 + $0xca0] sm:$0xf0]  ;;  %v8538_v26 = vld [vmem:[#allocation11 + $0x164] sm:$0xf0] }
 0x5ab   :  { %v8957_v54 = vld [vmem:[#allocation11 + $0xe84] sm:$0xf]  ;;  %v8052_v51 = vor.u32 %v8893_v12, %v8049_v14  ;;  %5650 = vmatpush.bf16.msrb.mxu1 %v7796_v35  ;;  %v7160_v12 = vor.u32 %v8674_v39, %v7159_v36  ;;  %v7416_v14 = vor.u32 %v8738_v33, %v7415_v32  ;;  %v7127_v34 = vld [vmem:[#allocation11 + $0x548] sm:$0xf] }
 0x5ac   :  { %v8305_v63 = vld [vmem:[#allocation11 + $0xea0] sm:$0xf0]  ;;  %v8666_v35 = vld [vmem:[#allocation11 + $0x564] sm:$0xf0] }
 0x5ad   :  { %v8757_v59 = vld [vmem:[#allocation11 + $0x844] sm:$0xf]  ;;  %v8308_v21 = vor.u32 %v8957_v54, %v8305_v63  ;;  %5663 = vmatpush.bf16.msrb.mxu2 %v8052_v51  ;;  %v6871_v54 = vld [vmem:[#allocation11 + $0x348] sm:$0xf]  ;;  %v6616_v51 = vor.u32 %v8538_v26, %v6615_v9 }
 0x5ae   :  { %v7505_v44 = vld [vmem:[#allocation11 + $0x860] sm:$0xf0]  ;;  %v8602_v63 = vld [vmem:[#allocation11 + $0x364] sm:$0xf0] }
 0x5af   :  { %v8821_v53 = vld [vmem:[#allocation11 + $0xa44] sm:$0xf]  ;;  %v7508_v23 = vor.u32 %v8757_v59, %v7505_v44  ;;  %5676 = vmatpush.bf16.msrb.mxu3 %v8308_v21  ;;  %v7383_v59 = vld [vmem:[#allocation11 + $0x748] sm:$0xf]  ;;  %v6872_v21 = vor.u32 %v8602_v63, %v6871_v54 }
 0x5b0   :  { %v7761_v16 = vld [vmem:[#allocation11 + $0xa60] sm:$0xf0]  ;;  %v8730_v44 = vld [vmem:[#allocation11 + $0x764] sm:$0xf0] }
 0x5b1   :  { %v8885_v60 = vld [vmem:[#allocation11 + $0xc44] sm:$0xf]  ;;  %v7764_v1 = vor.u32 %v8821_v53, %v7761_v16  ;;  %5638 = vmatpush.bf16.msrb.mxu0 %v7508_v23  ;;  %v6583_v53 = vld [vmem:[#allocation11 + $0x108] sm:$0xf] }
 0x5b2   :  { %v8017_v27 = vld [vmem:[#allocation11 + $0xc60] sm:$0xf0]  ;;  %v8530_v16 = vld [vmem:[#allocation11 + $0x124] sm:$0xf0] }
 0x5b3   :  { %v8949_v0 = vld [vmem:[#allocation11 + $0xe44] sm:$0xf]  ;;  %v8020_v7 = vor.u32 %v8885_v60, %v8017_v27  ;;  %5651 = vmatpush.bf16.msrb.mxu1 %v7764_v1  ;;  %v7128_v60 = vor.u32 %v8666_v35, %v7127_v34  ;;  %v7384_v27 = vor.u32 %v8730_v44, %v7383_v59  ;;  %v8722_v23 = vld [vmem:[#allocation11 + $0x724] sm:$0xf0] }
 0x5b4   :  { %v8273_v61 = vld [vmem:[#allocation11 + $0xe60] sm:$0xf0]  ;;  %v8514_v29 = vld [vmem:[#allocation11 + $0xa4] sm:$0xf0] }
 0x5b5   :  { %v8749_v40 = vld [vmem:[#allocation11 + $0x804] sm:$0xf]  ;;  %v8276_v28 = vor.u32 %v8949_v0, %v8273_v61  ;;  %5664 = vmatpush.bf16.msrb.mxu2 %v8020_v7  ;;  %v8594_v0 = vld [vmem:[#allocation11 + $0x324] sm:$0xf0] }
 0x5b6   :  { %v7473_v5 = vld [vmem:[#allocation11 + $0x820] sm:$0xf0]  ;;  %v8658_v61 = vld [vmem:[#allocation11 + $0x524] sm:$0xf0] }
 0x5b7   :  { %v8813_v41 = vld [vmem:[#allocation11 + $0xa04] sm:$0xf]  ;;  %v7476_v18 = vor.u32 %v8749_v40, %v7473_v5  ;;  %5677 = vmatpush.bf16.msrb.mxu3 %v8276_v28  ;;  %v7351_v40 = vld [vmem:[#allocation11 + $0x708] sm:$0xf] }
 0x5b8   :  { %v7729_v37 = vld [vmem:[#allocation11 + $0xa20] sm:$0xf0]  ;;  %v6551_v5 = vld [vmem:[#allocation11 + $0xc8] sm:$0xf]  ;;  %v7352_v7 = vor.u32 %v8722_v23, %v7351_v40 }
 0x5b9   :  { %v8877_v10 = vld [vmem:[#allocation11 + $0xc04] sm:$0xf]  ;;  %v7732_v15 = vor.u32 %v8813_v41, %v7729_v37  ;;  %5639 = vmatpush.bf16.msrb.mxu0 %v7476_v18  ;;  %v8522_v41 = vld [vmem:[#allocation11 + $0xe4] sm:$0xf0] }
 0x5ba   :  { %v7985_v6 = vld [vmem:[#allocation11 + $0xc20] sm:$0xf0]  ;;  %v6807_v28 = vld [vmem:[#allocation11 + $0x2c8] sm:$0xf]  ;;  %v6552_v24 = vor.u32 %v8522_v41, %v6551_v5 }
 0x5bb   :  { %v8941_v57 = vld [vmem:[#allocation11 + $0xe04] sm:$0xf]  ;;  %v7988_v3 = vor.u32 %v8877_v10, %v7985_v6  ;;  %5652 = vmatpush.bf16.msrb.mxu1 %v7732_v15  ;;  %v8586_v10 = vld [vmem:[#allocation11 + $0x2e4] sm:$0xf0] }
 0x5bc   :  { %v8241_v47 = vld [vmem:[#allocation11 + $0xe20] sm:$0xf0]  ;;  %5640 = vmatmul.bf16.vlgmr.msrb.gmra.mxu0 %v11935_v17  ;;  %v6839_v17 = vld [vmem:[#allocation11 + $0x308] sm:$0xf]  ;;  %v6808_v30 = vor.u32 %v8586_v10, %v6807_v28 }
 0x5bd   :  { %v8244_v11 = vor.u32 %v8941_v57, %v8241_v47  ;;  %5665 = vmatpush.bf16.msrb.mxu2 %v7988_v3  ;;  %5684 = vmatpush.bf16.msra.mxu0 %v6680_v4  ;;  %v6840_v1 = vor.u32 %v8594_v0, %v6839_v17  ;;  %v7063_v6 = vld [vmem:[#allocation11 + $0x4c8] sm:$0xf] }
 0x5be   :  { %5653 = vmatmul.bf16.vlgmr.msrb.gmra.mxu1 %v11937_v52  ;;  %v7095_v52 = vld [vmem:[#allocation11 + $0x508] sm:$0xf] }
 0x5bf   :  { %5678 = vmatpush.bf16.msrb.mxu3 %v8244_v11  ;;  %5697 = vmatpush.bf16.msra.mxu1 %v6936_v13  ;;  %v7096_v37 = vor.u32 %v8658_v61, %v7095_v52  ;;  %v8650_v57 = vld [vmem:[#allocation11 + $0x4e4] sm:$0xf0]  ;;  %v6520_v13 = vor.u32 %v8514_v29, %v6519_v62 }
 0x5c0   :  { %5666 = vmatmul.bf16.vlgmr.msrb.gmra.mxu2 %v11939_v43  ;;  %v6584_v43 = vor.u32 %v8530_v16, %v6583_v53  ;;  %v7319_v47 = vld [vmem:[#allocation11 + $0x6c8] sm:$0xf]  ;;  %v7064_v18 = vor.u32 %v8650_v57, %v7063_v6 }
 0x5c1   :  { %5710 = vmatpush.bf16.msra.mxu2 %v7192_v58  ;;  %5685 = vmatpush.bf16.msra.mxu0 %v6648_v49  ;;  %v7320_v15 = vor.u32 %v8714_v22, %v7319_v47  ;;  %v6775_v48 = vld [vmem:[#allocation11 + $0x288] sm:$0xf] }
 0x5c2   :  { %5679 = vmatmul.bf16.vlgmr.msrb.gmra.mxu3 %v11943_v20  ;;  %v8578_v2 = vld [vmem:[#allocation11 + $0x2a4] sm:$0xf0] }
 0x5c3   :  { %5723 = vmatpush.bf16.msra.mxu3 %v7448_v55  ;;  %5698 = vmatpush.bf16.msra.mxu1 %v6904_v46  ;;  %v7031_v42 = vld [vmem:[#allocation11 + $0x488] sm:$0xf]  ;;  %v6776_v45 = vor.u32 %v8578_v2, %v6775_v48 }
 0x5c4   :  { %v8642_v3 = vld [vmem:[#allocation11 + $0x4a4] sm:$0xf0] }
 0x5c5   :  { %5711 = vmatpush.bf16.msra.mxu2 %v7160_v12  ;;  %5686 = vmatpush.bf16.msra.mxu0 %v6616_v51  ;;  %v7287_v11 = vld [vmem:[#allocation11 + $0x688] sm:$0xf]  ;;  %v7032_v55 = vor.u32 %v8642_v3, %v7031_v42 }
 0x5c6   :  { %v8706_v4 = vld [vmem:[#allocation11 + $0x6a4] sm:$0xf0] }
 0x5c7   :  { %5724 = vmatpush.bf16.msra.mxu3 %v7416_v14  ;;  %5699 = vmatpush.bf16.msra.mxu1 %v6872_v21  ;;  %v6487_v8 = vld [vmem:[#allocation11 + $0x48] sm:$0xf]  ;;  %v7288_v56 = vor.u32 %v8706_v4, %v7287_v11 }
 0x5c8   :  { %v8506_v58 = vld [vmem:[#allocation11 + $0x64] sm:$0xf0] }
 0x5c9   :  { %5712 = vmatpush.bf16.msra.mxu2 %v7128_v60  ;;  %5687 = vmatpush.bf16.msra.mxu0 %v6584_v43  ;;  %v6743_v31 = vld [vmem:[#allocation11 + $0x248] sm:$0xf]  ;;  %v6488_v9 = vor.u32 %v8506_v58, %v6487_v8 }
 0x5ca   :  { %v8570_v36 = vld [vmem:[#allocation11 + $0x264] sm:$0xf0] }
 0x5cb   :  { %5725 = vmatpush.bf16.msra.mxu3 %v7384_v27  ;;  %5700 = vmatpush.bf16.msra.mxu1 %v6840_v1  ;;  %v6999_v39 = vld [vmem:[#allocation11 + $0x448] sm:$0xf]  ;;  %v6744_v26 = vor.u32 %v8570_v36, %v6743_v31 }
 0x5cc   :  { %v8634_v32 = vld [vmem:[#allocation11 + $0x464] sm:$0xf0] }
 0x5cd   :  { %5713 = vmatpush.bf16.msra.mxu2 %v7096_v37  ;;  %5688 = vmatpush.bf16.msra.mxu0 %v6552_v24  ;;  %v7255_v33 = vld [vmem:[#allocation11 + $0x648] sm:$0xf]  ;;  %v7000_v63 = vor.u32 %v8634_v32, %v6999_v39 }
 0x5ce   :  { %v8698_v49 = vld [vmem:[#allocation11 + $0x664] sm:$0xf0] }
 0x5cf   :  { %5726 = vmatpush.bf16.msra.mxu3 %v7352_v7  ;;  %5701 = vmatpush.bf16.msra.mxu1 %v6808_v30  ;;  %v6455_v46 = vld [vmem:[#allocation11 + $0x8] sm:$0xf]  ;;  %v7256_v34 = vor.u32 %v8698_v49, %v7255_v33 }
 0x5d0   :  { %v8498_v12 = vld [vmem:[#allocation11 + $0x24] sm:$0xf0] }
 0x5d1   :  { %5714 = vmatpush.bf16.msra.mxu2 %v7064_v18  ;;  %5689 = vmatpush.bf16.msra.mxu0 %v6520_v13  ;;  %v6711_v14 = vld [vmem:[#allocation11 + $0x208] sm:$0xf]  ;;  %v6456_v17 = vor.u32 %v8498_v12, %v6455_v46 }
 0x5d2   :  { %v8562_v54 = vld [vmem:[#allocation11 + $0x224] sm:$0xf0] }
 0x5d3   :  { %5727 = vmatpush.bf16.msra.mxu3 %v7320_v15  ;;  %5702 = vmatpush.bf16.msra.mxu1 %v6776_v45  ;;  %v6967_v35 = vld [vmem:[#allocation11 + $0x408] sm:$0xf]  ;;  %v6712_v0 = vor.u32 %v8562_v54, %v6711_v14 }
 0x5d4   :  { %v8626_v59 = vld [vmem:[#allocation11 + $0x424] sm:$0xf0] }
 0x5d5   :  { %5715 = vmatpush.bf16.msra.mxu2 %v7032_v55  ;;  %v7223_v44 = vld [vmem:[#allocation11 + $0x608] sm:$0xf]  ;;  %5690 = vmatpush.bf16.msra.mxu0 %v6488_v9  ;;  %v6968_v23 = vor.u32 %v8626_v59, %v6967_v35 }
 0x5d6   :  { %v8690_v51 = vld [vmem:[#allocation11 + $0x624] sm:$0xf0] }
 0x5d7   :  { %5728 = vmatpush.bf16.msra.mxu3 %v7288_v56  ;;  %v7703_v21 = vld [vmem:[#allocation11 + $0x9c8] sm:$0xf]  ;;  %5703 = vmatpush.bf16.msra.mxu1 %v6744_v26  ;;  %v7224_v43 = vor.u32 %v8690_v51, %v7223_v44 }
 0x5d8   :  { %v8810_v53 = vld [vmem:[#allocation11 + $0x9e4] sm:$0xf0] }
 0x5d9   :  { %v7959_v16 = vld [vmem:[#allocation11 + $0xbc8] sm:$0xf]  ;;  %5716 = vmatpush.bf16.msra.mxu2 %v7000_v63  ;;  %v7704_v1 = vor.u32 %v8810_v53, %v7703_v21  ;;  %5691 = vmatpush.bf16.msra.mxu0 %v6456_v17 }
 0x5da   :  { %v8874_v60 = vld [vmem:[#allocation11 + $0xbe4] sm:$0xf0] }
 0x5db   :  { %v8215_v27 = vld [vmem:[#allocation11 + $0xdc8] sm:$0xf]  ;;  %5729 = vmatpush.bf16.msra.mxu3 %v7256_v34  ;;  %v7960_v5 = vor.u32 %v8874_v60, %v7959_v16  ;;  %5704 = vmatpush.bf16.msra.mxu1 %v6712_v0 }
 0x5dc   :  { %v8938_v52 = vld [vmem:[#allocation11 + $0xde4] sm:$0xf0]  ;;  %5692 = vmatmul.bf16.vlgmr.msra.gmra.mxu0 %v11923_v25 }
 0x5dd   :  { %v8471_v61 = vld [vmem:[#allocation11 + $0xfc8] sm:$0xf]  ;;  %v8216_v7 = vor.u32 %v8938_v52, %v8215_v27  ;;  %5717 = vmatpush.bf16.msra.mxu2 %v6968_v23  ;;  %5736 = vmatpush.bf16.msrb.mxu0 %v7704_v1 }
 0x5de   :  { %v9002_v40 = vld [vmem:[#allocation11 + $0xfe4] sm:$0xf0]  ;;  %5705 = vmatmul.bf16.vlgmr.msra.gmra.mxu1 %v11925_v38 }
 0x5df   :  { %v7671_v41 = vld [vmem:[#allocation11 + $0x988] sm:$0xf]  ;;  %v8472_v28 = vor.u32 %v9002_v40, %v8471_v61  ;;  %5730 = vmatpush.bf16.msra.mxu3 %v7224_v43  ;;  %5749 = vmatpush.bf16.msrb.mxu1 %v7960_v5 }
 0x5e0   :  { %v8802_v37 = vld [vmem:[#allocation11 + $0x9a4] sm:$0xf0]  ;;  %5718 = vmatmul.bf16.vlgmr.msra.gmra.mxu2 %v11927_v50 }
 0x5e1   :  { %v7927_v10 = vld [vmem:[#allocation11 + $0xb88] sm:$0xf]  ;;  %v7672_v30 = vor.u32 %v8802_v37, %v7671_v41  ;;  %5762 = vmatpush.bf16.msrb.mxu2 %v8216_v7 }
 0x5e2   :  { %v8866_v6 = vld [vmem:[#allocation11 + $0xba4] sm:$0xf0]  ;;  %5731 = vmatmul.bf16.vlgmr.msra.gmra.mxu3 %v11931_v19 }
 0x5e3   :  { %v8183_v57 = vld [vmem:[#allocation11 + $0xd88] sm:$0xf]  ;;  %v7928_v62 = vor.u32 %v8866_v6, %v7927_v10  ;;  %5775 = vmatpush.bf16.msrb.mxu3 %v8472_v28  ;;  %5737 = vmatpush.bf16.msrb.mxu0 %v7672_v30 }
 0x5e4   :  { %v8930_v47 = vld [vmem:[#allocation11 + $0xda4] sm:$0xf0] }
 0x5e5   :  { %v8439_v22 = vld [vmem:[#allocation11 + $0xf88] sm:$0xf]  ;;  %v8184_v15 = vor.u32 %v8930_v47, %v8183_v57  ;;  %5750 = vmatpush.bf16.msrb.mxu1 %v7928_v62 }
 0x5e6   :  { %v8994_v24 = vld [vmem:[#allocation11 + $0xfa4] sm:$0xf0] }
 0x5e7   :  { %v7639_v29 = vld [vmem:[#allocation11 + $0x948] sm:$0xf]  ;;  %v8440_v48 = vor.u32 %v8994_v24, %v8439_v22  ;;  %5763 = vmatpush.bf16.msrb.mxu2 %v8184_v15 }
 0x5e8   :  { %v8794_v18 = vld [vmem:[#allocation11 + $0x964] sm:$0xf0] }
 0x5e9   :  { %v7895_v2 = vld [vmem:[#allocation11 + $0xb48] sm:$0xf]  ;;  %v7640_v45 = vor.u32 %v8794_v18, %v7639_v29  ;;  %5776 = vmatpush.bf16.msrb.mxu3 %v8440_v48 }
 0x5ea   :  { %v8858_v42 = vld [vmem:[#allocation11 + $0xb64] sm:$0xf0] }
 0x5eb   :  { %v8151_v3 = vld [vmem:[#allocation11 + $0xd48] sm:$0xf]  ;;  %v7896_v8 = vor.u32 %v8858_v42, %v7895_v2  ;;  %5738 = vmatpush.bf16.msrb.mxu0 %v7640_v45  ;;  %v6937_v45 = vld [vmem:[#allocation11 + $0x3e8] sm:$0xf0] }
 0x5ec   :  { %v8922_v11 = vld [vmem:[#allocation11 + $0xd64] sm:$0xf0] }
 0x5ed   :  { %v8407_v4 = vld [vmem:[#allocation11 + $0xf48] sm:$0xf]  ;;  %v8152_v56 = vor.u32 %v8922_v11, %v8151_v3  ;;  %5751 = vmatpush.bf16.msrb.mxu1 %v7896_v8  ;;  %v8550_v11 = vld [vmem:[#allocation11 + $0x1cc] sm:$0xf] }
 0x5ee   :  { %v8986_v13 = vld [vmem:[#allocation11 + $0xf64] sm:$0xf0]  ;;  %v8678_v8 = vld [vmem:[#allocation11 + $0x5cc] sm:$0xf] }
 0x5ef   :  { %v7607_v58 = vld [vmem:[#allocation11 + $0x908] sm:$0xf]  ;;  %v8408_v31 = vor.u32 %v8986_v13, %v8407_v4  ;;  %5764 = vmatpush.bf16.msrb.mxu2 %v8152_v56  ;;  %v6681_v4 = vld [vmem:[#allocation11 + $0x1e8] sm:$0xf0] }
 0x5f0   :  { %v8786_v55 = vld [vmem:[#allocation11 + $0x924] sm:$0xf0]  ;;  %v8614_v13 = vld [vmem:[#allocation11 + $0x3cc] sm:$0xf] }
 0x5f1   :  { %v7863_v25 = vld [vmem:[#allocation11 + $0xb08] sm:$0xf]  ;;  %v7608_v50 = vor.u32 %v8786_v55, %v7607_v58  ;;  %5777 = vmatpush.bf16.msrb.mxu3 %v8408_v31  ;;  %v7193_v56 = vld [vmem:[#allocation11 + $0x5e8] sm:$0xf0] }
 0x5f2   :  { %v8850_v36 = vld [vmem:[#allocation11 + $0xb24] sm:$0xf0]  ;;  %v8742_v31 = vld [vmem:[#allocation11 + $0x7cc] sm:$0xf] }
 0x5f3   :  { %v8119_v38 = vld [vmem:[#allocation11 + $0xd08] sm:$0xf]  ;;  %v7864_v19 = vor.u32 %v8850_v36, %v7863_v25  ;;  %5739 = vmatpush.bf16.msrb.mxu0 %v7608_v50  ;;  %v7449_v25 = vld [vmem:[#allocation11 + $0x7e8] sm:$0xf0] }
 0x5f4   :  { %v8914_v39 = vld [vmem:[#allocation11 + $0xd24] sm:$0xf0]  ;;  %v6649_v50 = vld [vmem:[#allocation11 + $0x1a8] sm:$0xf0] }
 0x5f5   :  { %v8375_v32 = vld [vmem:[#allocation11 + $0xf08] sm:$0xf]  ;;  %v8120_v9 = vor.u32 %v8914_v39, %v8119_v38  ;;  %5752 = vmatpush.bf16.msrb.mxu1 %v7864_v19  ;;  %v6684_v39 = vor.u32 %v8550_v11, %v6681_v4  ;;  %v7196_v19 = vor.u32 %v8678_v8, %v7193_v56  ;;  %v8646_v8 = vld [vmem:[#allocation11 + $0x4cc] sm:$0xf] }
 0x5f6   :  { %v8978_v33 = vld [vmem:[#allocation11 + $0xf24] sm:$0xf0]  ;;  %v7321_v56 = vld [vmem:[#allocation11 + $0x6e8] sm:$0xf0] }
 0x5f7   :  { %v7575_v49 = vld [vmem:[#allocation11 + $0x8c8] sm:$0xf]  ;;  %v8376_v26 = vor.u32 %v8978_v33, %v8375_v32  ;;  %5765 = vmatpush.bf16.msrb.mxu2 %v8120_v9  ;;  %v6940_v32 = vor.u32 %v8614_v13, %v6937_v45  ;;  %v8542_v33 = vld [vmem:[#allocation11 + $0x18c] sm:$0xf] }
 0x5f8   :  { %v8778_v46 = vld [vmem:[#allocation11 + $0x8e4] sm:$0xf0]  ;;  %v6905_v9 = vld [vmem:[#allocation11 + $0x3a8] sm:$0xf0] }
 0x5f9   :  { %v7831_v12 = vld [vmem:[#allocation11 + $0xac8] sm:$0xf]  ;;  %v7576_v59 = vor.u32 %v8778_v46, %v7575_v49  ;;  %5778 = vmatpush.bf16.msrb.mxu3 %v8376_v26  ;;  %v7452_v49 = vor.u32 %v8742_v31, %v7449_v25  ;;  %v8606_v46 = vld [vmem:[#allocation11 + $0x38c] sm:$0xf] }
 0x5fa   :  { %v8842_v14 = vld [vmem:[#allocation11 + $0xae4] sm:$0xf0]  ;;  %v8670_v26 = vld [vmem:[#allocation11 + $0x58c] sm:$0xf] }
 0x5fb   :  { %v8087_v54 = vld [vmem:[#allocation11 + $0xcc8] sm:$0xf]  ;;  %v7832_v44 = vor.u32 %v8842_v14, %v7831_v12  ;;  %5740 = vmatpush.bf16.msrb.mxu0 %v7576_v59  ;;  %v5485_v12 = vpop.f32.mrf.mxu0  ;;  %v5498_v14 = vpop.f32.mrf.mxu1  ;;  %v6652_v59 = vor.u32 %v8542_v33, %v6649_v50  ;;  %v8582_v13 = vld [vmem:[#allocation11 + $0x2cc] sm:$0xf] }
 0x5fc   :  { %v8906_v63 = vld [vmem:[#allocation11 + $0xce4] sm:$0xf0]  ;;  %v6809_v45 = vld [vmem:[#allocation11 + $0x2e8] sm:$0xf0] }
 0x5fd   :  { %v8343_v34 = vld [vmem:[#allocation11 + $0xec8] sm:$0xf]  ;;  %v8088_v53 = vor.u32 %v8906_v63, %v8087_v54  ;;  %5753 = vmatpush.bf16.msrb.mxu1 %v7832_v44  ;;  %v7161_v54 = vld [vmem:[#allocation11 + $0x5a8] sm:$0xf0]  ;;  %v6908_v44 = vor.u32 %v8606_v46, %v6905_v9  ;;  %v6812_v25 = vor.u32 %v8582_v13, %v6809_v45 }
 0x5fe   :  { %v8970_v35 = vld [vmem:[#allocation11 + $0xee4] sm:$0xf0]  ;;  %v8734_v63 = vld [vmem:[#allocation11 + $0x78c] sm:$0xf] }
 0x5ff   :  { %v7543_v51 = vld [vmem:[#allocation11 + $0x888] sm:$0xf]  ;;  %v8344_v16 = vor.u32 %v8970_v35, %v8343_v34  ;;  %5766 = vmatpush.bf16.msrb.mxu2 %v8088_v53  ;;  %v7417_v34 = vld [vmem:[#allocation11 + $0x7a8] sm:$0xf0]  ;;  %v5499_v35 = vadd.f32 %v5498_v14, %v5485_v12  ;;  %v7164_v53 = vor.u32 %v8670_v26, %v7161_v54 }
 0x600   :  { %v8770_v21 = vld [vmem:[#allocation11 + $0x8a4] sm:$0xf0]  ;;  %v8574_v50 = vld [vmem:[#allocation11 + $0x28c] sm:$0xf] }
 0x601   :  { %v7799_v60 = vld [vmem:[#allocation11 + $0xa88] sm:$0xf]  ;;  %v7544_v40 = vor.u32 %v8770_v21, %v7543_v51  ;;  %5779 = vmatpush.bf16.msrb.mxu3 %v8344_v16  ;;  %v8534_v51 = vld [vmem:[#allocation11 + $0x14c] sm:$0xf]  ;;  %v7420_v16 = vor.u32 %v8734_v63, %v7417_v34 }
 0x602   :  { %v8834_v27 = vld [vmem:[#allocation11 + $0xaa4] sm:$0xf0]  ;;  %v6617_v21 = vld [vmem:[#allocation11 + $0x168] sm:$0xf0] }
 0x603   :  { %v8055_v17 = vld [vmem:[#allocation11 + $0xc88] sm:$0xf]  ;;  %v7800_v23 = vor.u32 %v8834_v27, %v7799_v60  ;;  %5741 = vmatpush.bf16.msrb.mxu0 %v7544_v40  ;;  %v8598_v60 = vld [vmem:[#allocation11 + $0x34c] sm:$0xf] }
 0x604   :  { %v8898_v0 = vld [vmem:[#allocation11 + $0xca4] sm:$0xf0]  ;;  %v6873_v27 = vld [vmem:[#allocation11 + $0x368] sm:$0xf0] }
 0x605   :  { %v8311_v52 = vld [vmem:[#allocation11 + $0xe88] sm:$0xf]  ;;  %v8056_v5 = vor.u32 %v8898_v0, %v8055_v17  ;;  %5754 = vmatpush.bf16.msrb.mxu1 %v7800_v23  ;;  %v8662_v17 = vld [vmem:[#allocation11 + $0x54c] sm:$0xf] }
 0x606   :  { %v8962_v61 = vld [vmem:[#allocation11 + $0xea4] sm:$0xf0]  ;;  %v8726_v40 = vld [vmem:[#allocation11 + $0x74c] sm:$0xf] }
 0x607   :  { %v7511_v43 = vld [vmem:[#allocation11 + $0x848] sm:$0xf]  ;;  %v8312_v41 = vor.u32 %v8962_v61, %v8311_v52  ;;  %5767 = vmatpush.bf16.msrb.mxu2 %v8056_v5  ;;  %v11962_v52 = vld [vmem:[#allocation1 + $0x2d] sm:$0xff]  ;;  %v7129_v61 = vld [vmem:[#allocation11 + $0x568] sm:$0xf0]  ;;  %v6876_v5 = vor.u32 %v8598_v60, %v6873_v27 }
 0x608   :  { %v8762_v1 = vld [vmem:[#allocation11 + $0x864] sm:$0xf0]  ;;  %v7385_v23 = vld [vmem:[#allocation11 + $0x768] sm:$0xf0] }
 0x609   :  { %v7767_v37 = vld [vmem:[#allocation11 + $0xa48] sm:$0xf]  ;;  %v7512_v22 = vor.u32 %v8762_v1, %v7511_v43  ;;  %5780 = vmatpush.bf16.msrb.mxu3 %v8312_v41  ;;  %v11965_v43 = vld [vmem:[#allocation1 + $0x36] sm:$0xff]  ;;  %v6620_v1 = vor.u32 %v8534_v51, %v6617_v21  ;;  %v8526_v41 = vld [vmem:[#allocation11 + $0x10c] sm:$0xf] }
 0x60a   :  { %v8826_v7 = vld [vmem:[#allocation11 + $0xa64] sm:$0xf0]  ;;  %v7033_v9 = vld [vmem:[#allocation11 + $0x4a8] sm:$0xf0] }
 0x60b   :  { %v8023_v28 = vld [vmem:[#allocation11 + $0xc48] sm:$0xf]  ;;  %v7768_v24 = vor.u32 %v8826_v7, %v7767_v37  ;;  %5742 = vmatpush.bf16.msrb.mxu0 %v7512_v22  ;;  %v6585_v37 = vld [vmem:[#allocation11 + $0x128] sm:$0xf0]  ;;  %v5511_v7 = vpop.f32.mrf.mxu2 }
 0x60c   :  { %v8890_v10 = vld [vmem:[#allocation11 + $0xc64] sm:$0xf0]  ;;  %v5512_v22 = vadd.f32 %v5511_v7, %v5499_v35  ;;  %v8702_v26 = vld [vmem:[#allocation11 + $0x68c] sm:$0xf] }
 0x60d   :  { %v8279_v6 = vld [vmem:[#allocation11 + $0xe48] sm:$0xf]  ;;  %v8024_v18 = vor.u32 %v8890_v10, %v8023_v28  ;;  %5755 = vmatpush.bf16.msrb.mxu1 %v7768_v24  ;;  %v7132_v28 = vor.u32 %v8662_v17, %v7129_v61  ;;  %v7388_v10 = vor.u32 %v8726_v40, %v7385_v23  ;;  %v5524_v24 = vpop.f32.mrf.mxu3  ;;  %v7289_v12 = vld [vmem:[#allocation11 + $0x6a8] sm:$0xf0] }
 0x60e   :  { %v8954_v57 = vld [vmem:[#allocation11 + $0xe64] sm:$0xf0]  ;;  %v7292_v21 = vor.u32 %v8702_v26, %v7289_v12  ;;  %v8630_v60 = vld [vmem:[#allocation11 + $0x44c] sm:$0xf] }
 0x60f   :  { %v7479_v47 = vld [vmem:[#allocation11 + $0x808] sm:$0xf]  ;;  %v8280_v15 = vor.u32 %v8954_v57, %v8279_v6  ;;  %5768 = vmatpush.bf16.msrb.mxu2 %v8024_v18  ;;  %v8590_v6 = vld [vmem:[#allocation11 + $0x30c] sm:$0xf]  ;;  %v5500_v18 = vpop.f32.mrf.mxu1 }
 0x610   :  { %v8754_v30 = vld [vmem:[#allocation11 + $0x824] sm:$0xf0]  ;;  %v6841_v57 = vld [vmem:[#allocation11 + $0x328] sm:$0xf0] }
 0x611   :  { %v7735_v62 = vld [vmem:[#allocation11 + $0xa08] sm:$0xf]  ;;  %v7480_v58 = vor.u32 %v8754_v30, %v7479_v47  ;;  %5781 = vmatpush.bf16.msrb.mxu3 %v8280_v15  ;;  %v8654_v47 = vld [vmem:[#allocation11 + $0x50c] sm:$0xf]  ;;  %v5487_v30 = vpop.f32.mrf.mxu0  ;;  %v5525_v15 = vadd.f32 %v5524_v24, %v5512_v22 }
 0x612   :  { %v8818_v29 = vld [vmem:[#allocation11 + $0xa24] sm:$0xf0]  ;;  %v7001_v17 = vld [vmem:[#allocation11 + $0x468] sm:$0xf0] }
 0x613   :  { %v7991_v48 = vld [vmem:[#allocation11 + $0xc08] sm:$0xf]  ;;  %v7736_v55 = vor.u32 %v8818_v29, %v7735_v62  ;;  %5743 = vmatpush.bf16.msrb.mxu0 %v7480_v58  ;;  %v7097_v62 = vld [vmem:[#allocation11 + $0x528] sm:$0xf0] }
 0x614   :  { %v8882_v2 = vld [vmem:[#allocation11 + $0xc24] sm:$0xf0]  ;;  %v8718_v29 = vld [vmem:[#allocation11 + $0x70c] sm:$0xf]  ;;  %v7100_v11 = vor.u32 %v8654_v47, %v7097_v62 }
 0x615   :  { %v8247_v42 = vld [vmem:[#allocation11 + $0xe08] sm:$0xf]  ;;  %v7992_v36 = vor.u32 %v8882_v2, %v7991_v48  ;;  %5756 = vmatpush.bf16.msrb.mxu1 %v7736_v55  ;;  %v6588_v48 = vor.u32 %v8526_v41, %v6585_v37  ;;  %v6844_v2 = vor.u32 %v8590_v6, %v6841_v57  ;;  %v7065_v58 = vld [vmem:[#allocation11 + $0x4e8] sm:$0xf0]  ;;  %v5526_v46 = vpop.f32.mrf.mxu3 }
 0x616   :  { %v8946_v3 = vld [vmem:[#allocation11 + $0xe24] sm:$0xf0]  ;;  %v8710_v55 = vld [vmem:[#allocation11 + $0x6cc] sm:$0xf] }
 0x617   :  { %v8248_v38 = vor.u32 %v8946_v3, %v8247_v42  ;;  %5769 = vmatpush.bf16.msrb.mxu2 %v7992_v36  ;;  %5788 = vmatpush.bf16.msra.mxu0 %v6684_v39  ;;  %v11959_v0 = vld [vmem:[#allocation1 + $0x24] sm:$0xff]  ;;  %v5513_v39 = vpop.f32.mrf.mxu2  ;;  %v7324_v33 = vor.u32 %v8710_v55, %v7321_v56  ;;  %v5550_v63 = vpop.f32.mrf.mxu1 }
 0x618   :  { %5744 = vmatmul.bf16.vlgmr.msrb.gmra.mxu0 %v11959_v0  ;;  %5757 = vmatmul.bf16.vlgmr.msrb.gmra.mxu1 %v11962_v52  ;;  %v8518_v42 = vld [vmem:[#allocation11 + $0xcc] sm:$0xf] }
 0x619   :  { %5782 = vmatpush.bf16.msrb.mxu3 %v8248_v38  ;;  %5801 = vmatpush.bf16.msra.mxu1 %v6940_v32  ;;  %v6553_v3 = vld [vmem:[#allocation11 + $0xe8] sm:$0xf0]  ;;  %v7068_v32 = vor.u32 %v8646_v8, %v7065_v58  ;;  %v5537_v14 = vpop.f32.mrf.mxu0 }
 0x61a   :  { %5770 = vmatmul.bf16.vlgmr.msrb.gmra.mxu2 %v11965_v43  ;;  %v6556_v31 = vor.u32 %v8518_v42, %v6553_v3  ;;  %v8510_v36 = vld [vmem:[#allocation11 + $0x8c] sm:$0xf]  ;;  %v5538_v54 = vadd.f32 %v5537_v14, %v5525_v15 }
 0x61b   :  { %5814 = vmatpush.bf16.msra.mxu2 %v7196_v19  ;;  %5789 = vmatpush.bf16.msra.mxu0 %v6652_v59  ;;  %v6521_v38 = vld [vmem:[#allocation11 + $0xa8] sm:$0xf0] }
 0x61c   :  { %5783 = vmatmul.bf16.vlgmr.msrb.gmra.mxu3 %v11943_v20  ;;  %v7353_v20 = vld [vmem:[#allocation11 + $0x728] sm:$0xf0]  ;;  %v6524_v34 = vor.u32 %v8510_v36, %v6521_v38  ;;  %v5551_v27 = vadd.f32 %v5550_v63, %v5538_v54 }
 0x61d   :  { %5827 = vmatpush.bf16.msra.mxu3 %v7452_v49  ;;  %5802 = vmatpush.bf16.msra.mxu1 %v6908_v44  ;;  %v7356_v4 = vor.u32 %v8718_v29, %v7353_v20  ;;  %v6777_v19 = vld [vmem:[#allocation11 + $0x2a8] sm:$0xf0]  ;;  %v5576_v29 = vpop.f32.mrf.mxu3 }
 0x61e   :  { %v8638_v49 = vld [vmem:[#allocation11 + $0x48c] sm:$0xf]  ;;  %v6780_v35 = vor.u32 %v8574_v50, %v6777_v19 }
 0x61f   :  { %5815 = vmatpush.bf16.msra.mxu2 %v7164_v53  ;;  %5790 = vmatpush.bf16.msra.mxu0 %v6620_v1  ;;  %v8502_v59 = vld [vmem:[#allocation11 + $0x4c] sm:$0xf]  ;;  %v7036_v51 = vor.u32 %v8638_v49, %v7033_v9  ;;  %v5563_v62 = vpop.f32.mrf.mxu2  ;;  %v5552_v42 = vpop.f32.mrf.mxu1 }
 0x620   :  { %v6489_v44 = vld [vmem:[#allocation11 + $0x68] sm:$0xf0] }
 0x621   :  { %5828 = vmatpush.bf16.msra.mxu3 %v7420_v16  ;;  %5803 = vmatpush.bf16.msra.mxu1 %v6876_v5  ;;  %v8566_v53 = vld [vmem:[#allocation11 + $0x24c] sm:$0xf]  ;;  %v6492_v1 = vor.u32 %v8502_v59, %v6489_v44 }
 0x622   :  { %v6745_v16 = vld [vmem:[#allocation11 + $0x268] sm:$0xf0] }
 0x623   :  { %5816 = vmatpush.bf16.msra.mxu2 %v7132_v28  ;;  %5791 = vmatpush.bf16.msra.mxu0 %v6588_v48  ;;  %v8694_v61 = vld [vmem:[#allocation11 + $0x64c] sm:$0xf]  ;;  %v6748_v5 = vor.u32 %v8566_v53, %v6745_v16  ;;  %v7004_v28 = vor.u32 %v8630_v60, %v7001_v17  ;;  %v5564_v48 = vadd.f32 %v5563_v62, %v5551_v27  ;;  %v11977_v17 = vld [vmem:[#allocation1 + $0x12] sm:$0xff] }
 0x624   :  { %v7257_v40 = vld [vmem:[#allocation11 + $0x668] sm:$0xf0] }
 0x625   :  { %5829 = vmatpush.bf16.msra.mxu3 %v7388_v10  ;;  %5804 = vmatpush.bf16.msra.mxu1 %v6844_v2  ;;  %v8494_v23 = vld [vmem:[#allocation11 + $0xc] sm:$0xf]  ;;  %v7260_v10 = vor.u32 %v8694_v61, %v7257_v40  ;;  %v5539_v2 = vpop.f32.mrf.mxu0  ;;  %v11969_v55 = vadd.f32 %v5576_v29, %v5564_v48  ;;  %v5578_v63 = vpop.f32.mrf.mxu3  ;;  %v11980_v61 = vld [vmem:[#allocation1 + $0x1b] sm:$0xff] }
 0x626   :  { %v6457_v41 = vld [vmem:[#allocation11 + $0x28] sm:$0xf0] }
 0x627   :  { %5817 = vmatpush.bf16.msra.mxu2 %v7100_v11  ;;  %5792 = vmatpush.bf16.msra.mxu0 %v6556_v31  ;;  %v8558_v37 = vld [vmem:[#allocation11 + $0x20c] sm:$0xf]  ;;  %v6460_v3 = vor.u32 %v8494_v23, %v6457_v41  ;;  %v5565_v54 = vpop.f32.mrf.mxu2 }
 0x628   :  { %v6713_v7 = vld [vmem:[#allocation11 + $0x228] sm:$0xf0] }
 0x629   :  { %5830 = vmatpush.bf16.msra.mxu3 %v7356_v4  ;;  %5805 = vmatpush.bf16.msra.mxu1 %v6812_v25  ;;  %v8622_v6 = vld [vmem:[#allocation11 + $0x40c] sm:$0xf]  ;;  %v6716_v11 = vor.u32 %v8558_v37, %v6713_v7 }
 0x62a   :  { %v6969_v57 = vld [vmem:[#allocation11 + $0x428] sm:$0xf0] }
 0x62b   :  { %5818 = vmatpush.bf16.msra.mxu2 %v7068_v32  ;;  %5793 = vmatpush.bf16.msra.mxu0 %v6524_v34  ;;  %v8686_v47 = vld [vmem:[#allocation11 + $0x60c] sm:$0xf]  ;;  %v6972_v8 = vor.u32 %v8622_v6, %v6969_v57 }
 0x62c   :  { %v7225_v22 = vld [vmem:[#allocation11 + $0x628] sm:$0xf0] }
 0x62d   :  { %5831 = vmatpush.bf16.msra.mxu3 %v7324_v33  ;;  %5806 = vmatpush.bf16.msra.mxu1 %v6780_v35  ;;  %v8806_v24 = vld [vmem:[#allocation11 + $0x9cc] sm:$0xf]  ;;  %v7228_v58 = vor.u32 %v8686_v47, %v7225_v22  ;;  %v5589_v22 = vpop.f32.mrf.mxu0 }
 0x62e   :  { %v7705_v30 = vld [vmem:[#allocation11 + $0x9e8] sm:$0xf0] }
 0x62f   :  { %5819 = vmatpush.bf16.msra.mxu2 %v7036_v51  ;;  %v8870_v20 = vld [vmem:[#allocation11 + $0xbcc] sm:$0xf]  ;;  %5794 = vmatpush.bf16.msra.mxu0 %v6492_v1  ;;  %v7708_v56 = vor.u32 %v8806_v24, %v7705_v30  ;;  %v5602_v24 = vpop.f32.mrf.mxu1 }
 0x630   :  { %v7961_v18 = vld [vmem:[#allocation11 + $0xbe8] sm:$0xf0]  ;;  %v5603_v30 = vadd.f32 %v5602_v24, %v5589_v22 }
 0x631   :  { %5832 = vmatpush.bf16.msra.mxu3 %v7292_v21  ;;  %v8934_v15 = vld [vmem:[#allocation11 + $0xdcc] sm:$0xf]  ;;  %5807 = vmatpush.bf16.msra.mxu1 %v6748_v5  ;;  %v7964_v31 = vor.u32 %v8870_v20, %v7961_v18 }
 0x632   :  { %v8217_v4 = vld [vmem:[#allocation11 + $0xde8] sm:$0xf0] }
 0x633   :  { %v8998_v13 = vld [vmem:[#allocation11 + $0xfcc] sm:$0xf]  ;;  %5820 = vmatpush.bf16.msra.mxu2 %v7004_v28  ;;  %v8220_v38 = vor.u32 %v8934_v15, %v8217_v4  ;;  %5795 = vmatpush.bf16.msra.mxu0 %v6460_v3 }
 0x634   :  { %v8473_v45 = vld [vmem:[#allocation11 + $0xfe8] sm:$0xf0] }
 0x635   :  { %5833 = vmatpush.bf16.msra.mxu3 %v7260_v10  ;;  %v8798_v25 = vld [vmem:[#allocation11 + $0x98c] sm:$0xf]  ;;  %v8476_v39 = vor.u32 %v8998_v13, %v8473_v45  ;;  %5808 = vmatpush.bf16.msra.mxu1 %v6716_v11 }
 0x636   :  { %v7673_v36 = vld [vmem:[#allocation11 + $0x9a8] sm:$0xf0] }
 0x637   :  { %v8862_v32 = vld [vmem:[#allocation11 + $0xb8c] sm:$0xf]  ;;  %5821 = vmatpush.bf16.msra.mxu2 %v6972_v8  ;;  %5840 = vmatpush.bf16.msrb.mxu0 %v7708_v56  ;;  %v7676_v9 = vor.u32 %v8798_v25, %v7673_v36 }
 0x638   :  { %v7929_v33 = vld [vmem:[#allocation11 + $0xba8] sm:$0xf0] }
 0x639   :  { %v8926_v50 = vld [vmem:[#allocation11 + $0xd8c] sm:$0xf]  ;;  %5834 = vmatpush.bf16.msra.mxu3 %v7228_v58  ;;  %5853 = vmatpush.bf16.msrb.mxu1 %v7964_v31  ;;  %v7932_v26 = vor.u32 %v8862_v32, %v7929_v33  ;;  %v5615_v32 = vpop.f32.mrf.mxu2  ;;  %v5628_v33 = vpop.f32.mrf.mxu3 }
 0x63a   :  { %v8185_v19 = vld [vmem:[#allocation11 + $0xda8] sm:$0xf0]  ;;  %5822 = vmatmul.bf16.vlgmr.msra.gmra.mxu2 %v11977_v17 }
 0x63b   :  { %v8990_v49 = vld [vmem:[#allocation11 + $0xf8c] sm:$0xf]  ;;  %5866 = vmatpush.bf16.msrb.mxu2 %v8220_v38  ;;  %v8188_v34 = vor.u32 %v8926_v50, %v8185_v19  ;;  %5841 = vmatpush.bf16.msrb.mxu0 %v7676_v9  ;;  %v5591_v9 = vpop.f32.mrf.mxu0 }
 0x63c   :  { %v8441_v46 = vld [vmem:[#allocation11 + $0xfa8] sm:$0xf0]  ;;  %5835 = vmatmul.bf16.vlgmr.msra.gmra.mxu3 %v11980_v61  ;;  %v8539_v9 = vld [vmem:[#allocation11 + $0x16c] sm:$0xf0] }
 0x63d   :  { %v8790_v12 = vld [vmem:[#allocation11 + $0x94c] sm:$0xf]  ;;  %5879 = vmatpush.bf16.msrb.mxu3 %v8476_v39  ;;  %v8444_v35 = vor.u32 %v8990_v49, %v8441_v46  ;;  %5854 = vmatpush.bf16.msrb.mxu1 %v7932_v26  ;;  %v5616_v46 = vadd.f32 %v5615_v32, %v5603_v30  ;;  %v5604_v26 = vpop.f32.mrf.mxu1  ;;  %v8675_v32 = vld [vmem:[#allocation11 + $0x5ac] sm:$0xf0] }
 0x63e   :  { %v7641_v14 = vld [vmem:[#allocation11 + $0x968] sm:$0xf0] }
 0x63f   :  { %v8854_v59 = vld [vmem:[#allocation11 + $0xb4c] sm:$0xf]  ;;  %v7644_v40 = vor.u32 %v8790_v12, %v7641_v14  ;;  %5867 = vmatpush.bf16.msrb.mxu2 %v8188_v34  ;;  %v11983_v34 = vadd.f32 %v5628_v33, %v5616_v46  ;;  %v7423_v33 = vld [vmem:[#allocation11 + $0x790] sm:$0xf] }
 0x640   :  { %v7897_v44 = vld [vmem:[#allocation11 + $0xb68] sm:$0xf0]  ;;  %v6623_v46 = vld [vmem:[#allocation11 + $0x150] sm:$0xf] }
 0x641   :  { %v8918_v51 = vld [vmem:[#allocation11 + $0xd4c] sm:$0xf]  ;;  %v7900_v23 = vor.u32 %v8854_v59, %v7897_v44  ;;  %5880 = vmatpush.bf16.msrb.mxu3 %v8444_v35  ;;  %5842 = vmatpush.bf16.msrb.mxu0 %v7644_v40  ;;  %v5617_v22 = vpop.f32.mrf.mxu2  ;;  %v5630_v24 = vpop.f32.mrf.mxu3 }
 0x642   :  { %v11971_v21 = vld [vmem:[#allocation1] sm:$0xff]  ;;  %v11974_v53 = vld [vmem:[#allocation1 + $0x9] sm:$0xff] }
 0x643   :  { %5796 = vmatmul.bf16.vlgmr.msra.gmra.mxu0 %v11971_v21  ;;  %5809 = vmatmul.bf16.vlgmr.msra.gmra.mxu1 %v11974_v53  ;;  %v8153_v16 = vld [vmem:[#allocation11 + $0xd68] sm:$0xf0]  ;;  %v8523_v22 = vld [vmem:[#allocation11 + $0xec] sm:$0xf0] }
 0x644   :  { %v8982_v60 = vld [vmem:[#allocation11 + $0xf4c] sm:$0xf]  ;;  %v8156_v41 = vor.u32 %v8918_v51, %v8153_v16  ;;  %5855 = vmatpush.bf16.msrb.mxu1 %v7900_v23 }
 0x645   :  { %v8409_v27 = vld [vmem:[#allocation11 + $0xf68] sm:$0xf0] }
 0x646   :  { %v8782_v1 = vld [vmem:[#allocation11 + $0x90c] sm:$0xf]  ;;  %v8412_v37 = vor.u32 %v8982_v60, %v8409_v27  ;;  %5868 = vmatpush.bf16.msrb.mxu2 %v8156_v41 }
 0x647   :  { %v7609_v5 = vld [vmem:[#allocation11 + $0x928] sm:$0xf0] }
 0x648   :  { %v8846_v7 = vld [vmem:[#allocation11 + $0xb0c] sm:$0xf]  ;;  %v7612_v62 = vor.u32 %v8782_v1, %v7609_v5  ;;  %5881 = vmatpush.bf16.msrb.mxu3 %v8412_v37 }
 0x649   :  { %v7865_v28 = vld [vmem:[#allocation11 + $0xb28] sm:$0xf0] }
 0x64a   :  { %v8910_v10 = vld [vmem:[#allocation11 + $0xd0c] sm:$0xf]  ;;  %v7868_v29 = vor.u32 %v8846_v7, %v7865_v28  ;;  %5843 = vmatpush.bf16.msrb.mxu0 %v7612_v62  ;;  %v6687_v62 = vld [vmem:[#allocation11 + $0x1d0] sm:$0xf] }
 0x64b   :  { %v8121_v6 = vld [vmem:[#allocation11 + $0xd28] sm:$0xf0] }
 0x64c   :  { %v8974_v57 = vld [vmem:[#allocation11 + $0xf0c] sm:$0xf]  ;;  %v8124_v15 = vor.u32 %v8910_v10, %v8121_v6  ;;  %5856 = vmatpush.bf16.msrb.mxu1 %v7868_v29  ;;  %v8555_v29 = vld [vmem:[#allocation11 + $0x1ec] sm:$0xf0] }
 0x64d   :  { %v8377_v47 = vld [vmem:[#allocation11 + $0xf28] sm:$0xf0] }
 0x64e   :  { %v8774_v20 = vld [vmem:[#allocation11 + $0x8cc] sm:$0xf]  ;;  %v8380_v48 = vor.u32 %v8974_v57, %v8377_v47  ;;  %5869 = vmatpush.bf16.msrb.mxu2 %v8124_v15  ;;  %v7199_v15 = vld [vmem:[#allocation11 + $0x5d0] sm:$0xf] }
 0x64f   :  { %v7577_v18 = vld [vmem:[#allocation11 + $0x8e8] sm:$0xf0] }
 0x650   :  { %v8838_v2 = vld [vmem:[#allocation11 + $0xacc] sm:$0xf]  ;;  %v7580_v45 = vor.u32 %v8774_v20, %v7577_v18  ;;  %5882 = vmatpush.bf16.msrb.mxu3 %v8380_v48  ;;  %v6943_v20 = vld [vmem:[#allocation11 + $0x3d0] sm:$0xf] }
 0x651   :  { %v7833_v42 = vld [vmem:[#allocation11 + $0xae8] sm:$0xf0]  ;;  %v8619_v18 = vld [vmem:[#allocation11 + $0x3ec] sm:$0xf0] }
 0x652   :  { %v8902_v3 = vld [vmem:[#allocation11 + $0xccc] sm:$0xf]  ;;  %v7836_v8 = vor.u32 %v8838_v2, %v7833_v42  ;;  %5844 = vmatpush.bf16.msrb.mxu0 %v7580_v45  ;;  %v8683_v42 = vld [vmem:[#allocation11 + $0x5ec] sm:$0xf0]  ;;  %v6688_v45 = vor.u32 %v8555_v29, %v6687_v62 }
 0x653   :  { %v8089_v11 = vld [vmem:[#allocation11 + $0xce8] sm:$0xf0]  ;;  %v6815_v62 = vld [vmem:[#allocation11 + $0x2d0] sm:$0xf] }
 0x654   :  { %v8966_v4 = vld [vmem:[#allocation11 + $0xecc] sm:$0xf]  ;;  %v8092_v31 = vor.u32 %v8902_v3, %v8089_v11  ;;  %5857 = vmatpush.bf16.msrb.mxu1 %v7836_v8  ;;  %v7455_v3 = vld [vmem:[#allocation11 + $0x7d0] sm:$0xf]  ;;  %v6944_v8 = vor.u32 %v8619_v18, %v6943_v20 }
 0x655   :  { %v8345_v13 = vld [vmem:[#allocation11 + $0xee8] sm:$0xf0]  ;;  %v8747_v11 = vld [vmem:[#allocation11 + $0x7ec] sm:$0xf0] }
 0x656   :  { %v8766_v58 = vld [vmem:[#allocation11 + $0x88c] sm:$0xf]  ;;  %v8348_v25 = vor.u32 %v8966_v4, %v8345_v13  ;;  %5870 = vmatpush.bf16.msrb.mxu2 %v8092_v31  ;;  %v7200_v31 = vor.u32 %v8683_v42, %v7199_v15  ;;  %v8587_v29 = vld [vmem:[#allocation11 + $0x2ec] sm:$0xf0] }
 0x657   :  { %v7545_v56 = vld [vmem:[#allocation11 + $0x8a8] sm:$0xf0]  ;;  %v7071_v20 = vld [vmem:[#allocation11 + $0x4d0] sm:$0xf] }
 0x658   :  { %v8830_v36 = vld [vmem:[#allocation11 + $0xa8c] sm:$0xf]  ;;  %v7548_v12 = vor.u32 %v8766_v58, %v7545_v56  ;;  %5883 = vmatpush.bf16.msrb.mxu3 %v8348_v25  ;;  %v6655_v58 = vld [vmem:[#allocation11 + $0x190] sm:$0xf]  ;;  %v7456_v25 = vor.u32 %v8747_v11, %v7455_v3  ;;  %v6816_v3 = vor.u32 %v8587_v29, %v6815_v62 }
 0x659   :  { %v7801_v38 = vld [vmem:[#allocation11 + $0xaa8] sm:$0xf0]  ;;  %v8547_v56 = vld [vmem:[#allocation11 + $0x1ac] sm:$0xf0] }
 0x65a   :  { %v8894_v39 = vld [vmem:[#allocation11 + $0xc8c] sm:$0xf]  ;;  %v7804_v14 = vor.u32 %v8830_v36, %v7801_v38  ;;  %5845 = vmatpush.bf16.msrb.mxu0 %v7548_v12  ;;  %v6911_v36 = vld [vmem:[#allocation11 + $0x390] sm:$0xf] }
 0x65b   :  { %v8057_v50 = vld [vmem:[#allocation11 + $0xca8] sm:$0xf0]  ;;  %v8611_v38 = vld [vmem:[#allocation11 + $0x3ac] sm:$0xf0] }
 0x65c   :  { %v8958_v19 = vld [vmem:[#allocation11 + $0xe8c] sm:$0xf]  ;;  %v8060_v35 = vor.u32 %v8894_v39, %v8057_v50  ;;  %5858 = vmatpush.bf16.msrb.mxu1 %v7804_v14  ;;  %v7167_v39 = vld [vmem:[#allocation11 + $0x590] sm:$0xf] }
 0x65d   :  { %v8313_v49 = vld [vmem:[#allocation11 + $0xea8] sm:$0xf0]  ;;  %v8739_v50 = vld [vmem:[#allocation11 + $0x7ac] sm:$0xf0]  ;;  %v7168_v26 = vor.u32 %v8675_v32, %v7167_v39 }
 0x65e   :  { %v8758_v54 = vld [vmem:[#allocation11 + $0x84c] sm:$0xf]  ;;  %v8316_v59 = vor.u32 %v8958_v19, %v8313_v49  ;;  %5871 = vmatpush.bf16.msrb.mxu2 %v8060_v35  ;;  %v6656_v19 = vor.u32 %v8547_v56, %v6655_v58  ;;  %v6912_v49 = vor.u32 %v8611_v38, %v6911_v36  ;;  %v7424_v12 = vor.u32 %v8739_v50, %v7423_v33  ;;  %v6879_v14 = vld [vmem:[#allocation11 + $0x350] sm:$0xf]  ;;  %v5667_v56 = vpop.f32.mrf.mxu2 }
 0x65f   :  { %v7513_v63 = vld [vmem:[#allocation11 + $0x868] sm:$0xf0]  ;;  %v8667_v35 = vld [vmem:[#allocation11 + $0x56c] sm:$0xf0] }
 0x660   :  { %v8822_v44 = vld [vmem:[#allocation11 + $0xa4c] sm:$0xf]  ;;  %v7516_v1 = vor.u32 %v8758_v54, %v7513_v63  ;;  %5884 = vmatpush.bf16.msrb.mxu3 %v8316_v59  ;;  %v8603_v54 = vld [vmem:[#allocation11 + $0x36c] sm:$0xf0] }
 0x661   :  { %v7769_v51 = vld [vmem:[#allocation11 + $0xa68] sm:$0xf0]  ;;  %v7135_v63 = vld [vmem:[#allocation11 + $0x550] sm:$0xf] }
 0x662   :  { %v8886_v16 = vld [vmem:[#allocation11 + $0xc4c] sm:$0xf]  ;;  %v7772_v5 = vor.u32 %v8822_v44, %v7769_v51  ;;  %5846 = vmatpush.bf16.msrb.mxu0 %v7516_v1  ;;  %v7391_v59 = vld [vmem:[#allocation11 + $0x750] sm:$0xf] }
 0x663   :  { %v8025_v60 = vld [vmem:[#allocation11 + $0xc68] sm:$0xf0]  ;;  %v8731_v44 = vld [vmem:[#allocation11 + $0x76c] sm:$0xf0] }
 0x664   :  { %v8950_v27 = vld [vmem:[#allocation11 + $0xe4c] sm:$0xf]  ;;  %v8028_v28 = vor.u32 %v8886_v16, %v8025_v60  ;;  %5859 = vmatpush.bf16.msrb.mxu1 %v7772_v5  ;;  %v6624_v16 = vor.u32 %v8539_v9, %v6623_v46  ;;  %v6880_v60 = vor.u32 %v8603_v54, %v6879_v14  ;;  %v8595_v1 = vld [vmem:[#allocation11 + $0x32c] sm:$0xf0] }
 0x665   :  { %v8281_v40 = vld [vmem:[#allocation11 + $0xe68] sm:$0xf0]  ;;  %v7103_v5 = vld [vmem:[#allocation11 + $0x510] sm:$0xf] }
 0x666   :  { %v8750_v23 = vld [vmem:[#allocation11 + $0x80c] sm:$0xf]  ;;  %v8284_v10 = vor.u32 %v8950_v27, %v8281_v40  ;;  %5872 = vmatpush.bf16.msrb.mxu2 %v8028_v28  ;;  %v6591_v27 = vld [vmem:[#allocation11 + $0x110] sm:$0xf]  ;;  %v5654_v28 = vpop.f32.mrf.mxu1 }
 0x667   :  { %v7481_v41 = vld [vmem:[#allocation11 + $0x828] sm:$0xf0]  ;;  %v8531_v40 = vld [vmem:[#allocation11 + $0x12c] sm:$0xf0] }
 0x668   :  { %v8814_v37 = vld [vmem:[#allocation11 + $0xa0c] sm:$0xf]  ;;  %v7484_v48 = vor.u32 %v8750_v23, %v7481_v41  ;;  %5885 = vmatpush.bf16.msrb.mxu3 %v8284_v10  ;;  %v7392_v23 = vor.u32 %v8731_v44, %v7391_v59  ;;  %v8659_v41 = vld [vmem:[#allocation11 + $0x52c] sm:$0xf0] }
 0x669   :  { %v7737_v7 = vld [vmem:[#allocation11 + $0xa28] sm:$0xf0]  ;;  %v7104_v24 = vor.u32 %v8659_v41, %v7103_v5  ;;  %v8651_v15 = vld [vmem:[#allocation11 + $0x4ec] sm:$0xf0] }
 0x66a   :  { %v8878_v6 = vld [vmem:[#allocation11 + $0xc0c] sm:$0xf]  ;;  %v7740_v2 = vor.u32 %v8814_v37, %v7737_v7  ;;  %5847 = vmatpush.bf16.msrb.mxu0 %v7484_v48  ;;  %v7359_v37 = vld [vmem:[#allocation11 + $0x710] sm:$0xf]  ;;  %v5641_v7 = vpop.f32.mrf.mxu0 }
 0x66b   :  { %v7993_v57 = vld [vmem:[#allocation11 + $0xc28] sm:$0xf0]  ;;  %v5642_v10 = vadd.f32 %v5641_v7, %v11983_v34  ;;  %v7327_v48 = vld [vmem:[#allocation11 + $0x6d0] sm:$0xf] }
 0x66c   :  { %v8942_v47 = vld [vmem:[#allocation11 + $0xe0c] sm:$0xf]  ;;  %v7996_v4 = vor.u32 %v8878_v6, %v7993_v57  ;;  %5860 = vmatpush.bf16.msrb.mxu1 %v7740_v2  ;;  %v6592_v6 = vor.u32 %v8531_v40, %v6591_v27  ;;  %v8715_v2 = vld [vmem:[#allocation11 + $0x6ec] sm:$0xf0] }
 0x66d   :  { %v8249_v30 = vld [vmem:[#allocation11 + $0xe28] sm:$0xf0]  ;;  %5848 = vmatmul.bf16.vlgmr.msrb.gmra.mxu0 %v11959_v0  ;;  %v7136_v0 = vor.u32 %v8667_v35, %v7135_v63  ;;  %v5655_v18 = vadd.f32 %v5654_v28, %v5642_v10  ;;  %v6527_v34 = vld [vmem:[#allocation11 + $0x90] sm:$0xf]  ;;  %v5669_v28 = vpop.f32.mrf.mxu2 }
 0x66e   :  { %v8252_v13 = vor.u32 %v8942_v47, %v8249_v30  ;;  %5873 = vmatpush.bf16.msrb.mxu2 %v7996_v4  ;;  %5892 = vmatpush.bf16.msra.mxu0 %v6688_v45  ;;  %v11988_v51 = vld [vmem:[#allocation1 + $0x3f] sm:$0xff]  ;;  %v6559_v47 = vld [vmem:[#allocation11 + $0xd0] sm:$0xf]  ;;  %v7072_v4 = vor.u32 %v8651_v15, %v7071_v20  ;;  %v5656_v33 = vpop.f32.mrf.mxu1 }
 0x66f   :  { %5861 = vmatmul.bf16.vlgmr.msrb.gmra.mxu1 %v11962_v52  ;;  %v6847_v52 = vld [vmem:[#allocation11 + $0x310] sm:$0xf]  ;;  %v6560_v42 = vor.u32 %v8523_v22, %v6559_v47  ;;  %v5668_v39 = vadd.f32 %v5667_v56, %v5655_v18 }
 0x670   :  { %5886 = vmatpush.bf16.msrb.mxu3 %v8252_v13  ;;  %5905 = vmatpush.bf16.msra.mxu1 %v6944_v8  ;;  %v6848_v57 = vor.u32 %v8595_v1, %v6847_v52  ;;  %v8515_v11 = vld [vmem:[#allocation11 + $0xac] sm:$0xf0]  ;;  %v7328_v13 = vor.u32 %v8715_v2, %v7327_v48 }
 0x671   :  { %5874 = vmatmul.bf16.vlgmr.msrb.gmra.mxu2 %v11965_v43  ;;  %v8723_v43 = vld [vmem:[#allocation11 + $0x72c] sm:$0xf0]  ;;  %v6528_v50 = vor.u32 %v8515_v11, %v6527_v34 }
 0x672   :  { %5918 = vmatpush.bf16.msra.mxu2 %v7200_v31  ;;  %5893 = vmatpush.bf16.msra.mxu0 %v6656_v19  ;;  %v7360_v30 = vor.u32 %v8723_v43, %v7359_v37  ;;  %v6783_v45 = vld [vmem:[#allocation11 + $0x290] sm:$0xf]  ;;  %v5680_v31 = vpop.f32.mrf.mxu3  ;;  %v5643_v32 = vpop.f32.mrf.mxu0 }
 0x673   :  { %5887 = vmatmul.bf16.vlgmr.msrb.gmra.mxu3 %v11988_v51  ;;  %v8579_v8 = vld [vmem:[#allocation11 + $0x2ac] sm:$0xf0]  ;;  %v5681_v9 = vadd.f32 %v5680_v31, %v5668_v39 }
 0x674   :  { %5931 = vmatpush.bf16.msra.mxu3 %v7456_v25  ;;  %5906 = vmatpush.bf16.msra.mxu1 %v6912_v49  ;;  %v7039_v58 = vld [vmem:[#allocation11 + $0x490] sm:$0xf]  ;;  %v6784_v19 = vor.u32 %v8579_v8, %v6783_v45 }
 0x675   :  { %v8643_v25 = vld [vmem:[#allocation11 + $0x4ac] sm:$0xf0] }
 0x676   :  { %5919 = vmatpush.bf16.msra.mxu2 %v7168_v26  ;;  %5894 = vmatpush.bf16.msra.mxu0 %v6624_v16  ;;  %v7295_v36 = vld [vmem:[#allocation11 + $0x690] sm:$0xf]  ;;  %v7040_v26 = vor.u32 %v8643_v25, %v7039_v58  ;;  %v6316_v16 = vrot.slane %v5681_v9, 7 }
 0x677   :  { %v8707_v38 = vld [vmem:[#allocation11 + $0x6ac] sm:$0xf0] }
 0x678   :  { %5932 = vmatpush.bf16.msra.mxu3 %v7424_v12  ;;  %5907 = vmatpush.bf16.msra.mxu1 %v6880_v60  ;;  %v6495_v49 = vld [vmem:[#allocation11 + $0x50] sm:$0xf]  ;;  %v7296_v12 = vor.u32 %v8707_v38, %v7295_v36  ;;  %v11994_v1 = vsel %vm12758_vm8, %v11969_v55, %v6316_v16 }
 0x679   :  { %v8507_v46 = vld [vmem:[#allocation11 + $0x6c] sm:$0xf0] }
 0x67a   :  { %5920 = vmatpush.bf16.msra.mxu2 %v7136_v0  ;;  %5895 = vmatpush.bf16.msra.mxu0 %v6592_v6  ;;  %v6751_v14 = vld [vmem:[#allocation11 + $0x250] sm:$0xf]  ;;  %v6496_v27 = vor.u32 %v8507_v46, %v6495_v49  ;;  %v5682_v10 = vpop.f32.mrf.mxu3 }
 0x67b   :  { %v8571_v54 = vld [vmem:[#allocation11 + $0x26c] sm:$0xf0] }
 0x67c   :  { %5933 = vmatpush.bf16.msra.mxu3 %v7392_v23  ;;  %5908 = vmatpush.bf16.msra.mxu1 %v6848_v57  ;;  %v7007_v63 = vld [vmem:[#allocation11 + $0x450] sm:$0xf]  ;;  %v6752_v40 = vor.u32 %v8571_v54, %v6751_v14 }
 0x67d   :  { %v8635_v35 = vld [vmem:[#allocation11 + $0x46c] sm:$0xf0] }
 0x67e   :  { %5921 = vmatpush.bf16.msra.mxu2 %v7104_v24  ;;  %5896 = vmatpush.bf16.msra.mxu0 %v6560_v42  ;;  %v7263_v59 = vld [vmem:[#allocation11 + $0x650] sm:$0xf]  ;;  %v7008_v5 = vor.u32 %v8635_v35, %v7007_v63 }
 0x67f   :  { %v8699_v44 = vld [vmem:[#allocation11 + $0x66c] sm:$0xf0] }
 0x680   :  { %5934 = vmatpush.bf16.msra.mxu3 %v7360_v30  ;;  %5909 = vmatpush.bf16.msra.mxu1 %v6816_v3  ;;  %v6463_v60 = vld [vmem:[#allocation11 + $0x10] sm:$0xf]  ;;  %v7264_v41 = vor.u32 %v8699_v44, %v7263_v59 }
 0x681   :  { %v8499_v0 = vld [vmem:[#allocation11 + $0x2c] sm:$0xf0] }
 0x682   :  { %5922 = vmatpush.bf16.msra.mxu2 %v7072_v4  ;;  %5897 = vmatpush.bf16.msra.mxu0 %v6528_v50  ;;  %v6719_v23 = vld [vmem:[#allocation11 + $0x210] sm:$0xf]  ;;  %v6464_v62 = vor.u32 %v8499_v0, %v6463_v60 }
 0x683   :  { %v8563_v52 = vld [vmem:[#allocation11 + $0x22c] sm:$0xf0] }
 0x684   :  { %5935 = vmatpush.bf16.msra.mxu3 %v7328_v13  ;;  %5910 = vmatpush.bf16.msra.mxu1 %v6784_v19  ;;  %v6975_v37 = vld [vmem:[#allocation11 + $0x410] sm:$0xf]  ;;  %v6720_v55 = vor.u32 %v8563_v52, %v6719_v23 }
 0x685   :  { %v8627_v43 = vld [vmem:[#allocation11 + $0x42c] sm:$0xf0] }
 0x686   :  { %5923 = vmatpush.bf16.msra.mxu2 %v7040_v26  ;;  %v7231_v7 = vld [vmem:[#allocation11 + $0x610] sm:$0xf]  ;;  %5898 = vmatpush.bf16.msra.mxu0 %v6496_v27  ;;  %v6976_v15 = vor.u32 %v8627_v43, %v6975_v37 }
 0x687   :  { %v8691_v6 = vld [vmem:[#allocation11 + $0x62c] sm:$0xf0] }
 0x688   :  { %5936 = vmatpush.bf16.msra.mxu3 %v7296_v12  ;;  %v7711_v57 = vld [vmem:[#allocation11 + $0x9d0] sm:$0xf]  ;;  %5911 = vmatpush.bf16.msra.mxu1 %v6752_v40  ;;  %v7232_v48 = vor.u32 %v8691_v6, %v7231_v7  ;;  %v5693_v40 = vpop.f32.mrf.mxu0 }
 0x689   :  { %v8811_v47 = vld [vmem:[#allocation11 + $0x9ec] sm:$0xf0] }
 0x68a   :  { %v7967_v22 = vld [vmem:[#allocation11 + $0xbd0] sm:$0xf]  ;;  %5924 = vmatpush.bf16.msra.mxu2 %v7008_v5  ;;  %v7712_v2 = vor.u32 %v8811_v47, %v7711_v57  ;;  %5899 = vmatpush.bf16.msra.mxu0 %v6464_v62 }
 0x68b   :  { %v8875_v24 = vld [vmem:[#allocation11 + $0xbec] sm:$0xf0] }
 0x68c   :  { %v8223_v30 = vld [vmem:[#allocation11 + $0xdd0] sm:$0xf]  ;;  %5937 = vmatpush.bf16.msra.mxu3 %v7264_v41  ;;  %v7968_v42 = vor.u32 %v8875_v24, %v7967_v22  ;;  %5912 = vmatpush.bf16.msra.mxu1 %v6720_v55 }
 0x68d   :  { %v8939_v29 = vld [vmem:[#allocation11 + $0xdec] sm:$0xf0]  ;;  %5900 = vmatmul.bf16.vlgmr.msra.gmra.mxu0 %v11971_v21 }
 0x68e   :  { %v8479_v20 = vld [vmem:[#allocation11 + $0xfd0] sm:$0xf]  ;;  %v8224_v11 = vor.u32 %v8939_v29, %v8223_v30  ;;  %5925 = vmatpush.bf16.msra.mxu2 %v6976_v15  ;;  %5944 = vmatpush.bf16.msrb.mxu0 %v7712_v2  ;;  %v5719_v15 = vpop.f32.mrf.mxu2 }
 0x68f   :  { %v9003_v18 = vld [vmem:[#allocation11 + $0xfec] sm:$0xf0]  ;;  %5913 = vmatmul.bf16.vlgmr.msra.gmra.mxu1 %v11974_v53 }
 0x690   :  { %v7679_v3 = vld [vmem:[#allocation11 + $0x990] sm:$0xf]  ;;  %v8480_v4 = vor.u32 %v9003_v18, %v8479_v20  ;;  %5938 = vmatpush.bf16.msra.mxu3 %v7232_v48  ;;  %5957 = vmatpush.bf16.msrb.mxu1 %v7968_v42  ;;  %v5732_v48 = vpop.f32.mrf.mxu3 }
 0x691   :  { %v8803_v34 = vld [vmem:[#allocation11 + $0x9ac] sm:$0xf0]  ;;  %5926 = vmatmul.bf16.vlgmr.msra.gmra.mxu2 %v11977_v17  ;;  %v5706_v17 = vpop.f32.mrf.mxu1 }
 0x692   :  { %v7935_v13 = vld [vmem:[#allocation11 + $0xb90] sm:$0xf]  ;;  %v7680_v25 = vor.u32 %v8803_v34, %v7679_v3  ;;  %5970 = vmatpush.bf16.msrb.mxu2 %v8224_v11  ;;  %v5695_v11 = vpop.f32.mrf.mxu0 }
 0x693   :  { %v8867_v45 = vld [vmem:[#allocation11 + $0xbac] sm:$0xf0]  ;;  %5939 = vmatmul.bf16.vlgmr.msra.gmra.mxu3 %v11980_v61  ;;  %v5707_v61 = vadd.f32 %v5706_v17, %v5693_v40  ;;  %v6945_v40 = vld [vmem:[#allocation11 + $0x3f0] sm:$0xf0] }
 0x694   :  { %v8191_v8 = vld [vmem:[#allocation11 + $0xd90] sm:$0xf]  ;;  %v7936_v36 = vor.u32 %v8867_v45, %v7935_v13  ;;  %5983 = vmatpush.bf16.msrb.mxu3 %v8480_v4  ;;  %5945 = vmatpush.bf16.msrb.mxu0 %v7680_v25  ;;  %v8679_v17 = vld [vmem:[#allocation11 + $0x5d4] sm:$0xf] }
 0x695   :  { %v8931_v58 = vld [vmem:[#allocation11 + $0xdac] sm:$0xf0]  ;;  %v5720_v34 = vadd.f32 %v5719_v15, %v5707_v61  ;;  %v6625_v15 = vld [vmem:[#allocation11 + $0x170] sm:$0xf0] }
 0x696   :  { %v8447_v56 = vld [vmem:[#allocation11 + $0xf90] sm:$0xf]  ;;  %v8192_v32 = vor.u32 %v8931_v58, %v8191_v8  ;;  %5958 = vmatpush.bf16.msrb.mxu1 %v7936_v36 }
 0x697   :  { %v8995_v31 = vld [vmem:[#allocation11 + $0xfac] sm:$0xf0] }
 0x698   :  { %v7647_v38 = vld [vmem:[#allocation11 + $0x950] sm:$0xf]  ;;  %v8448_v33 = vor.u32 %v8995_v31, %v8447_v56  ;;  %5971 = vmatpush.bf16.msrb.mxu2 %v8192_v32  ;;  %v12000_v56 = vadd.f32 %v5732_v48, %v5720_v34  ;;  %v8663_v34 = vld [vmem:[#allocation11 + $0x554] sm:$0xf] }
 0x699   :  { %v8795_v39 = vld [vmem:[#allocation11 + $0x96c] sm:$0xf0]  ;;  %v5708_v4 = vpop.f32.mrf.mxu1 }
 0x69a   :  { %v7903_v50 = vld [vmem:[#allocation11 + $0xb50] sm:$0xf]  ;;  %v7648_v12 = vor.u32 %v8795_v39, %v7647_v38  ;;  %5984 = vmatpush.bf16.msrb.mxu3 %v8448_v33 }
 0x69b   :  { %v8859_v19 = vld [vmem:[#allocation11 + $0xb6c] sm:$0xf0] }
 0x69c   :  { %v8159_v49 = vld [vmem:[#allocation11 + $0xd50] sm:$0xf]  ;;  %v7904_v14 = vor.u32 %v8859_v19, %v7903_v50  ;;  %5946 = vmatpush.bf16.msrb.mxu0 %v7648_v12 }
 0x69d   :  { %v8923_v46 = vld [vmem:[#allocation11 + $0xd6c] sm:$0xf0] }
 0x69e   :  { %v8415_v9 = vld [vmem:[#allocation11 + $0xf50] sm:$0xf]  ;;  %v8160_v35 = vor.u32 %v8923_v46, %v8159_v49  ;;  %5959 = vmatpush.bf16.msrb.mxu1 %v7904_v14 }
 0x69f   :  { %v8987_v26 = vld [vmem:[#allocation11 + $0xf6c] sm:$0xf0] }
 0x6a0   :  { %v7615_v54 = vld [vmem:[#allocation11 + $0x910] sm:$0xf]  ;;  %v8416_v59 = vor.u32 %v8987_v26, %v8415_v9  ;;  %5972 = vmatpush.bf16.msrb.mxu2 %v8160_v35 }
 0x6a1   :  { %v8787_v63 = vld [vmem:[#allocation11 + $0x92c] sm:$0xf0] }
 0x6a2   :  { %v7871_v21 = vld [vmem:[#allocation11 + $0xb10] sm:$0xf]  ;;  %v7616_v0 = vor.u32 %v8787_v63, %v7615_v54  ;;  %5985 = vmatpush.bf16.msrb.mxu3 %v8416_v59 }
 0x6a3   :  { %v8851_v44 = vld [vmem:[#allocation11 + $0xb2c] sm:$0xf0] }
 0x6a4   :  { %v8127_v53 = vld [vmem:[#allocation11 + $0xd10] sm:$0xf]  ;;  %v7872_v23 = vor.u32 %v8851_v44, %v7871_v21  ;;  %5947 = vmatpush.bf16.msrb.mxu0 %v7616_v0  ;;  %v5721_v21 = vpop.f32.mrf.mxu2  ;;  %v5734_v44 = vpop.f32.mrf.mxu3 }
 0x6a5   :  { %v8915_v16 = vld [vmem:[#allocation11 + $0xd2c] sm:$0xf0]  ;;  %v8583_v44 = vld [vmem:[#allocation11 + $0x2d4] sm:$0xf] }
 0x6a6   :  { %v8383_v60 = vld [vmem:[#allocation11 + $0xf10] sm:$0xf]  ;;  %v8128_v41 = vor.u32 %v8915_v16, %v8127_v53  ;;  %5960 = vmatpush.bf16.msrb.mxu1 %v7872_v23  ;;  %v8551_v16 = vld [vmem:[#allocation11 + $0x1d4] sm:$0xf] }
 0x6a7   :  { %v8979_v27 = vld [vmem:[#allocation11 + $0xf2c] sm:$0xf0]  ;;  %v7201_v23 = vld [vmem:[#allocation11 + $0x5f0] sm:$0xf0] }
 0x6a8   :  { %v7583_v52 = vld [vmem:[#allocation11 + $0x8d0] sm:$0xf]  ;;  %v8384_v37 = vor.u32 %v8979_v27, %v8383_v60  ;;  %5973 = vmatpush.bf16.msrb.mxu2 %v8128_v41  ;;  %v6689_v60 = vld [vmem:[#allocation11 + $0x1f0] sm:$0xf0] }
 0x6a9   :  { %v8779_v5 = vld [vmem:[#allocation11 + $0x8ec] sm:$0xf0]  ;;  %v8615_v27 = vld [vmem:[#allocation11 + $0x3d4] sm:$0xf] }
 0x6aa   :  { %v7839_v43 = vld [vmem:[#allocation11 + $0xad0] sm:$0xf]  ;;  %v7584_v47 = vor.u32 %v8779_v5, %v7583_v52  ;;  %5986 = vmatpush.bf16.msrb.mxu3 %v8384_v37  ;;  %v8743_v52 = vld [vmem:[#allocation11 + $0x7d4] sm:$0xf] }
 0x6ab   :  { %v8843_v7 = vld [vmem:[#allocation11 + $0xaec] sm:$0xf0]  ;;  %v7457_v5 = vld [vmem:[#allocation11 + $0x7f0] sm:$0xf0] }
 0x6ac   :  { %v8095_v28 = vld [vmem:[#allocation11 + $0xcd0] sm:$0xf]  ;;  %v7840_v22 = vor.u32 %v8843_v7, %v7839_v43  ;;  %5948 = vmatpush.bf16.msrb.mxu0 %v7584_v47  ;;  %v6692_v43 = vor.u32 %v8551_v16, %v6689_v60  ;;  %v6948_v7 = vor.u32 %v8615_v27, %v6945_v40  ;;  %v8607_v47 = vld [vmem:[#allocation11 + $0x394] sm:$0xf] }
 0x6ad   :  { %v8907_v10 = vld [vmem:[#allocation11 + $0xcec] sm:$0xf0]  ;;  %v8647_v16 = vld [vmem:[#allocation11 + $0x4d4] sm:$0xf] }
 0x6ae   :  { %v8351_v6 = vld [vmem:[#allocation11 + $0xed0] sm:$0xf]  ;;  %v8096_v62 = vor.u32 %v8907_v10, %v8095_v28  ;;  %5961 = vmatpush.bf16.msrb.mxu1 %v7840_v22  ;;  %v8543_v28 = vld [vmem:[#allocation11 + $0x194] sm:$0xf] }
 0x6af   :  { %v8971_v57 = vld [vmem:[#allocation11 + $0xeec] sm:$0xf0]  ;;  %v6657_v10 = vld [vmem:[#allocation11 + $0x1b0] sm:$0xf0] }
 0x6b0   :  { %v7551_v24 = vld [vmem:[#allocation11 + $0x890] sm:$0xf]  ;;  %v8352_v55 = vor.u32 %v8971_v57, %v8351_v6  ;;  %5974 = vmatpush.bf16.msrb.mxu2 %v8096_v62  ;;  %v7204_v6 = vor.u32 %v8679_v17, %v7201_v23  ;;  %v7460_v57 = vor.u32 %v8743_v52, %v7457_v5  ;;  %v6913_v22 = vld [vmem:[#allocation11 + $0x3b0] sm:$0xf0] }
 0x6b1   :  { %v8771_v30 = vld [vmem:[#allocation11 + $0x8ac] sm:$0xf0]  ;;  %v8735_v62 = vld [vmem:[#allocation11 + $0x794] sm:$0xf] }
 0x6b2   :  { %v7807_v29 = vld [vmem:[#allocation11 + $0xa90] sm:$0xf]  ;;  %v7552_v13 = vor.u32 %v8771_v30, %v7551_v24  ;;  %5987 = vmatpush.bf16.msrb.mxu3 %v8352_v55  ;;  %v8671_v24 = vld [vmem:[#allocation11 + $0x594] sm:$0xf] }
 0x6b3   :  { %v8835_v20 = vld [vmem:[#allocation11 + $0xaac] sm:$0xf0]  ;;  %v7169_v30 = vld [vmem:[#allocation11 + $0x5b0] sm:$0xf0] }
 0x6b4   :  { %v8063_v18 = vld [vmem:[#allocation11 + $0xc90] sm:$0xf]  ;;  %v7808_v45 = vor.u32 %v8835_v20, %v7807_v29  ;;  %5949 = vmatpush.bf16.msrb.mxu0 %v7552_v13  ;;  %v7425_v55 = vld [vmem:[#allocation11 + $0x7b0] sm:$0xf0]  ;;  %v6660_v29 = vor.u32 %v8543_v28, %v6657_v10  ;;  %v6916_v20 = vor.u32 %v8607_v47, %v6913_v22  ;;  %v7172_v48 = vor.u32 %v8671_v24, %v7169_v30  ;;  %v5784_v28 = vpop.f32.mrf.mxu3 }
 0x6b5   :  { %v8899_v2 = vld [vmem:[#allocation11 + $0xcac] sm:$0xf0]  ;;  %v7137_v13 = vld [vmem:[#allocation11 + $0x570] sm:$0xf0] }
 0x6b6   :  { %v8319_v42 = vld [vmem:[#allocation11 + $0xe90] sm:$0xf]  ;;  %v8064_v31 = vor.u32 %v8899_v2, %v8063_v18  ;;  %5962 = vmatpush.bf16.msrb.mxu1 %v7808_v45  ;;  %v8535_v18 = vld [vmem:[#allocation11 + $0x154] sm:$0xf]  ;;  %v7428_v2 = vor.u32 %v8735_v62, %v7425_v55 }
 0x6b7   :  { %v8963_v3 = vld [vmem:[#allocation11 + $0xeac] sm:$0xf0]  ;;  %v8727_v45 = vld [vmem:[#allocation11 + $0x754] sm:$0xf] }
 0x6b8   :  { %v7519_v8 = vld [vmem:[#allocation11 + $0x850] sm:$0xf]  ;;  %v8320_v25 = vor.u32 %v8963_v3, %v8319_v42  ;;  %5975 = vmatpush.bf16.msrb.mxu2 %v8064_v31  ;;  %v8599_v42 = vld [vmem:[#allocation11 + $0x354] sm:$0xf]  ;;  %v6628_v31 = vor.u32 %v8535_v18, %v6625_v15 }
 0x6b9   :  { %v8763_v58 = vld [vmem:[#allocation11 + $0x86c] sm:$0xf0]  ;;  %v6881_v3 = vld [vmem:[#allocation11 + $0x370] sm:$0xf0] }
 0x6ba   :  { %v7775_v36 = vld [vmem:[#allocation11 + $0xa50] sm:$0xf]  ;;  %v7520_v49 = vor.u32 %v8763_v58, %v7519_v8  ;;  %5988 = vmatpush.bf16.msrb.mxu3 %v8320_v25  ;;  %v7393_v8 = vld [vmem:[#allocation11 + $0x770] sm:$0xf0]  ;;  %v12008_v58 = vld [vmem:[#allocation1 + $0x36] sm:$0xff]  ;;  %v6884_v25 = vor.u32 %v8599_v42, %v6881_v3 }
 0x6bb   :  { %v8827_v38 = vld [vmem:[#allocation11 + $0xa6c] sm:$0xf0]  ;;  %v7073_v27 = vld [vmem:[#allocation11 + $0x4f0] sm:$0xf0] }
 0x6bc   :  { %v8031_v39 = vld [vmem:[#allocation11 + $0xc50] sm:$0xf]  ;;  %v7776_v46 = vor.u32 %v8827_v38, %v7775_v36  ;;  %5950 = vmatpush.bf16.msrb.mxu0 %v7520_v49  ;;  %v8527_v36 = vld [vmem:[#allocation11 + $0x114] sm:$0xf]  ;;  %v7076_v52 = vor.u32 %v8647_v16, %v7073_v27 }
 0x6bd   :  { %v8891_v32 = vld [vmem:[#allocation11 + $0xc6c] sm:$0xf0]  ;;  %v6593_v38 = vld [vmem:[#allocation11 + $0x130] sm:$0xf0] }
 0x6be   :  { %v8287_v33 = vld [vmem:[#allocation11 + $0xe50] sm:$0xf]  ;;  %v8032_v14 = vor.u32 %v8891_v32, %v8031_v39  ;;  %5963 = vmatpush.bf16.msrb.mxu1 %v7776_v46  ;;  %v7140_v39 = vor.u32 %v8663_v34, %v7137_v13  ;;  %v7396_v32 = vor.u32 %v8727_v45, %v7393_v8  ;;  %v7105_v49 = vld [vmem:[#allocation11 + $0x530] sm:$0xf0] }
 0x6bf   :  { %v8955_v50 = vld [vmem:[#allocation11 + $0xe6c] sm:$0xf0]  ;;  %v8719_v46 = vld [vmem:[#allocation11 + $0x714] sm:$0xf] }
 0x6c0   :  { %v7487_v19 = vld [vmem:[#allocation11 + $0x810] sm:$0xf]  ;;  %v8288_v54 = vor.u32 %v8955_v50, %v8287_v33  ;;  %5976 = vmatpush.bf16.msrb.mxu2 %v8032_v14  ;;  %v8591_v33 = vld [vmem:[#allocation11 + $0x314] sm:$0xf]  ;;  %v6596_v14 = vor.u32 %v8527_v36, %v6593_v38 }
 0x6c1   :  { %v8755_v9 = vld [vmem:[#allocation11 + $0x82c] sm:$0xf0]  ;;  %v6849_v50 = vld [vmem:[#allocation11 + $0x330] sm:$0xf0] }
 0x6c2   :  { %v7743_v26 = vld [vmem:[#allocation11 + $0xa10] sm:$0xf]  ;;  %v7488_v61 = vor.u32 %v8755_v9, %v7487_v19  ;;  %5989 = vmatpush.bf16.msrb.mxu3 %v8288_v54  ;;  %v8655_v19 = vld [vmem:[#allocation11 + $0x514] sm:$0xf]  ;;  %v6852_v54 = vor.u32 %v8591_v33, %v6849_v50 }
 0x6c3   :  { %v8819_v12 = vld [vmem:[#allocation11 + $0xa2c] sm:$0xf0]  ;;  %v7361_v9 = vld [vmem:[#allocation11 + $0x730] sm:$0xf0] }
 0x6c4   :  { %v7999_v63 = vld [vmem:[#allocation11 + $0xc10] sm:$0xf]  ;;  %v7744_v0 = vor.u32 %v8819_v12, %v7743_v26  ;;  %5951 = vmatpush.bf16.msrb.mxu0 %v7488_v61  ;;  %v5745_v26 = vpop.f32.mrf.mxu0  ;;  %v5758_v12 = vpop.f32.mrf.mxu1  ;;  %v7364_v21 = vor.u32 %v8719_v46, %v7361_v9  ;;  %v8711_v40 = vld [vmem:[#allocation11 + $0x6d4] sm:$0xf] }
 0x6c5   :  { %v8883_v35 = vld [vmem:[#allocation11 + $0xc2c] sm:$0xf0]  ;;  %v7329_v17 = vld [vmem:[#allocation11 + $0x6f0] sm:$0xf0]  ;;  %v5786_v46 = vpop.f32.mrf.mxu3 }
 0x6c6   :  { %v8255_v59 = vld [vmem:[#allocation11 + $0xe10] sm:$0xf]  ;;  %v8000_v41 = vor.u32 %v8883_v35, %v7999_v63  ;;  %5964 = vmatpush.bf16.msrb.mxu1 %v7744_v0  ;;  %v8519_v63 = vld [vmem:[#allocation11 + $0xd4] sm:$0xf]  ;;  %v7332_v5 = vor.u32 %v8711_v40, %v7329_v17 }
 0x6c7   :  { %v8947_v53 = vld [vmem:[#allocation11 + $0xe2c] sm:$0xf0]  ;;  %v6561_v35 = vld [vmem:[#allocation11 + $0xf0] sm:$0xf0] }
 0x6c8   :  { %v8256_v37 = vor.u32 %v8947_v53, %v8255_v59  ;;  %5977 = vmatpush.bf16.msrb.mxu2 %v8000_v41  ;;  %5996 = vmatpush.bf16.msra.mxu0 %v6692_v43  ;;  %v12002_v11 = vld [vmem:[#allocation1 + $0x24] sm:$0xff]  ;;  %v12005_v4 = vld [vmem:[#allocation1 + $0x2d] sm:$0xff]  ;;  %v7108_v59 = vor.u32 %v8655_v19, %v7105_v49  ;;  %v6564_v61 = vor.u32 %v8519_v63, %v6561_v35 }
 0x6c9   :  { %5952 = vmatmul.bf16.vlgmr.msrb.gmra.mxu0 %v12002_v11  ;;  %5965 = vmatmul.bf16.vlgmr.msrb.gmra.mxu1 %v12005_v4  ;;  %v6817_v53 = vld [vmem:[#allocation11 + $0x2f0] sm:$0xf0] }
 0x6ca   :  { %5990 = vmatpush.bf16.msrb.mxu3 %v8256_v37  ;;  %6009 = vmatpush.bf16.msra.mxu1 %v6948_v7  ;;  %v6820_v0 = vor.u32 %v8583_v44, %v6817_v53  ;;  %v6529_v23 = vld [vmem:[#allocation11 + $0xb0] sm:$0xf0]  ;;  %v5771_v7 = vpop.f32.mrf.mxu2 }
 0x6cb   :  { %5978 = vmatmul.bf16.vlgmr.msrb.gmra.mxu2 %v12008_v58  ;;  %v8575_v41 = vld [vmem:[#allocation11 + $0x294] sm:$0xf] }
 0x6cc   :  { %6022 = vmatpush.bf16.msra.mxu2 %v7204_v6  ;;  %5997 = vmatpush.bf16.msra.mxu0 %v6660_v29  ;;  %v6785_v37 = vld [vmem:[#allocation11 + $0x2b0] sm:$0xf0]  ;;  %v5747_v22 = vpop.f32.mrf.mxu0  ;;  %v5760_v24 = vpop.f32.mrf.mxu1 }
 0x6cd   :  { %5991 = vmatmul.bf16.vlgmr.msrb.gmra.mxu3 %v11988_v51  ;;  %v5746_v51 = vadd.f32 %v5745_v26, %v12000_v56  ;;  %v8511_v56 = vld [vmem:[#allocation11 + $0x94] sm:$0xf]  ;;  %v6788_v62 = vor.u32 %v8575_v41, %v6785_v37 }
 0x6ce   :  { %6035 = vmatpush.bf16.msra.mxu3 %v7460_v57  ;;  %6010 = vmatpush.bf16.msra.mxu1 %v6916_v20  ;;  %v8639_v43 = vld [vmem:[#allocation11 + $0x494] sm:$0xf]  ;;  %v6532_v30 = vor.u32 %v8511_v56, %v6529_v23 }
 0x6cf   :  { %v5759_v60 = vadd.f32 %v5758_v12, %v5746_v51  ;;  %v7041_v10 = vld [vmem:[#allocation11 + $0x4b0] sm:$0xf0] }
 0x6d0   :  { %6023 = vmatpush.bf16.msra.mxu2 %v7172_v48  ;;  %5998 = vmatpush.bf16.msra.mxu0 %v6628_v31  ;;  %v8703_v6 = vld [vmem:[#allocation11 + $0x694] sm:$0xf]  ;;  %v7044_v18 = vor.u32 %v8639_v43, %v7041_v10 }
 0x6d1   :  { %v7297_v57 = vld [vmem:[#allocation11 + $0x6b0] sm:$0xf0]  ;;  %v5772_v47 = vadd.f32 %v5771_v7, %v5759_v60 }
 0x6d2   :  { %6036 = vmatpush.bf16.msra.mxu3 %v7428_v2  ;;  %6011 = vmatpush.bf16.msra.mxu1 %v6884_v25  ;;  %v8503_v55 = vld [vmem:[#allocation11 + $0x54] sm:$0xf]  ;;  %v7300_v15 = vor.u32 %v8703_v6, %v7297_v57  ;;  %v5773_v49 = vpop.f32.mrf.mxu2 }
 0x6d3   :  { %v6497_v29 = vld [vmem:[#allocation11 + $0x70] sm:$0xf0]  ;;  %v12013_v20 = vadd.f32 %v5784_v28, %v5772_v47 }
 0x6d4   :  { %6024 = vmatpush.bf16.msra.mxu2 %v7140_v39  ;;  %5999 = vmatpush.bf16.msra.mxu0 %v6596_v14  ;;  %v8567_v48 = vld [vmem:[#allocation11 + $0x254] sm:$0xf]  ;;  %v6500_v8 = vor.u32 %v8503_v55, %v6497_v29 }
 0x6d5   :  { %v6753_v2 = vld [vmem:[#allocation11 + $0x270] sm:$0xf0] }
 0x6d6   :  { %6037 = vmatpush.bf16.msra.mxu3 %v7396_v32  ;;  %6012 = vmatpush.bf16.msra.mxu1 %v6852_v54  ;;  %v8631_v42 = vld [vmem:[#allocation11 + $0x454] sm:$0xf]  ;;  %v6756_v31 = vor.u32 %v8567_v48, %v6753_v2  ;;  %v12024_v48 = vld [vmem:[#allocation1 + $0x1b] sm:$0xff] }
 0x6d7   :  { %v7009_v3 = vld [vmem:[#allocation11 + $0x470] sm:$0xf0] }
 0x6d8   :  { %6025 = vmatpush.bf16.msra.mxu2 %v7108_v59  ;;  %6000 = vmatpush.bf16.msra.mxu0 %v6564_v61  ;;  %v8695_v34 = vld [vmem:[#allocation11 + $0x654] sm:$0xf]  ;;  %v7012_v39 = vor.u32 %v8631_v42, %v7009_v3 }
 0x6d9   :  { %v7265_v13 = vld [vmem:[#allocation11 + $0x670] sm:$0xf0] }
 0x6da   :  { %6038 = vmatpush.bf16.msra.mxu3 %v7364_v21  ;;  %6013 = vmatpush.bf16.msra.mxu1 %v6820_v0  ;;  %v8495_v45 = vld [vmem:[#allocation11 + $0x14] sm:$0xf]  ;;  %v7268_v32 = vor.u32 %v8695_v34, %v7265_v13 }
 0x6db   :  { %v6465_v25 = vld [vmem:[#allocation11 + $0x30] sm:$0xf0] }
 0x6dc   :  { %6026 = vmatpush.bf16.msra.mxu2 %v7076_v52  ;;  %6001 = vmatpush.bf16.msra.mxu0 %v6532_v30  ;;  %v8559_v36 = vld [vmem:[#allocation11 + $0x214] sm:$0xf]  ;;  %v6468_v63 = vor.u32 %v8495_v45, %v6465_v25  ;;  %v12015_v30 = vld [vmem:[#allocation1] sm:$0xff] }
 0x6dd   :  { %v6721_v38 = vld [vmem:[#allocation11 + $0x230] sm:$0xf0] }
 0x6de   :  { %6039 = vmatpush.bf16.msra.mxu3 %v7332_v5  ;;  %6014 = vmatpush.bf16.msra.mxu1 %v6788_v62  ;;  %v8623_v33 = vld [vmem:[#allocation11 + $0x414] sm:$0xf]  ;;  %v6724_v35 = vor.u32 %v8559_v36, %v6721_v38 }
 0x6df   :  { %v6977_v50 = vld [vmem:[#allocation11 + $0x430] sm:$0xf0] }
 0x6e0   :  { %6027 = vmatpush.bf16.msra.mxu2 %v7044_v18  ;;  %v8687_v19 = vld [vmem:[#allocation11 + $0x614] sm:$0xf]  ;;  %6002 = vmatpush.bf16.msra.mxu0 %v6500_v8  ;;  %v6980_v53 = vor.u32 %v8623_v33, %v6977_v50  ;;  %v5810_v33 = vpop.f32.mrf.mxu1 }
 0x6e1   :  { %v7233_v9 = vld [vmem:[#allocation11 + $0x630] sm:$0xf0] }
 0x6e2   :  { %6040 = vmatpush.bf16.msra.mxu3 %v7300_v15  ;;  %v8807_v26 = vld [vmem:[#allocation11 + $0x9d4] sm:$0xf]  ;;  %6015 = vmatpush.bf16.msra.mxu1 %v6756_v31  ;;  %v7236_v16 = vor.u32 %v8687_v19, %v7233_v9  ;;  %v12021_v15 = vld [vmem:[#allocation1 + $0x12] sm:$0xff] }
 0x6e3   :  { %v7713_v12 = vld [vmem:[#allocation11 + $0x9f0] sm:$0xf0] }
 0x6e4   :  { %v8871_v51 = vld [vmem:[#allocation11 + $0xbd4] sm:$0xf]  ;;  %6028 = vmatpush.bf16.msra.mxu2 %v7012_v39  ;;  %v7716_v60 = vor.u32 %v8807_v26, %v7713_v12  ;;  %6003 = vmatpush.bf16.msra.mxu0 %v6468_v63 }
 0x6e5   :  { %v7969_v14 = vld [vmem:[#allocation11 + $0xbf0] sm:$0xf0] }
 0x6e6   :  { %v8935_v54 = vld [vmem:[#allocation11 + $0xdd4] sm:$0xf]  ;;  %6041 = vmatpush.bf16.msra.mxu3 %v7268_v32  ;;  %v7972_v27 = vor.u32 %v8871_v51, %v7969_v14  ;;  %6016 = vmatpush.bf16.msra.mxu1 %v6724_v35  ;;  %v5797_v32 = vpop.f32.mrf.mxu0 }
 0x6e7   :  { %v8225_v59 = vld [vmem:[#allocation11 + $0xdf0] sm:$0xf0]  ;;  %6004 = vmatmul.bf16.vlgmr.msra.gmra.mxu0 %v12015_v30  ;;  %v5811_v50 = vadd.f32 %v5810_v33, %v5797_v32 }
 0x6e8   :  { %v8999_v21 = vld [vmem:[#allocation11 + $0xfd4] sm:$0xf]  ;;  %v8228_v61 = vor.u32 %v8935_v54, %v8225_v59  ;;  %6029 = vmatpush.bf16.msra.mxu2 %v6980_v53  ;;  %6048 = vmatpush.bf16.msrb.mxu0 %v7716_v60 }
 0x6e9   :  { %v8481_v44 = vld [vmem:[#allocation11 + $0xff0] sm:$0xf0] }
 0x6ea   :  { %v8799_v40 = vld [vmem:[#allocation11 + $0x994] sm:$0xf]  ;;  %v8484_v0 = vor.u32 %v8999_v21, %v8481_v44  ;;  %6042 = vmatpush.bf16.msra.mxu3 %v7236_v16  ;;  %6061 = vmatpush.bf16.msrb.mxu1 %v7972_v27 }
 0x6eb   :  { %v7681_v17 = vld [vmem:[#allocation11 + $0x9b0] sm:$0xf0]  ;;  %6030 = vmatmul.bf16.vlgmr.msra.gmra.mxu2 %v12021_v15 }
 0x6ec   :  { %v8863_v56 = vld [vmem:[#allocation11 + $0xb94] sm:$0xf]  ;;  %v7684_v43 = vor.u32 %v8799_v40, %v7681_v17  ;;  %6074 = vmatpush.bf16.msrb.mxu2 %v8228_v61 }
 0x6ed   :  { %v7937_v23 = vld [vmem:[#allocation11 + $0xbb0] sm:$0xf0]  ;;  %6043 = vmatmul.bf16.vlgmr.msra.gmra.mxu3 %v12024_v48 }
 0x6ee   :  { %v8927_v52 = vld [vmem:[#allocation11 + $0xd94] sm:$0xf]  ;;  %v7940_v7 = vor.u32 %v8863_v56, %v7937_v23  ;;  %6087 = vmatpush.bf16.msrb.mxu3 %v8484_v0  ;;  %6049 = vmatpush.bf16.msrb.mxu0 %v7684_v43  ;;  %v5823_v0 = vpop.f32.mrf.mxu2  ;;  %v5836_v56 = vpop.f32.mrf.mxu3 }
 0x6ef   :  { %v8193_v5 = vld [vmem:[#allocation11 + $0xdb0] sm:$0xf0]  ;;  %v5812_v43 = vpop.f32.mrf.mxu1 }
 0x6f0   :  { %v8991_v41 = vld [vmem:[#allocation11 + $0xf94] sm:$0xf]  ;;  %v8196_v6 = vor.u32 %v8927_v52, %v8193_v5  ;;  %6062 = vmatpush.bf16.msrb.mxu1 %v7940_v7  ;;  %v8540_v43 = vld [vmem:[#allocation11 + $0x174] sm:$0xf0] }
 0x6f1   :  { %v8449_v37 = vld [vmem:[#allocation11 + $0xfb0] sm:$0xf0] }
 0x6f2   :  { %v8791_v28 = vld [vmem:[#allocation11 + $0x954] sm:$0xf]  ;;  %v8452_v57 = vor.u32 %v8991_v41, %v8449_v37  ;;  %6075 = vmatpush.bf16.msrb.mxu2 %v8196_v6  ;;  %v5824_v41 = vadd.f32 %v5823_v0, %v5811_v50  ;;  %v5799_v37 = vpop.f32.mrf.mxu0  ;;  %v7175_v0 = vld [vmem:[#allocation11 + $0x598] sm:$0xf] }
 0x6f3   :  { %v7649_v10 = vld [vmem:[#allocation11 + $0x970] sm:$0xf0]  ;;  %v6631_v37 = vld [vmem:[#allocation11 + $0x158] sm:$0xf] }
 0x6f4   :  { %v8855_v47 = vld [vmem:[#allocation11 + $0xb54] sm:$0xf]  ;;  %v7652_v2 = vor.u32 %v8791_v28, %v7649_v10  ;;  %6088 = vmatpush.bf16.msrb.mxu3 %v8452_v57  ;;  %v12027_v57 = vadd.f32 %v5836_v56, %v5824_v41  ;;  %v8676_v56 = vld [vmem:[#allocation11 + $0x5b4] sm:$0xf0] }
 0x6f5   :  { %v7905_v22 = vld [vmem:[#allocation11 + $0xb70] sm:$0xf0] }
 0x6f6   :  { %v8919_v24 = vld [vmem:[#allocation11 + $0xd54] sm:$0xf]  ;;  %v7908_v42 = vor.u32 %v8855_v47, %v7905_v22  ;;  %6050 = vmatpush.bf16.msrb.mxu0 %v7652_v2  ;;  %v5825_v33 = vpop.f32.mrf.mxu2  ;;  %v5838_v50 = vpop.f32.mrf.mxu3 }
 0x6f7   :  { %v12018_v62 = vld [vmem:[#allocation1 + $0x9] sm:$0xff]  ;;  %v6567_v33 = vld [vmem:[#allocation11 + $0xd8] sm:$0xf] }
 0x6f8   :  { %6017 = vmatmul.bf16.vlgmr.msra.gmra.mxu1 %v12018_v62  ;;  %v8161_v55 = vld [vmem:[#allocation11 + $0xd70] sm:$0xf0]  ;;  %v8524_v50 = vld [vmem:[#allocation11 + $0xf4] sm:$0xf0] }
 0x6f9   :  { %v8983_v29 = vld [vmem:[#allocation11 + $0xf54] sm:$0xf]  ;;  %v8164_v13 = vor.u32 %v8919_v24, %v8161_v55  ;;  %6063 = vmatpush.bf16.msrb.mxu1 %v7908_v42 }
 0x6fa   :  { %v8417_v18 = vld [vmem:[#allocation11 + $0xf70] sm:$0xf0] }
 0x6fb   :  { %v8783_v3 = vld [vmem:[#allocation11 + $0x914] sm:$0xf]  ;;  %v8420_v45 = vor.u32 %v8983_v29, %v8417_v18  ;;  %6076 = vmatpush.bf16.msrb.mxu2 %v8164_v13 }
 0x6fc   :  { %v7617_v34 = vld [vmem:[#allocation11 + $0x930] sm:$0xf0] }
 0x6fd   :  { %v8847_v8 = vld [vmem:[#allocation11 + $0xb14] sm:$0xf]  ;;  %v7620_v19 = vor.u32 %v8783_v3, %v7617_v34  ;;  %6089 = vmatpush.bf16.msrb.mxu3 %v8420_v45 }
 0x6fe   :  { %v7873_v31 = vld [vmem:[#allocation11 + $0xb30] sm:$0xf0] }
 0x6ff   :  { %v8911_v25 = vld [vmem:[#allocation11 + $0xd14] sm:$0xf]  ;;  %v7876_v49 = vor.u32 %v8847_v8, %v7873_v31  ;;  %6051 = vmatpush.bf16.msrb.mxu0 %v7620_v19 }
 0x700   :  { %v8129_v36 = vld [vmem:[#allocation11 + $0xd30] sm:$0xf0] }
 0x701   :  { %v8975_v38 = vld [vmem:[#allocation11 + $0xf14] sm:$0xf]  ;;  %v8132_v26 = vor.u32 %v8911_v25, %v8129_v36  ;;  %6064 = vmatpush.bf16.msrb.mxu1 %v7876_v49  ;;  %v6695_v49 = vld [vmem:[#allocation11 + $0x1d8] sm:$0xf] }
 0x702   :  { %v8385_v39 = vld [vmem:[#allocation11 + $0xf30] sm:$0xf0] }
 0x703   :  { %v8775_v46 = vld [vmem:[#allocation11 + $0x8d4] sm:$0xf]  ;;  %v8388_v12 = vor.u32 %v8975_v38, %v8385_v39  ;;  %6077 = vmatpush.bf16.msrb.mxu2 %v8132_v26  ;;  %v8620_v26 = vld [vmem:[#allocation11 + $0x3f4] sm:$0xf0] }
 0x704   :  { %v7585_v9 = vld [vmem:[#allocation11 + $0x8f0] sm:$0xf0] }
 0x705   :  { %v8839_v51 = vld [vmem:[#allocation11 + $0xad4] sm:$0xf]  ;;  %v7588_v21 = vor.u32 %v8775_v46, %v7585_v9  ;;  %6090 = vmatpush.bf16.msrb.mxu3 %v8388_v12  ;;  %v8556_v46 = vld [vmem:[#allocation11 + $0x1f4] sm:$0xf0] }
 0x706   :  { %v7841_v14 = vld [vmem:[#allocation11 + $0xaf0] sm:$0xf0]  ;;  %v6951_v9 = vld [vmem:[#allocation11 + $0x3d8] sm:$0xf] }
 0x707   :  { %v8903_v54 = vld [vmem:[#allocation11 + $0xcd4] sm:$0xf]  ;;  %v7844_v44 = vor.u32 %v8839_v51, %v7841_v14  ;;  %6052 = vmatpush.bf16.msrb.mxu0 %v7588_v21  ;;  %v7207_v12 = vld [vmem:[#allocation11 + $0x5d8] sm:$0xf] }
 0x708   :  { %v8097_v63 = vld [vmem:[#allocation11 + $0xcf0] sm:$0xf0] }
 0x709   :  { %v8967_v35 = vld [vmem:[#allocation11 + $0xed4] sm:$0xf]  ;;  %v8100_v60 = vor.u32 %v8903_v54, %v8097_v63  ;;  %6065 = vmatpush.bf16.msrb.mxu1 %v7844_v44  ;;  %v8684_v54 = vld [vmem:[#allocation11 + $0x5f4] sm:$0xf0]  ;;  %v6696_v44 = vor.u32 %v8556_v46, %v6695_v49 }
 0x70a   :  { %v8353_v59 = vld [vmem:[#allocation11 + $0xef0] sm:$0xf0]  ;;  %v7463_v63 = vld [vmem:[#allocation11 + $0x7d8] sm:$0xf] }
 0x70b   :  { %v8767_v53 = vld [vmem:[#allocation11 + $0x894] sm:$0xf]  ;;  %v8356_v27 = vor.u32 %v8967_v35, %v8353_v59  ;;  %6078 = vmatpush.bf16.msrb.mxu2 %v8100_v60  ;;  %v8748_v35 = vld [vmem:[#allocation11 + $0x7f4] sm:$0xf0] }
 0x70c   :  { %v7553_v16 = vld [vmem:[#allocation11 + $0x8b0] sm:$0xf0]  ;;  %v8548_v60 = vld [vmem:[#allocation11 + $0x1b4] sm:$0xf0] }
 0x70d   :  { %v8831_v40 = vld [vmem:[#allocation11 + $0xa94] sm:$0xf]  ;;  %v7556_v7 = vor.u32 %v8767_v53, %v7553_v16  ;;  %6091 = vmatpush.bf16.msrb.mxu3 %v8356_v27  ;;  %v6952_v53 = vor.u32 %v8620_v26, %v6951_v9  ;;  %v6663_v16 = vld [vmem:[#allocation11 + $0x198] sm:$0xf]  ;;  %v7208_v27 = vor.u32 %v8684_v54, %v7207_v12 }
 0x70e   :  { %v7809_v17 = vld [vmem:[#allocation11 + $0xab0] sm:$0xf0]  ;;  %v6823_v46 = vld [vmem:[#allocation11 + $0x2d8] sm:$0xf] }
 0x70f   :  { %v8895_v61 = vld [vmem:[#allocation11 + $0xc94] sm:$0xf]  ;;  %v7812_v28 = vor.u32 %v8831_v40, %v7809_v17  ;;  %6053 = vmatpush.bf16.msrb.mxu0 %v7556_v7  ;;  %v7464_v40 = vor.u32 %v8748_v35, %v7463_v63  ;;  %v6919_v17 = vld [vmem:[#allocation11 + $0x398] sm:$0xf]  ;;  %v7176_v7 = vor.u32 %v8676_v56, %v7175_v0  ;;  %v6568_v63 = vor.u32 %v8524_v50, %v6567_v33 }
 0x710   :  { %v8065_v23 = vld [vmem:[#allocation11 + $0xcb0] sm:$0xf0]  ;;  %v8588_v9 = vld [vmem:[#allocation11 + $0x2f4] sm:$0xf0] }
 0x711   :  { %v8959_v52 = vld [vmem:[#allocation11 + $0xe94] sm:$0xf]  ;;  %v8068_v47 = vor.u32 %v8895_v61, %v8065_v23  ;;  %6066 = vmatpush.bf16.msrb.mxu1 %v7812_v28  ;;  %v8612_v61 = vld [vmem:[#allocation11 + $0x3b4] sm:$0xf0]  ;;  %v6824_v35 = vor.u32 %v8588_v9, %v6823_v46 }
 0x712   :  { %v8321_v5 = vld [vmem:[#allocation11 + $0xeb0] sm:$0xf0]  ;;  %v7431_v23 = vld [vmem:[#allocation11 + $0x798] sm:$0xf]  ;;  %v6920_v41 = vor.u32 %v8612_v61, %v6919_v17 }
 0x713   :  { %v8759_v10 = vld [vmem:[#allocation11 + $0x854] sm:$0xf]  ;;  %v8324_v22 = vor.u32 %v8959_v52, %v8321_v5  ;;  %6079 = vmatpush.bf16.msrb.mxu2 %v8068_v47  ;;  %v8740_v52 = vld [vmem:[#allocation11 + $0x7b4] sm:$0xf0]  ;;  %v6664_v5 = vor.u32 %v8548_v60, %v6663_v16 }
 0x714   :  { %v7521_v6 = vld [vmem:[#allocation11 + $0x870] sm:$0xf0]  ;;  %v7432_v28 = vor.u32 %v8740_v52, %v7431_v23  ;;  %v7143_v47 = vld [vmem:[#allocation11 + $0x558] sm:$0xf] }
 0x715   :  { %v8823_v24 = vld [vmem:[#allocation11 + $0xa54] sm:$0xf]  ;;  %v7524_v34 = vor.u32 %v8759_v10, %v7521_v6  ;;  %6092 = vmatpush.bf16.msrb.mxu3 %v8324_v22  ;;  %v6887_v10 = vld [vmem:[#allocation11 + $0x358] sm:$0xf] }
 0x716   :  { %v7777_v55 = vld [vmem:[#allocation11 + $0xa70] sm:$0xf0]  ;;  %v8604_v6 = vld [vmem:[#allocation11 + $0x374] sm:$0xf0] }
 0x717   :  { %v8887_v29 = vld [vmem:[#allocation11 + $0xc54] sm:$0xf]  ;;  %v7780_v13 = vor.u32 %v8823_v24, %v7777_v55  ;;  %6054 = vmatpush.bf16.msrb.mxu0 %v7524_v34  ;;  %v8668_v22 = vld [vmem:[#allocation11 + $0x574] sm:$0xf0] }
 0x718   :  { %v8033_v18 = vld [vmem:[#allocation11 + $0xc70] sm:$0xf0]  ;;  %v7399_v24 = vld [vmem:[#allocation11 + $0x758] sm:$0xf] }
 0x719   :  { %v8951_v2 = vld [vmem:[#allocation11 + $0xe54] sm:$0xf]  ;;  %v8036_v25 = vor.u32 %v8887_v29, %v8033_v18  ;;  %6067 = vmatpush.bf16.msrb.mxu1 %v7780_v13  ;;  %v8732_v55 = vld [vmem:[#allocation11 + $0x774] sm:$0xf0]  ;;  %v12032_v29 = vld [vmem:[#allocation1 + $0x3f] sm:$0xff]  ;;  %v6632_v18 = vor.u32 %v8540_v43, %v6631_v37 }
 0x71a   :  { %v8289_v42 = vld [vmem:[#allocation11 + $0xe70] sm:$0xf0]  ;;  %v7400_v34 = vor.u32 %v8732_v55, %v7399_v24  ;;  %v8596_v13 = vld [vmem:[#allocation11 + $0x334] sm:$0xf0] }
 0x71b   :  { %v8751_v3 = vld [vmem:[#allocation11 + $0x814] sm:$0xf]  ;;  %v8292_v36 = vor.u32 %v8951_v2, %v8289_v42  ;;  %6080 = vmatpush.bf16.msrb.mxu2 %v8036_v25  ;;  %v6888_v2 = vor.u32 %v8604_v6, %v6887_v10  ;;  %v6599_v42 = vld [vmem:[#allocation11 + $0x118] sm:$0xf]  ;;  %v5849_v25 = vpop.f32.mrf.mxu0 }
 0x71c   :  { %v7489_v45 = vld [vmem:[#allocation11 + $0x830] sm:$0xf0]  ;;  %v7079_v26 = vld [vmem:[#allocation11 + $0x4d8] sm:$0xf] }
 0x71d   :  { %v8815_v8 = vld [vmem:[#allocation11 + $0xa14] sm:$0xf]  ;;  %v7492_v51 = vor.u32 %v8751_v3, %v7489_v45  ;;  %6093 = vmatpush.bf16.msrb.mxu3 %v8292_v36  ;;  %v8532_v3 = vld [vmem:[#allocation11 + $0x134] sm:$0xf0]  ;;  %v5862_v36 = vpop.f32.mrf.mxu1 }
 0x71e   :  { %v7745_v31 = vld [vmem:[#allocation11 + $0xa30] sm:$0xf0]  ;;  %v7111_v45 = vld [vmem:[#allocation11 + $0x518] sm:$0xf] }
 0x71f   :  { %v8879_v38 = vld [vmem:[#allocation11 + $0xc14] sm:$0xf]  ;;  %v7748_v14 = vor.u32 %v8815_v8, %v7745_v31  ;;  %6055 = vmatpush.bf16.msrb.mxu0 %v7492_v51  ;;  %v8660_v8 = vld [vmem:[#allocation11 + $0x534] sm:$0xf0] }
 0x720   :  { %v8001_v39 = vld [vmem:[#allocation11 + $0xc30] sm:$0xf0]  ;;  %v7367_v31 = vld [vmem:[#allocation11 + $0x718] sm:$0xf] }
 0x721   :  { %v8943_v32 = vld [vmem:[#allocation11 + $0xe14] sm:$0xf]  ;;  %v8004_v59 = vor.u32 %v8879_v38, %v8001_v39  ;;  %6068 = vmatpush.bf16.msrb.mxu1 %v7748_v14  ;;  %v5850_v38 = vadd.f32 %v5849_v25, %v12027_v57  ;;  %v6600_v39 = vor.u32 %v8532_v3, %v6599_v42  ;;  %v8652_v51 = vld [vmem:[#allocation11 + $0x4f4] sm:$0xf0] }
 0x722   :  { %v8257_v19 = vld [vmem:[#allocation11 + $0xe30] sm:$0xf0]  ;;  %6056 = vmatmul.bf16.vlgmr.msrb.gmra.mxu0 %v12002_v11  ;;  %v7144_v11 = vor.u32 %v8668_v22, %v7143_v47  ;;  %v7335_v14 = vld [vmem:[#allocation11 + $0x6d8] sm:$0xf] }
 0x723   :  { %v8260_v21 = vor.u32 %v8943_v32, %v8257_v19  ;;  %6081 = vmatpush.bf16.msrb.mxu2 %v8004_v59  ;;  %6100 = vmatpush.bf16.msra.mxu0 %v6696_v44  ;;  %v7112_v19 = vor.u32 %v8660_v8, %v7111_v45  ;;  %v5863_v12 = vadd.f32 %v5862_v36, %v5850_v38  ;;  %v8716_v54 = vld [vmem:[#allocation11 + $0x6f4] sm:$0xf0]  ;;  %v5851_v23 = vpop.f32.mrf.mxu0 }
 0x724   :  { %6069 = vmatmul.bf16.vlgmr.msrb.gmra.mxu1 %v12005_v4  ;;  %v6855_v4 = vld [vmem:[#allocation11 + $0x318] sm:$0xf]  ;;  %v7336_v44 = vor.u32 %v8716_v54, %v7335_v14 }
 0x725   :  { %6094 = vmatpush.bf16.msrb.mxu3 %v8260_v21  ;;  %6113 = vmatpush.bf16.msra.mxu1 %v6952_v53  ;;  %v6856_v32 = vor.u32 %v8596_v13, %v6855_v4  ;;  %v6535_v57 = vld [vmem:[#allocation11 + $0x98] sm:$0xf]  ;;  %v7080_v21 = vor.u32 %v8652_v51, %v7079_v26  ;;  %v5864_v52 = vpop.f32.mrf.mxu1 }
 0x726   :  { %6082 = vmatmul.bf16.vlgmr.msrb.gmra.mxu2 %v12008_v58  ;;  %v8724_v58 = vld [vmem:[#allocation11 + $0x734] sm:$0xf0] }
 0x727   :  { %6126 = vmatpush.bf16.msra.mxu2 %v7208_v27  ;;  %6101 = vmatpush.bf16.msra.mxu0 %v6664_v5  ;;  %v7368_v49 = vor.u32 %v8724_v58, %v7367_v31  ;;  %v8516_v59 = vld [vmem:[#allocation11 + $0xb4] sm:$0xf0]  ;;  %v5875_v27 = vpop.f32.mrf.mxu2 }
 0x728   :  { %6095 = vmatmul.bf16.vlgmr.msrb.gmra.mxu3 %v12032_v29  ;;  %v6791_v53 = vld [vmem:[#allocation11 + $0x298] sm:$0xf]  ;;  %v5876_v56 = vadd.f32 %v5875_v27, %v5863_v12  ;;  %v6536_v5 = vor.u32 %v8516_v59, %v6535_v57 }
 0x729   :  { %6139 = vmatpush.bf16.msra.mxu3 %v7464_v40  ;;  %6114 = vmatpush.bf16.msra.mxu1 %v6920_v41  ;;  %v8580_v16 = vld [vmem:[#allocation11 + $0x2b4] sm:$0xf0]  ;;  %v5888_v40 = vpop.f32.mrf.mxu3 }
 0x72a   :  { %v7047_v60 = vld [vmem:[#allocation11 + $0x498] sm:$0xf]  ;;  %v6792_v41 = vor.u32 %v8580_v16, %v6791_v53 }
 0x72b   :  { %6127 = vmatpush.bf16.msra.mxu2 %v7176_v7  ;;  %6102 = vmatpush.bf16.msra.mxu0 %v6632_v18  ;;  %v8644_v17 = vld [vmem:[#allocation11 + $0x4b4] sm:$0xf0]  ;;  %v5889_v7 = vadd.f32 %v5888_v40, %v5876_v56 }
 0x72c   :  { %v7303_v61 = vld [vmem:[#allocation11 + $0x698] sm:$0xf] }
 0x72d   :  { %6140 = vmatpush.bf16.msra.mxu3 %v7432_v28  ;;  %6115 = vmatpush.bf16.msra.mxu1 %v6888_v2  ;;  %v8708_v0 = vld [vmem:[#allocation11 + $0x6b4] sm:$0xf0]  ;;  %v7048_v28 = vor.u32 %v8644_v17, %v7047_v60  ;;  %v6317_v2 = vrot.slane %v12013_v20, 6  ;;  %v6318_v42 = vrot.slane %v5889_v7, 5 }
 0x72e   :  { %v6503_v37 = vld [vmem:[#allocation11 + $0x58] sm:$0xf]  ;;  %v7304_v10 = vor.u32 %v8708_v0, %v7303_v61 }
 0x72f   :  { %6128 = vmatpush.bf16.msra.mxu2 %v7144_v11  ;;  %6103 = vmatpush.bf16.msra.mxu0 %v6600_v39  ;;  %v8508_v43 = vld [vmem:[#allocation11 + $0x74] sm:$0xf0]  ;;  %v6326_v8 = vsel %vm12759_vm1, %v6317_v2, %v6318_v42  ;;  %v5877_v39 = vpop.f32.mrf.mxu2 }
 0x730   :  { %v6759_v6 = vld [vmem:[#allocation11 + $0x258] sm:$0xf]  ;;  %v6504_v11 = vor.u32 %v8508_v43, %v6503_v37  ;;  %v12040_v20 = vsel %vm12760_vm12, %v11994_v1, %v6326_v8 }
 0x731   :  { %6141 = vmatpush.bf16.msra.mxu3 %v7400_v34  ;;  %6116 = vmatpush.bf16.msra.mxu1 %v6856_v32  ;;  %v8572_v47 = vld [vmem:[#allocation11 + $0x274] sm:$0xf0]  ;;  %v5890_v32 = vpop.f32.mrf.mxu3 }
 0x732   :  { %v7015_v22 = vld [vmem:[#allocation11 + $0x458] sm:$0xf]  ;;  %v6760_v34 = vor.u32 %v8572_v47, %v6759_v6 }
 0x733   :  { %6129 = vmatpush.bf16.msra.mxu2 %v7112_v19  ;;  %6104 = vmatpush.bf16.msra.mxu0 %v6568_v63  ;;  %v8636_v24 = vld [vmem:[#allocation11 + $0x474] sm:$0xf0] }
 0x734   :  { %v7271_v55 = vld [vmem:[#allocation11 + $0x658] sm:$0xf]  ;;  %v7016_v31 = vor.u32 %v8636_v24, %v7015_v22 }
 0x735   :  { %6142 = vmatpush.bf16.msra.mxu3 %v7368_v49  ;;  %6117 = vmatpush.bf16.msra.mxu1 %v6824_v35  ;;  %v8700_v18 = vld [vmem:[#allocation11 + $0x674] sm:$0xf0] }
 0x736   :  { %v6471_v3 = vld [vmem:[#allocation11 + $0x18] sm:$0xf]  ;;  %v7272_v58 = vor.u32 %v8700_v18, %v7271_v55 }
 0x737   :  { %6130 = vmatpush.bf16.msra.mxu2 %v7080_v21  ;;  %6105 = vmatpush.bf16.msra.mxu0 %v6536_v5  ;;  %v8500_v4 = vld [vmem:[#allocation11 + $0x34] sm:$0xf0] }
 0x738   :  { %v6727_v13 = vld [vmem:[#allocation11 + $0x218] sm:$0xf]  ;;  %v6472_v26 = vor.u32 %v8500_v4, %v6471_v3  ;;  %v5901_v4 = vpop.f32.mrf.mxu0 }
 0x739   :  { %6143 = vmatpush.bf16.msra.mxu3 %v7336_v44  ;;  %6118 = vmatpush.bf16.msra.mxu1 %v6792_v41  ;;  %v8564_v45 = vld [vmem:[#allocation11 + $0x234] sm:$0xf0] }
 0x73a   :  { %v6983_v25 = vld [vmem:[#allocation11 + $0x418] sm:$0xf]  ;;  %v6728_v12 = vor.u32 %v8564_v45, %v6727_v13 }
 0x73b   :  { %6131 = vmatpush.bf16.msra.mxu2 %v7048_v28  ;;  %v8628_v36 = vld [vmem:[#allocation11 + $0x434] sm:$0xf0]  ;;  %6106 = vmatpush.bf16.msra.mxu0 %v6504_v11 }
 0x73c   :  { %v7239_v38 = vld [vmem:[#allocation11 + $0x618] sm:$0xf]  ;;  %v6984_v63 = vor.u32 %v8628_v36, %v6983_v25 }
 0x73d   :  { %6144 = vmatpush.bf16.msra.mxu3 %v7304_v10  ;;  %v8692_v33 = vld [vmem:[#allocation11 + $0x634] sm:$0xf0]  ;;  %6119 = vmatpush.bf16.msra.mxu1 %v6760_v34 }
 0x73e   :  { %v7719_v50 = vld [vmem:[#allocation11 + $0x9d8] sm:$0xf]  ;;  %v7240_v1 = vor.u32 %v8692_v33, %v7239_v38 }
 0x73f   :  { %v8812_v19 = vld [vmem:[#allocation11 + $0x9f4] sm:$0xf0]  ;;  %6132 = vmatpush.bf16.msra.mxu2 %v7016_v31  ;;  %6107 = vmatpush.bf16.msra.mxu0 %v6472_v26 }
 0x740   :  { %v7975_v49 = vld [vmem:[#allocation11 + $0xbd8] sm:$0xf]  ;;  %v7720_v35 = vor.u32 %v8812_v19, %v7719_v50 }
 0x741   :  { %v8876_v46 = vld [vmem:[#allocation11 + $0xbf4] sm:$0xf0]  ;;  %6145 = vmatpush.bf16.msra.mxu3 %v7272_v58  ;;  %6120 = vmatpush.bf16.msra.mxu1 %v6728_v12 }
 0x742   :  { %v8231_v9 = vld [vmem:[#allocation11 + $0xdd8] sm:$0xf]  ;;  %v7976_v57 = vor.u32 %v8876_v46, %v7975_v49  ;;  %6108 = vmatmul.bf16.vlgmr.msra.gmra.mxu0 %v12015_v30 }
 0x743   :  { %v8940_v51 = vld [vmem:[#allocation11 + $0xdf4] sm:$0xf0]  ;;  %6133 = vmatpush.bf16.msra.mxu2 %v6984_v63  ;;  %6152 = vmatpush.bf16.msrb.mxu0 %v7720_v35  ;;  %v5927_v63 = vpop.f32.mrf.mxu2 }
 0x744   :  { %v8487_v14 = vld [vmem:[#allocation11 + $0xfd8] sm:$0xf]  ;;  %v8232_v44 = vor.u32 %v8940_v51, %v8231_v9  ;;  %6121 = vmatmul.bf16.vlgmr.msra.gmra.mxu1 %v12018_v62 }
 0x745   :  { %v9004_v54 = vld [vmem:[#allocation11 + $0xff4] sm:$0xf0]  ;;  %6146 = vmatpush.bf16.msra.mxu3 %v7240_v1  ;;  %6165 = vmatpush.bf16.msrb.mxu1 %v7976_v57  ;;  %v5940_v1 = vpop.f32.mrf.mxu3 }
 0x746   :  { %v7687_v59 = vld [vmem:[#allocation11 + $0x998] sm:$0xf]  ;;  %v8488_v53 = vor.u32 %v9004_v54, %v8487_v14  ;;  %6134 = vmatmul.bf16.vlgmr.msra.gmra.mxu2 %v12021_v15  ;;  %v5914_v15 = vpop.f32.mrf.mxu1 }
 0x747   :  { %v8804_v21 = vld [vmem:[#allocation11 + $0x9b4] sm:$0xf0]  ;;  %6178 = vmatpush.bf16.msrb.mxu2 %v8232_v44  ;;  %v5903_v44 = vpop.f32.mrf.mxu0 }
 0x748   :  { %v7943_v16 = vld [vmem:[#allocation11 + $0xb98] sm:$0xf]  ;;  %v7688_v0 = vor.u32 %v8804_v21, %v7687_v59  ;;  %6147 = vmatmul.bf16.vlgmr.msra.gmra.mxu3 %v12024_v48  ;;  %v5915_v48 = vadd.f32 %v5914_v15, %v5901_v4  ;;  %v6953_v4 = vld [vmem:[#allocation11 + $0x3f8] sm:$0xf0]  ;;  %v12048_v44 = vld [vmem:[#allocation1 + $0x24] sm:$0xff] }
 0x749   :  { %v8868_v60 = vld [vmem:[#allocation11 + $0xbb4] sm:$0xf0]  ;;  %6191 = vmatpush.bf16.msrb.mxu3 %v8488_v53  ;;  %v8680_v15 = vld [vmem:[#allocation11 + $0x5dc] sm:$0xf] }
 0x74a   :  { %v8199_v27 = vld [vmem:[#allocation11 + $0xd98] sm:$0xf]  ;;  %v7944_v56 = vor.u32 %v8868_v60, %v7943_v16  ;;  %6153 = vmatpush.bf16.msrb.mxu0 %v7688_v0  ;;  %v5928_v21 = vadd.f32 %v5927_v63, %v5915_v48  ;;  %v6633_v63 = vld [vmem:[#allocation11 + $0x178] sm:$0xf0] }
 0x74b   :  { %v8932_v40 = vld [vmem:[#allocation11 + $0xdb4] sm:$0xf0] }
 0x74c   :  { %v8455_v17 = vld [vmem:[#allocation11 + $0xf98] sm:$0xf]  ;;  %v8200_v5 = vor.u32 %v8932_v40, %v8199_v27  ;;  %6166 = vmatpush.bf16.msrb.mxu1 %v7944_v56 }
 0x74d   :  { %v8996_v61 = vld [vmem:[#allocation11 + $0xfb4] sm:$0xf0] }
 0x74e   :  { %v7655_v23 = vld [vmem:[#allocation11 + $0x958] sm:$0xf]  ;;  %v8456_v41 = vor.u32 %v8996_v61, %v8455_v17  ;;  %6179 = vmatpush.bf16.msrb.mxu2 %v8200_v5  ;;  %v5916_v53 = vpop.f32.mrf.mxu1  ;;  %v12046_v17 = vadd.f32 %v5940_v1, %v5928_v21  ;;  %v8664_v21 = vld [vmem:[#allocation11 + $0x55c] sm:$0xf] }
 0x74f   :  { %v8796_v52 = vld [vmem:[#allocation11 + $0x974] sm:$0xf0] }
 0x750   :  { %v7911_v37 = vld [vmem:[#allocation11 + $0xb58] sm:$0xf]  ;;  %v7656_v47 = vor.u32 %v8796_v52, %v7655_v23  ;;  %6192 = vmatpush.bf16.msrb.mxu3 %v8456_v41 }
 0x751   :  { %v8860_v43 = vld [vmem:[#allocation11 + $0xb74] sm:$0xf0] }
 0x752   :  { %v8167_v7 = vld [vmem:[#allocation11 + $0xd58] sm:$0xf]  ;;  %v7912_v22 = vor.u32 %v8860_v43, %v7911_v37  ;;  %6154 = vmatpush.bf16.msrb.mxu0 %v7656_v47 }
 0x753   :  { %v8924_v28 = vld [vmem:[#allocation11 + $0xd74] sm:$0xf0] }
 0x754   :  { %v8423_v10 = vld [vmem:[#allocation11 + $0xf58] sm:$0xf]  ;;  %v8168_v18 = vor.u32 %v8924_v28, %v8167_v7  ;;  %6167 = vmatpush.bf16.msrb.mxu1 %v7912_v22 }
 0x755   :  { %v8988_v6 = vld [vmem:[#allocation11 + $0xf74] sm:$0xf0] }
 0x756   :  { %v7623_v24 = vld [vmem:[#allocation11 + $0x918] sm:$0xf]  ;;  %v8424_v2 = vor.u32 %v8988_v6, %v8423_v10  ;;  %6180 = vmatpush.bf16.msrb.mxu2 %v8168_v18 }
 0x757   :  { %v8788_v55 = vld [vmem:[#allocation11 + $0x934] sm:$0xf0] }
 0x758   :  { %v7879_v30 = vld [vmem:[#allocation11 + $0xb18] sm:$0xf]  ;;  %v7624_v13 = vor.u32 %v8788_v55, %v7623_v24  ;;  %6193 = vmatpush.bf16.msrb.mxu3 %v8424_v2 }
 0x759   :  { %v8852_v42 = vld [vmem:[#allocation11 + $0xb34] sm:$0xf0] }
 0x75a   :  { %v8135_v62 = vld [vmem:[#allocation11 + $0xd18] sm:$0xf]  ;;  %v7880_v45 = vor.u32 %v8852_v42, %v7879_v30  ;;  %6155 = vmatpush.bf16.msrb.mxu0 %v7624_v13  ;;  %v5929_v30 = vpop.f32.mrf.mxu2  ;;  %v5942_v42 = vpop.f32.mrf.mxu3 }
 0x75b   :  { %v8916_v3 = vld [vmem:[#allocation11 + $0xd34] sm:$0xf0]  ;;  %v8584_v42 = vld [vmem:[#allocation11 + $0x2dc] sm:$0xf] }
 0x75c   :  { %v8391_v11 = vld [vmem:[#allocation11 + $0xf18] sm:$0xf]  ;;  %v8136_v58 = vor.u32 %v8916_v3, %v8135_v62  ;;  %6168 = vmatpush.bf16.msrb.mxu1 %v7880_v45  ;;  %v8552_v3 = vld [vmem:[#allocation11 + $0x1dc] sm:$0xf] }
 0x75d   :  { %v8980_v34 = vld [vmem:[#allocation11 + $0xf34] sm:$0xf0]  ;;  %v7209_v45 = vld [vmem:[#allocation11 + $0x5f8] sm:$0xf0] }
 0x75e   :  { %v7591_v8 = vld [vmem:[#allocation11 + $0x8d8] sm:$0xf]  ;;  %v8392_v25 = vor.u32 %v8980_v34, %v8391_v11  ;;  %6181 = vmatpush.bf16.msrb.mxu2 %v8136_v58  ;;  %v6697_v11 = vld [vmem:[#allocation11 + $0x1f8] sm:$0xf0] }
 0x75f   :  { %v8780_v31 = vld [vmem:[#allocation11 + $0x8f4] sm:$0xf0]  ;;  %v8616_v34 = vld [vmem:[#allocation11 + $0x3dc] sm:$0xf] }
 0x760   :  { %v7847_v36 = vld [vmem:[#allocation11 + $0xad8] sm:$0xf]  ;;  %v7592_v19 = vor.u32 %v8780_v31, %v7591_v8  ;;  %6194 = vmatpush.bf16.msrb.mxu3 %v8392_v25  ;;  %v8744_v8 = vld [vmem:[#allocation11 + $0x7dc] sm:$0xf] }
 0x761   :  { %v8844_v38 = vld [vmem:[#allocation11 + $0xaf4] sm:$0xf0]  ;;  %v7465_v31 = vld [vmem:[#allocation11 + $0x7f8] sm:$0xf0] }
 0x762   :  { %v8103_v39 = vld [vmem:[#allocation11 + $0xcd8] sm:$0xf]  ;;  %v7848_v49 = vor.u32 %v8844_v38, %v7847_v36  ;;  %6156 = vmatpush.bf16.msrb.mxu0 %v7592_v19  ;;  %v6700_v36 = vor.u32 %v8552_v3, %v6697_v11  ;;  %v6956_v38 = vor.u32 %v8616_v34, %v6953_v4  ;;  %v8608_v19 = vld [vmem:[#allocation11 + $0x39c] sm:$0xf] }
 0x763   :  { %v8908_v32 = vld [vmem:[#allocation11 + $0xcf4] sm:$0xf0]  ;;  %v8648_v3 = vld [vmem:[#allocation11 + $0x4dc] sm:$0xf] }
 0x764   :  { %v8359_v33 = vld [vmem:[#allocation11 + $0xed8] sm:$0xf]  ;;  %v8104_v26 = vor.u32 %v8908_v32, %v8103_v39  ;;  %6169 = vmatpush.bf16.msrb.mxu1 %v7848_v49  ;;  %v8544_v39 = vld [vmem:[#allocation11 + $0x19c] sm:$0xf] }
 0x765   :  { %v8972_v50 = vld [vmem:[#allocation11 + $0xef4] sm:$0xf0]  ;;  %v6665_v32 = vld [vmem:[#allocation11 + $0x1b8] sm:$0xf0] }
 0x766   :  { %v7559_v46 = vld [vmem:[#allocation11 + $0x898] sm:$0xf]  ;;  %v8360_v12 = vor.u32 %v8972_v50, %v8359_v33  ;;  %6182 = vmatpush.bf16.msrb.mxu2 %v8104_v26  ;;  %v7212_v33 = vor.u32 %v8680_v15, %v7209_v45  ;;  %v7468_v50 = vor.u32 %v8744_v8, %v7465_v31  ;;  %v6921_v49 = vld [vmem:[#allocation11 + $0x3b8] sm:$0xf0] }
 0x767   :  { %v8772_v9 = vld [vmem:[#allocation11 + $0x8b4] sm:$0xf0]  ;;  %v8736_v26 = vld [vmem:[#allocation11 + $0x79c] sm:$0xf] }
 0x768   :  { %v7815_v51 = vld [vmem:[#allocation11 + $0xa98] sm:$0xf]  ;;  %v7560_v16 = vor.u32 %v8772_v9, %v7559_v46  ;;  %6195 = vmatpush.bf16.msrb.mxu3 %v8360_v12  ;;  %v8672_v46 = vld [vmem:[#allocation11 + $0x59c] sm:$0xf] }
 0x769   :  { %v8836_v14 = vld [vmem:[#allocation11 + $0xab4] sm:$0xf0]  ;;  %v7177_v9 = vld [vmem:[#allocation11 + $0x5b8] sm:$0xf0] }
 0x76a   :  { %v8071_v54 = vld [vmem:[#allocation11 + $0xc98] sm:$0xf]  ;;  %v7816_v60 = vor.u32 %v8836_v14, %v7815_v51  ;;  %6157 = vmatpush.bf16.msrb.mxu0 %v7560_v16  ;;  %v7433_v12 = vld [vmem:[#allocation11 + $0x7b8] sm:$0xf0]  ;;  %v6668_v51 = vor.u32 %v8544_v39, %v6665_v32  ;;  %v6924_v14 = vor.u32 %v8608_v19, %v6921_v49  ;;  %v7180_v1 = vor.u32 %v8672_v46, %v7177_v9  ;;  %v5992_v39 = vpop.f32.mrf.mxu3 }
 0x76b   :  { %v8900_v35 = vld [vmem:[#allocation11 + $0xcb4] sm:$0xf0]  ;;  %v7145_v16 = vld [vmem:[#allocation11 + $0x578] sm:$0xf0] }
 0x76c   :  { %v8327_v57 = vld [vmem:[#allocation11 + $0xe98] sm:$0xf]  ;;  %v8072_v61 = vor.u32 %v8900_v35, %v8071_v54  ;;  %6170 = vmatpush.bf16.msrb.mxu1 %v7816_v60  ;;  %v8536_v54 = vld [vmem:[#allocation11 + $0x15c] sm:$0xf]  ;;  %v7436_v35 = vor.u32 %v8736_v26, %v7433_v12 }
 0x76d   :  { %v8964_v59 = vld [vmem:[#allocation11 + $0xeb4] sm:$0xf0]  ;;  %v8728_v60 = vld [vmem:[#allocation11 + $0x75c] sm:$0xf] }
 0x76e   :  { %v7527_v27 = vld [vmem:[#allocation11 + $0x858] sm:$0xf]  ;;  %v8328_v0 = vor.u32 %v8964_v59, %v8327_v57  ;;  %6183 = vmatpush.bf16.msrb.mxu2 %v8072_v61  ;;  %v8600_v57 = vld [vmem:[#allocation11 + $0x35c] sm:$0xf]  ;;  %v6636_v61 = vor.u32 %v8536_v54, %v6633_v63 }
 0x76f   :  { %v8764_v40 = vld [vmem:[#allocation11 + $0x874] sm:$0xf0]  ;;  %v6889_v59 = vld [vmem:[#allocation11 + $0x378] sm:$0xf0] }
 0x770   :  { %v7783_v56 = vld [vmem:[#allocation11 + $0xa58] sm:$0xf]  ;;  %v7528_v7 = vor.u32 %v8764_v40, %v7527_v27  ;;  %6196 = vmatpush.bf16.msrb.mxu3 %v8328_v0  ;;  %v7401_v27 = vld [vmem:[#allocation11 + $0x778] sm:$0xf0]  ;;  %v6892_v0 = vor.u32 %v8600_v57, %v6889_v59 }
 0x771   :  { %v8828_v23 = vld [vmem:[#allocation11 + $0xa74] sm:$0xf0]  ;;  %v12054_v40 = vld [vmem:[#allocation1 + $0x36] sm:$0xff] }
 0x772   :  { %v8039_v52 = vld [vmem:[#allocation11 + $0xc58] sm:$0xf]  ;;  %v7784_v28 = vor.u32 %v8828_v23, %v7783_v56  ;;  %6158 = vmatpush.bf16.msrb.mxu0 %v7528_v7  ;;  %v8528_v56 = vld [vmem:[#allocation11 + $0x11c] sm:$0xf] }
 0x773   :  { %v8892_v5 = vld [vmem:[#allocation11 + $0xc74] sm:$0xf0]  ;;  %v6601_v23 = vld [vmem:[#allocation11 + $0x138] sm:$0xf0] }
 0x774   :  { %v8295_v41 = vld [vmem:[#allocation11 + $0xe58] sm:$0xf]  ;;  %v8040_v22 = vor.u32 %v8892_v5, %v8039_v52  ;;  %6171 = vmatpush.bf16.msrb.mxu1 %v7784_v28  ;;  %v7148_v52 = vor.u32 %v8664_v21, %v7145_v16  ;;  %v7404_v5 = vor.u32 %v8728_v60, %v7401_v27  ;;  %v7113_v7 = vld [vmem:[#allocation11 + $0x538] sm:$0xf0] }
 0x775   :  { %v8956_v37 = vld [vmem:[#allocation11 + $0xe74] sm:$0xf0]  ;;  %v8720_v28 = vld [vmem:[#allocation11 + $0x71c] sm:$0xf] }
 0x776   :  { %v7495_v43 = vld [vmem:[#allocation11 + $0x818] sm:$0xf]  ;;  %v8296_v24 = vor.u32 %v8956_v37, %v8295_v41  ;;  %6184 = vmatpush.bf16.msrb.mxu2 %v8040_v22  ;;  %v8592_v41 = vld [vmem:[#allocation11 + $0x31c] sm:$0xf]  ;;  %v6604_v22 = vor.u32 %v8528_v56, %v6601_v23 }
 0x777   :  { %v8756_v10 = vld [vmem:[#allocation11 + $0x834] sm:$0xf0]  ;;  %v6857_v37 = vld [vmem:[#allocation11 + $0x338] sm:$0xf0] }
 0x778   :  { %v7751_v6 = vld [vmem:[#allocation11 + $0xa18] sm:$0xf]  ;;  %v7496_v48 = vor.u32 %v8756_v10, %v7495_v43  ;;  %6197 = vmatpush.bf16.msrb.mxu3 %v8296_v24  ;;  %v8656_v43 = vld [vmem:[#allocation11 + $0x51c] sm:$0xf]  ;;  %v6860_v24 = vor.u32 %v8592_v41, %v6857_v37 }
 0x779   :  { %v8820_v47 = vld [vmem:[#allocation11 + $0xa34] sm:$0xf0]  ;;  %v7369_v10 = vld [vmem:[#allocation11 + $0x738] sm:$0xf0] }
 0x77a   :  { %v8007_v55 = vld [vmem:[#allocation11 + $0xc18] sm:$0xf]  ;;  %v7752_v13 = vor.u32 %v8820_v47, %v7751_v6  ;;  %6159 = vmatpush.bf16.msrb.mxu0 %v7496_v48  ;;  %v5953_v6 = vpop.f32.mrf.mxu0  ;;  %v5966_v47 = vpop.f32.mrf.mxu1  ;;  %v7372_v30 = vor.u32 %v8720_v28, %v7369_v10  ;;  %v7081_v34 = vld [vmem:[#allocation11 + $0x4f8] sm:$0xf0] }
 0x77b   :  { %v8884_v18 = vld [vmem:[#allocation11 + $0xc34] sm:$0xf0]  ;;  %v8712_v4 = vld [vmem:[#allocation11 + $0x6dc] sm:$0xf]  ;;  %v7084_v8 = vor.u32 %v8648_v3, %v7081_v34  ;;  %v5994_v28 = vpop.f32.mrf.mxu3 }
 0x77c   :  { %v8263_v2 = vld [vmem:[#allocation11 + $0xe18] sm:$0xf]  ;;  %v8008_v58 = vor.u32 %v8884_v18, %v8007_v55  ;;  %6172 = vmatpush.bf16.msrb.mxu1 %v7752_v13  ;;  %v8520_v55 = vld [vmem:[#allocation11 + $0xdc] sm:$0xf] }
 0x77d   :  { %v8948_v62 = vld [vmem:[#allocation11 + $0xe34] sm:$0xf0]  ;;  %6160 = vmatmul.bf16.vlgmr.msrb.gmra.mxu0 %v12048_v44  ;;  %v6569_v18 = vld [vmem:[#allocation11 + $0xf8] sm:$0xf0] }
 0x77e   :  { %v8264_v25 = vor.u32 %v8948_v62, %v8263_v2  ;;  %6185 = vmatpush.bf16.msrb.mxu2 %v8008_v58  ;;  %6204 = vmatpush.bf16.msra.mxu0 %v6700_v36  ;;  %v12051_v53 = vld [vmem:[#allocation1 + $0x2d] sm:$0xff]  ;;  %v7116_v2 = vor.u32 %v8656_v43, %v7113_v7  ;;  %v6825_v62 = vld [vmem:[#allocation11 + $0x2f8] sm:$0xf0]  ;;  %v6572_v48 = vor.u32 %v8520_v55, %v6569_v18 }
 0x77f   :  { %6173 = vmatmul.bf16.vlgmr.msrb.gmra.mxu1 %v12051_v53  ;;  %v7337_v15 = vld [vmem:[#allocation11 + $0x6f8] sm:$0xf0]  ;;  %v6828_v13 = vor.u32 %v8584_v42, %v6825_v62 }
 0x780   :  { %6198 = vmatpush.bf16.msrb.mxu3 %v8264_v25  ;;  %6217 = vmatpush.bf16.msra.mxu1 %v6956_v38  ;;  %v6537_v45 = vld [vmem:[#allocation11 + $0xb8] sm:$0xf0]  ;;  %v7340_v31 = vor.u32 %v8712_v4, %v7337_v15  ;;  %v5979_v38 = vpop.f32.mrf.mxu2 }
 0x781   :  { %6186 = vmatmul.bf16.vlgmr.msrb.gmra.mxu2 %v12054_v40  ;;  %v8576_v58 = vld [vmem:[#allocation11 + $0x29c] sm:$0xf] }
 0x782   :  { %6230 = vmatpush.bf16.msra.mxu2 %v7212_v33  ;;  %6205 = vmatpush.bf16.msra.mxu0 %v6668_v51  ;;  %v6793_v25 = vld [vmem:[#allocation11 + $0x2b8] sm:$0xf0]  ;;  %v5955_v49 = vpop.f32.mrf.mxu0  ;;  %v5968_v46 = vpop.f32.mrf.mxu1 }
 0x783   :  { %6199 = vmatmul.bf16.vlgmr.msrb.gmra.mxu3 %v12032_v29  ;;  %v5954_v29 = vadd.f32 %v5953_v6, %v12046_v17  ;;  %v8512_v17 = vld [vmem:[#allocation11 + $0x9c] sm:$0xf]  ;;  %v6796_v26 = vor.u32 %v8576_v58, %v6793_v25 }
 0x784   :  { %6243 = vmatpush.bf16.msra.mxu3 %v7468_v50  ;;  %6218 = vmatpush.bf16.msra.mxu1 %v6924_v14  ;;  %v8640_v36 = vld [vmem:[#allocation11 + $0x49c] sm:$0xf]  ;;  %v6540_v9 = vor.u32 %v8512_v17, %v6537_v45 }
 0x785   :  { %v5967_v11 = vadd.f32 %v5966_v47, %v5954_v29  ;;  %v7049_v32 = vld [vmem:[#allocation11 + $0x4b8] sm:$0xf0] }
 0x786   :  { %6231 = vmatpush.bf16.msra.mxu2 %v7180_v1  ;;  %6206 = vmatpush.bf16.msra.mxu0 %v6636_v61  ;;  %v8704_v33 = vld [vmem:[#allocation11 + $0x69c] sm:$0xf]  ;;  %v7052_v54 = vor.u32 %v8640_v36, %v7049_v32 }
 0x787   :  { %v7305_v50 = vld [vmem:[#allocation11 + $0x6b8] sm:$0xf0]  ;;  %v5980_v19 = vadd.f32 %v5979_v38, %v5967_v11 }
 0x788   :  { %6244 = vmatpush.bf16.msra.mxu3 %v7436_v35  ;;  %6219 = vmatpush.bf16.msra.mxu1 %v6892_v0  ;;  %v8504_v12 = vld [vmem:[#allocation11 + $0x5c] sm:$0xf]  ;;  %v7308_v63 = vor.u32 %v8704_v33, %v7305_v50  ;;  %v5981_v7 = vpop.f32.mrf.mxu2 }
 0x789   :  { %v6505_v51 = vld [vmem:[#allocation11 + $0x78] sm:$0xf0]  ;;  %v12059_v14 = vadd.f32 %v5992_v39, %v5980_v19 }
 0x78a   :  { %6232 = vmatpush.bf16.msra.mxu2 %v7148_v52  ;;  %6207 = vmatpush.bf16.msra.mxu0 %v6604_v22  ;;  %v8568_v1 = vld [vmem:[#allocation11 + $0x25c] sm:$0xf]  ;;  %v6508_v27 = vor.u32 %v8504_v12, %v6505_v51 }
 0x78b   :  { %v6761_v35 = vld [vmem:[#allocation11 + $0x278] sm:$0xf0] }
 0x78c   :  { %6245 = vmatpush.bf16.msra.mxu3 %v7404_v5  ;;  %6220 = vmatpush.bf16.msra.mxu1 %v6860_v24  ;;  %v8632_v57 = vld [vmem:[#allocation11 + $0x45c] sm:$0xf]  ;;  %v6764_v61 = vor.u32 %v8568_v1, %v6761_v35  ;;  %v9065_v1 = vld [vmem:[#allocation1 + $0x1b] sm:$0xff] }
 0x78d   :  { %v7017_v59 = vld [vmem:[#allocation11 + $0x478] sm:$0xf0] }
 0x78e   :  { %6233 = vmatpush.bf16.msra.mxu2 %v7116_v2  ;;  %6208 = vmatpush.bf16.msra.mxu0 %v6572_v48  ;;  %v8696_v21 = vld [vmem:[#allocation11 + $0x65c] sm:$0xf]  ;;  %v7020_v52 = vor.u32 %v8632_v57, %v7017_v59 }
 0x78f   :  { %v7273_v16 = vld [vmem:[#allocation11 + $0x678] sm:$0xf0] }
 0x790   :  { %6246 = vmatpush.bf16.msra.mxu3 %v7372_v30  ;;  %6221 = vmatpush.bf16.msra.mxu1 %v6828_v13  ;;  %v8496_v60 = vld [vmem:[#allocation11 + $0x1c] sm:$0xf]  ;;  %v7276_v5 = vor.u32 %v8696_v21, %v7273_v16 }
 0x791   :  { %v6473_v0 = vld [vmem:[#allocation11 + $0x38] sm:$0xf0] }
 0x792   :  { %6234 = vmatpush.bf16.msra.mxu2 %v7084_v8  ;;  %6209 = vmatpush.bf16.msra.mxu0 %v6540_v9  ;;  %v8560_v56 = vld [vmem:[#allocation11 + $0x21c] sm:$0xf]  ;;  %v6476_v55 = vor.u32 %v8496_v60, %v6473_v0  ;;  %v9062_v9 = vld [vmem:[#allocation1] sm:$0xff] }
 0x793   :  { %v6729_v23 = vld [vmem:[#allocation11 + $0x238] sm:$0xf0] }
 0x794   :  { %6247 = vmatpush.bf16.msra.mxu3 %v7340_v31  ;;  %6222 = vmatpush.bf16.msra.mxu1 %v6796_v26  ;;  %v8624_v41 = vld [vmem:[#allocation11 + $0x41c] sm:$0xf]  ;;  %v6732_v18 = vor.u32 %v8560_v56, %v6729_v23  ;;  %v9063_v26 = vld [vmem:[#allocation1 + $0x9] sm:$0xff] }
 0x795   :  { %v6985_v37 = vld [vmem:[#allocation11 + $0x438] sm:$0xf0] }
 0x796   :  { %6235 = vmatpush.bf16.msra.mxu2 %v7052_v54  ;;  %v8688_v43 = vld [vmem:[#allocation11 + $0x61c] sm:$0xf]  ;;  %6210 = vmatpush.bf16.msra.mxu0 %v6508_v27  ;;  %v6988_v62 = vor.u32 %v8624_v41, %v6985_v37  ;;  %v6018_v41 = vpop.f32.mrf.mxu1 }
 0x797   :  { %v7241_v10 = vld [vmem:[#allocation11 + $0x638] sm:$0xf0] }
 0x798   :  { %6248 = vmatpush.bf16.msra.mxu3 %v7308_v63  ;;  %v8808_v6 = vld [vmem:[#allocation11 + $0x9dc] sm:$0xf]  ;;  %6223 = vmatpush.bf16.msra.mxu1 %v6764_v61  ;;  %v7244_v3 = vor.u32 %v8688_v43, %v7241_v10 }
 0x799   :  { %v7721_v47 = vld [vmem:[#allocation11 + $0x9f8] sm:$0xf0] }
 0x79a   :  { %v8872_v29 = vld [vmem:[#allocation11 + $0xbdc] sm:$0xf]  ;;  %6236 = vmatpush.bf16.msra.mxu2 %v7020_v52  ;;  %v7724_v11 = vor.u32 %v8808_v6, %v7721_v47  ;;  %6211 = vmatpush.bf16.msra.mxu0 %v6476_v55 }
 0x79b   :  { %v7977_v22 = vld [vmem:[#allocation11 + $0xbf8] sm:$0xf0] }
 0x79c   :  { %v8936_v24 = vld [vmem:[#allocation11 + $0xddc] sm:$0xf]  ;;  %6249 = vmatpush.bf16.msra.mxu3 %v7276_v5  ;;  %v7980_v34 = vor.u32 %v8872_v29, %v7977_v22  ;;  %6224 = vmatpush.bf16.msra.mxu1 %v6732_v18  ;;  %v6005_v5 = vpop.f32.mrf.mxu0 }
 0x79d   :  { %v8233_v2 = vld [vmem:[#allocation11 + $0xdf8] sm:$0xf0]  ;;  %6212 = vmatmul.bf16.vlgmr.msra.gmra.mxu0 %v9062_v9  ;;  %v6019_v37 = vadd.f32 %v6018_v41, %v6005_v5 }
 0x79e   :  { %v9000_v30 = vld [vmem:[#allocation11 + $0xfdc] sm:$0xf]  ;;  %v8236_v48 = vor.u32 %v8936_v24, %v8233_v2  ;;  %6237 = vmatpush.bf16.msra.mxu2 %v6988_v62  ;;  %6256 = vmatpush.bf16.msrb.mxu0 %v7724_v11 }
 0x79f   :  { %v8489_v42 = vld [vmem:[#allocation11 + $0xff8] sm:$0xf0]  ;;  %6225 = vmatmul.bf16.vlgmr.msra.gmra.mxu1 %v9063_v26 }
 0x7a0   :  { %v8800_v4 = vld [vmem:[#allocation11 + $0x99c] sm:$0xf]  ;;  %v8492_v13 = vor.u32 %v9000_v30, %v8489_v42  ;;  %6250 = vmatpush.bf16.msra.mxu3 %v7244_v3  ;;  %6269 = vmatpush.bf16.msrb.mxu1 %v7980_v34 }
 0x7a1   :  { %v7689_v15 = vld [vmem:[#allocation11 + $0x9b8] sm:$0xf0] }
 0x7a2   :  { %v8864_v17 = vld [vmem:[#allocation11 + $0xb9c] sm:$0xf]  ;;  %v7692_v36 = vor.u32 %v8800_v4, %v7689_v15  ;;  %6282 = vmatpush.bf16.msrb.mxu2 %v8236_v48 }
 0x7a3   :  { %v7945_v45 = vld [vmem:[#allocation11 + $0xbb8] sm:$0xf0]  ;;  %6251 = vmatmul.bf16.vlgmr.msra.gmra.mxu3 %v9065_v1 }
 0x7a4   :  { %v8928_v8 = vld [vmem:[#allocation11 + $0xd9c] sm:$0xf]  ;;  %v7948_v38 = vor.u32 %v8864_v17, %v7945_v45  ;;  %6295 = vmatpush.bf16.msrb.mxu3 %v8492_v13  ;;  %6257 = vmatpush.bf16.msrb.mxu0 %v7692_v36  ;;  %v6031_v13 = vpop.f32.mrf.mxu2  ;;  %v6044_v17 = vpop.f32.mrf.mxu3 }
 0x7a5   :  { %v8201_v31 = vld [vmem:[#allocation11 + $0xdb8] sm:$0xf0]  ;;  %v6020_v36 = vpop.f32.mrf.mxu1 }
 0x7a6   :  { %v8992_v58 = vld [vmem:[#allocation11 + $0xf9c] sm:$0xf]  ;;  %v8204_v33 = vor.u32 %v8928_v8, %v8201_v31  ;;  %6270 = vmatpush.bf16.msrb.mxu1 %v7948_v38 }
 0x7a7   :  { %v8457_v25 = vld [vmem:[#allocation11 + $0xfb8] sm:$0xf0] }
 0x7a8   :  { %v8792_v39 = vld [vmem:[#allocation11 + $0x95c] sm:$0xf]  ;;  %v8460_v50 = vor.u32 %v8992_v58, %v8457_v25  ;;  %6283 = vmatpush.bf16.msrb.mxu2 %v8204_v33  ;;  %v6032_v58 = vadd.f32 %v6031_v13, %v6019_v37  ;;  %v6007_v25 = vpop.f32.mrf.mxu0 }
 0x7a9   :  { %v7657_v32 = vld [vmem:[#allocation11 + $0x978] sm:$0xf0] }
 0x7aa   :  { %v8856_v19 = vld [vmem:[#allocation11 + $0xb5c] sm:$0xf]  ;;  %v7660_v35 = vor.u32 %v8792_v39, %v7657_v32  ;;  %6296 = vmatpush.bf16.msrb.mxu3 %v8460_v50  ;;  %v6045_v50 = vadd.f32 %v6044_v17, %v6032_v58 }
 0x7ab   :  { %v7913_v49 = vld [vmem:[#allocation11 + $0xb78] sm:$0xf0] }
 0x7ac   :  { %v8920_v46 = vld [vmem:[#allocation11 + $0xd5c] sm:$0xf]  ;;  %v7916_v57 = vor.u32 %v8856_v19, %v7913_v49  ;;  %6258 = vmatpush.bf16.msrb.mxu0 %v7660_v35 }
 0x7ad   :  { %v8169_v12 = vld [vmem:[#allocation11 + $0xd78] sm:$0xf0] }
 0x7ae   :  { %v8984_v51 = vld [vmem:[#allocation11 + $0xf5c] sm:$0xf]  ;;  %v8172_v16 = vor.u32 %v8920_v46, %v8169_v12  ;;  %6271 = vmatpush.bf16.msrb.mxu1 %v7916_v57 }
 0x7af   :  { %v8425_v54 = vld [vmem:[#allocation11 + $0xf78] sm:$0xf0] }
 0x7b0   :  { %v9064_v63 = vld [vmem:[#allocation1 + $0x12] sm:$0xff]  ;;  %v8428_v60 = vor.u32 %v8984_v51, %v8425_v54  ;;  %6284 = vmatpush.bf16.msrb.mxu2 %v8172_v16 }
 0x7b1   :  { %6238 = vmatmul.bf16.vlgmr.msra.gmra.mxu2 %v9064_v63  ;;  %v8784_v59 = vld [vmem:[#allocation11 + $0x91c] sm:$0xf] }
 0x7b2   :  { %v7625_v21 = vld [vmem:[#allocation11 + $0x938] sm:$0xf0]  ;;  %6297 = vmatpush.bf16.msrb.mxu3 %v8428_v60 }
 0x7b3   :  { %v8848_v27 = vld [vmem:[#allocation11 + $0xb1c] sm:$0xf]  ;;  %v7628_v43 = vor.u32 %v8784_v59, %v7625_v21 }
 0x7b4   :  { %v7881_v61 = vld [vmem:[#allocation11 + $0xb38] sm:$0xf0] }
 0x7b5   :  { %v8912_v0 = vld [vmem:[#allocation11 + $0xd1c] sm:$0xf]  ;;  %v7884_v7 = vor.u32 %v8848_v27, %v7881_v61  ;;  %6259 = vmatpush.bf16.msrb.mxu0 %v7628_v43  ;;  %v6033_v61 = vpop.f32.mrf.mxu2 }
 0x7b6   :  { %v8137_v56 = vld [vmem:[#allocation11 + $0xd38] sm:$0xf0] }
 0x7b7   :  { %v8976_v23 = vld [vmem:[#allocation11 + $0xf1c] sm:$0xf]  ;;  %v8140_v6 = vor.u32 %v8912_v0, %v8137_v56  ;;  %6272 = vmatpush.bf16.msrb.mxu1 %v7884_v7  ;;  %v6046_v0 = vpop.f32.mrf.mxu3  ;;  %v9066_v7 = vld [vmem:[#allocation1 + $0x3f] sm:$0xff] }
 0x7b8   :  { %v8393_v52 = vld [vmem:[#allocation11 + $0xf38] sm:$0xf0] }
 0x7b9   :  { %v8776_v28 = vld [vmem:[#allocation11 + $0x8dc] sm:$0xf]  ;;  %v8396_v47 = vor.u32 %v8976_v23, %v8393_v52  ;;  %6285 = vmatpush.bf16.msrb.mxu2 %v8140_v6 }
 0x7ba   :  { %v7593_v10 = vld [vmem:[#allocation11 + $0x8f8] sm:$0xf0] }
 0x7bb   :  { %v8840_v29 = vld [vmem:[#allocation11 + $0xadc] sm:$0xf]  ;;  %v7596_v30 = vor.u32 %v8776_v28, %v7593_v10  ;;  %6298 = vmatpush.bf16.msrb.mxu3 %v8396_v47  ;;  %v6057_v28 = vpop.f32.mrf.mxu0  ;;  %v6070_v10 = vpop.f32.mrf.mxu1 }
 0x7bc   :  { %v7849_v22 = vld [vmem:[#allocation11 + $0xaf8] sm:$0xf0]  ;;  %v6058_v6 = vadd.f32 %v6057_v28, %v6045_v50 }
 0x7bd   :  { %v8904_v24 = vld [vmem:[#allocation11 + $0xcdc] sm:$0xf]  ;;  %v7852_v42 = vor.u32 %v8840_v29, %v7849_v22  ;;  %6260 = vmatpush.bf16.msrb.mxu0 %v7596_v30  ;;  %v6083_v29 = vpop.f32.mrf.mxu2  ;;  %v6319_v30 = vrot.slane %v12059_v14, 4 }
 0x7be   :  { %v8105_v55 = vld [vmem:[#allocation11 + $0xcf8] sm:$0xf0]  ;;  %v6071_v47 = vadd.f32 %v6070_v10, %v6058_v6 }
 0x7bf   :  { %v8968_v18 = vld [vmem:[#allocation11 + $0xedc] sm:$0xf]  ;;  %v8108_v11 = vor.u32 %v8904_v24, %v8105_v55  ;;  %6273 = vmatpush.bf16.msrb.mxu1 %v7852_v42  ;;  %v6096_v22 = vpop.f32.mrf.mxu3 }
 0x7c0   :  { %v8361_v2 = vld [vmem:[#allocation11 + $0xef8] sm:$0xf0]  ;;  %v6084_v24 = vadd.f32 %v6083_v29, %v6071_v47  ;;  %v6344_v47 = vld [vmem:[#allocation12] sm:$0xff] }
 0x7c1   :  { %v8768_v62 = vld [vmem:[#allocation11 + $0x89c] sm:$0xf]  ;;  %v8364_v34 = vor.u32 %v8968_v18, %v8361_v2  ;;  %6286 = vmatpush.bf16.msrb.mxu2 %v8108_v11 }
 0x7c2   :  { %v7561_v3 = vld [vmem:[#allocation11 + $0x8b8] sm:$0xf0]  ;;  %v6097_v2 = vadd.f32 %v6096_v22, %v6084_v24 }
 0x7c3   :  { %v8832_v4 = vld [vmem:[#allocation11 + $0xa9c] sm:$0xf]  ;;  %v7564_v38 = vor.u32 %v8768_v62, %v7561_v3  ;;  %6299 = vmatpush.bf16.msrb.mxu3 %v8364_v34  ;;  %v6059_v55 = vpop.f32.mrf.mxu0  ;;  %v6072_v18 = vpop.f32.mrf.mxu1 }
 0x7c4   :  { %v7817_v15 = vld [vmem:[#allocation11 + $0xab8] sm:$0xf0]  ;;  %v6320_v42 = vrot.slane %v6097_v2, 3 }
 0x7c5   :  { %v8896_v48 = vld [vmem:[#allocation11 + $0xc9c] sm:$0xf]  ;;  %v7820_v39 = vor.u32 %v8832_v4, %v7817_v15  ;;  %6261 = vmatpush.bf16.msrb.mxu0 %v7564_v38 }
 0x7c6   :  { %v8073_v45 = vld [vmem:[#allocation11 + $0xcb8] sm:$0xf0] }
 0x7c7   :  { %v8960_v8 = vld [vmem:[#allocation11 + $0xe9c] sm:$0xf]  ;;  %v8076_v19 = vor.u32 %v8896_v48, %v8073_v45  ;;  %6274 = vmatpush.bf16.msrb.mxu1 %v7820_v39  ;;  %v6098_v62 = vpop.f32.mrf.mxu3 }
 0x7c8   :  { %v8329_v31 = vld [vmem:[#allocation11 + $0xeb8] sm:$0xf0] }
 0x7c9   :  { %v8760_v32 = vld [vmem:[#allocation11 + $0x85c] sm:$0xf]  ;;  %v8332_v49 = vor.u32 %v8960_v8, %v8329_v31  ;;  %6287 = vmatpush.bf16.msrb.mxu2 %v8076_v19 }
 0x7ca   :  { %v7529_v33 = vld [vmem:[#allocation11 + $0x878] sm:$0xf0] }
 0x7cb   :  { %v8824_v46 = vld [vmem:[#allocation11 + $0xa5c] sm:$0xf]  ;;  %v7532_v63 = vor.u32 %v8760_v32, %v7529_v33  ;;  %6300 = vmatpush.bf16.msrb.mxu3 %v8332_v49  ;;  %v6122_v3 = vpop.f32.mrf.mxu1 }
 0x7cc   :  { %v7785_v9 = vld [vmem:[#allocation11 + $0xa78] sm:$0xf0] }
 0x7cd   :  { %v8888_v26 = vld [vmem:[#allocation11 + $0xc5c] sm:$0xf]  ;;  %v7788_v1 = vor.u32 %v8824_v46, %v7785_v9  ;;  %6262 = vmatpush.bf16.msrb.mxu0 %v7532_v63 }
 0x7ce   :  { %v8041_v12 = vld [vmem:[#allocation11 + $0xc78] sm:$0xf0] }
 0x7cf   :  { %v8952_v51 = vld [vmem:[#allocation11 + $0xe5c] sm:$0xf]  ;;  %v8044_v59 = vor.u32 %v8888_v26, %v8041_v12  ;;  %6275 = vmatpush.bf16.msrb.mxu1 %v7788_v1  ;;  %v6148_v4 = vpop.f32.mrf.mxu3 }
 0x7d0   :  { %v8297_v54 = vld [vmem:[#allocation11 + $0xe78] sm:$0xf0] }
 0x7d1   :  { %v8752_v35 = vld [vmem:[#allocation11 + $0x81c] sm:$0xf]  ;;  %v8300_v21 = vor.u32 %v8952_v51, %v8297_v54  ;;  %6288 = vmatpush.bf16.msrb.mxu2 %v8044_v59 }
 0x7d2   :  { %v7497_v57 = vld [vmem:[#allocation11 + $0x838] sm:$0xf0] }
 0x7d3   :  { %v8816_v16 = vld [vmem:[#allocation11 + $0xa1c] sm:$0xf]  ;;  %v7500_v5 = vor.u32 %v8752_v35, %v7497_v57  ;;  %6301 = vmatpush.bf16.msrb.mxu3 %v8300_v21  ;;  %v6124_v13 = vpop.f32.mrf.mxu1 }
 0x7d4   :  { %v7753_v60 = vld [vmem:[#allocation11 + $0xa38] sm:$0xf0] }
 0x7d5   :  { %v8880_v27 = vld [vmem:[#allocation11 + $0xc1c] sm:$0xf]  ;;  %v7756_v41 = vor.u32 %v8816_v16, %v7753_v60  ;;  %6263 = vmatpush.bf16.msrb.mxu0 %v7500_v5 }
 0x7d6   :  { %v8009_v56 = vld [vmem:[#allocation11 + $0xc38] sm:$0xf0] }
 0x7d7   :  { %v8944_v23 = vld [vmem:[#allocation11 + $0xe1c] sm:$0xf]  ;;  %v8012_v37 = vor.u32 %v8880_v27, %v8009_v56  ;;  %6276 = vmatpush.bf16.msrb.mxu1 %v7756_v41  ;;  %v6150_v8 = vpop.f32.mrf.mxu3 }
 0x7d8   :  { %v8265_v52 = vld [vmem:[#allocation11 + $0xe38] sm:$0xf0]  ;;  %6264 = vmatmul.bf16.vlgmr.msrb.gmra.mxu0 %v12048_v44  ;;  %v6330_v44 = vsel %vm12761_vm3, %v6319_v30, %v6320_v42 }
 0x7d9   :  { %v8268_v43 = vor.u32 %v8944_v23, %v8265_v52  ;;  %6289 = vmatpush.bf16.msrb.mxu2 %v8012_v37 }
 0x7da   :  { %6277 = vmatmul.bf16.vlgmr.msrb.gmra.mxu1 %v12051_v53  ;;  %v6085_v53 = vpop.f32.mrf.mxu2 }
 0x7db   :  { %6302 = vmatpush.bf16.msrb.mxu3 %v8268_v43 }
 0x7dc   :  { %6290 = vmatmul.bf16.vlgmr.msrb.gmra.mxu2 %v12054_v40  ;;  %v6109_v40 = vpop.f32.mrf.mxu0 }
 0x7dd   :  { %v6123_v11 = vadd.f32 %v6122_v3, %v6109_v40 }
 0x7de   :  { %6303 = vmatmul.bf16.vlgmr.msrb.gmra.mxu3 %v9066_v7 }
 0x7e2   :  { %v6135_v34 = vpop.f32.mrf.mxu2 }
 0x7e3   :  { %v6136_v15 = vadd.f32 %v6135_v34, %v6123_v11 }
 0x7e4   :  { %v6111_v48 = vpop.f32.mrf.mxu0 }
 0x7e5   :  { %v6149_v17 = vadd.f32 %v6148_v4, %v6136_v15 }
 0x7ea   :  { %v6137_v45 = vpop.f32.mrf.mxu2 }
 0x7fa   :  { %v6161_v31 = vpop.f32.mrf.mxu0 }
 0x7fb   :  { %v6162_v25 = vadd.f32 %v6161_v31, %v6149_v17 }
 0x7fc   :  { %v6174_v58 = vpop.f32.mrf.mxu1 }
 0x7fd   :  { %v6175_v14 = vadd.f32 %v6174_v58, %v6162_v25 }
 0x802   :  { %v6163_v39 = vpop.f32.mrf.mxu0 }
 0x804   :  { %v6187_v36 = vpop.f32.mrf.mxu2  ;;  %v6176_v32 = vpop.f32.mrf.mxu1 }
 0x805   :  { %v6188_v16 = vadd.f32 %v6187_v36, %v6175_v14 }
 0x806   :  { %v6200_v38 = vpop.f32.mrf.mxu3 }
 0x807   :  { %v6201_v0 = vadd.f32 %v6200_v38, %v6188_v16 }
 0x809   :  { %v6321_v41 = vrot.slane %v6201_v0, 2 }
 0x80c   :  { %v6189_v33 = vpop.f32.mrf.mxu2 }
 0x80e   :  { %v6202_v50 = vpop.f32.mrf.mxu3 }
 0x81a   :  { %v6213_v19 = vpop.f32.mrf.mxu0 }
 0x81c   :  { %v6226_v49 = vpop.f32.mrf.mxu1 }
 0x81d   :  { %v6227_v63 = vadd.f32 %v6226_v49, %v6213_v19 }
 0x822   :  { %v6215_v26 = vpop.f32.mrf.mxu0 }
 0x824   :  { %v6228_v12 = vpop.f32.mrf.mxu1 }
 0x826   :  { %v6252_v9 = vpop.f32.mrf.mxu3 }
 0x82e   :  { %v6254_v54 = vpop.f32.mrf.mxu3 }
 0x834   :  { %v6239_v46 = vpop.f32.mrf.mxu2 }
 0x835   :  { %v6240_v1 = vadd.f32 %v6239_v46, %v6227_v63 }
 0x837   :  { %v6253_v35 = vadd.f32 %v6252_v9, %v6240_v1 }
 0x83c   :  { %v6241_v51 = vpop.f32.mrf.mxu2 }
 0x855   :  { %v6265_v57 = vpop.f32.mrf.mxu0 }
 0x856   :  { %v6266_v21 = vadd.f32 %v6265_v57, %v6253_v35 }
 0x857   :  { %v6278_v59 = vpop.f32.mrf.mxu1 }
 0x858   :  { %v6279_v60 = vadd.f32 %v6278_v59, %v6266_v21 }
 0x85d   :  { %v6267_v23 = vpop.f32.mrf.mxu0 }
 0x85f   :  { %v6291_v27 = vpop.f32.mrf.mxu2  ;;  %v6280_v52 = vpop.f32.mrf.mxu1 }
 0x860   :  { %v6292_v56 = vadd.f32 %v6291_v27, %v6279_v60 }
 0x861   :  { %v6304_v61 = vpop.f32.mrf.mxu3 }
 0x862   :  { %v6305_v5 = vadd.f32 %v6304_v61, %v6292_v56 }
 0x864   :  { %v6322_v37 = vrot.slane %v6305_v5, 1 }
 0x866   :  { %v6332_v43 = vsel %vm12762_vm15, %v6321_v41, %v6322_v37 }
 0x867   :  { %v6334_v7 = vsel %vm12763_vm11, %v6330_v44, %v6332_v43  ;;  %v6293_v28 = vpop.f32.mrf.mxu2 }
 0x868   :  { %v6336_v6 = vsel %vm12764_vm5, %v12040_v20, %v6334_v7 }
 0x869   :  { %v6306_v10 = vpop.f32.mrf.mxu3  ;;  %v6345_v29 = vadd.f32 %v6344_v47, %v6336_v6 }
 0x86b   :  { %vm6346_vm0 = vcmp.ge.f32.partialorder %v6345_v29, 0.0  ;;  %v6347_v22 = vmul.f32 0.01, %v6345_v29 }
 0x86d   :  { %v6348_v24 = vsel %vm6346_vm0, %v6345_v29, %v6347_v22 }
 0x86e   :  { %6349 = vst [vmem:[#allocation14] sm:$0xff] %v6348_v24 }
 0x86f   :  { %6360 = dma.vmem_to_hbm [thread:$0]  %s6356_s0, 128, %s6358_s28, [#allocation6]  }
 0x870   :  { %9209 = dma.done.wait [#allocation6], 128  }
 0x871   :  { %9210 = vsyncadd [#allocation6], 4294967168 }
 0x872   :  { %6365 = vsyncpa [#allocation5], 1 }
 0x873   :  { %6366 = vsyncpa [#allocation9], 1 }
 0x874   :  { %6367 = vsyncpa [#allocation13], 1 }
 0x875   :  { %6368 = vsyncpa [#allocation6], 1 }
 0x876   :  { %6369 = vsyncpa [#allocation7], 1 }

</bundles_post_ra>
